<compile_context>
chip_gen: v7x
topology: tpu7x:2x2x1
jax: 0.10.0
libtpu: 0.0.40
codegen_flags: <defaults>
</compile_context>

<pallas_src>
import functools

import jax
import jax.numpy as jnp
import numpy as np
from jax.experimental import pallas as pl
from jax.experimental.pallas import tpu as pltpu


def _round_up(v, m):
    return ((v + m - 1) // m) * m


def _full_spec(shape):
    # whole array resident in VMEM (gridless call)
    return pl.BlockSpec(shape, lambda: (0,) * len(shape))


# packed-weight row offsets inside the single f32 weight operand (all multiples of 8)
_W2_OFF, _WF1_OFF, _WF2_OFF, _WF3_OFF, _BIAS_OFF = 0, 256, 768, 896, 1024
_WPACK_ROWS = 1032


# ---------------------------------------------------------------------------
# The fused LeNet forward kernel
# ---------------------------------------------------------------------------
def _lenet_fused_kernel(patches_ref, w1_ref, wpack_ref, out_ref,
                        c1_scr, p_scr, im_scr, o2_scr, fc_scr, *, n):
    f32 = jnp.float32
    R1 = 196 * n              # pooled1 rows:  row = (y*14 + x)*n + sample
    R2 = 136 * n              # conv2 rows:    row = (oy*14 + ox)*n + sample, oy < 10
    P1 = p_scr.shape[0]       # pooled1 scratch rows incl. zero tail

    def bias(i):              # (1, 128) row of the packed small-tensor block
        return wpack_ref[_BIAS_OFF + i:_BIAS_OFF + i + 1, :]

    # ---- conv1: ONE bf16 MXU matmul over all 4 pool-offset patch groups -------------
    c1_scr[...] = jnp.dot(patches_ref[...], w1_ref[...],
                          preferred_element_type=f32)              # (4*R1, 128) f32
    # 2x2 maxpool over the 4 offset groups; bias + relu hoisted out of the max
    # (both monotone, so max_d relu(x_d + b) == relu(max_d x_d + b)).
    m = jnp.maximum(jnp.maximum(c1_scr[0 * R1:1 * R1, :], c1_scr[1 * R1:2 * R1, :]),
                    jnp.maximum(c1_scr[2 * R1:3 * R1, :], c1_scr[3 * R1:4 * R1, :]))
    p_scr[0:R1, :] = jnp.maximum(m + bias(0), 0.0)
    p_scr[R1:P1, :] = jnp.zeros((P1 - R1, 128), f32)     # zero tail for shifted reads

    # ---- conv2 im2col: 25 static shifted-window copies into a K=256 slab -------------
    # slab[row, 8*t + c] = pooled1[sample, chan c, oy+ki, ox+kj],  t = ki*5 + kj.
    # Rows cover the 136 positions oy in [0,10), ox in [0,14); ox >= 10 rows are never
    # read downstream -- they only keep each tap copy a single contiguous slice.
    im_scr[...] = jnp.zeros_like(im_scr)                  # zero K-pad lanes 200:256
    for ki in range(5):
        for kj in range(5):
            t = ki * 5 + kj
            src = (ki * 14 + kj) * n                      # static offset
            im_scr[:, 8 * t:8 * t + 8] = p_scr[src:src + R2, 0:8]

    # ---- conv2: ONE wide-K (256) MXU matmul + bias + relu ----------------------------
    y2 = jnp.dot(im_scr[...], wpack_ref[_W2_OFF:_W2_OFF + 256, :],
                 preferred_element_type=f32)              # (R2, 128)
    o2_scr[...] = jnp.maximum(y2 + bias(1), 0.0)

    # ---- maxpool2 + torch.flatten folded into an (8, 512) fc1-input slab -------------
    fc_scr[...] = jnp.zeros_like(fc_scr)
    for pq in range(25):                                  # static, fully unrolled
        p2, q2 = pq // 5, pq % 5
        e = None
        for a in range(2):
            for b in range(2):
                r = ((2 * p2 + a) * 14 + (2 * q2 + b)) * n
                v = o2_scr[r:r + n, :]
                e = v if e is None else jnp.maximum(e, v)
        fc_scr[0:n, 16 * pq:16 * pq + 16] = e[:, 0:16]

    # ---- fc1 -> fc2 -> fc3: three lane-dense matmuls ---------------------------------
    h = jnp.dot(fc_scr[...], wpack_ref[_WF1_OFF:_WF1_OFF + 512, :],
                preferred_element_type=f32)
    h = jnp.maximum(h + bias(2), 0.0)
    h = jnp.dot(h, wpack_ref[_WF2_OFF:_WF2_OFF + 128, :], preferred_element_type=f32)
    h = jnp.maximum(h + bias(3), 0.0)
    out_ref[...] = (jnp.dot(h, wpack_ref[_WF3_OFF:_WF3_OFF + 128, :],
                            preferred_element_type=f32) + bias(4))


# ---------------------------------------------------------------------------
# Host-side prep (cheap, no big HBM inflation)
# ---------------------------------------------------------------------------
def _conv1_pool_patches(x):
    """x: (n,1,32,32) f32 -> (4*196*n, 32) bf16 conv1 im2col grouped by 2x2 pool offset.
    Rows ordered (y, x, sample) so all in-kernel windows are contiguous slices."""
    n = x.shape[0]
    img = x[:, 0]                                              # (n, 32, 32)
    cols = [img[:, ki:ki + 28, kj:kj + 28]                     # (n, 28, 28)
            for ki in range(5) for kj in range(5)]
    p = jnp.stack(cols, axis=-1)                               # (n, 28, 28, 25)
    groups = []
    for a in range(2):
        for b in range(2):
            g = p[:, a::2, b::2, :]                            # (n, 14, 14, 25)
            groups.append(jnp.transpose(g, (1, 2, 0, 3)).reshape(196 * n, 25))
    pat = jnp.concatenate(groups, axis=0)                      # (4*196n, 25)
    pat = jnp.pad(pat, ((0, 0), (0, 7)))                       # tap dim padded 25 -> 32
    return pat.astype(jnp.bfloat16)


def _prep_params(p):
    """Repack torch-layout weights: bf16 conv1 weight + ONE packed f32 array with
    conv2 / fc1 / fc2 / fc3 weights and all 5 biases (fewer DMA'd operands)."""
    f32 = jnp.float32
    # conv1: (6,1,5,5) -> (32 taps, 128 co), bf16
    w1 = jnp.transpose(p['conv1_w'].astype(f32).reshape(6, 25), (1, 0))          # (25, 6)
    w1p = jnp.zeros((32, 128), f32).at[:25, :6].set(w1).astype(jnp.bfloat16)

    wpack = jnp.zeros((_WPACK_ROWS, 128), f32)
    # conv2: (16,6,5,5) -> rows t*8+c of a (256,128) block, cols = co
    w2 = jnp.transpose(p['conv2_w'].astype(f32), (2, 3, 1, 0)).reshape(25, 6, 16)
    w2p = jnp.zeros((25, 8, 16), f32).at[:, :6, :].set(w2).reshape(200, 16)
    wpack = wpack.at[_W2_OFF:_W2_OFF + 200, :16].set(w2p)
    # fc1: (120, 400), torch feature = co*25 + s -> rows s*16 + co of a (512,128) block
    wf1 = jnp.transpose(p['fc1_w'].astype(f32).reshape(120, 16, 25), (2, 1, 0))  # (s,co,j)
    wpack = wpack.at[_WF1_OFF:_WF1_OFF + 400, :120].set(wf1.reshape(400, 120))
    # fc2 / fc3
    wpack = wpack.at[_WF2_OFF:_WF2_OFF + 120, :84].set(p['fc2_w'].astype(f32).T)
    wpack = wpack.at[_WF3_OFF:_WF3_OFF + 84, :10].set(p['fc3_w'].astype(f32).T)
    # all 5 biases as single packed rows
    wpack = wpack.at[_BIAS_OFF + 0, :6].set(p['conv1_b'].astype(f32))
    wpack = wpack.at[_BIAS_OFF + 1, :16].set(p['conv2_b'].astype(f32))
    wpack = wpack.at[_BIAS_OFF + 2, :120].set(p['fc1_b'].astype(f32))
    wpack = wpack.at[_BIAS_OFF + 3, :84].set(p['fc2_b'].astype(f32))
    wpack = wpack.at[_BIAS_OFF + 4, :10].set(p['fc3_b'].astype(f32))
    return w1p, wpack


def net_forward(x, params):
    n = x.shape[0]
    R1, R2 = 196 * n, 136 * n
    P1 = _round_up(204 * n, 8)               # pooled1 rows + zero tail (max tap offset 68)
    out_rows = max(8, _round_up(n, 8))       # FC rows padded to a multiple of 8

    patches = _conv1_pool_patches(x.astype(jnp.float32))       # (4*R1, 32) bf16
    w1p, wpack = _prep_params(params)

    flops = 2 * (4 * R1 * 32 * 128 + R2 * 256 * 128
                 + out_rows * 512 * 128 + 2 * out_rows * 128 * 128)
    bytes_accessed = (patches.size * 2 + w1p.size * 2 + wpack.size * 4
                      + out_rows * 128 * 4)

    # TODO(synk): on v7x add a parallel batch grid (dimension_semantics=("parallel",)) to
    # engage the second TensorCore and switch the slab/matmul inputs to bf16 on v6e/v7x;
    # at batch 2 the gridless single-TC form is launch/DMA bound, so it is left as-is.
    kernel = functools.partial(_lenet_fused_kernel, n=n)
    out = pl.pallas_call(
        kernel,
        out_shape=jax.ShapeDtypeStruct((out_rows, 128), jnp.float32),
        in_specs=[_full_spec(patches.shape), _full_spec(w1p.shape),
                  _full_spec(wpack.shape)],
        out_specs=_full_spec((out_rows, 128)),
        scratch_shapes=[
            pltpu.VMEM((4 * R1, 128), jnp.float32),    # conv1 pre-pool output
            pltpu.VMEM((P1, 128), jnp.float32),        # pooled1 (+ zero tail)
            pltpu.VMEM((R2, 256), jnp.float32),        # conv2 im2col slab (K=200 + pad)
            pltpu.VMEM((R2, 128), jnp.float32),        # relu(conv2 + b2)
            pltpu.VMEM((out_rows, 512), jnp.float32),  # fc1 input slab
        ],
        cost_estimate=pl.CostEstimate(flops=flops, transcendentals=0,
                                      bytes_accessed=bytes_accessed),
    )(patches, w1p, wpack)
    # padded rows / lanes are discarded; slice to the real logits
    return out[:n, :10]


# ---------------------------------------------------------------------------
# Deterministic parameter init (torch default-style uniform, synthetic)
# ---------------------------------------------------------------------------
def init_params(key):
    ks = jax.random.split(key, 10)

    def u(k, shape, fan_in):
        bound = 1.0 / np.sqrt(fan_in)
        return jax.random.uniform(k, shape, jnp.float32, -bound, bound)

    return {
        'conv1_w': u(ks[0], (6, 1, 5, 5), 1 * 25),
        'conv1_b': u(ks[1], (6,), 1 * 25),
        'conv2_w': u(ks[2], (16, 6, 5, 5), 6 * 25),
        'conv2_b': u(ks[3], (16,), 6 * 25),
        'fc1_w':   u(ks[4], (120, 400), 400),
        'fc1_b':   u(ks[5], (120,), 400),
        'fc2_w':   u(ks[6], (84, 120), 120),
        'fc2_b':   u(ks[7], (84,), 120),
        'fc3_w':   u(ks[8], (10, 84), 84),
        'fc3_b':   u(ks[9], (10,), 84),
    }


def reference_forward(x, p):
    """Pure-JAX reference of the PyTorch forward (sanity check)."""
    dn = ('NCHW', 'OIHW', 'NCHW')
    y = jax.lax.conv_general_dilated(x, p['conv1_w'], (1, 1), 'VALID',
                                     dimension_numbers=dn) + p['conv1_b'][None, :, None, None]
    y = jnp.maximum(y, 0.0)
    y = jax.lax.reduce_window(y, -jnp.inf, jax.lax.max, (1, 1, 2, 2), (1, 1, 2, 2), 'VALID')
    y = jax.lax.conv_general_dilated(y, p['conv2_w'], (1, 1), 'VALID',
                                     dimension_numbers=dn) + p['conv2_b'][None, :, None, None]
    y = jnp.maximum(y, 0.0)
    y = jax.lax.reduce_window(y, -jnp.inf, jax.lax.max, (1, 1, 2, 2), (1, 1, 2, 2), 'VALID')
    y = y.reshape(y.shape[0], -1)
    y = jnp.maximum(y @ p['fc1_w'].T + p['fc1_b'], 0.0)
    y = jnp.maximum(y @ p['fc2_w'].T + p['fc2_b'], 0.0)
    return y @ p['fc3_w'].T + p['fc3_b']


if __name__ == "__main__":
    key = jax.random.PRNGKey(0)
    k_params, k_x = jax.random.split(key)
    params = init_params(k_params)
    # LeNet geometry requires 32x32 input to reach 16*5*5 = 400 flattened features.
    x = jax.random.normal(k_x, (2, 1, 32, 32), dtype=jnp.float32)

    out = jax.block_until_ready(jax.jit(net_forward)(x, params))
    assert out.shape == (2, 10) and out.dtype == jnp.float32

    ref = jax.block_until_ready(reference_forward(x, params))
    np.testing.assert_allclose(np.asarray(out), np.asarray(ref), rtol=5e-2, atol=5e-2)

    print("KERNEL_OK")
</pallas_src>

<mosaic_0001>
module attributes {stable_mosaic.version = 11 : i64} {
  func.func @_lenet_fused_kernel(%arg0: memref<1568x32xbf16, #tpu.memory_space<vmem>>, %arg1: memref<32x128xbf16, #tpu.memory_space<vmem>>, %arg2: memref<1032x128xf32, #tpu.memory_space<vmem>>, %arg3: memref<8x128xf32, #tpu.memory_space<vmem>>, %arg4: memref<1568x128xf32, #tpu.memory_space<vmem>>, %arg5: memref<408x128xf32, #tpu.memory_space<vmem>>, %arg6: memref<272x256xf32, #tpu.memory_space<vmem>>, %arg7: memref<272x128xf32, #tpu.memory_space<vmem>>, %arg8: memref<8x512xf32, #tpu.memory_space<vmem>>) attributes {dimension_semantics = [], scalar_prefetch = 0 : i64, scratch_operands = 5 : i64, tpu.core_type = #tpu.core_type<tc>} {
    %c0 = arith.constant 0 : index
    %c0_0 = arith.constant 0 : index
    %0 = vector.load %arg0[%c0, %c0_0] : memref<1568x32xbf16, #tpu.memory_space<vmem>>, vector<1568x32xbf16>
    %c0_1 = arith.constant 0 : index
    %c0_2 = arith.constant 0 : index
    %1 = vector.load %arg1[%c0_1, %c0_2] : memref<32x128xbf16, #tpu.memory_space<vmem>>, vector<32x128xbf16>
    %cst = arith.constant dense<0.000000e+00> : vector<1568x128xf32>
    %2 = tpu.matmul %0, %1, %cst {dimension_numbers = #tpu.dot_dimension_numbers<[1], [0], [0], [1], [0, 0, 1, 1], [], []>} : vector<1568x32xbf16>, vector<32x128xbf16>, vector<1568x128xf32> -> vector<1568x128xf32>
    %c0_3 = arith.constant 0 : index
    %c0_4 = arith.constant 0 : index
    %3 = vector.load %arg4[%c0_3, %c0_4] : memref<1568x128xf32, #tpu.memory_space<vmem>>, vector<1568x128xf32>
    tpu.vector_store %arg4[%c0_3, %c0_4], %2 {strides = array<i32>} : memref<1568x128xf32, #tpu.memory_space<vmem>>, vector<1568x128xf32>,
    %c0_5 = arith.constant 0 : index
    %c0_6 = arith.constant 0 : index
    %4 = vector.load %arg4[%c0_5, %c0_6] : memref<1568x128xf32, #tpu.memory_space<vmem>>, vector<392x128xf32>
    %c392 = arith.constant 392 : index
    %c0_7 = arith.constant 0 : index
    %5 = vector.load %arg4[%c392, %c0_7] : memref<1568x128xf32, #tpu.memory_space<vmem>>, vector<392x128xf32>
    %6 = arith.maximumf %4, %5 : vector<392x128xf32>
    %c784 = arith.constant 784 : index
    %c0_8 = arith.constant 0 : index
    %7 = vector.load %arg4[%c784, %c0_8] : memref<1568x128xf32, #tpu.memory_space<vmem>>, vector<392x128xf32>
    %c1176 = arith.constant 1176 : index
    %c0_9 = arith.constant 0 : index
    %8 = vector.load %arg4[%c1176, %c0_9] : memref<1568x128xf32, #tpu.memory_space<vmem>>, vector<392x128xf32>
    %9 = arith.maximumf %7, %8 : vector<392x128xf32>
    %10 = arith.maximumf %6, %9 : vector<392x128xf32>
    %c1024 = arith.constant 1024 : index
    %c0_10 = arith.constant 0 : index
    %11 = vector.load %arg2[%c1024, %c0_10] : memref<1032x128xf32, #tpu.memory_space<vmem>>, vector<1x128xf32>
    %12 = vector.broadcast %11 : vector<1x128xf32> to vector<392x128xf32>
    %13 = arith.addf %10, %12 : vector<392x128xf32>
    %cst_11 = arith.constant 0.000000e+00 : f32
    %14 = vector.broadcast %cst_11 : f32 to vector<392x128xf32>
    %15 = arith.maximumf %13, %14 : vector<392x128xf32>
    %c0_12 = arith.constant 0 : index
    %c0_13 = arith.constant 0 : index
    %16 = vector.load %arg5[%c0_12, %c0_13] : memref<408x128xf32, #tpu.memory_space<vmem>>, vector<392x128xf32>
    tpu.vector_store %arg5[%c0_12, %c0_13], %15 {strides = array<i32>} : memref<408x128xf32, #tpu.memory_space<vmem>>, vector<392x128xf32>,
    %cst_14 = arith.constant 0.000000e+00 : f32
    %17 = vector.broadcast %cst_14 : f32 to vector<16x128xf32>
    %c392_15 = arith.constant 392 : index
    %c0_16 = arith.constant 0 : index
    %18 = vector.load %arg5[%c392_15, %c0_16] : memref<408x128xf32, #tpu.memory_space<vmem>>, vector<16x128xf32>
    tpu.vector_store %arg5[%c392_15, %c0_16], %17 {strides = array<i32>} : memref<408x128xf32, #tpu.memory_space<vmem>>, vector<16x128xf32>,
    %cst_17 = arith.constant 0.000000e+00 : f32
    %19 = vector.broadcast %cst_17 : f32 to vector<272x256xf32>
    %c0_18 = arith.constant 0 : index
    %c0_19 = arith.constant 0 : index
    %20 = vector.load %arg6[%c0_18, %c0_19] : memref<272x256xf32, #tpu.memory_space<vmem>>, vector<272x256xf32>
    tpu.vector_store %arg6[%c0_18, %c0_19], %19 {strides = array<i32>} : memref<272x256xf32, #tpu.memory_space<vmem>>, vector<272x256xf32>,
    %c0_20 = arith.constant 0 : index
    %c0_21 = arith.constant 0 : index
    %21 = vector.load %arg5[%c0_20, %c0_21] : memref<408x128xf32, #tpu.memory_space<vmem>>, vector<272x8xf32>
    %c0_22 = arith.constant 0 : index
    %c0_23 = arith.constant 0 : index
    %22 = vector.load %arg6[%c0_22, %c0_23] : memref<272x256xf32, #tpu.memory_space<vmem>>, vector<272x8xf32>
    tpu.vector_store %arg6[%c0_22, %c0_23], %21 {strides = array<i32>} : memref<272x256xf32, #tpu.memory_space<vmem>>, vector<272x8xf32>,
    %c2 = arith.constant 2 : index
    %c0_24 = arith.constant 0 : index
    %23 = vector.load %arg5[%c2, %c0_24] : memref<408x128xf32, #tpu.memory_space<vmem>>, vector<272x8xf32>
    %c0_25 = arith.constant 0 : index
    %c8 = arith.constant 8 : index
    %24 = vector.load %arg6[%c0_25, %c8] : memref<272x256xf32, #tpu.memory_space<vmem>>, vector<272x8xf32>
    tpu.vector_store %arg6[%c0_25, %c8], %23 {strides = array<i32>} : memref<272x256xf32, #tpu.memory_space<vmem>>, vector<272x8xf32>,
    %c4 = arith.constant 4 : index
    %c0_26 = arith.constant 0 : index
    %25 = vector.load %arg5[%c4, %c0_26] : memref<408x128xf32, #tpu.memory_space<vmem>>, vector<272x8xf32>
    %c0_27 = arith.constant 0 : index
    %c16 = arith.constant 16 : index
    %26 = vector.load %arg6[%c0_27, %c16] : memref<272x256xf32, #tpu.memory_space<vmem>>, vector<272x8xf32>
    tpu.vector_store %arg6[%c0_27, %c16], %25 {strides = array<i32>} : memref<272x256xf32, #tpu.memory_space<vmem>>, vector<272x8xf32>,
    %c6 = arith.constant 6 : index
    %c0_28 = arith.constant 0 : index
    %27 = vector.load %arg5[%c6, %c0_28] : memref<408x128xf32, #tpu.memory_space<vmem>>, vector<272x8xf32>
    %c0_29 = arith.constant 0 : index
    %c24 = arith.constant 24 : index
    %28 = vector.load %arg6[%c0_29, %c24] : memref<272x256xf32, #tpu.memory_space<vmem>>, vector<272x8xf32>
    tpu.vector_store %arg6[%c0_29, %c24], %27 {strides = array<i32>} : memref<272x256xf32, #tpu.memory_space<vmem>>, vector<272x8xf32>,
    %c8_30 = arith.constant 8 : index
    %c0_31 = arith.constant 0 : index
    %29 = vector.load %arg5[%c8_30, %c0_31] : memref<408x128xf32, #tpu.memory_space<vmem>>, vector<272x8xf32>
    %c0_32 = arith.constant 0 : index
    %c32 = arith.constant 32 : index
    %30 = vector.load %arg6[%c0_32, %c32] : memref<272x256xf32, #tpu.memory_space<vmem>>, vector<272x8xf32>
    tpu.vector_store %arg6[%c0_32, %c32], %29 {strides = array<i32>} : memref<272x256xf32, #tpu.memory_space<vmem>>, vector<272x8xf32>,
    %c28 = arith.constant 28 : index
    %c0_33 = arith.constant 0 : index
    %31 = vector.load %arg5[%c28, %c0_33] : memref<408x128xf32, #tpu.memory_space<vmem>>, vector<272x8xf32>
    %c0_34 = arith.constant 0 : index
    %c40 = arith.constant 40 : index
    %32 = vector.load %arg6[%c0_34, %c40] : memref<272x256xf32, #tpu.memory_space<vmem>>, vector<272x8xf32>
    tpu.vector_store %arg6[%c0_34, %c40], %31 {strides = array<i32>} : memref<272x256xf32, #tpu.memory_space<vmem>>, vector<272x8xf32>,
    %c30 = arith.constant 30 : index
    %c0_35 = arith.constant 0 : index
    %33 = vector.load %arg5[%c30, %c0_35] : memref<408x128xf32, #tpu.memory_space<vmem>>, vector<272x8xf32>
    %c0_36 = arith.constant 0 : index
    %c48 = arith.constant 48 : index
    %34 = vector.load %arg6[%c0_36, %c48] : memref<272x256xf32, #tpu.memory_space<vmem>>, vector<272x8xf32>
    tpu.vector_store %arg6[%c0_36, %c48], %33 {strides = array<i32>} : memref<272x256xf32, #tpu.memory_space<vmem>>, vector<272x8xf32>,
    %c32_37 = arith.constant 32 : index
    %c0_38 = arith.constant 0 : index
    %35 = vector.load %arg5[%c32_37, %c0_38] : memref<408x128xf32, #tpu.memory_space<vmem>>, vector<272x8xf32>
    %c0_39 = arith.constant 0 : index
    %c56 = arith.constant 56 : index
    %36 = vector.load %arg6[%c0_39, %c56] : memref<272x256xf32, #tpu.memory_space<vmem>>, vector<272x8xf32>
    tpu.vector_store %arg6[%c0_39, %c56], %35 {strides = array<i32>} : memref<272x256xf32, #tpu.memory_space<vmem>>, vector<272x8xf32>,
    %c34 = arith.constant 34 : index
    %c0_40 = arith.constant 0 : index
    %37 = vector.load %arg5[%c34, %c0_40] : memref<408x128xf32, #tpu.memory_space<vmem>>, vector<272x8xf32>
    %c0_41 = arith.constant 0 : index
    %c64 = arith.constant 64 : index
    %38 = vector.load %arg6[%c0_41, %c64] : memref<272x256xf32, #tpu.memory_space<vmem>>, vector<272x8xf32>
    tpu.vector_store %arg6[%c0_41, %c64], %37 {strides = array<i32>} : memref<272x256xf32, #tpu.memory_space<vmem>>, vector<272x8xf32>,
    %c36 = arith.constant 36 : index
    %c0_42 = arith.constant 0 : index
    %39 = vector.load %arg5[%c36, %c0_42] : memref<408x128xf32, #tpu.memory_space<vmem>>, vector<272x8xf32>
    %c0_43 = arith.constant 0 : index
    %c72 = arith.constant 72 : index
    %40 = vector.load %arg6[%c0_43, %c72] : memref<272x256xf32, #tpu.memory_space<vmem>>, vector<272x8xf32>
    tpu.vector_store %arg6[%c0_43, %c72], %39 {strides = array<i32>} : memref<272x256xf32, #tpu.memory_space<vmem>>, vector<272x8xf32>,
    %c56_44 = arith.constant 56 : index
    %c0_45 = arith.constant 0 : index
    %41 = vector.load %arg5[%c56_44, %c0_45] : memref<408x128xf32, #tpu.memory_space<vmem>>, vector<272x8xf32>
    %c0_46 = arith.constant 0 : index
    %c80 = arith.constant 80 : index
    %42 = vector.load %arg6[%c0_46, %c80] : memref<272x256xf32, #tpu.memory_space<vmem>>, vector<272x8xf32>
    tpu.vector_store %arg6[%c0_46, %c80], %41 {strides = array<i32>} : memref<272x256xf32, #tpu.memory_space<vmem>>, vector<272x8xf32>,
    %c58 = arith.constant 58 : index
    %c0_47 = arith.constant 0 : index
    %43 = vector.load %arg5[%c58, %c0_47] : memref<408x128xf32, #tpu.memory_space<vmem>>, vector<272x8xf32>
    %c0_48 = arith.constant 0 : index
    %c88 = arith.constant 88 : index
    %44 = vector.load %arg6[%c0_48, %c88] : memref<272x256xf32, #tpu.memory_space<vmem>>, vector<272x8xf32>
    tpu.vector_store %arg6[%c0_48, %c88], %43 {strides = array<i32>} : memref<272x256xf32, #tpu.memory_space<vmem>>, vector<272x8xf32>,
    %c60 = arith.constant 60 : index
    %c0_49 = arith.constant 0 : index
    %45 = vector.load %arg5[%c60, %c0_49] : memref<408x128xf32, #tpu.memory_space<vmem>>, vector<272x8xf32>
    %c0_50 = arith.constant 0 : index
    %c96 = arith.constant 96 : index
    %46 = vector.load %arg6[%c0_50, %c96] : memref<272x256xf32, #tpu.memory_space<vmem>>, vector<272x8xf32>
    tpu.vector_store %arg6[%c0_50, %c96], %45 {strides = array<i32>} : memref<272x256xf32, #tpu.memory_space<vmem>>, vector<272x8xf32>,
    %c62 = arith.constant 62 : index
    %c0_51 = arith.constant 0 : index
    %47 = vector.load %arg5[%c62, %c0_51] : memref<408x128xf32, #tpu.memory_space<vmem>>, vector<272x8xf32>
    %c0_52 = arith.constant 0 : index
    %c104 = arith.constant 104 : index
    %48 = vector.load %arg6[%c0_52, %c104] : memref<272x256xf32, #tpu.memory_space<vmem>>, vector<272x8xf32>
    tpu.vector_store %arg6[%c0_52, %c104], %47 {strides = array<i32>} : memref<272x256xf32, #tpu.memory_space<vmem>>, vector<272x8xf32>,
    %c64_53 = arith.constant 64 : index
    %c0_54 = arith.constant 0 : index
    %49 = vector.load %arg5[%c64_53, %c0_54] : memref<408x128xf32, #tpu.memory_space<vmem>>, vector<272x8xf32>
    %c0_55 = arith.constant 0 : index
    %c112 = arith.constant 112 : index
    %50 = vector.load %arg6[%c0_55, %c112] : memref<272x256xf32, #tpu.memory_space<vmem>>, vector<272x8xf32>
    tpu.vector_store %arg6[%c0_55, %c112], %49 {strides = array<i32>} : memref<272x256xf32, #tpu.memory_space<vmem>>, vector<272x8xf32>,
    %c84 = arith.constant 84 : index
    %c0_56 = arith.constant 0 : index
    %51 = vector.load %arg5[%c84, %c0_56] : memref<408x128xf32, #tpu.memory_space<vmem>>, vector<272x8xf32>
    %c0_57 = arith.constant 0 : index
    %c120 = arith.constant 120 : index
    %52 = vector.load %arg6[%c0_57, %c120] : memref<272x256xf32, #tpu.memory_space<vmem>>, vector<272x8xf32>
    tpu.vector_store %arg6[%c0_57, %c120], %51 {strides = array<i32>} : memref<272x256xf32, #tpu.memory_space<vmem>>, vector<272x8xf32>,
    %c86 = arith.constant 86 : index
    %c0_58 = arith.constant 0 : index
    %53 = vector.load %arg5[%c86, %c0_58] : memref<408x128xf32, #tpu.memory_space<vmem>>, vector<272x8xf32>
    %c0_59 = arith.constant 0 : index
    %c128 = arith.constant 128 : index
    %54 = vector.load %arg6[%c0_59, %c128] : memref<272x256xf32, #tpu.memory_space<vmem>>, vector<272x8xf32>
    tpu.vector_store %arg6[%c0_59, %c128], %53 {strides = array<i32>} : memref<272x256xf32, #tpu.memory_space<vmem>>, vector<272x8xf32>,
    %c88_60 = arith.constant 88 : index
    %c0_61 = arith.constant 0 : index
    %55 = vector.load %arg5[%c88_60, %c0_61] : memref<408x128xf32, #tpu.memory_space<vmem>>, vector<272x8xf32>
    %c0_62 = arith.constant 0 : index
    %c136 = arith.constant 136 : index
    %56 = vector.load %arg6[%c0_62, %c136] : memref<272x256xf32, #tpu.memory_space<vmem>>, vector<272x8xf32>
    tpu.vector_store %arg6[%c0_62, %c136], %55 {strides = array<i32>} : memref<272x256xf32, #tpu.memory_space<vmem>>, vector<272x8xf32>,
    %c90 = arith.constant 90 : index
    %c0_63 = arith.constant 0 : index
    %57 = vector.load %arg5[%c90, %c0_63] : memref<408x128xf32, #tpu.memory_space<vmem>>, vector<272x8xf32>
    %c0_64 = arith.constant 0 : index
    %c144 = arith.constant 144 : index
    %58 = vector.load %arg6[%c0_64, %c144] : memref<272x256xf32, #tpu.memory_space<vmem>>, vector<272x8xf32>
    tpu.vector_store %arg6[%c0_64, %c144], %57 {strides = array<i32>} : memref<272x256xf32, #tpu.memory_space<vmem>>, vector<272x8xf32>,
    %c92 = arith.constant 92 : index
    %c0_65 = arith.constant 0 : index
    %59 = vector.load %arg5[%c92, %c0_65] : memref<408x128xf32, #tpu.memory_space<vmem>>, vector<272x8xf32>
    %c0_66 = arith.constant 0 : index
    %c152 = arith.constant 152 : index
    %60 = vector.load %arg6[%c0_66, %c152] : memref<272x256xf32, #tpu.memory_space<vmem>>, vector<272x8xf32>
    tpu.vector_store %arg6[%c0_66, %c152], %59 {strides = array<i32>} : memref<272x256xf32, #tpu.memory_space<vmem>>, vector<272x8xf32>,
    %c112_67 = arith.constant 112 : index
    %c0_68 = arith.constant 0 : index
    %61 = vector.load %arg5[%c112_67, %c0_68] : memref<408x128xf32, #tpu.memory_space<vmem>>, vector<272x8xf32>
    %c0_69 = arith.constant 0 : index
    %c160 = arith.constant 160 : index
    %62 = vector.load %arg6[%c0_69, %c160] : memref<272x256xf32, #tpu.memory_space<vmem>>, vector<272x8xf32>
    tpu.vector_store %arg6[%c0_69, %c160], %61 {strides = array<i32>} : memref<272x256xf32, #tpu.memory_space<vmem>>, vector<272x8xf32>,
    %c114 = arith.constant 114 : index
    %c0_70 = arith.constant 0 : index
    %63 = vector.load %arg5[%c114, %c0_70] : memref<408x128xf32, #tpu.memory_space<vmem>>, vector<272x8xf32>
    %c0_71 = arith.constant 0 : index
    %c168 = arith.constant 168 : index
    %64 = vector.load %arg6[%c0_71, %c168] : memref<272x256xf32, #tpu.memory_space<vmem>>, vector<272x8xf32>
    tpu.vector_store %arg6[%c0_71, %c168], %63 {strides = array<i32>} : memref<272x256xf32, #tpu.memory_space<vmem>>, vector<272x8xf32>,
    %c116 = arith.constant 116 : index
    %c0_72 = arith.constant 0 : index
    %65 = vector.load %arg5[%c116, %c0_72] : memref<408x128xf32, #tpu.memory_space<vmem>>, vector<272x8xf32>
    %c0_73 = arith.constant 0 : index
    %c176 = arith.constant 176 : index
    %66 = vector.load %arg6[%c0_73, %c176] : memref<272x256xf32, #tpu.memory_space<vmem>>, vector<272x8xf32>
    tpu.vector_store %arg6[%c0_73, %c176], %65 {strides = array<i32>} : memref<272x256xf32, #tpu.memory_space<vmem>>, vector<272x8xf32>,
    %c118 = arith.constant 118 : index
    %c0_74 = arith.constant 0 : index
    %67 = vector.load %arg5[%c118, %c0_74] : memref<408x128xf32, #tpu.memory_space<vmem>>, vector<272x8xf32>
    %c0_75 = arith.constant 0 : index
    %c184 = arith.constant 184 : index
    %68 = vector.load %arg6[%c0_75, %c184] : memref<272x256xf32, #tpu.memory_space<vmem>>, vector<272x8xf32>
    tpu.vector_store %arg6[%c0_75, %c184], %67 {strides = array<i32>} : memref<272x256xf32, #tpu.memory_space<vmem>>, vector<272x8xf32>,
    %c120_76 = arith.constant 120 : index
    %c0_77 = arith.constant 0 : index
    %69 = vector.load %arg5[%c120_76, %c0_77] : memref<408x128xf32, #tpu.memory_space<vmem>>, vector<272x8xf32>
    %c0_78 = arith.constant 0 : index
    %c192 = arith.constant 192 : index
    %70 = vector.load %arg6[%c0_78, %c192] : memref<272x256xf32, #tpu.memory_space<vmem>>, vector<272x8xf32>
    tpu.vector_store %arg6[%c0_78, %c192], %69 {strides = array<i32>} : memref<272x256xf32, #tpu.memory_space<vmem>>, vector<272x8xf32>,
    %c0_79 = arith.constant 0 : index
    %c0_80 = arith.constant 0 : index
    %71 = vector.load %arg6[%c0_79, %c0_80] : memref<272x256xf32, #tpu.memory_space<vmem>>, vector<272x256xf32>
    %c0_81 = arith.constant 0 : index
    %c0_82 = arith.constant 0 : index
    %72 = vector.load %arg2[%c0_81, %c0_82] : memref<1032x128xf32, #tpu.memory_space<vmem>>, vector<256x128xf32>
    %cst_83 = arith.constant dense<0.000000e+00> : vector<272x128xf32>
    %73 = tpu.matmul %71, %72, %cst_83 {dimension_numbers = #tpu.dot_dimension_numbers<[1], [0], [0], [1], [0, 0, 1, 1], [], []>} : vector<272x256xf32>, vector<256x128xf32>, vector<272x128xf32> -> vector<272x128xf32>
    %c1025 = arith.constant 1025 : index
    %c0_84 = arith.constant 0 : index
    %74 = vector.load %arg2[%c1025, %c0_84] : memref<1032x128xf32, #tpu.memory_space<vmem>>, vector<1x128xf32>
    %75 = vector.broadcast %74 : vector<1x128xf32> to vector<272x128xf32>
    %76 = arith.addf %73, %75 : vector<272x128xf32>
    %cst_85 = arith.constant 0.000000e+00 : f32
    %77 = vector.broadcast %cst_85 : f32 to vector<272x128xf32>
    %78 = arith.maximumf %76, %77 : vector<272x128xf32>
    %c0_86 = arith.constant 0 : index
    %c0_87 = arith.constant 0 : index
    %79 = vector.load %arg7[%c0_86, %c0_87] : memref<272x128xf32, #tpu.memory_space<vmem>>, vector<272x128xf32>
    tpu.vector_store %arg7[%c0_86, %c0_87], %78 {strides = array<i32>} : memref<272x128xf32, #tpu.memory_space<vmem>>, vector<272x128xf32>,
    %cst_88 = arith.constant 0.000000e+00 : f32
    %80 = vector.broadcast %cst_88 : f32 to vector<8x512xf32>
    %c0_89 = arith.constant 0 : index
    %c0_90 = arith.constant 0 : index
    %81 = vector.load %arg8[%c0_89, %c0_90] : memref<8x512xf32, #tpu.memory_space<vmem>>, vector<8x512xf32>
    tpu.vector_store %arg8[%c0_89, %c0_90], %80 {strides = array<i32>} : memref<8x512xf32, #tpu.memory_space<vmem>>, vector<8x512xf32>,
    %c0_91 = arith.constant 0 : index
    %c0_92 = arith.constant 0 : index
    %82 = vector.load %arg7[%c0_91, %c0_92] : memref<272x128xf32, #tpu.memory_space<vmem>>, vector<2x128xf32>
    %c2_93 = arith.constant 2 : index
    %c0_94 = arith.constant 0 : index
    %83 = vector.load %arg7[%c2_93, %c0_94] : memref<272x128xf32, #tpu.memory_space<vmem>>, vector<2x128xf32>
    %84 = arith.maximumf %82, %83 : vector<2x128xf32>
    %c28_95 = arith.constant 28 : index
    %c0_96 = arith.constant 0 : index
    %85 = vector.load %arg7[%c28_95, %c0_96] : memref<272x128xf32, #tpu.memory_space<vmem>>, vector<2x128xf32>
    %86 = arith.maximumf %84, %85 : vector<2x128xf32>
    %c30_97 = arith.constant 30 : index
    %c0_98 = arith.constant 0 : index
    %87 = vector.load %arg7[%c30_97, %c0_98] : memref<272x128xf32, #tpu.memory_space<vmem>>, vector<2x128xf32>
    %88 = arith.maximumf %86, %87 : vector<2x128xf32>
    %89 = vector.extract_strided_slice %88 {offsets = [0, 0], sizes = [2, 16], strides = [1, 1]} : vector<2x128xf32> to vector<2x16xf32>
    %c0_99 = arith.constant 0 : index
    %c0_100 = arith.constant 0 : index
    %90 = vector.load %arg8[%c0_99, %c0_100] : memref<8x512xf32, #tpu.memory_space<vmem>>, vector<2x16xf32>
    tpu.vector_store %arg8[%c0_99, %c0_100], %89 {strides = array<i32>} : memref<8x512xf32, #tpu.memory_space<vmem>>, vector<2x16xf32>,
    %c4_101 = arith.constant 4 : index
    %c0_102 = arith.constant 0 : index
    %91 = vector.load %arg7[%c4_101, %c0_102] : memref<272x128xf32, #tpu.memory_space<vmem>>, vector<2x128xf32>
    %c6_103 = arith.constant 6 : index
    %c0_104 = arith.constant 0 : index
    %92 = vector.load %arg7[%c6_103, %c0_104] : memref<272x128xf32, #tpu.memory_space<vmem>>, vector<2x128xf32>
    %93 = arith.maximumf %91, %92 : vector<2x128xf32>
    %c32_105 = arith.constant 32 : index
    %c0_106 = arith.constant 0 : index
    %94 = vector.load %arg7[%c32_105, %c0_106] : memref<272x128xf32, #tpu.memory_space<vmem>>, vector<2x128xf32>
    %95 = arith.maximumf %93, %94 : vector<2x128xf32>
    %c34_107 = arith.constant 34 : index
    %c0_108 = arith.constant 0 : index
    %96 = vector.load %arg7[%c34_107, %c0_108] : memref<272x128xf32, #tpu.memory_space<vmem>>, vector<2x128xf32>
    %97 = arith.maximumf %95, %96 : vector<2x128xf32>
    %98 = vector.extract_strided_slice %97 {offsets = [0, 0], sizes = [2, 16], strides = [1, 1]} : vector<2x128xf32> to vector<2x16xf32>
    %c0_109 = arith.constant 0 : index
    %c16_110 = arith.constant 16 : index
    %99 = vector.load %arg8[%c0_109, %c16_110] : memref<8x512xf32, #tpu.memory_space<vmem>>, vector<2x16xf32>
    tpu.vector_store %arg8[%c0_109, %c16_110], %98 {strides = array<i32>} : memref<8x512xf32, #tpu.memory_space<vmem>>, vector<2x16xf32>,
    %c8_111 = arith.constant 8 : index
    %c0_112 = arith.constant 0 : index
    %100 = vector.load %arg7[%c8_111, %c0_112] : memref<272x128xf32, #tpu.memory_space<vmem>>, vector<2x128xf32>
    %c10 = arith.constant 10 : index
    %c0_113 = arith.constant 0 : index
    %101 = vector.load %arg7[%c10, %c0_113] : memref<272x128xf32, #tpu.memory_space<vmem>>, vector<2x128xf32>
    %102 = arith.maximumf %100, %101 : vector<2x128xf32>
    %c36_114 = arith.constant 36 : index
    %c0_115 = arith.constant 0 : index
    %103 = vector.load %arg7[%c36_114, %c0_115] : memref<272x128xf32, #tpu.memory_space<vmem>>, vector<2x128xf32>
    %104 = arith.maximumf %102, %103 : vector<2x128xf32>
    %c38 = arith.constant 38 : index
    %c0_116 = arith.constant 0 : index
    %105 = vector.load %arg7[%c38, %c0_116] : memref<272x128xf32, #tpu.memory_space<vmem>>, vector<2x128xf32>
    %106 = arith.maximumf %104, %105 : vector<2x128xf32>
    %107 = vector.extract_strided_slice %106 {offsets = [0, 0], sizes = [2, 16], strides = [1, 1]} : vector<2x128xf32> to vector<2x16xf32>
    %c0_117 = arith.constant 0 : index
    %c32_118 = arith.constant 32 : index
    %108 = vector.load %arg8[%c0_117, %c32_118] : memref<8x512xf32, #tpu.memory_space<vmem>>, vector<2x16xf32>
    tpu.vector_store %arg8[%c0_117, %c32_118], %107 {strides = array<i32>} : memref<8x512xf32, #tpu.memory_space<vmem>>, vector<2x16xf32>,
    %c12 = arith.constant 12 : index
    %c0_119 = arith.constant 0 : index
    %109 = vector.load %arg7[%c12, %c0_119] : memref<272x128xf32, #tpu.memory_space<vmem>>, vector<2x128xf32>
    %c14 = arith.constant 14 : index
    %c0_120 = arith.constant 0 : index
    %110 = vector.load %arg7[%c14, %c0_120] : memref<272x128xf32, #tpu.memory_space<vmem>>, vector<2x128xf32>
    %111 = arith.maximumf %109, %110 : vector<2x128xf32>
    %c40_121 = arith.constant 40 : index
    %c0_122 = arith.constant 0 : index
    %112 = vector.load %arg7[%c40_121, %c0_122] : memref<272x128xf32, #tpu.memory_space<vmem>>, vector<2x128xf32>
    %113 = arith.maximumf %111, %112 : vector<2x128xf32>
    %c42 = arith.constant 42 : index
    %c0_123 = arith.constant 0 : index
    %114 = vector.load %arg7[%c42, %c0_123] : memref<272x128xf32, #tpu.memory_space<vmem>>, vector<2x128xf32>
    %115 = arith.maximumf %113, %114 : vector<2x128xf32>
    %116 = vector.extract_strided_slice %115 {offsets = [0, 0], sizes = [2, 16], strides = [1, 1]} : vector<2x128xf32> to vector<2x16xf32>
    %c0_124 = arith.constant 0 : index
    %c48_125 = arith.constant 48 : index
    %117 = vector.load %arg8[%c0_124, %c48_125] : memref<8x512xf32, #tpu.memory_space<vmem>>, vector<2x16xf32>
    tpu.vector_store %arg8[%c0_124, %c48_125], %116 {strides = array<i32>} : memref<8x512xf32, #tpu.memory_space<vmem>>, vector<2x16xf32>,
    %c16_126 = arith.constant 16 : index
    %c0_127 = arith.constant 0 : index
    %118 = vector.load %arg7[%c16_126, %c0_127] : memref<272x128xf32, #tpu.memory_space<vmem>>, vector<2x128xf32>
    %c18 = arith.constant 18 : index
    %c0_128 = arith.constant 0 : index
    %119 = vector.load %arg7[%c18, %c0_128] : memref<272x128xf32, #tpu.memory_space<vmem>>, vector<2x128xf32>
    %120 = arith.maximumf %118, %119 : vector<2x128xf32>
    %c44 = arith.constant 44 : index
    %c0_129 = arith.constant 0 : index
    %121 = vector.load %arg7[%c44, %c0_129] : memref<272x128xf32, #tpu.memory_space<vmem>>, vector<2x128xf32>
    %122 = arith.maximumf %120, %121 : vector<2x128xf32>
    %c46 = arith.constant 46 : index
    %c0_130 = arith.constant 0 : index
    %123 = vector.load %arg7[%c46, %c0_130] : memref<272x128xf32, #tpu.memory_space<vmem>>, vector<2x128xf32>
    %124 = arith.maximumf %122, %123 : vector<2x128xf32>
    %125 = vector.extract_strided_slice %124 {offsets = [0, 0], sizes = [2, 16], strides = [1, 1]} : vector<2x128xf32> to vector<2x16xf32>
    %c0_131 = arith.constant 0 : index
    %c64_132 = arith.constant 64 : index
    %126 = vector.load %arg8[%c0_131, %c64_132] : memref<8x512xf32, #tpu.memory_space<vmem>>, vector<2x16xf32>
    tpu.vector_store %arg8[%c0_131, %c64_132], %125 {strides = array<i32>} : memref<8x512xf32, #tpu.memory_space<vmem>>, vector<2x16xf32>,
    %c56_133 = arith.constant 56 : index
    %c0_134 = arith.constant 0 : index
    %127 = vector.load %arg7[%c56_133, %c0_134] : memref<272x128xf32, #tpu.memory_space<vmem>>, vector<2x128xf32>
    %c58_135 = arith.constant 58 : index
    %c0_136 = arith.constant 0 : index
    %128 = vector.load %arg7[%c58_135, %c0_136] : memref<272x128xf32, #tpu.memory_space<vmem>>, vector<2x128xf32>
    %129 = arith.maximumf %127, %128 : vector<2x128xf32>
    %c84_137 = arith.constant 84 : index
    %c0_138 = arith.constant 0 : index
    %130 = vector.load %arg7[%c84_137, %c0_138] : memref<272x128xf32, #tpu.memory_space<vmem>>, vector<2x128xf32>
    %131 = arith.maximumf %129, %130 : vector<2x128xf32>
    %c86_139 = arith.constant 86 : index
    %c0_140 = arith.constant 0 : index
    %132 = vector.load %arg7[%c86_139, %c0_140] : memref<272x128xf32, #tpu.memory_space<vmem>>, vector<2x128xf32>
    %133 = arith.maximumf %131, %132 : vector<2x128xf32>
    %134 = vector.extract_strided_slice %133 {offsets = [0, 0], sizes = [2, 16], strides = [1, 1]} : vector<2x128xf32> to vector<2x16xf32>
    %c0_141 = arith.constant 0 : index
    %c80_142 = arith.constant 80 : index
    %135 = vector.load %arg8[%c0_141, %c80_142] : memref<8x512xf32, #tpu.memory_space<vmem>>, vector<2x16xf32>
    tpu.vector_store %arg8[%c0_141, %c80_142], %134 {strides = array<i32>} : memref<8x512xf32, #tpu.memory_space<vmem>>, vector<2x16xf32>,
    %c60_143 = arith.constant 60 : index
    %c0_144 = arith.constant 0 : index
    %136 = vector.load %arg7[%c60_143, %c0_144] : memref<272x128xf32, #tpu.memory_space<vmem>>, vector<2x128xf32>
    %c62_145 = arith.constant 62 : index
    %c0_146 = arith.constant 0 : index
    %137 = vector.load %arg7[%c62_145, %c0_146] : memref<272x128xf32, #tpu.memory_space<vmem>>, vector<2x128xf32>
    %138 = arith.maximumf %136, %137 : vector<2x128xf32>
    %c88_147 = arith.constant 88 : index
    %c0_148 = arith.constant 0 : index
    %139 = vector.load %arg7[%c88_147, %c0_148] : memref<272x128xf32, #tpu.memory_space<vmem>>, vector<2x128xf32>
    %140 = arith.maximumf %138, %139 : vector<2x128xf32>
    %c90_149 = arith.constant 90 : index
    %c0_150 = arith.constant 0 : index
    %141 = vector.load %arg7[%c90_149, %c0_150] : memref<272x128xf32, #tpu.memory_space<vmem>>, vector<2x128xf32>
    %142 = arith.maximumf %140, %141 : vector<2x128xf32>
    %143 = vector.extract_strided_slice %142 {offsets = [0, 0], sizes = [2, 16], strides = [1, 1]} : vector<2x128xf32> to vector<2x16xf32>
    %c0_151 = arith.constant 0 : index
    %c96_152 = arith.constant 96 : index
    %144 = vector.load %arg8[%c0_151, %c96_152] : memref<8x512xf32, #tpu.memory_space<vmem>>, vector<2x16xf32>
    tpu.vector_store %arg8[%c0_151, %c96_152], %143 {strides = array<i32>} : memref<8x512xf32, #tpu.memory_space<vmem>>, vector<2x16xf32>,
    %c64_153 = arith.constant 64 : index
    %c0_154 = arith.constant 0 : index
    %145 = vector.load %arg7[%c64_153, %c0_154] : memref<272x128xf32, #tpu.memory_space<vmem>>, vector<2x128xf32>
    %c66 = arith.constant 66 : index
    %c0_155 = arith.constant 0 : index
    %146 = vector.load %arg7[%c66, %c0_155] : memref<272x128xf32, #tpu.memory_space<vmem>>, vector<2x128xf32>
    %147 = arith.maximumf %145, %146 : vector<2x128xf32>
    %c92_156 = arith.constant 92 : index
    %c0_157 = arith.constant 0 : index
    %148 = vector.load %arg7[%c92_156, %c0_157] : memref<272x128xf32, #tpu.memory_space<vmem>>, vector<2x128xf32>
    %149 = arith.maximumf %147, %148 : vector<2x128xf32>
    %c94 = arith.constant 94 : index
    %c0_158 = arith.constant 0 : index
    %150 = vector.load %arg7[%c94, %c0_158] : memref<272x128xf32, #tpu.memory_space<vmem>>, vector<2x128xf32>
    %151 = arith.maximumf %149, %150 : vector<2x128xf32>
    %152 = vector.extract_strided_slice %151 {offsets = [0, 0], sizes = [2, 16], strides = [1, 1]} : vector<2x128xf32> to vector<2x16xf32>
    %c0_159 = arith.constant 0 : index
    %c112_160 = arith.constant 112 : index
    %153 = vector.load %arg8[%c0_159, %c112_160] : memref<8x512xf32, #tpu.memory_space<vmem>>, vector<2x16xf32>
    tpu.vector_store %arg8[%c0_159, %c112_160], %152 {strides = array<i32>} : memref<8x512xf32, #tpu.memory_space<vmem>>, vector<2x16xf32>,
    %c68 = arith.constant 68 : index
    %c0_161 = arith.constant 0 : index
    %154 = vector.load %arg7[%c68, %c0_161] : memref<272x128xf32, #tpu.memory_space<vmem>>, vector<2x128xf32>
    %c70 = arith.constant 70 : index
    %c0_162 = arith.constant 0 : index
    %155 = vector.load %arg7[%c70, %c0_162] : memref<272x128xf32, #tpu.memory_space<vmem>>, vector<2x128xf32>
    %156 = arith.maximumf %154, %155 : vector<2x128xf32>
    %c96_163 = arith.constant 96 : index
    %c0_164 = arith.constant 0 : index
    %157 = vector.load %arg7[%c96_163, %c0_164] : memref<272x128xf32, #tpu.memory_space<vmem>>, vector<2x128xf32>
    %158 = arith.maximumf %156, %157 : vector<2x128xf32>
    %c98 = arith.constant 98 : index
    %c0_165 = arith.constant 0 : index
    %159 = vector.load %arg7[%c98, %c0_165] : memref<272x128xf32, #tpu.memory_space<vmem>>, vector<2x128xf32>
    %160 = arith.maximumf %158, %159 : vector<2x128xf32>
    %161 = vector.extract_strided_slice %160 {offsets = [0, 0], sizes = [2, 16], strides = [1, 1]} : vector<2x128xf32> to vector<2x16xf32>
    %c0_166 = arith.constant 0 : index
    %c128_167 = arith.constant 128 : index
    %162 = vector.load %arg8[%c0_166, %c128_167] : memref<8x512xf32, #tpu.memory_space<vmem>>, vector<2x16xf32>
    tpu.vector_store %arg8[%c0_166, %c128_167], %161 {strides = array<i32>} : memref<8x512xf32, #tpu.memory_space<vmem>>, vector<2x16xf32>,
    %c72_168 = arith.constant 72 : index
    %c0_169 = arith.constant 0 : index
    %163 = vector.load %arg7[%c72_168, %c0_169] : memref<272x128xf32, #tpu.memory_space<vmem>>, vector<2x128xf32>
    %c74 = arith.constant 74 : index
    %c0_170 = arith.constant 0 : index
    %164 = vector.load %arg7[%c74, %c0_170] : memref<272x128xf32, #tpu.memory_space<vmem>>, vector<2x128xf32>
    %165 = arith.maximumf %163, %164 : vector<2x128xf32>
    %c100 = arith.constant 100 : index
    %c0_171 = arith.constant 0 : index
    %166 = vector.load %arg7[%c100, %c0_171] : memref<272x128xf32, #tpu.memory_space<vmem>>, vector<2x128xf32>
    %167 = arith.maximumf %165, %166 : vector<2x128xf32>
    %c102 = arith.constant 102 : index
    %c0_172 = arith.constant 0 : index
    %168 = vector.load %arg7[%c102, %c0_172] : memref<272x128xf32, #tpu.memory_space<vmem>>, vector<2x128xf32>
    %169 = arith.maximumf %167, %168 : vector<2x128xf32>
    %170 = vector.extract_strided_slice %169 {offsets = [0, 0], sizes = [2, 16], strides = [1, 1]} : vector<2x128xf32> to vector<2x16xf32>
    %c0_173 = arith.constant 0 : index
    %c144_174 = arith.constant 144 : index
    %171 = vector.load %arg8[%c0_173, %c144_174] : memref<8x512xf32, #tpu.memory_space<vmem>>, vector<2x16xf32>
    tpu.vector_store %arg8[%c0_173, %c144_174], %170 {strides = array<i32>} : memref<8x512xf32, #tpu.memory_space<vmem>>, vector<2x16xf32>,
    %c112_175 = arith.constant 112 : index
    %c0_176 = arith.constant 0 : index
    %172 = vector.load %arg7[%c112_175, %c0_176] : memref<272x128xf32, #tpu.memory_space<vmem>>, vector<2x128xf32>
    %c114_177 = arith.constant 114 : index
    %c0_178 = arith.constant 0 : index
    %173 = vector.load %arg7[%c114_177, %c0_178] : memref<272x128xf32, #tpu.memory_space<vmem>>, vector<2x128xf32>
    %174 = arith.maximumf %172, %173 : vector<2x128xf32>
    %c140 = arith.constant 140 : index
    %c0_179 = arith.constant 0 : index
    %175 = vector.load %arg7[%c140, %c0_179] : memref<272x128xf32, #tpu.memory_space<vmem>>, vector<2x128xf32>
    %176 = arith.maximumf %174, %175 : vector<2x128xf32>
    %c142 = arith.constant 142 : index
    %c0_180 = arith.constant 0 : index
    %177 = vector.load %arg7[%c142, %c0_180] : memref<272x128xf32, #tpu.memory_space<vmem>>, vector<2x128xf32>
    %178 = arith.maximumf %176, %177 : vector<2x128xf32>
    %179 = vector.extract_strided_slice %178 {offsets = [0, 0], sizes = [2, 16], strides = [1, 1]} : vector<2x128xf32> to vector<2x16xf32>
    %c0_181 = arith.constant 0 : index
    %c160_182 = arith.constant 160 : index
    %180 = vector.load %arg8[%c0_181, %c160_182] : memref<8x512xf32, #tpu.memory_space<vmem>>, vector<2x16xf32>
    tpu.vector_store %arg8[%c0_181, %c160_182], %179 {strides = array<i32>} : memref<8x512xf32, #tpu.memory_space<vmem>>, vector<2x16xf32>,
    %c116_183 = arith.constant 116 : index
    %c0_184 = arith.constant 0 : index
    %181 = vector.load %arg7[%c116_183, %c0_184] : memref<272x128xf32, #tpu.memory_space<vmem>>, vector<2x128xf32>
    %c118_185 = arith.constant 118 : index
    %c0_186 = arith.constant 0 : index
    %182 = vector.load %arg7[%c118_185, %c0_186] : memref<272x128xf32, #tpu.memory_space<vmem>>, vector<2x128xf32>
    %183 = arith.maximumf %181, %182 : vector<2x128xf32>
    %c144_187 = arith.constant 144 : index
    %c0_188 = arith.constant 0 : index
    %184 = vector.load %arg7[%c144_187, %c0_188] : memref<272x128xf32, #tpu.memory_space<vmem>>, vector<2x128xf32>
    %185 = arith.maximumf %183, %184 : vector<2x128xf32>
    %c146 = arith.constant 146 : index
    %c0_189 = arith.constant 0 : index
    %186 = vector.load %arg7[%c146, %c0_189] : memref<272x128xf32, #tpu.memory_space<vmem>>, vector<2x128xf32>
    %187 = arith.maximumf %185, %186 : vector<2x128xf32>
    %188 = vector.extract_strided_slice %187 {offsets = [0, 0], sizes = [2, 16], strides = [1, 1]} : vector<2x128xf32> to vector<2x16xf32>
    %c0_190 = arith.constant 0 : index
    %c176_191 = arith.constant 176 : index
    %189 = vector.load %arg8[%c0_190, %c176_191] : memref<8x512xf32, #tpu.memory_space<vmem>>, vector<2x16xf32>
    tpu.vector_store %arg8[%c0_190, %c176_191], %188 {strides = array<i32>} : memref<8x512xf32, #tpu.memory_space<vmem>>, vector<2x16xf32>,
    %c120_192 = arith.constant 120 : index
    %c0_193 = arith.constant 0 : index
    %190 = vector.load %arg7[%c120_192, %c0_193] : memref<272x128xf32, #tpu.memory_space<vmem>>, vector<2x128xf32>
    %c122 = arith.constant 122 : index
    %c0_194 = arith.constant 0 : index
    %191 = vector.load %arg7[%c122, %c0_194] : memref<272x128xf32, #tpu.memory_space<vmem>>, vector<2x128xf32>
    %192 = arith.maximumf %190, %191 : vector<2x128xf32>
    %c148 = arith.constant 148 : index
    %c0_195 = arith.constant 0 : index
    %193 = vector.load %arg7[%c148, %c0_195] : memref<272x128xf32, #tpu.memory_space<vmem>>, vector<2x128xf32>
    %194 = arith.maximumf %192, %193 : vector<2x128xf32>
    %c150 = arith.constant 150 : index
    %c0_196 = arith.constant 0 : index
    %195 = vector.load %arg7[%c150, %c0_196] : memref<272x128xf32, #tpu.memory_space<vmem>>, vector<2x128xf32>
    %196 = arith.maximumf %194, %195 : vector<2x128xf32>
    %197 = vector.extract_strided_slice %196 {offsets = [0, 0], sizes = [2, 16], strides = [1, 1]} : vector<2x128xf32> to vector<2x16xf32>
    %c0_197 = arith.constant 0 : index
    %c192_198 = arith.constant 192 : index
    %198 = vector.load %arg8[%c0_197, %c192_198] : memref<8x512xf32, #tpu.memory_space<vmem>>, vector<2x16xf32>
    tpu.vector_store %arg8[%c0_197, %c192_198], %197 {strides = array<i32>} : memref<8x512xf32, #tpu.memory_space<vmem>>, vector<2x16xf32>,
    %c124 = arith.constant 124 : index
    %c0_199 = arith.constant 0 : index
    %199 = vector.load %arg7[%c124, %c0_199] : memref<272x128xf32, #tpu.memory_space<vmem>>, vector<2x128xf32>
    %c126 = arith.constant 126 : index
    %c0_200 = arith.constant 0 : index
    %200 = vector.load %arg7[%c126, %c0_200] : memref<272x128xf32, #tpu.memory_space<vmem>>, vector<2x128xf32>
    %201 = arith.maximumf %199, %200 : vector<2x128xf32>
    %c152_201 = arith.constant 152 : index
    %c0_202 = arith.constant 0 : index
    %202 = vector.load %arg7[%c152_201, %c0_202] : memref<272x128xf32, #tpu.memory_space<vmem>>, vector<2x128xf32>
    %203 = arith.maximumf %201, %202 : vector<2x128xf32>
    %c154 = arith.constant 154 : index
    %c0_203 = arith.constant 0 : index
    %204 = vector.load %arg7[%c154, %c0_203] : memref<272x128xf32, #tpu.memory_space<vmem>>, vector<2x128xf32>
    %205 = arith.maximumf %203, %204 : vector<2x128xf32>
    %206 = vector.extract_strided_slice %205 {offsets = [0, 0], sizes = [2, 16], strides = [1, 1]} : vector<2x128xf32> to vector<2x16xf32>
    %c0_204 = arith.constant 0 : index
    %c208 = arith.constant 208 : index
    %207 = vector.load %arg8[%c0_204, %c208] : memref<8x512xf32, #tpu.memory_space<vmem>>, vector<2x16xf32>
    tpu.vector_store %arg8[%c0_204, %c208], %206 {strides = array<i32>} : memref<8x512xf32, #tpu.memory_space<vmem>>, vector<2x16xf32>,
    %c128_205 = arith.constant 128 : index
    %c0_206 = arith.constant 0 : index
    %208 = vector.load %arg7[%c128_205, %c0_206] : memref<272x128xf32, #tpu.memory_space<vmem>>, vector<2x128xf32>
    %c130 = arith.constant 130 : index
    %c0_207 = arith.constant 0 : index
    %209 = vector.load %arg7[%c130, %c0_207] : memref<272x128xf32, #tpu.memory_space<vmem>>, vector<2x128xf32>
    %210 = arith.maximumf %208, %209 : vector<2x128xf32>
    %c156 = arith.constant 156 : index
    %c0_208 = arith.constant 0 : index
    %211 = vector.load %arg7[%c156, %c0_208] : memref<272x128xf32, #tpu.memory_space<vmem>>, vector<2x128xf32>
    %212 = arith.maximumf %210, %211 : vector<2x128xf32>
    %c158 = arith.constant 158 : index
    %c0_209 = arith.constant 0 : index
    %213 = vector.load %arg7[%c158, %c0_209] : memref<272x128xf32, #tpu.memory_space<vmem>>, vector<2x128xf32>
    %214 = arith.maximumf %212, %213 : vector<2x128xf32>
    %215 = vector.extract_strided_slice %214 {offsets = [0, 0], sizes = [2, 16], strides = [1, 1]} : vector<2x128xf32> to vector<2x16xf32>
    %c0_210 = arith.constant 0 : index
    %c224 = arith.constant 224 : index
    %216 = vector.load %arg8[%c0_210, %c224] : memref<8x512xf32, #tpu.memory_space<vmem>>, vector<2x16xf32>
    tpu.vector_store %arg8[%c0_210, %c224], %215 {strides = array<i32>} : memref<8x512xf32, #tpu.memory_space<vmem>>, vector<2x16xf32>,
    %c168_211 = arith.constant 168 : index
    %c0_212 = arith.constant 0 : index
    %217 = vector.load %arg7[%c168_211, %c0_212] : memref<272x128xf32, #tpu.memory_space<vmem>>, vector<2x128xf32>
    %c170 = arith.constant 170 : index
    %c0_213 = arith.constant 0 : index
    %218 = vector.load %arg7[%c170, %c0_213] : memref<272x128xf32, #tpu.memory_space<vmem>>, vector<2x128xf32>
    %219 = arith.maximumf %217, %218 : vector<2x128xf32>
    %c196 = arith.constant 196 : index
    %c0_214 = arith.constant 0 : index
    %220 = vector.load %arg7[%c196, %c0_214] : memref<272x128xf32, #tpu.memory_space<vmem>>, vector<2x128xf32>
    %221 = arith.maximumf %219, %220 : vector<2x128xf32>
    %c198 = arith.constant 198 : index
    %c0_215 = arith.constant 0 : index
    %222 = vector.load %arg7[%c198, %c0_215] : memref<272x128xf32, #tpu.memory_space<vmem>>, vector<2x128xf32>
    %223 = arith.maximumf %221, %222 : vector<2x128xf32>
    %224 = vector.extract_strided_slice %223 {offsets = [0, 0], sizes = [2, 16], strides = [1, 1]} : vector<2x128xf32> to vector<2x16xf32>
    %c0_216 = arith.constant 0 : index
    %c240 = arith.constant 240 : index
    %225 = vector.load %arg8[%c0_216, %c240] : memref<8x512xf32, #tpu.memory_space<vmem>>, vector<2x16xf32>
    tpu.vector_store %arg8[%c0_216, %c240], %224 {strides = array<i32>} : memref<8x512xf32, #tpu.memory_space<vmem>>, vector<2x16xf32>,
    %c172 = arith.constant 172 : index
    %c0_217 = arith.constant 0 : index
    %226 = vector.load %arg7[%c172, %c0_217] : memref<272x128xf32, #tpu.memory_space<vmem>>, vector<2x128xf32>
    %c174 = arith.constant 174 : index
    %c0_218 = arith.constant 0 : index
    %227 = vector.load %arg7[%c174, %c0_218] : memref<272x128xf32, #tpu.memory_space<vmem>>, vector<2x128xf32>
    %228 = arith.maximumf %226, %227 : vector<2x128xf32>
    %c200 = arith.constant 200 : index
    %c0_219 = arith.constant 0 : index
    %229 = vector.load %arg7[%c200, %c0_219] : memref<272x128xf32, #tpu.memory_space<vmem>>, vector<2x128xf32>
    %230 = arith.maximumf %228, %229 : vector<2x128xf32>
    %c202 = arith.constant 202 : index
    %c0_220 = arith.constant 0 : index
    %231 = vector.load %arg7[%c202, %c0_220] : memref<272x128xf32, #tpu.memory_space<vmem>>, vector<2x128xf32>
    %232 = arith.maximumf %230, %231 : vector<2x128xf32>
    %233 = vector.extract_strided_slice %232 {offsets = [0, 0], sizes = [2, 16], strides = [1, 1]} : vector<2x128xf32> to vector<2x16xf32>
    %c0_221 = arith.constant 0 : index
    %c256 = arith.constant 256 : index
    %234 = vector.load %arg8[%c0_221, %c256] : memref<8x512xf32, #tpu.memory_space<vmem>>, vector<2x16xf32>
    tpu.vector_store %arg8[%c0_221, %c256], %233 {strides = array<i32>} : memref<8x512xf32, #tpu.memory_space<vmem>>, vector<2x16xf32>,
    %c176_222 = arith.constant 176 : index
    %c0_223 = arith.constant 0 : index
    %235 = vector.load %arg7[%c176_222, %c0_223] : memref<272x128xf32, #tpu.memory_space<vmem>>, vector<2x128xf32>
    %c178 = arith.constant 178 : index
    %c0_224 = arith.constant 0 : index
    %236 = vector.load %arg7[%c178, %c0_224] : memref<272x128xf32, #tpu.memory_space<vmem>>, vector<2x128xf32>
    %237 = arith.maximumf %235, %236 : vector<2x128xf32>
    %c204 = arith.constant 204 : index
    %c0_225 = arith.constant 0 : index
    %238 = vector.load %arg7[%c204, %c0_225] : memref<272x128xf32, #tpu.memory_space<vmem>>, vector<2x128xf32>
    %239 = arith.maximumf %237, %238 : vector<2x128xf32>
    %c206 = arith.constant 206 : index
    %c0_226 = arith.constant 0 : index
    %240 = vector.load %arg7[%c206, %c0_226] : memref<272x128xf32, #tpu.memory_space<vmem>>, vector<2x128xf32>
    %241 = arith.maximumf %239, %240 : vector<2x128xf32>
    %242 = vector.extract_strided_slice %241 {offsets = [0, 0], sizes = [2, 16], strides = [1, 1]} : vector<2x128xf32> to vector<2x16xf32>
    %c0_227 = arith.constant 0 : index
    %c272 = arith.constant 272 : index
    %243 = vector.load %arg8[%c0_227, %c272] : memref<8x512xf32, #tpu.memory_space<vmem>>, vector<2x16xf32>
    tpu.vector_store %arg8[%c0_227, %c272], %242 {strides = array<i32>} : memref<8x512xf32, #tpu.memory_space<vmem>>, vector<2x16xf32>,
    %c180 = arith.constant 180 : index
    %c0_228 = arith.constant 0 : index
    %244 = vector.load %arg7[%c180, %c0_228] : memref<272x128xf32, #tpu.memory_space<vmem>>, vector<2x128xf32>
    %c182 = arith.constant 182 : index
    %c0_229 = arith.constant 0 : index
    %245 = vector.load %arg7[%c182, %c0_229] : memref<272x128xf32, #tpu.memory_space<vmem>>, vector<2x128xf32>
    %246 = arith.maximumf %244, %245 : vector<2x128xf32>
    %c208_230 = arith.constant 208 : index
    %c0_231 = arith.constant 0 : index
    %247 = vector.load %arg7[%c208_230, %c0_231] : memref<272x128xf32, #tpu.memory_space<vmem>>, vector<2x128xf32>
    %248 = arith.maximumf %246, %247 : vector<2x128xf32>
    %c210 = arith.constant 210 : index
    %c0_232 = arith.constant 0 : index
    %249 = vector.load %arg7[%c210, %c0_232] : memref<272x128xf32, #tpu.memory_space<vmem>>, vector<2x128xf32>
    %250 = arith.maximumf %248, %249 : vector<2x128xf32>
    %251 = vector.extract_strided_slice %250 {offsets = [0, 0], sizes = [2, 16], strides = [1, 1]} : vector<2x128xf32> to vector<2x16xf32>
    %c0_233 = arith.constant 0 : index
    %c288 = arith.constant 288 : index
    %252 = vector.load %arg8[%c0_233, %c288] : memref<8x512xf32, #tpu.memory_space<vmem>>, vector<2x16xf32>
    tpu.vector_store %arg8[%c0_233, %c288], %251 {strides = array<i32>} : memref<8x512xf32, #tpu.memory_space<vmem>>, vector<2x16xf32>,
    %c184_234 = arith.constant 184 : index
    %c0_235 = arith.constant 0 : index
    %253 = vector.load %arg7[%c184_234, %c0_235] : memref<272x128xf32, #tpu.memory_space<vmem>>, vector<2x128xf32>
    %c186 = arith.constant 186 : index
    %c0_236 = arith.constant 0 : index
    %254 = vector.load %arg7[%c186, %c0_236] : memref<272x128xf32, #tpu.memory_space<vmem>>, vector<2x128xf32>
    %255 = arith.maximumf %253, %254 : vector<2x128xf32>
    %c212 = arith.constant 212 : index
    %c0_237 = arith.constant 0 : index
    %256 = vector.load %arg7[%c212, %c0_237] : memref<272x128xf32, #tpu.memory_space<vmem>>, vector<2x128xf32>
    %257 = arith.maximumf %255, %256 : vector<2x128xf32>
    %c214 = arith.constant 214 : index
    %c0_238 = arith.constant 0 : index
    %258 = vector.load %arg7[%c214, %c0_238] : memref<272x128xf32, #tpu.memory_space<vmem>>, vector<2x128xf32>
    %259 = arith.maximumf %257, %258 : vector<2x128xf32>
    %260 = vector.extract_strided_slice %259 {offsets = [0, 0], sizes = [2, 16], strides = [1, 1]} : vector<2x128xf32> to vector<2x16xf32>
    %c0_239 = arith.constant 0 : index
    %c304 = arith.constant 304 : index
    %261 = vector.load %arg8[%c0_239, %c304] : memref<8x512xf32, #tpu.memory_space<vmem>>, vector<2x16xf32>
    tpu.vector_store %arg8[%c0_239, %c304], %260 {strides = array<i32>} : memref<8x512xf32, #tpu.memory_space<vmem>>, vector<2x16xf32>,
    %c224_240 = arith.constant 224 : index
    %c0_241 = arith.constant 0 : index
    %262 = vector.load %arg7[%c224_240, %c0_241] : memref<272x128xf32, #tpu.memory_space<vmem>>, vector<2x128xf32>
    %c226 = arith.constant 226 : index
    %c0_242 = arith.constant 0 : index
    %263 = vector.load %arg7[%c226, %c0_242] : memref<272x128xf32, #tpu.memory_space<vmem>>, vector<2x128xf32>
    %264 = arith.maximumf %262, %263 : vector<2x128xf32>
    %c252 = arith.constant 252 : index
    %c0_243 = arith.constant 0 : index
    %265 = vector.load %arg7[%c252, %c0_243] : memref<272x128xf32, #tpu.memory_space<vmem>>, vector<2x128xf32>
    %266 = arith.maximumf %264, %265 : vector<2x128xf32>
    %c254 = arith.constant 254 : index
    %c0_244 = arith.constant 0 : index
    %267 = vector.load %arg7[%c254, %c0_244] : memref<272x128xf32, #tpu.memory_space<vmem>>, vector<2x128xf32>
    %268 = arith.maximumf %266, %267 : vector<2x128xf32>
    %269 = vector.extract_strided_slice %268 {offsets = [0, 0], sizes = [2, 16], strides = [1, 1]} : vector<2x128xf32> to vector<2x16xf32>
    %c0_245 = arith.constant 0 : index
    %c320 = arith.constant 320 : index
    %270 = vector.load %arg8[%c0_245, %c320] : memref<8x512xf32, #tpu.memory_space<vmem>>, vector<2x16xf32>
    tpu.vector_store %arg8[%c0_245, %c320], %269 {strides = array<i32>} : memref<8x512xf32, #tpu.memory_space<vmem>>, vector<2x16xf32>,
    %c228 = arith.constant 228 : index
    %c0_246 = arith.constant 0 : index
    %271 = vector.load %arg7[%c228, %c0_246] : memref<272x128xf32, #tpu.memory_space<vmem>>, vector<2x128xf32>
    %c230 = arith.constant 230 : index
    %c0_247 = arith.constant 0 : index
    %272 = vector.load %arg7[%c230, %c0_247] : memref<272x128xf32, #tpu.memory_space<vmem>>, vector<2x128xf32>
    %273 = arith.maximumf %271, %272 : vector<2x128xf32>
    %c256_248 = arith.constant 256 : index
    %c0_249 = arith.constant 0 : index
    %274 = vector.load %arg7[%c256_248, %c0_249] : memref<272x128xf32, #tpu.memory_space<vmem>>, vector<2x128xf32>
    %275 = arith.maximumf %273, %274 : vector<2x128xf32>
    %c258 = arith.constant 258 : index
    %c0_250 = arith.constant 0 : index
    %276 = vector.load %arg7[%c258, %c0_250] : memref<272x128xf32, #tpu.memory_space<vmem>>, vector<2x128xf32>
    %277 = arith.maximumf %275, %276 : vector<2x128xf32>
    %278 = vector.extract_strided_slice %277 {offsets = [0, 0], sizes = [2, 16], strides = [1, 1]} : vector<2x128xf32> to vector<2x16xf32>
    %c0_251 = arith.constant 0 : index
    %c336 = arith.constant 336 : index
    %279 = vector.load %arg8[%c0_251, %c336] : memref<8x512xf32, #tpu.memory_space<vmem>>, vector<2x16xf32>
    tpu.vector_store %arg8[%c0_251, %c336], %278 {strides = array<i32>} : memref<8x512xf32, #tpu.memory_space<vmem>>, vector<2x16xf32>,
    %c232 = arith.constant 232 : index
    %c0_252 = arith.constant 0 : index
    %280 = vector.load %arg7[%c232, %c0_252] : memref<272x128xf32, #tpu.memory_space<vmem>>, vector<2x128xf32>
    %c234 = arith.constant 234 : index
    %c0_253 = arith.constant 0 : index
    %281 = vector.load %arg7[%c234, %c0_253] : memref<272x128xf32, #tpu.memory_space<vmem>>, vector<2x128xf32>
    %282 = arith.maximumf %280, %281 : vector<2x128xf32>
    %c260 = arith.constant 260 : index
    %c0_254 = arith.constant 0 : index
    %283 = vector.load %arg7[%c260, %c0_254] : memref<272x128xf32, #tpu.memory_space<vmem>>, vector<2x128xf32>
    %284 = arith.maximumf %282, %283 : vector<2x128xf32>
    %c262 = arith.constant 262 : index
    %c0_255 = arith.constant 0 : index
    %285 = vector.load %arg7[%c262, %c0_255] : memref<272x128xf32, #tpu.memory_space<vmem>>, vector<2x128xf32>
    %286 = arith.maximumf %284, %285 : vector<2x128xf32>
    %287 = vector.extract_strided_slice %286 {offsets = [0, 0], sizes = [2, 16], strides = [1, 1]} : vector<2x128xf32> to vector<2x16xf32>
    %c0_256 = arith.constant 0 : index
    %c352 = arith.constant 352 : index
    %288 = vector.load %arg8[%c0_256, %c352] : memref<8x512xf32, #tpu.memory_space<vmem>>, vector<2x16xf32>
    tpu.vector_store %arg8[%c0_256, %c352], %287 {strides = array<i32>} : memref<8x512xf32, #tpu.memory_space<vmem>>, vector<2x16xf32>,
    %c236 = arith.constant 236 : index
    %c0_257 = arith.constant 0 : index
    %289 = vector.load %arg7[%c236, %c0_257] : memref<272x128xf32, #tpu.memory_space<vmem>>, vector<2x128xf32>
    %c238 = arith.constant 238 : index
    %c0_258 = arith.constant 0 : index
    %290 = vector.load %arg7[%c238, %c0_258] : memref<272x128xf32, #tpu.memory_space<vmem>>, vector<2x128xf32>
    %291 = arith.maximumf %289, %290 : vector<2x128xf32>
    %c264 = arith.constant 264 : index
    %c0_259 = arith.constant 0 : index
    %292 = vector.load %arg7[%c264, %c0_259] : memref<272x128xf32, #tpu.memory_space<vmem>>, vector<2x128xf32>
    %293 = arith.maximumf %291, %292 : vector<2x128xf32>
    %c266 = arith.constant 266 : index
    %c0_260 = arith.constant 0 : index
    %294 = vector.load %arg7[%c266, %c0_260] : memref<272x128xf32, #tpu.memory_space<vmem>>, vector<2x128xf32>
    %295 = arith.maximumf %293, %294 : vector<2x128xf32>
    %296 = vector.extract_strided_slice %295 {offsets = [0, 0], sizes = [2, 16], strides = [1, 1]} : vector<2x128xf32> to vector<2x16xf32>
    %c0_261 = arith.constant 0 : index
    %c368 = arith.constant 368 : index
    %297 = vector.load %arg8[%c0_261, %c368] : memref<8x512xf32, #tpu.memory_space<vmem>>, vector<2x16xf32>
    tpu.vector_store %arg8[%c0_261, %c368], %296 {strides = array<i32>} : memref<8x512xf32, #tpu.memory_space<vmem>>, vector<2x16xf32>,
    %c240_262 = arith.constant 240 : index
    %c0_263 = arith.constant 0 : index
    %298 = vector.load %arg7[%c240_262, %c0_263] : memref<272x128xf32, #tpu.memory_space<vmem>>, vector<2x128xf32>
    %c242 = arith.constant 242 : index
    %c0_264 = arith.constant 0 : index
    %299 = vector.load %arg7[%c242, %c0_264] : memref<272x128xf32, #tpu.memory_space<vmem>>, vector<2x128xf32>
    %300 = arith.maximumf %298, %299 : vector<2x128xf32>
    %c268 = arith.constant 268 : index
    %c0_265 = arith.constant 0 : index
    %301 = vector.load %arg7[%c268, %c0_265] : memref<272x128xf32, #tpu.memory_space<vmem>>, vector<2x128xf32>
    %302 = arith.maximumf %300, %301 : vector<2x128xf32>
    %c270 = arith.constant 270 : index
    %c0_266 = arith.constant 0 : index
    %303 = vector.load %arg7[%c270, %c0_266] : memref<272x128xf32, #tpu.memory_space<vmem>>, vector<2x128xf32>
    %304 = arith.maximumf %302, %303 : vector<2x128xf32>
    %305 = vector.extract_strided_slice %304 {offsets = [0, 0], sizes = [2, 16], strides = [1, 1]} : vector<2x128xf32> to vector<2x16xf32>
    %c0_267 = arith.constant 0 : index
    %c384 = arith.constant 384 : index
    %306 = vector.load %arg8[%c0_267, %c384] : memref<8x512xf32, #tpu.memory_space<vmem>>, vector<2x16xf32>
    tpu.vector_store %arg8[%c0_267, %c384], %305 {strides = array<i32>} : memref<8x512xf32, #tpu.memory_space<vmem>>, vector<2x16xf32>,
    %c0_268 = arith.constant 0 : index
    %c0_269 = arith.constant 0 : index
    %307 = vector.load %arg8[%c0_268, %c0_269] : memref<8x512xf32, #tpu.memory_space<vmem>>, vector<8x512xf32>
    %c256_270 = arith.constant 256 : index
    %c0_271 = arith.constant 0 : index
    %308 = vector.load %arg2[%c256_270, %c0_271] : memref<1032x128xf32, #tpu.memory_space<vmem>>, vector<512x128xf32>
    %cst_272 = arith.constant dense<0.000000e+00> : vector<8x128xf32>
    %309 = tpu.matmul %307, %308, %cst_272 {dimension_numbers = #tpu.dot_dimension_numbers<[1], [0], [0], [1], [0, 0, 1, 1], [], []>} : vector<8x512xf32>, vector<512x128xf32>, vector<8x128xf32> -> vector<8x128xf32>
    %c1026 = arith.constant 1026 : index
    %c0_273 = arith.constant 0 : index
    %310 = vector.load %arg2[%c1026, %c0_273] : memref<1032x128xf32, #tpu.memory_space<vmem>>, vector<1x128xf32>
    %311 = vector.broadcast %310 : vector<1x128xf32> to vector<8x128xf32>
    %312 = arith.addf %309, %311 : vector<8x128xf32>
    %cst_274 = arith.constant 0.000000e+00 : f32
    %313 = vector.broadcast %cst_274 : f32 to vector<8x128xf32>
    %314 = arith.maximumf %312, %313 : vector<8x128xf32>
    %c768 = arith.constant 768 : index
    %c0_275 = arith.constant 0 : index
    %315 = vector.load %arg2[%c768, %c0_275] : memref<1032x128xf32, #tpu.memory_space<vmem>>, vector<128x128xf32>
    %cst_276 = arith.constant dense<0.000000e+00> : vector<8x128xf32>
    %316 = tpu.matmul %314, %315, %cst_276 {dimension_numbers = #tpu.dot_dimension_numbers<[1], [0], [0], [1], [0, 0, 1, 1], [], []>} : vector<8x128xf32>, vector<128x128xf32>, vector<8x128xf32> -> vector<8x128xf32>
    %c1027 = arith.constant 1027 : index
    %c0_277 = arith.constant 0 : index
    %317 = vector.load %arg2[%c1027, %c0_277] : memref<1032x128xf32, #tpu.memory_space<vmem>>, vector<1x128xf32>
    %318 = vector.broadcast %317 : vector<1x128xf32> to vector<8x128xf32>
    %319 = arith.addf %316, %318 : vector<8x128xf32>
    %cst_278 = arith.constant 0.000000e+00 : f32
    %320 = vector.broadcast %cst_278 : f32 to vector<8x128xf32>
    %321 = arith.maximumf %319, %320 : vector<8x128xf32>
    %c896 = arith.constant 896 : index
    %c0_279 = arith.constant 0 : index
    %322 = vector.load %arg2[%c896, %c0_279] : memref<1032x128xf32, #tpu.memory_space<vmem>>, vector<128x128xf32>
    %cst_280 = arith.constant dense<0.000000e+00> : vector<8x128xf32>
    %323 = tpu.matmul %321, %322, %cst_280 {dimension_numbers = #tpu.dot_dimension_numbers<[1], [0], [0], [1], [0, 0, 1, 1], [], []>} : vector<8x128xf32>, vector<128x128xf32>, vector<8x128xf32> -> vector<8x128xf32>
    %c1028 = arith.constant 1028 : index
    %c0_281 = arith.constant 0 : index
    %324 = vector.load %arg2[%c1028, %c0_281] : memref<1032x128xf32, #tpu.memory_space<vmem>>, vector<1x128xf32>
    %325 = vector.broadcast %324 : vector<1x128xf32> to vector<8x128xf32>
    %326 = arith.addf %323, %325 : vector<8x128xf32>
    %c0_282 = arith.constant 0 : index
    %c0_283 = arith.constant 0 : index
    %327 = vector.load %arg3[%c0_282, %c0_283] : memref<8x128xf32, #tpu.memory_space<vmem>>, vector<8x128xf32>
    tpu.vector_store %arg3[%c0_282, %c0_283], %326 {strides = array<i32>} : memref<8x128xf32, #tpu.memory_space<vmem>>, vector<8x128xf32>,
    return
  }
}

</mosaic_0001>

<bundles_post_ra>
// kernel: net_forward.1
= control target key start
LH: loop header
LB: loop body
LE: loop exit
PB: predicated region body
PF: predicated region fallthrough
CT: control target
= control target key end

     0   :  { %vm717_vm0 = vcmask 261120   ;;  %s9504_s17 = smov 56   ;;  %s9505_s18 = smov 32   ;;  %vm2624_vm1 = vcmask 64512   ;;  %vm2829_vm2 = vcmask 130112   ;;  %vm3034_vm3 = vcmask 195712   ;;  %s13954_s1 = inlined_call_operand.vmem [shape: bf16[32,128], index: 1, kind: input, shape index: {}]   ;;  %s13955_s0 = inlined_call_operand.vmem [shape: bf16[1568,32], index: 0, kind: input, shape index: {}]   ;;  %s13956_s2 = inlined_call_operand.vmem [shape: f32[1032,128], index: 2, kind: input, shape index: {}]   ;;  %s13957_s3 = inlined_call_operand.vmem [shape: f32[8,128], index: 3, kind: output, shape index: {}]  }
   0x1   :  { %v9399_v0 = vld [vmem:[%s13954_s1] sm:$0xff]   ;;  %v9400_v1 = vld [vmem:[%s13954_s1 + $0x8] sm:$0xff]   ;;  %v9403_v4 = vld [vmem:[%s13955_s0 + $0x10] sm:$0xff]   ;;  %s9506_s19 = smov 8   ;;  %s9507_s20 = smov 64   ;;  %vm3239_vm4 = vcmask 261312  }
   0x2   :  { %8947 = vmatprep.subr.bf16.mxu0 %v9399_v0  ;;  %v9401_v2 = vld [vmem:[%s13955_s0] sm:$0xff]   ;;  %9377 = vmatprep.subr.bf16.mxu1 %v9399_v0  ;;  %v9402_v3 = vld [vmem:[%s13955_s0 + $0x8] sm:$0xff]   ;;  %v9404_v5 = vld [vmem:[%s13955_s0 + $0x18] sm:$0xff]   ;;  %s9508_s1 = smov 40   ;;  %s9509_s21 = smov 48   ;;  %vm3444_vm5 = vcmask 326912  }
   0x3   :  { %8948 = vmatpush3.bf16.msra.mxu0 %v9399_v0  ;;  %9379 = vmatpush3.bf16.msra.mxu1 %v9399_v0  ;;  %v9405_v6 = vld [vmem:[%s13955_s0 + $0x20] sm:$0xff]   ;;  %v9406_v7 = vld [vmem:[%s13955_s0 + $0x28] sm:$0xff]   ;;  %v9407_v8 = vld [vmem:[%s13955_s0 + $0x30] sm:$0xff]   ;;  %s9510_s22 = smov 16   ;;  %s9511_s23 = smov 24   ;;  %vm3649_vm6 = vcmask 392512  }
   0x4   :  { %8949 = vmatprep.subr.bf16.mxu0 %v9400_v1  ;;  %8951 = vmatprep.mubr.msk.bf16.mxu0 %vm717_vm0, %v9401_v2  ;;  %v9408_v9 = vld [vmem:[%s13955_s0 + $0x38] sm:$0xff]   ;;  %v9409_v10 = vld [vmem:[%s13955_s0 + $0x40] sm:$0xff]   ;;  %v9410_v11 = vld [vmem:[%s13955_s0 + $0x48] sm:$0xff]   ;;  %vm3854_vm7 = vcmask 458112   ;;  %vm4059_vm8 = vcmask 523712   ;;  %s9512_s24 = smov 80  }
   0x5   :  { %9378 = vmatprep.subr.bf16.mxu1 %v9400_v1  ;;  %v9411_v12 = vld [vmem:[%s13955_s0 + $0x50] sm:$0xff]   ;;  %v9412_v13 = vld [vmem:[%s13955_s0 + $0x58] sm:$0xff]   ;;  %v9413_v14 = vld [vmem:[%s13955_s0 + $0x60] sm:$0xff]   ;;  %s9513_s25 = smov 72   ;;  %s9514_s26 = smov 88   ;;  %vm4264_vm9 = vcmask 589312  }
   0x6   :  { %v9414_v15 = vld [vmem:[%s13955_s0 + $0x68] sm:$0xff]   ;;  %v9415_v16 = vld [vmem:[%s13955_s0 + $0x70] sm:$0xff]   ;;  %v9416_v17 = vld [vmem:[%s13955_s0 + $0x78] sm:$0xff]   ;;  %s9515_s27 = smov 96   ;;  %s9516_s28 = smov 104   ;;  %vm4469_vm10 = vcmask 654912  }
   0x7   :  { %8950 = vmatpush3.bf16.msra.mxu0 %v9400_v1  ;;  %9380 = vmatpush3.bf16.msra.mxu1 %v9400_v1  ;;  %v9417_v18 = vld [vmem:[%s13955_s0 + $0x80] sm:$0xff]   ;;  %v9418_v19 = vld [vmem:[%s13955_s0 + $0x88] sm:$0xff]   ;;  %v9419_v20 = vld [vmem:[%s13955_s0 + $0x90] sm:$0xff]   ;;  %s9517_s29 = smov 112   ;;  %s9519_s13 = smov 120   ;;  %vm4674_vm11 = vcmask 720512  }
   0x8   :  { %v9420_v21 = vld [vmem:[%s13955_s0 + $0x98] sm:$0xff]   ;;  %v9421_v22 = vld [vmem:[%s13955_s0 + $0xa0] sm:$0xff]   ;;  %v9422_v23 = vld [vmem:[%s13955_s0 + $0xa8] sm:$0xff]   ;;  %vm4879_vm12 = vcmask 786112   ;;  %vm5084_vm13 = vcmask 851712   ;;  %vm5289_vm14 = vcmask 917312  }
   0x9   :  { %v9423_v24 = vld [vmem:[%s13955_s0 + $0xb0] sm:$0xff]   ;;  %v9424_v25 = vld [vmem:[%s13955_s0 + $0xb8] sm:$0xff]   ;;  %v9425_v26 = vld [vmem:[%s13955_s0 + $0xc0] sm:$0xff]   ;;  %vm5494_vm15 = vcmask 982912  }
   0xa   :  { %8952 = vmatmul.mubr.msk.bf16.vlgmr.msra.gmra.mrb[0].mxu0 %vm717_vm0, %v9402_v3  ;;  %v9456_v27 = vld [vmem:[%s13955_s0 + $0x280] sm:$0xff]   ;;  %v9458_v28 = vld [vmem:[%s13955_s0 + $0x288] sm:$0xff]   ;;  %v9427_v30 = vld [vmem:[%s13955_s0 + $0xd0] sm:$0xff]  }
   0xb   :  { %8955 = vmatprep.mubr.msk.bf16.mxu0 %vm717_vm0, %v9403_v4  ;;  %9111 = vmatprep.mubr.msk.bf16.mxu1 %vm717_vm0, %v9456_v27  ;;  %v9426_v29 = vld [vmem:[%s13955_s0 + $0xc8] sm:$0xff]   ;;  %v9461_v31 = vld [vmem:[%s13955_s0 + $0x290] sm:$0xff]   ;;  %v9462_v32 = vld [vmem:[%s13955_s0 + $0x298] sm:$0xff]  }
   0xc   :  { %9112 = vmatmul.mubr.msk.bf16.vlgmr.msra.gmra.mrb[0].mxu1 %vm717_vm0, %v9458_v28  ;;  %v9428_v33 = vld [vmem:[%s13955_s0 + $0xd8] sm:$0xff]   ;;  %v9429_v34 = vld [vmem:[%s13955_s0 + $0xe0] sm:$0xff]   ;;  %v9466_v36 = vld [vmem:[%s13955_s0 + $0x2a8] sm:$0xff]  }
   0xd   :  { %9115 = vmatprep.mubr.msk.bf16.mxu1 %vm717_vm0, %v9461_v31  ;;  %v9465_v35 = vld [vmem:[%s13955_s0 + $0x2a0] sm:$0xff]   ;;  %v9430_v37 = vld [vmem:[%s13955_s0 + $0xe8] sm:$0xff]   ;;  %v9431_v38 = vld [vmem:[%s13955_s0 + $0xf0] sm:$0xff]  }
   0xe   :  { %v9469_v39 = vld [vmem:[%s13955_s0 + $0x2b0] sm:$0xff]   ;;  %v9470_v40 = vld [vmem:[%s13955_s0 + $0x2b8] sm:$0xff]   ;;  %v9433_v42 = vld [vmem:[%s13955_s0 + $0x100] sm:$0xff]  }
   0xf   :  { %v9432_v41 = vld [vmem:[%s13955_s0 + $0xf8] sm:$0xff]   ;;  %v9473_v43 = vld [vmem:[%s13955_s0 + $0x2c0] sm:$0xff]   ;;  %v9474_v44 = vld [vmem:[%s13955_s0 + $0x2c8] sm:$0xff]  }
  0x10   :  { %v9434_v45 = vld [vmem:[%s13955_s0 + $0x108] sm:$0xff]   ;;  %v9435_v46 = vld [vmem:[%s13955_s0 + $0x110] sm:$0xff]   ;;  %v9478_v48 = vld [vmem:[%s13955_s0 + $0x2d8] sm:$0xff]  }
  0x11   :  { %v9477_v47 = vld [vmem:[%s13955_s0 + $0x2d0] sm:$0xff]   ;;  %v9436_v49 = vld [vmem:[%s13955_s0 + $0x118] sm:$0xff]   ;;  %v9437_v50 = vld [vmem:[%s13955_s0 + $0x120] sm:$0xff]  }
  0x12   :  { %8956 = vmatmul.mubr.msk.bf16.gmra.mrb[4].mxu0 %vm717_vm0, %v9404_v5  ;;  %v9481_v51 = vld [vmem:[%s13955_s0 + $0x2e0] sm:$0xff]   ;;  %v9482_v52 = vld [vmem:[%s13955_s0 + $0x2e8] sm:$0xff]   ;;  %v9439_v54 = vld [vmem:[%s13955_s0 + $0x130] sm:$0xff]  }
  0x13   :  { %8959 = vmatprep.mubr.msk.bf16.mxu0 %vm717_vm0, %v9405_v6  ;;  %v9438_v53 = vld [vmem:[%s13955_s0 + $0x128] sm:$0xff]   ;;  %v9485_v55 = vld [vmem:[%s13955_s0 + $0x2f0] sm:$0xff]   ;;  %v9486_v56 = vld [vmem:[%s13955_s0 + $0x2f8] sm:$0xff]  }
  0x14   :  { %9116 = vmatmul.mubr.msk.bf16.gmra.mrb[4].mxu1 %vm717_vm0, %v9462_v32  ;;  %v9440_v57 = vld [vmem:[%s13955_s0 + $0x138] sm:$0xff]   ;;  %v9441_v58 = vld [vmem:[%s13955_s0 + $0x140] sm:$0xff]   ;;  %v9490_v60 = vld [vmem:[%s13955_s0 + $0x308] sm:$0xff]  }
  0x15   :  { %9119 = vmatprep.mubr.msk.bf16.mxu1 %vm717_vm0, %v9465_v35  ;;  %v9489_v59 = vld [vmem:[%s13955_s0 + $0x300] sm:$0xff]   ;;  %v9442_v61 = vld [vmem:[%s13955_s0 + $0x148] sm:$0xff]   ;;  %v9443_v62 = vld [vmem:[%s13955_s0 + $0x150] sm:$0xff]  }
  0x16   :  { %v9444_v63 = vld [vmem:[%s13955_s0 + $0x158] sm:$0xff]   ;;  %v9445_v0 = vld [vmem:[%s13955_s0 + $0x160] sm:$0xff]   ;;  %v9446_v1 = vld [vmem:[%s13955_s0 + $0x168] sm:$0xff]  }
  0x17   :  { %v9447_v2 = vld [vmem:[%s13955_s0 + $0x170] sm:$0xff]   ;;  %v9448_v3 = vld [vmem:[%s13955_s0 + $0x178] sm:$0xff]   ;;  %v9449_v4 = vld [vmem:[%s13955_s0 + $0x180] sm:$0xff]  }
  0x18   :  { %v9450_v5 = vld [vmem:[%s13955_s0 + $0x188] sm:$0xff]   ;;  %v9451_v6 = vld [vmem:[%s13955_s0 + $0x190] sm:$0xff]   ;;  %v9467_v27 = vld [vmem:[%s13955_s0 + $0x1e0] sm:$0xff]  }
  0x19   :  { %v9468_v31 = vld [vmem:[%s13955_s0 + $0x1e8] sm:$0xff]  }
  0x1a   :  { %8960 = vmatmul.mubr.msk.bf16.gmra.mrb[8].mxu0 %vm717_vm0, %v9406_v7  ;;  %v9452_v7 = vld [vmem:[%s13955_s0 + $0x198] sm:$0xff]  }
  0x1b   :  { %8963 = vmatprep.mubr.msk.bf16.mxu0 %vm717_vm0, %v9407_v8  ;;  %v9453_v8 = vld [vmem:[%s13955_s0 + $0x1a0] sm:$0xff]  }
  0x1c   :  { %9120 = vmatmul.mubr.msk.bf16.gmra.mrb[8].mxu1 %vm717_vm0, %v9466_v36 }
  0x1d   :  { %9123 = vmatprep.mubr.msk.bf16.mxu1 %vm717_vm0, %v9469_v39  ;;  %v9475_v39 = vld [vmem:[%s13955_s0 + $0x200] sm:$0xff]  }
  0x22   :  { %8964 = vmatmul.mubr.msk.bf16.gmra.mrb[12].mxu0 %vm717_vm0, %v9408_v9  ;;  %v9454_v9 = vld [vmem:[%s13955_s0 + $0x1a8] sm:$0xff]  }
  0x23   :  { %8967 = vmatprep.mubr.msk.bf16.mxu0 %vm717_vm0, %v9409_v10  ;;  %v9455_v10 = vld [vmem:[%s13955_s0 + $0x1b0] sm:$0xff]  }
  0x24   :  { %9124 = vmatmul.mubr.msk.bf16.gmra.mrb[12].mxu1 %vm717_vm0, %v9470_v40 }
  0x25   :  { %9127 = vmatprep.mubr.msk.bf16.mxu1 %vm717_vm0, %v9473_v43  ;;  %v9476_v43 = vld [vmem:[%s13955_s0 + $0x208] sm:$0xff]  }
  0x2a   :  { %8968 = vmatmul.mubr.msk.bf16.gmra.mrb[16].mxu0 %vm717_vm0, %v9410_v11 }
  0x2b   :  { %8971 = vmatprep.mubr.msk.bf16.mxu0 %vm717_vm0, %v9411_v12 }
  0x2c   :  { %9128 = vmatmul.mubr.msk.bf16.gmra.mrb[16].mxu1 %vm717_vm0, %v9474_v44 }
  0x2d   :  { %9131 = vmatprep.mubr.msk.bf16.mxu1 %vm717_vm0, %v9477_v47 }
  0x32   :  { %8972 = vmatmul.mubr.msk.bf16.gmra.mrb[20].mxu0 %vm717_vm0, %v9412_v13  ;;  %v9457_v13 = vld [vmem:[%s13955_s0 + $0x1b8] sm:$0xff]  }
  0x33   :  { %8975 = vmatprep.mubr.msk.bf16.mxu0 %vm717_vm0, %v9413_v14 }
  0x34   :  { %9132 = vmatmul.mubr.msk.bf16.gmra.mrb[20].mxu1 %vm717_vm0, %v9478_v48 }
  0x35   :  { %9135 = vmatprep.mubr.msk.bf16.mxu1 %vm717_vm0, %v9481_v51  ;;  %v9483_v51 = vld [vmem:[%s13955_s0 + $0x220] sm:$0xff]  }
  0x3a   :  { %8976 = vmatmul.mubr.msk.bf16.gmra.mrb[24].mxu0 %vm717_vm0, %v9414_v15  ;;  %v9459_v15 = vld [vmem:[%s13955_s0 + $0x1c0] sm:$0xff]  }
  0x3b   :  { %8979 = vmatprep.mubr.msk.bf16.mxu0 %vm717_vm0, %v9415_v16 }
  0x3c   :  { %9136 = vmatmul.mubr.msk.bf16.gmra.mrb[24].mxu1 %vm717_vm0, %v9482_v52 }
  0x3d   :  { %9139 = vmatprep.mubr.msk.bf16.mxu1 %vm717_vm0, %v9485_v55  ;;  %v9484_v55 = vld [vmem:[%s13955_s0 + $0x228] sm:$0xff]  }
  0x42   :  { %8980 = vmatmul.mubr.msk.bf16.gmra.mrb[28].mxu0 %vm717_vm0, %v9416_v17 }
  0x43   :  { %8983 = vmatprep.mubr.msk.bf16.mxu0 %vm717_vm0, %v9417_v18 }
  0x44   :  { %9140 = vmatmul.mubr.msk.bf16.gmra.mrb[28].mxu1 %vm717_vm0, %v9486_v56 }
  0x45   :  { %9143 = vmatprep.mubr.msk.bf16.mxu1 %vm717_vm0, %v9489_v59 }
  0x4a   :  { %8984 = vmatmul.mubr.msk.bf16.gmra.mrb[32].mxu0 %vm717_vm0, %v9418_v19  ;;  %v9460_v19 = vld [vmem:[%s13955_s0 + $0x1c8] sm:$0xff]  }
  0x4b   :  { %8987 = vmatprep.mubr.msk.bf16.mxu0 %vm717_vm0, %v9419_v20 }
  0x4c   :  { %9144 = vmatmul.mubr.msk.bf16.gmra.mrb[32].mxu1 %vm717_vm0, %v9490_v60 }
  0x52   :  { %8988 = vmatmul.mubr.msk.bf16.gmra.mrb[36].mxu0 %vm717_vm0, %v9420_v21  ;;  %v9463_v21 = vld [vmem:[%s13955_s0 + $0x1d0] sm:$0xff]  }
  0x53   :  { %8991 = vmatprep.mubr.msk.bf16.mxu0 %vm717_vm0, %v9421_v22 }
  0x5a   :  { %8992 = vmatmul.mubr.msk.bf16.gmra.mrb[40].mxu0 %vm717_vm0, %v9422_v23 }
  0x5b   :  { %8995 = vmatprep.mubr.msk.bf16.mxu0 %vm717_vm0, %v9423_v24 }
  0x62   :  { %8996 = vmatmul.mubr.msk.bf16.gmra.mrb[44].mxu0 %vm717_vm0, %v9424_v25  ;;  %v9464_v25 = vld [vmem:[%s13955_s0 + $0x1d8] sm:$0xff]  }
  0x63   :  { %8999 = vmatprep.mubr.msk.bf16.mxu0 %vm717_vm0, %v9425_v26 }
  0x6a   :  { %9000 = vmatmul.mubr.msk.bf16.gmra.mrb[48].mxu0 %vm717_vm0, %v9426_v29 }
  0x6b   :  { %9003 = vmatprep.mubr.msk.bf16.mxu0 %vm717_vm0, %v9427_v30 }
  0x72   :  { %9004 = vmatmul.mubr.msk.bf16.gmra.mrb[52].mxu0 %vm717_vm0, %v9428_v33  ;;  %v9471_v33 = vld [vmem:[%s13955_s0 + $0x1f0] sm:$0xff]  }
  0x73   :  { %9007 = vmatprep.mubr.msk.bf16.mxu0 %vm717_vm0, %v9429_v34 }
  0x7a   :  { %9008 = vmatmul.mubr.msk.bf16.gmra.mrb[56].mxu0 %vm717_vm0, %v9430_v37  ;;  %v9472_v37 = vld [vmem:[%s13955_s0 + $0x1f8] sm:$0xff]  }
  0x7b   :  { %9011 = vmatprep.mubr.msk.bf16.mxu0 %vm717_vm0, %v9431_v38 }
  0x82   :  { %9012 = vmatmul.mubr.msk.bf16.gmra.mrb[60].mxu0 %vm717_vm0, %v9432_v41 }
  0x83   :  { %9015 = vmatprep.mubr.msk.bf16.mxu0 %vm717_vm0, %v9433_v42 }
  0x8a   :  { %9016 = vmatmul.mubr.msk.bf16.gmra.mrb[64].mxu0 %vm717_vm0, %v9434_v45  ;;  %v9479_v45 = vld [vmem:[%s13955_s0 + $0x210] sm:$0xff]  }
  0x8b   :  { %9019 = vmatprep.mubr.msk.bf16.mxu0 %vm717_vm0, %v9435_v46 }
  0x92   :  { %9020 = vmatmul.mubr.msk.bf16.gmra.mrb[68].mxu0 %vm717_vm0, %v9436_v49  ;;  %v9480_v49 = vld [vmem:[%s13955_s0 + $0x218] sm:$0xff]  }
  0x93   :  { %9023 = vmatprep.mubr.msk.bf16.mxu0 %vm717_vm0, %v9437_v50 }
  0x9a   :  { %9024 = vmatmul.mubr.msk.bf16.gmra.mrb[72].mxu0 %vm717_vm0, %v9438_v53 }
  0x9b   :  { %9027 = vmatprep.mubr.msk.bf16.mxu0 %vm717_vm0, %v9439_v54 }
  0xa2   :  { %9028 = vmatmul.mubr.msk.bf16.gmra.mrb[76].mxu0 %vm717_vm0, %v9440_v57  ;;  %v9487_v57 = vld [vmem:[%s13955_s0 + $0x230] sm:$0xff]  }
  0xa3   :  { %9031 = vmatprep.mubr.msk.bf16.mxu0 %vm717_vm0, %v9441_v58 }
  0xaa   :  { %9032 = vmatmul.mubr.msk.bf16.gmra.mrb[80].mxu0 %vm717_vm0, %v9442_v61  ;;  %v9488_v61 = vld [vmem:[%s13955_s0 + $0x238] sm:$0xff]  }
  0xab   :  { %9035 = vmatprep.mubr.msk.bf16.mxu0 %vm717_vm0, %v9443_v62 }
  0xb2   :  { %9036 = vmatmul.mubr.msk.bf16.gmra.mrb[84].mxu0 %vm717_vm0, %v9444_v63  ;;  %v9491_v63 = vld [vmem:[%s13955_s0 + $0x240] sm:$0xff]  }
  0xb3   :  { %9039 = vmatprep.mubr.msk.bf16.mxu0 %vm717_vm0, %v9445_v0 }
  0xba   :  { %9040 = vmatmul.mubr.msk.bf16.gmra.mrb[88].mxu0 %vm717_vm0, %v9446_v1 }
  0xbb   :  { %9043 = vmatprep.mubr.msk.bf16.mxu0 %vm717_vm0, %v9447_v2 }
  0xc2   :  { %9044 = vmatmul.mubr.msk.bf16.gmra.mrb[92].mxu0 %vm717_vm0, %v9448_v3  ;;  %v9492_v3 = vld [vmem:[%s13955_s0 + $0x248] sm:$0xff]  }
  0xc3   :  { %9047 = vmatprep.mubr.msk.bf16.mxu0 %vm717_vm0, %v9449_v4 }
  0xca   :  { %9048 = vmatmul.mubr.msk.bf16.gmra.mrb[96].mxu0 %vm717_vm0, %v9450_v5  ;;  %v9493_v5 = vld [vmem:[%s13955_s0 + $0x250] sm:$0xff]  }
  0xcb   :  { %9051 = vmatprep.mubr.msk.bf16.mxu0 %vm717_vm0, %v9451_v6 }
  0xd2   :  { %9052 = vmatmul.mubr.msk.bf16.gmra.mrb[100].mxu0 %vm717_vm0, %v9452_v7 }
  0xd3   :  { %9055 = vmatprep.mubr.msk.bf16.mxu0 %vm717_vm0, %v9453_v8 }
  0xda   :  { %9056 = vmatmul.mubr.msk.bf16.gmra.mrb[104].mxu0 %vm717_vm0, %v9454_v9  ;;  %v9494_v9 = vld [vmem:[%s13955_s0 + $0x258] sm:$0xff]  }
  0xdb   :  { %9059 = vmatprep.mubr.msk.bf16.mxu0 %vm717_vm0, %v9455_v10 }
  0xdd   :  { %v9839_v11 = vpop.f32.mrb[0].mxu0 }
  0xde   :  { %14034 = vst [vmem:[#allocation7_spill] sm:$0xff] %v9839_v11  ;;  %v9841_v12 = vpop.f32.mrb[1].mxu0 }
  0xdf   :  { %14035 = vst [vmem:[#allocation8_spill] sm:$0xff] %v9841_v12  ;;  %v9846_v14 = vpop.f32.mrb[2].mxu0 }
  0xe0   :  { %14036 = vst [vmem:[#allocation9_spill] sm:$0xff] %v9846_v14  ;;  %v9851_v16 = vpop.f32.mrb[3].mxu0 }
  0xe1   :  { %14037 = vst [vmem:[#allocation10_spill] sm:$0xff] %v9851_v16 }
  0xe2   :  { %9060 = vmatmul.mubr.msk.bf16.gmra.mrb[108].mxu0 %vm717_vm0, %v9457_v13  ;;  %v9495_v13 = vld [vmem:[%s13955_s0 + $0x260] sm:$0xff]  }
  0xe3   :  { %9063 = vmatprep.mubr.msk.bf16.mxu0 %vm717_vm0, %v9459_v15 }
  0xe5   :  { %v9855_v17 = vpop.f32.mrb[4].mxu0 }
  0xe6   :  { %14038 = vst [vmem:[#allocation11_spill] sm:$0xff] %v9855_v17  ;;  %v9857_v18 = vpop.f32.mrb[5].mxu0 }
  0xe7   :  { %14039 = vst [vmem:[#allocation12_spill] sm:$0xff] %v9857_v18  ;;  %v9862_v20 = vpop.f32.mrb[6].mxu0 }
  0xe8   :  { %14040 = vst [vmem:[#allocation13_spill] sm:$0xff] %v9862_v20  ;;  %v9867_v22 = vpop.f32.mrb[7].mxu0 }
  0xe9   :  { %14041 = vst [vmem:[#allocation14_spill] sm:$0xff] %v9867_v22 }
  0xea   :  { %9064 = vmatmul.mubr.msk.bf16.gmra.mrb[112].mxu0 %vm717_vm0, %v9460_v19 }
  0xeb   :  { %9067 = vmatprep.mubr.msk.bf16.mxu0 %vm717_vm0, %v9463_v21 }
  0xed   :  { %v9871_v23 = vpop.f32.mrb[8].mxu0 }
  0xee   :  { %14042 = vst [vmem:[#allocation15_spill] sm:$0xff] %v9871_v23  ;;  %v9873_v24 = vpop.f32.mrb[9].mxu0 }
  0xef   :  { %14043 = vst [vmem:[#allocation16_spill] sm:$0xff] %v9873_v24  ;;  %v9878_v26 = vpop.f32.mrb[10].mxu0 }
  0xf0   :  { %14044 = vst [vmem:[#allocation17_spill] sm:$0xff] %v9878_v26  ;;  %v9883_v28 = vpop.f32.mrb[11].mxu0 }
  0xf1   :  { %14045 = vst [vmem:[#allocation18_spill] sm:$0xff] %v9883_v28 }
  0xf2   :  { %9068 = vmatmul.mubr.msk.bf16.gmra.mrb[116].mxu0 %vm717_vm0, %v9464_v25  ;;  %v9496_v25 = vld [vmem:[%s13955_s0 + $0x268] sm:$0xff]  }
  0xf3   :  { %9071 = vmatprep.mubr.msk.bf16.mxu0 %vm717_vm0, %v9467_v27  ;;  %v10022_v27 = vpop.f32.mrb[0].mxu1 }
  0xf5   :  { %v9887_v29 = vpop.f32.mrb[12].mxu0 }
  0xf6   :  { %v9889_v30 = vpop.f32.mrb[13].mxu0 }
  0xf7   :  { %14046 = vst [vmem:[#allocation19_spill] sm:$0xff] %v9889_v30  ;;  %v9894_v32 = vpop.f32.mrb[14].mxu0 }
  0xf8   :  { %v9899_v34 = vpop.f32.mrb[15].mxu0 }
  0xfa   :  { %9072 = vmatmul.mubr.msk.bf16.gmra.mrb[120].mxu0 %vm717_vm0, %v9468_v31 }
  0xfb   :  { %9075 = vmatprep.mubr.msk.bf16.mxu0 %vm717_vm0, %v9471_v33  ;;  %v9497_v33 = vld [vmem:[%s13955_s0 + $0x270] sm:$0xff]  }
  0xfd   :  { %v9903_v35 = vpop.f32.mrb[16].mxu0 }
  0xfe   :  { %v9905_v36 = vpop.f32.mrb[17].mxu0 }
  0xff   :  { %v9910_v38 = vpop.f32.mrb[18].mxu0 }
 0x100   :  { %v9915_v40 = vpop.f32.mrb[19].mxu0 }
 0x102   :  { %9076 = vmatmul.mubr.msk.bf16.gmra.mrb[124].mxu0 %vm717_vm0, %v9472_v37  ;;  %v10029_v37 = vpop.f32.mrb[1].mxu1 }
 0x103   :  { %9079 = vmatprep.mubr.msk.bf16.mxu0 %vm717_vm0, %v9475_v39 }
 0x105   :  { %v9919_v41 = vpop.f32.mrb[20].mxu0 }
 0x106   :  { %14047 = vst [vmem:[#allocation20_spill] sm:$0xff] %v9919_v41  ;;  %v9921_v42 = vpop.f32.mrb[21].mxu0 }
 0x107   :  { %v9926_v44 = vpop.f32.mrb[22].mxu0 }
 0x108   :  { %v9931_v46 = vpop.f32.mrb[23].mxu0 }
 0x10a   :  { %9080 = vmatmul.mubr.msk.bf16.gmra.mrb[128].mxu0 %vm717_vm0, %v9476_v43  ;;  %v10033_v43 = vpop.f32.mrb[2].mxu1 }
 0x10b   :  { %9083 = vmatprep.mubr.msk.bf16.mxu0 %vm717_vm0, %v9479_v45  ;;  %v10035_v45 = vpop.f32.mrb[3].mxu1 }
 0x10d   :  { %v9935_v47 = vpop.f32.mrb[24].mxu0 }
 0x10e   :  { %14048 = vst [vmem:[#allocation21_spill] sm:$0xff] %v9935_v47  ;;  %v9937_v48 = vpop.f32.mrb[25].mxu0 }
 0x10f   :  { %v9942_v50 = vpop.f32.mrb[26].mxu0 }
 0x110   :  { %v9947_v52 = vpop.f32.mrb[27].mxu0 }
 0x112   :  { %9084 = vmatmul.mubr.msk.bf16.gmra.mrb[132].mxu0 %vm717_vm0, %v9480_v49 }
 0x113   :  { %9087 = vmatprep.mubr.msk.bf16.mxu0 %vm717_vm0, %v9483_v51 }
 0x115   :  { %v9951_v53 = vpop.f32.mrb[28].mxu0 }
 0x116   :  { %14049 = vst [vmem:[#allocation22_spill] sm:$0xff] %v9951_v53  ;;  %v9953_v54 = vpop.f32.mrb[29].mxu0 }
 0x117   :  { %v9958_v56 = vpop.f32.mrb[30].mxu0 }
 0x118   :  { %v9963_v58 = vpop.f32.mrb[31].mxu0 }
 0x11a   :  { %9088 = vmatmul.mubr.msk.bf16.gmra.mrb[136].mxu0 %vm717_vm0, %v9484_v55 }
 0x11b   :  { %9091 = vmatprep.mubr.msk.bf16.mxu0 %vm717_vm0, %v9487_v57  ;;  %v9498_v57 = vld [vmem:[%s13955_s0 + $0x278] sm:$0xff]  }
 0x11d   :  { %v9967_v59 = vpop.f32.mrb[32].mxu0 }
 0x11e   :  { %14050 = vst [vmem:[#allocation23_spill] sm:$0xff] %v9967_v59  ;;  %v9969_v60 = vpop.f32.mrb[33].mxu0 }
 0x11f   :  { %v9974_v62 = vpop.f32.mrb[34].mxu0 }
 0x120   :  { %v9979_v0 = vpop.f32.mrb[35].mxu0 }
 0x122   :  { %9092 = vmatmul.mubr.msk.bf16.gmra.mrb[140].mxu0 %vm717_vm0, %v9488_v61  ;;  %v10048_v61 = vpop.f32.mrb[4].mxu1 }
 0x123   :  { %9095 = vmatprep.mubr.msk.bf16.mxu0 %vm717_vm0, %v9491_v63  ;;  %14060 = vst [vmem:[#allocation33_spill] sm:$0xff] %v10048_v61 }
 0x125   :  { %v9983_v1 = vpop.f32.mrb[36].mxu0 }
 0x126   :  { %14051 = vst [vmem:[#allocation24_spill] sm:$0xff] %v9983_v1  ;;  %v9985_v2 = vpop.f32.mrb[37].mxu0 }
 0x127   :  { %v9990_v4 = vpop.f32.mrb[38].mxu0 }
 0x128   :  { %14052 = vst [vmem:[#allocation25_spill] sm:$0xff] %v9990_v4  ;;  %v9995_v6 = vpop.f32.mrb[39].mxu0 }
 0x12a   :  { %9096 = vmatmul.mubr.msk.bf16.gmra.mrb[144].mxu0 %vm717_vm0, %v9492_v3  ;;  %v10052_v3 = vpop.f32.mrb[5].mxu1 }
 0x12b   :  { %9099 = vmatprep.mubr.msk.bf16.mxu0 %vm717_vm0, %v9493_v5 }
 0x12d   :  { %v9999_v7 = vpop.f32.mrb[40].mxu0 }
 0x12e   :  { %14053 = vst [vmem:[#allocation26_spill] sm:$0xff] %v9999_v7  ;;  %v10001_v8 = vpop.f32.mrb[41].mxu0 }
 0x12f   :  { %v10006_v10 = vpop.f32.mrb[42].mxu0 }
 0x130   :  { %14054 = vst [vmem:[#allocation27_spill] sm:$0xff] %v10006_v10  ;;  %v10011_v15 = vpop.f32.mrb[43].mxu0 }
 0x132   :  { %9100 = vmatmul.mubr.msk.bf16.gmra.mrb[148].mxu0 %vm717_vm0, %v9494_v9 }
 0x133   :  { %9103 = vmatprep.mubr.msk.bf16.mxu0 %vm717_vm0, %v9495_v13 }
 0x135   :  { %v10015_v19 = vpop.f32.mrb[44].mxu0 }
 0x136   :  { %14055 = vst [vmem:[#allocation28_spill] sm:$0xff] %v10015_v19  ;;  %v10017_v21 = vpop.f32.mrb[45].mxu0 }
 0x137   :  { %v10024_v31 = vpop.f32.mrb[46].mxu0 }
 0x138   :  { %14056 = vst [vmem:[#allocation29_spill] sm:$0xff] %v10024_v31  ;;  %v10031_v39 = vpop.f32.mrb[47].mxu0 }
 0x139   :  { %14057 = vst [vmem:[#allocation30_spill] sm:$0xff] %v10031_v39 }
 0x13a   :  { %9104 = vmatmul.mubr.msk.bf16.gmra.mrb[152].mxu0 %vm717_vm0, %v9496_v25  ;;  %v10061_v25 = vpop.f32.mrb[6].mxu1 }
 0x13b   :  { %9107 = vmatprep.mubr.msk.bf16.mxu0 %vm717_vm0, %v9497_v33  ;;  %v10065_v51 = vpop.f32.mrb[7].mxu1 }
 0x13c   :  { %v10071_v61 = vpop.f32.mrb[8].mxu1 }
 0x13d   :  { %v10039_v49 = vpop.f32.mrb[48].mxu0  ;;  %14065 = vst [vmem:[#allocation38_spill] sm:$0xff] %v10071_v61  ;;  %v10077_v13 = vpop.f32.mrb[9].mxu1 }
 0x13e   :  { %14058 = vst [vmem:[#allocation31_spill] sm:$0xff] %v10039_v49  ;;  %v10043_v55 = vpop.f32.mrb[49].mxu0  ;;  %v10158_v49 = vpop.f32.mrb[10].mxu1 }
 0x13f   :  { %14059 = vst [vmem:[#allocation32_spill] sm:$0xff] %v10043_v55  ;;  %v10050_v63 = vpop.f32.mrb[50].mxu0 }
 0x140   :  { %14061 = vst [vmem:[#allocation34_spill] sm:$0xff] %v10050_v63  ;;  %v10056_v9 = vpop.f32.mrb[51].mxu0 }
 0x141   :  { %14062 = vst [vmem:[#allocation35_spill] sm:$0xff] %v10056_v9  ;;  %v9503_v9 = vmov 0.0  }
 0x142   :  { %9108 = vmatmul.mubr.msk.bf16.gmra.mrb[156].mxu0 %vm717_vm0, %v9498_v57  ;;  %2527 = vst [vmem:[#allocation4 + $0x28] sm:$0xff] %v9503_v9  ;;  %2520 = vst [vmem:[#allocation3 + $0x188] sm:$0xff] %v9503_v9  ;;  %vm5699_vm0 = vcmask 1048512  }
 0x143   :  { %2522 = vst [vmem:[#allocation4] sm:$0xff] %v9503_v9  ;;  %2523 = vst [vmem:[#allocation4 + $0x8] sm:$0xff] %v9503_v9 }
 0x144   :  { %2524 = vst [vmem:[#allocation4 + $0x10] sm:$0xff] %v9503_v9  ;;  %2525 = vst [vmem:[#allocation4 + $0x18] sm:$0xff] %v9503_v9 }
 0x145   :  { %v10063_v33 = vpop.f32.mrb[52].mxu0  ;;  %2526 = vst [vmem:[#allocation4 + $0x20] sm:$0xff] %v9503_v9  ;;  %2528 = vst [vmem:[#allocation4 + $0x30] sm:$0xff] %v9503_v9 }
 0x146   :  { %14063 = vst [vmem:[#allocation36_spill] sm:$0xff] %v10063_v33  ;;  %v10069_v16 = vpop.f32.mrb[53].mxu0  ;;  %2529 = vst [vmem:[#allocation4 + $0x38] sm:$0xff] %v9503_v9 }
 0x147   :  { %14064 = vst [vmem:[#allocation37_spill] sm:$0xff] %v10069_v16  ;;  %v10075_v63 = vpop.f32.mrb[54].mxu0  ;;  %2530 = vst [vmem:[#allocation4 + $0x40] sm:$0xff] %v9503_v9 }
 0x148   :  { %14066 = vst [vmem:[#allocation39_spill] sm:$0xff] %v10075_v63  ;;  %v10081_v11 = vpop.f32.mrb[55].mxu0  ;;  %2531 = vst [vmem:[#allocation4 + $0x48] sm:$0xff] %v9503_v9  ;;  %v10162_v63 = vpop.f32.mrb[11].mxu1 }
 0x149   :  { %14067 = vst [vmem:[#allocation40_spill] sm:$0xff] %v10081_v11  ;;  %2532 = vst [vmem:[#allocation4 + $0x50] sm:$0xff] %v9503_v9  ;;  %v10168_v22 = vpop.f32.mrb[12].mxu1 }
 0x14a   :  { %2533 = vst [vmem:[#allocation4 + $0x58] sm:$0xff] %v9503_v9  ;;  %2534 = vst [vmem:[#allocation4 + $0x60] sm:$0xff] %v9503_v9  ;;  %v10174_v14 = vpop.f32.mrb[13].mxu1 }
 0x14b   :  { %2535 = vst [vmem:[#allocation4 + $0x68] sm:$0xff] %v9503_v9  ;;  %2536 = vst [vmem:[#allocation4 + $0x70] sm:$0xff] %v9503_v9  ;;  %v10182_v17 = vpop.f32.mrb[14].mxu1 }
 0x14c   :  { %2537 = vst [vmem:[#allocation4 + $0x78] sm:$0xff] %v9503_v9  ;;  %2538 = vst [vmem:[#allocation4 + $0x80] sm:$0xff] %v9503_v9  ;;  %v10186_v28 = vpop.f32.mrb[15].mxu1 }
 0x14d   :  { %2539 = vst [vmem:[#allocation4 + $0x88] sm:$0xff] %v9503_v9  ;;  %2540 = vst [vmem:[#allocation4 + $0x90] sm:$0xff] %v9503_v9  ;;  %v10160_v5 = vpop.f32.mrb[56].mxu0  ;;  %v10192_v20 = vpop.f32.mrb[16].mxu1 }
 0x14e   :  { %2541 = vst [vmem:[#allocation4 + $0x98] sm:$0xff] %v9503_v9  ;;  %2542 = vst [vmem:[#allocation4 + $0xa0] sm:$0xff] %v9503_v9  ;;  %v10166_v33 = vpop.f32.mrb[57].mxu0  ;;  %v10198_v23 = vpop.f32.mrb[17].mxu1 }
 0x14f   :  { %2543 = vst [vmem:[#allocation4 + $0xa8] sm:$0xff] %v9503_v9  ;;  %2544 = vst [vmem:[#allocation4 + $0xb0] sm:$0xff] %v9503_v9  ;;  %v10206_v16 = vpop.f32.mrb[18].mxu1 }
 0x150   :  { %2545 = vst [vmem:[#allocation4 + $0xb8] sm:$0xff] %v9503_v9  ;;  %2546 = vst [vmem:[#allocation4 + $0xc0] sm:$0xff] %v9503_v9 }
 0x151   :  { %2547 = vst [vmem:[#allocation4 + $0xc8] sm:$0xff] %v9503_v9  ;;  %2548 = vst [vmem:[#allocation4 + $0xd0] sm:$0xff] %v9503_v9 }
 0x152   :  { %2549 = vst [vmem:[#allocation4 + $0xd8] sm:$0xff] %v9503_v9  ;;  %2550 = vst [vmem:[#allocation4 + $0xe0] sm:$0xff] %v9503_v9 }
 0x153   :  { %2551 = vst [vmem:[#allocation4 + $0xe8] sm:$0xff] %v9503_v9  ;;  %2552 = vst [vmem:[#allocation4 + $0xf0] sm:$0xff] %v9503_v9 }
 0x154   :  { %2553 = vst [vmem:[#allocation4 + $0xf8] sm:$0xff] %v9503_v9  ;;  %2554 = vst [vmem:[#allocation4 + $0x100] sm:$0xff] %v9503_v9 }
 0x155   :  { %2555 = vst [vmem:[#allocation4 + $0x108] sm:$0xff] %v9503_v9  ;;  %2556 = vst [vmem:[#allocation4 + $0x110] sm:$0xff] %v9503_v9 }
 0x156   :  { %2557 = vst [vmem:[#allocation4 + $0x118] sm:$0xff] %v9503_v9  ;;  %2558 = vst [vmem:[#allocation4 + $0x120] sm:$0xff] %v9503_v9 }
 0x157   :  { %2559 = vst [vmem:[#allocation4 + $0x128] sm:$0xff] %v9503_v9  ;;  %2560 = vst [vmem:[#allocation4 + $0x130] sm:$0xff] %v9503_v9 }
 0x158   :  { %2561 = vst [vmem:[#allocation4 + $0x138] sm:$0xff] %v9503_v9  ;;  %2562 = vst [vmem:[#allocation4 + $0x140] sm:$0xff] %v9503_v9 }
 0x159   :  { %2563 = vst [vmem:[#allocation4 + $0x148] sm:$0xff] %v9503_v9  ;;  %2564 = vst [vmem:[#allocation4 + $0x150] sm:$0xff] %v9503_v9 }
 0x15a   :  { %2565 = vst [vmem:[#allocation4 + $0x158] sm:$0xff] %v9503_v9  ;;  %2566 = vst [vmem:[#allocation4 + $0x160] sm:$0xff] %v9503_v9 }
 0x15b   :  { %2567 = vst [vmem:[#allocation4 + $0x168] sm:$0xff] %v9503_v9  ;;  %2568 = vst [vmem:[#allocation4 + $0x170] sm:$0xff] %v9503_v9 }
 0x15c   :  { %2569 = vst [vmem:[#allocation4 + $0x178] sm:$0xff] %v9503_v9  ;;  %2570 = vst [vmem:[#allocation4 + $0x180] sm:$0xff] %v9503_v9 }
 0x15d   :  { %2571 = vst [vmem:[#allocation4 + $0x188] sm:$0xff] %v9503_v9  ;;  %2572 = vst [vmem:[#allocation4 + $0x190] sm:$0xff] %v9503_v9 }
 0x15e   :  { %2573 = vst [vmem:[#allocation4 + $0x198] sm:$0xff] %v9503_v9  ;;  %2574 = vst [vmem:[#allocation4 + $0x1a0] sm:$0xff] %v9503_v9 }
 0x15f   :  { %2575 = vst [vmem:[#allocation4 + $0x1a8] sm:$0xff] %v9503_v9  ;;  %2576 = vst [vmem:[#allocation4 + $0x1b0] sm:$0xff] %v9503_v9 }
 0x160   :  { %2577 = vst [vmem:[#allocation4 + $0x1b8] sm:$0xff] %v9503_v9  ;;  %2578 = vst [vmem:[#allocation4 + $0x1c0] sm:$0xff] %v9503_v9 }
 0x161   :  { %2579 = vst [vmem:[#allocation4 + $0x1c8] sm:$0xff] %v9503_v9  ;;  %2580 = vst [vmem:[#allocation4 + $0x1d0] sm:$0xff] %v9503_v9 }
 0x162   :  { %2581 = vst [vmem:[#allocation4 + $0x1d8] sm:$0xff] %v9503_v9  ;;  %2582 = vst [vmem:[#allocation4 + $0x1e0] sm:$0xff] %v9503_v9 }
 0x163   :  { %2583 = vst [vmem:[#allocation4 + $0x1e8] sm:$0xff] %v9503_v9  ;;  %2584 = vst [vmem:[#allocation4 + $0x1f0] sm:$0xff] %v9503_v9 }
 0x164   :  { %2585 = vst [vmem:[#allocation4 + $0x1f8] sm:$0xff] %v9503_v9  ;;  %2586 = vst [vmem:[#allocation4 + $0x200] sm:$0xff] %v9503_v9 }
 0x165   :  { %2587 = vst [vmem:[#allocation4 + $0x208] sm:$0xff] %v9503_v9  ;;  %2588 = vst [vmem:[#allocation4 + $0x210] sm:$0xff] %v9503_v9 }
 0x166   :  { %2589 = vst [vmem:[#allocation4 + $0x218] sm:$0xff] %v9503_v9  ;;  %7842 = vst [vmem:[#allocation6] sm:$0xff] %v9503_v9 }
 0x167   :  { %7843 = vst [vmem:[#allocation6 + $0x8] sm:$0xff] %v9503_v9  ;;  %7844 = vst [vmem:[#allocation6 + $0x10] sm:$0xff] %v9503_v9 }
 0x168   :  { %7845 = vst [vmem:[#allocation6 + $0x18] sm:$0xff] %v9503_v9  ;;  %14068 = vst [vmem:[#allocation41_spill] sm:$0xff] %v10160_v5  ;;  %v10172_v9 = vpop.f32.mrb[58].mxu0 }
 0x169   :  { %14069 = vst [vmem:[#allocation42_spill] sm:$0xff] %v10166_v33  ;;  %14070 = vst [vmem:[#allocation43_spill] sm:$0xff] %v10168_v22  ;;  %v10178_v11 = vpop.f32.mrb[59].mxu0 }
 0x16a   :  { %14071 = vst [vmem:[#allocation44_spill] sm:$0xff] %v10172_v9  ;;  %14072 = vst [vmem:[#allocation45_spill] sm:$0xff] %v10174_v14  ;;  %v10184_v5 = vpop.f32.mrb[60].mxu0 }
 0x16b   :  { %14073 = vst [vmem:[#allocation46_spill] sm:$0xff] %v10178_v11  ;;  %14074 = vst [vmem:[#allocation47_spill] sm:$0xff] %v10182_v17  ;;  %v10190_v33 = vpop.f32.mrb[61].mxu0 }
 0x16c   :  { %14075 = vst [vmem:[#allocation48_spill] sm:$0xff] %v10186_v28  ;;  %14076 = vst [vmem:[#allocation49_spill] sm:$0xff] %v10190_v33  ;;  %v10196_v9 = vpop.f32.mrb[62].mxu0 }
 0x16d   :  { %14077 = vst [vmem:[#allocation50_spill] sm:$0xff] %v10192_v20  ;;  %14078 = vst [vmem:[#allocation51_spill] sm:$0xff] %v10198_v23  ;;  %v10202_v11 = vpop.f32.mrb[63].mxu0  ;;  %v10210_v20 = vpop.f32.mrb[19].mxu1 }
 0x16e   :  { %14079 = vst [vmem:[#allocation52_spill] sm:$0xff] %v10202_v11  ;;  %14080 = vst [vmem:[#allocation53_spill] sm:$0xff] %v10206_v16  ;;  %v10208_v12 = vpop.f32.mrb[64].mxu0  ;;  %v10216_v26 = vpop.f32.mrb[20].mxu1 }
 0x16f   :  { %14081 = vst [vmem:[#allocation54_spill] sm:$0xff] %v10210_v20  ;;  %v10214_v33 = vpop.f32.mrb[65].mxu0  ;;  %14082 = vst [vmem:[#allocation55_spill] sm:$0xff] %v10216_v26  ;;  %v10222_v23 = vpop.f32.mrb[21].mxu1 }
 0x170   :  { %v10220_v22 = vpop.f32.mrb[66].mxu0  ;;  %14083 = vst [vmem:[#allocation56_spill] sm:$0xff] %v10222_v23  ;;  %v10230_v57 = vpop.f32.mrb[22].mxu1 }
 0x171   :  { %v10226_v11 = vpop.f32.mrb[67].mxu0  ;;  %14084 = vst [vmem:[#allocation57_spill] sm:$0xff] %v10230_v57  ;;  %v10234_v26 = vpop.f32.mrb[23].mxu1 }
 0x172   :  { %v10232_v20 = vpop.f32.mrb[68].mxu0  ;;  %14085 = vst [vmem:[#allocation58_spill] sm:$0xff] %v10234_v26  ;;  %v10240_v23 = vpop.f32.mrb[24].mxu1 }
 0x173   :  { %v10238_v16 = vpop.f32.mrb[69].mxu0  ;;  %14086 = vst [vmem:[#allocation59_spill] sm:$0xff] %v10240_v23  ;;  %v10246_v17 = vpop.f32.mrb[25].mxu1 }
 0x174   :  { %v10244_v28 = vpop.f32.mrb[70].mxu0  ;;  %14088 = vst [vmem:[#allocation61_spill] sm:$0xff] %v10246_v17  ;;  %v10254_v18 = vpop.f32.mrb[26].mxu1 }
 0x175   :  { %14087 = vst [vmem:[#allocation60_spill] sm:$0xff] %v10244_v28  ;;  %v10250_v57 = vpop.f32.mrb[71].mxu0  ;;  %14089 = vst [vmem:[#allocation62_spill] sm:$0xff] %v10254_v18  ;;  %v10258_v23 = vpop.f32.mrb[27].mxu1 }
 0x176   :  { %v10256_v61 = vpop.f32.mrb[72].mxu0  ;;  %14091 = vst [vmem:[#allocation64_spill] sm:$0xff] %v10258_v23  ;;  %v10264_v17 = vpop.f32.mrb[28].mxu1 }
 0x177   :  { %14090 = vst [vmem:[#allocation63_spill] sm:$0xff] %v10256_v61  ;;  %v10262_v14 = vpop.f32.mrb[73].mxu0  ;;  %14093 = vst [vmem:[#allocation66_spill] sm:$0xff] %v10264_v17  ;;  %v10270_v41 = vpop.f32.mrb[29].mxu1 }
 0x178   :  { %14092 = vst [vmem:[#allocation65_spill] sm:$0xff] %v10262_v14  ;;  %v10268_v28 = vpop.f32.mrb[74].mxu0  ;;  %14095 = vst [vmem:[#allocation68_spill] sm:$0xff] %v10270_v41  ;;  %v10278_v24 = vpop.f32.mrb[30].mxu1 }
 0x179   :  { %14094 = vst [vmem:[#allocation67_spill] sm:$0xff] %v10268_v28  ;;  %v10274_v18 = vpop.f32.mrb[75].mxu0  ;;  %14096 = vst [vmem:[#allocation69_spill] sm:$0xff] %v10278_v24  ;;  %v10282_v17 = vpop.f32.mrb[31].mxu1 }
 0x17a   :  { %v10280_v61 = vpop.f32.mrb[76].mxu0  ;;  %14098 = vst [vmem:[#allocation71_spill] sm:$0xff] %v10282_v17  ;;  %v10288_v41 = vpop.f32.mrb[32].mxu1 }
 0x17b   :  { %14097 = vst [vmem:[#allocation70_spill] sm:$0xff] %v10280_v61  ;;  %v10286_v14 = vpop.f32.mrb[77].mxu0  ;;  %14100 = vst [vmem:[#allocation73_spill] sm:$0xff] %v10288_v41  ;;  %v10294_v47 = vpop.f32.mrb[33].mxu1 }
 0x17c   :  { %14099 = vst [vmem:[#allocation72_spill] sm:$0xff] %v10286_v14  ;;  %v10292_v28 = vpop.f32.mrb[78].mxu0  ;;  %14102 = vst [vmem:[#allocation75_spill] sm:$0xff] %v10294_v47  ;;  %v10304_v61 = vpop.f32.mrb[34].mxu1 }
 0x17d   :  { %14101 = vst [vmem:[#allocation74_spill] sm:$0xff] %v10292_v28  ;;  %v10298_v24 = vpop.f32.mrb[79].mxu0  ;;  %14104 = vst [vmem:[#allocation77_spill] sm:$0xff] %v10304_v61  ;;  %v10310_v14 = vpop.f32.mrb[35].mxu1 }
 0x17e   :  { %v10302_v30 = vpop.f32.mrb[80].mxu0  ;;  %14105 = vst [vmem:[#allocation78_spill] sm:$0xff] %v10310_v14 }
 0x17f   :  { %14103 = vst [vmem:[#allocation76_spill] sm:$0xff] %v10302_v30  ;;  %v10308_v26 = vpop.f32.mrb[81].mxu0 }
 0x180   :  { %v10314_v23 = vpop.f32.mrb[82].mxu0 }
 0x181   :  { %14106 = vst [vmem:[#allocation79_spill] sm:$0xff] %v10314_v23  ;;  %v10318_v17 = vpop.f32.mrb[83].mxu0 }
 0x185   :  { %v10322_v53 = vpop.f32.mrb[84].mxu0 }
 0x186   :  { %14107 = vst [vmem:[#allocation80_spill] sm:$0xff] %v10322_v53  ;;  %v10326_v30 = vpop.f32.mrb[85].mxu0 }
 0x187   :  { %14108 = vst [vmem:[#allocation81_spill] sm:$0xff] %v10326_v30  ;;  %v10330_v14 = vpop.f32.mrb[86].mxu0 }
 0x188   :  { %14109 = vst [vmem:[#allocation82_spill] sm:$0xff] %v10330_v14  ;;  %v10334_v23 = vpop.f32.mrb[87].mxu0 }
 0x18d   :  { %v10338_v59 = vpop.f32.mrb[88].mxu0 }
 0x18e   :  { %14110 = vst [vmem:[#allocation83_spill] sm:$0xff] %v10338_v59  ;;  %v10342_v53 = vpop.f32.mrb[89].mxu0 }
 0x18f   :  { %14111 = vst [vmem:[#allocation84_spill] sm:$0xff] %v10342_v53  ;;  %v10346_v30 = vpop.f32.mrb[90].mxu0 }
 0x190   :  { %14112 = vst [vmem:[#allocation85_spill] sm:$0xff] %v10346_v30  ;;  %v10350_v14 = vpop.f32.mrb[91].mxu0 }
 0x195   :  { %v10354_v1 = vpop.f32.mrb[92].mxu0 }
 0x196   :  { %14113 = vst [vmem:[#allocation86_spill] sm:$0xff] %v10354_v1  ;;  %v10358_v59 = vpop.f32.mrb[93].mxu0 }
 0x197   :  { %14114 = vst [vmem:[#allocation87_spill] sm:$0xff] %v10358_v59  ;;  %v10362_v53 = vpop.f32.mrb[94].mxu0 }
 0x198   :  { %14115 = vst [vmem:[#allocation88_spill] sm:$0xff] %v10362_v53  ;;  %v10366_v30 = vpop.f32.mrb[95].mxu0 }
 0x19d   :  { %v10370_v7 = vpop.f32.mrb[96].mxu0 }
 0x19e   :  { %14116 = vst [vmem:[#allocation89_spill] sm:$0xff] %v10370_v7  ;;  %v10372_v4 = vpop.f32.mrb[97].mxu0 }
 0x19f   :  { %14117 = vst [vmem:[#allocation90_spill] sm:$0xff] %v10372_v4  ;;  %v10376_v1 = vpop.f32.mrb[98].mxu0 }
 0x1a0   :  { %14118 = vst [vmem:[#allocation91_spill] sm:$0xff] %v10376_v1  ;;  %v10378_v47 = vpop.f32.mrb[99].mxu0 }
 0x1a1   :  { %14119 = vst [vmem:[#allocation92_spill] sm:$0xff] %v10378_v47 }
 0x1a5   :  { %v10382_v28 = vpop.f32.mrb[100].mxu0 }
 0x1a6   :  { %14120 = vst [vmem:[#allocation93_spill] sm:$0xff] %v10382_v28  ;;  %v10384_v53 = vpop.f32.mrb[101].mxu0 }
 0x1a7   :  { %14121 = vst [vmem:[#allocation94_spill] sm:$0xff] %v10384_v53  ;;  %v10386_v19 = vpop.f32.mrb[102].mxu0 }
 0x1a8   :  { %14122 = vst [vmem:[#allocation95_spill] sm:$0xff] %v10386_v19  ;;  %v10388_v61 = vpop.f32.mrb[103].mxu0  ;;  %v10408_v19 = vld [vmem:[%s13956_s2 + $0x400] ss:$0 sm:$0xff] }
 0x1a9   :  { %14123 = vst [vmem:[#allocation96_spill] sm:$0xff] %v10388_v61 }
 0x1ad   :  { %v10390_v7 = vpop.f32.mrb[104].mxu0 }
 0x1ae   :  { %14124 = vst [vmem:[#allocation97_spill] sm:$0xff] %v10390_v7  ;;  %v10392_v10 = vpop.f32.mrb[105].mxu0 }
 0x1af   :  { %14125 = vst [vmem:[#allocation98_spill] sm:$0xff] %v10392_v10  ;;  %v10394_v41 = vpop.f32.mrb[106].mxu0  ;;  %v14131_v10 = vmax.f32 %v9899_v34, %v10184_v5 }
 0x1b0   :  { %14126 = vst [vmem:[#allocation99_spill] sm:$0xff] %v10394_v41  ;;  %v10396_v1 = vpop.f32.mrb[107].mxu0 }
 0x1b1   :  { %14127 = vst [vmem:[#allocation100_spill] sm:$0xff] %v10396_v1 }
 0x1b5   :  { %v10398_v4 = vpop.f32.mrb[108].mxu0 }
 0x1b6   :  { %14128 = vst [vmem:[#allocation101_spill] sm:$0xff] %v10398_v4  ;;  %v10400_v31 = vpop.f32.mrb[109].mxu0 }
 0x1b7   :  { %14129 = vst [vmem:[#allocation102_spill] sm:$0xff] %v10400_v31  ;;  %v9062_v59 = vpop.f32.mrb[110].mxu0 }
 0x1b8   :  { %v2283_v28 = vmax.f32 %v9062_v59, %v10029_v37  ;;  %v10403_v53 = vpop.f32.mrb[111].mxu0 }
 0x1b9   :  { %14130 = vst [vmem:[#allocation103_spill] sm:$0xff] %v10403_v53  ;;  %v14132_v53 = vmax.f32 %v9905_v36, %v10226_v11  ;;  %v14134_v11 = vmax.f32 %v9915_v40, %v10208_v12 }
 0x1ba   :  { %v2332_v41 = vmax.f32 %v14131_v10, %v2283_v28  ;;  %v14133_v28 = vmax.f32 %v9887_v29, %v10196_v9  ;;  %v14138_v9 = vld [vmem:[#allocation33_spill] sm:$0xff] }
 0x1bc   :  { %v2386_v7 = vadd.f32 %v10408_v19, %v2332_v41 }
 0x1bd   :  { %v9065_v1 = vpop.f32.mrb[112].mxu0 }
 0x1be   :  { %v2435_v4 = vmax.f32 %v2386_v7, 0.0  ;;  %v2286_v31 = vmax.f32 %v9065_v1, %v10033_v43  ;;  %v1494_v61 = vpop.f32.mrb[113].mxu0  ;;  %v14135_v7 = vmax.f32 %v9894_v32, %v10214_v33 }
 0x1bf   :  { %v2284_v59 = vmax.f32 %v1494_v61, %v10035_v45  ;;  %v9066_v37 = vpop.f32.mrb[114].mxu0  ;;  %v14136_v61 = vmax.f32 %v9921_v42, %v10250_v57  ;;  %v14139_v42 = vmax.f32 %v9931_v46, %v10232_v20 }
 0x1c0   :  { %2484 = vst [vmem:[#allocation3 + $0x68] sm:$0xff] %v2435_v4  ;;  %v2335_v47 = vmax.f32 %v14132_v53, %v2286_v31  ;;  %v2287_v55 = vmax.f32 %v9066_v37, %v10052_v3  ;;  %v1497_v39 = vpop.f32.mrb[115].mxu0  ;;  %3975 = vrot.lane.b32.xlu1 %v2435_v4, %s9504_s17  ;;  %3366 = vrot.lane.b32.xlu0 %v2435_v4, %s9505_s18 }
 0x1c1   :  { %v2333_v34 = vmax.f32 %v14133_v28, %v2284_v59  ;;  %v2285_v41 = vmax.f32 %v1497_v39, %v10022_v27  ;;  %v14140_v28 = vmax.f32 %v9910_v38, %v10238_v16 }
 0x1c2   :  { %v2389_v1 = vadd.f32 %v10408_v19, %v2335_v47  ;;  %v2336_v36 = vmax.f32 %v14134_v11, %v2287_v55 }
 0x1c3   :  { %v2387_v53 = vadd.f32 %v10408_v19, %v2333_v34  ;;  %v2334_v10 = vmax.f32 %v14135_v7, %v2285_v41 }
 0x1c4   :  { %v2438_v31 = vmax.f32 %v2389_v1, 0.0  ;;  %v2390_v43 = vadd.f32 %v10408_v19, %v2336_v36  ;;  %5874 = vrot.lane.b32.xlu1 %v2435_v4, %s9506_s19 }
 0x1c5   :  { %v10436_v29 = vmax.f32 %v2387_v53, 0.0  ;;  %v2388_v47 = vadd.f32 %v10408_v19, %v2334_v10  ;;  %v9069_v27 = vpop.f32.mrb[116].mxu0 }
 0x1c6   :  { %2487 = vst [vmem:[#allocation3 + $0x80] sm:$0xff] %v2438_v31  ;;  %v10439_v12 = vmax.f32 %v2390_v43, 0.0  ;;  %v2290_v40 = vmax.f32 %v9069_v27, %v10061_v25  ;;  %v1510_v39 = vpop.f32.mrb[117].mxu0  ;;  %3981 = vrot.lane.b32.xlu0 %v2438_v31, %s9504_s17  ;;  %v14142_v27 = vld [vmem:[#allocation45_spill] sm:$0xff] }
 0x1c7   :  { %2485 = vst [vmem:[#allocation3 + $0x70] sm:$0xff] %v10436_v29  ;;  %v10444_v32 = vmax.f32 %v2388_v47, 0.0  ;;  %v2288_v4 = vmax.f32 %v1510_v39, %v10065_v51  ;;  %v9070_v45 = vpop.f32.mrb[118].mxu0  ;;  %v2603_v55 = vld [vmem:[#allocation3 + $0x68] sm:$0xff]  ;;  %v14137_v51 = vmax.f32 %v9903_v35, %v10220_v22 }
 0x1c8   :  { %2488 = vst [vmem:[#allocation3 + $0x88] sm:$0xff] %v10439_v12  ;;  %v2339_v3 = vmax.f32 %v14136_v61, %v2290_v40  ;;  %v2291_v5 = vmax.f32 %v9070_v45, %v10077_v13  ;;  %v1513_v25 = vpop.f32.mrb[119].mxu0  ;;  %3372 = vrot.lane.b32.xlu1 %v2438_v31, %s9505_s18  ;;  %2638 = vst.msk [vmem:[#allocation4 + $0xd0] sm:$0xff] %vm2624_vm1, %v2603_v55  ;;  %v14146_v61 = vld [vmem:[#allocation38_spill] sm:$0xff] }
 0x1c9   :  { %2486 = vst [vmem:[#allocation3 + $0x78] sm:$0xff] %v10444_v32  ;;  %v2337_v33 = vmax.f32 %v14137_v51, %v2288_v4  ;;  %v2289_v59 = vmax.f32 %v1513_v25, %v14138_v9  ;;  %v14144_v4 = vld [vmem:[#allocation60_spill] sm:$0xff]  ;;  %v14147_v25 = vld [vmem:[#allocation63_spill] sm:$0xff] }
 0x1ca   :  { %v2393_v37 = vadd.f32 %v10408_v19, %v2339_v3  ;;  %v2340_v57 = vmax.f32 %v14139_v42, %v2291_v5  ;;  %7300 = vrot.lane.b32.xlu0 %v2438_v31, %s9507_s20  ;;  %v14148_v51 = vmax.f32 %v9947_v52, %v14147_v25 }
 0x1cb   :  { %v2391_v13 = vadd.f32 %v10408_v19, %v2337_v33  ;;  %v2338_v34 = vmax.f32 %v14140_v28, %v2289_v59 }
 0x1cc   :  { %v10468_v41 = vmax.f32 %v2393_v37, 0.0  ;;  %v2394_v22 = vadd.f32 %v10408_v19, %v2340_v57  ;;  %6486 = vrot.lane.b32.xlu1 %v2438_v31, %s9505_s18  ;;  %v14149_v37 = vld [vmem:[#allocation65_spill] sm:$0xff] }
 0x1cd   :  { %v10472_v35 = vmax.f32 %v2391_v13, 0.0  ;;  %v2392_v20 = vadd.f32 %v10408_v19, %v2338_v34  ;;  %v9073_v46 = vpop.f32.mrb[120].mxu0  ;;  %v2606_v1 = vld [vmem:[#allocation3 + $0x80] sm:$0xff]  ;;  %v14150_v42 = vmax.f32 %v9926_v44, %v14149_v37 }
 0x1ce   :  { %2491 = vst [vmem:[#allocation3 + $0xa0] sm:$0xff] %v10468_v41  ;;  %v10476_v11 = vmax.f32 %v2394_v22, 0.0  ;;  %v2294_v36 = vmax.f32 %v9073_v46, %v10158_v49  ;;  %v1526_v16 = vpop.f32.mrb[121].mxu0  ;;  %v10479_v38 = vld [vmem:[#allocation3 + $0x6c] sm:$0xff]  ;;  %2641 = vst.msk [vmem:[#allocation4 + $0x100] sm:$0xff] %vm2624_vm1, %v2606_v1  ;;  %v14141_v49 = vmax.f32 %v9937_v48, %v10274_v18 }
 0x1cf   :  { %v10481_v53 = vld [vmem:[#allocation3 + $0x6a] sm:$0xff]  ;;  %2489 = vst [vmem:[#allocation3 + $0x90] sm:$0xff] %v10472_v35  ;;  %v2441_v10 = vmax.f32 %v2392_v20, 0.0  ;;  %v2292_v31 = vmax.f32 %v1526_v16, %v10162_v63  ;;  %v9074_v43 = vpop.f32.mrb[122].mxu0  ;;  %3567 = vrot.lane.b32.xlu0 %v10479_v38, %s9508_s1 }
 0x1d0   :  { %v3694_v7 = vld [vmem:[#allocation3 + $0x6e] sm:$0xff]  ;;  %2492 = vst [vmem:[#allocation3 + $0xa8] sm:$0xff] %v10476_v11  ;;  %v2343_v47 = vmax.f32 %v14141_v49, %v2294_v36  ;;  %v2295_v40 = vmax.f32 %v9074_v43, %v14142_v27  ;;  %v1529_v39 = vpop.f32.mrb[123].mxu0  ;;  %2753 = vrot.lane.b32.xlu1 %v10481_v53, %s9506_s19  ;;  %v2605_v33 = vld [vmem:[#allocation3 + $0x78] sm:$0xff]  ;;  %v14153_v49 = vmax.f32 %v9953_v54, %v10298_v24  ;;  %v14159_v24 = vld [vmem:[#allocation70_spill] sm:$0xff] }
 0x1d1   :  { %5771 = vst.msk [vmem:[#allocation4 + $0x38] sm:$0xff] %vm2624_vm1, %v3694_v7  ;;  %2490 = vst [vmem:[#allocation3 + $0x98] sm:$0xff] %v2441_v10  ;;  %v14143_v63 = vld [vmem:[#allocation20_spill] sm:$0xff]  ;;  %v2293_v3 = vmax.f32 %v1529_v39, %v14146_v61  ;;  %v2607_v9 = vld [vmem:[#allocation3 + $0x88] sm:$0xff]  ;;  %v14160_v54 = vmax.f32 %v9963_v58, %v14159_v24 }
 0x1d2   :  { %v14145_v45 = vmax.f32 %v14143_v63, %v14144_v4  ;;  %v2397_v5 = vadd.f32 %v10408_v19, %v2343_v47  ;;  %v2344_v18 = vmax.f32 %v14148_v51, %v2295_v40  ;;  %v2604_v48 = vld [vmem:[#allocation3 + $0x70] sm:$0xff]  ;;  %2640 = vst.msk [vmem:[#allocation4 + $0xf0] sm:$0xff] %vm2624_vm1, %v2605_v33  ;;  %2642 = vst.msk [vmem:[#allocation4 + $0x110] sm:$0xff] %vm2624_vm1, %v2607_v9  ;;  %v14151_v46 = vld [vmem:[#allocation47_spill] sm:$0xff] }
 0x1d3   :  { %v2342_v57 = vmax.f32 %v14150_v42, %v2293_v3  ;;  %3772 = vrot.lane.b32.xlu0 %v3694_v7, %s9509_s21  ;;  %2639 = vst.msk [vmem:[#allocation4 + $0xe0] sm:$0xff] %vm2624_vm1, %v2604_v48  ;;  %v14152_v10 = vld [vmem:[#allocation48_spill] sm:$0xff]  ;;  %v14154_v27 = vld [vmem:[#allocation51_spill] sm:$0xff]  ;;  %v14155_v63 = vld [vmem:[#allocation21_spill] sm:$0xff] }
 0x1d4   :  { %v2341_v55 = vmax.f32 %v14145_v45, %v2292_v31  ;;  %v2446_v52 = vmax.f32 %v2397_v5, 0.0  ;;  %v2398_v13 = vadd.f32 %v10408_v19, %v2344_v18  ;;  %2958 = vrot.lane.b32.xlu1 %v10479_v38, %s9510_s22  ;;  %v14156_v4 = vld [vmem:[#allocation67_spill] sm:$0xff]  ;;  %v14161_v9 = vld [vmem:[#allocation72_spill] sm:$0xff] }
 0x1d5   :  { %v2396_v44 = vadd.f32 %v10408_v19, %v2342_v57  ;;  %v9077_v34 = vpop.f32.mrb[124].mxu0  ;;  %v2610_v22 = vld [vmem:[#allocation3 + $0xa0] sm:$0xff]  ;;  %v14157_v45 = vmax.f32 %v14155_v63, %v14156_v4  ;;  %v14158_v61 = vld [vmem:[#allocation43_spill] sm:$0xff] }
 0x1d6   :  { %v2395_v59 = vadd.f32 %v10408_v19, %v2341_v55  ;;  %2495 = vst [vmem:[#allocation3 + $0xc0] sm:$0xff] %v2446_v52  ;;  %v2447_v20 = vmax.f32 %v2398_v13, 0.0  ;;  %v2298_v1 = vmax.f32 %v9077_v34, %v14151_v46  ;;  %v1542_v36 = vpop.f32.mrb[125].mxu0  ;;  %2645 = vst.msk [vmem:[#allocation4 + $0x140] sm:$0xff] %vm2624_vm1, %v2610_v22  ;;  %v10530_v5 = vld [vmem:[#allocation3 + $0x82] sm:$0xff]  ;;  %v2608_v48 = vld [vmem:[#allocation3 + $0x90] sm:$0xff] }
 0x1d7   :  { %v2445_v16 = vmax.f32 %v2396_v44, 0.0  ;;  %v2296_v31 = vmax.f32 %v1542_v36, %v14152_v10  ;;  %v9078_v43 = vpop.f32.mrb[126].mxu0  ;;  %3977 = vrot.lane.b32.xlu0 %v10436_v29, %s9504_s17  ;;  %v2611_v33 = vld [vmem:[#allocation3 + $0xa8] sm:$0xff]  ;;  %2643 = vst.msk [vmem:[#allocation4 + $0x120] sm:$0xff] %vm2624_vm1, %v2608_v48  ;;  %v14163_v34 = vld [vmem:[#allocation53_spill] sm:$0xff]  ;;  %v14164_v36 = vld [vmem:[#allocation54_spill] sm:$0xff] }
 0x1d8   :  { %v2444_v28 = vmax.f32 %v2395_v59, 0.0  ;;  %2496 = vst [vmem:[#allocation3 + $0xc8] sm:$0xff] %v2447_v20  ;;  %v2347_v47 = vmax.f32 %v14153_v49, %v2298_v1  ;;  %v2299_v40 = vmax.f32 %v9078_v43, %v14154_v27  ;;  %v1545_v39 = vpop.f32.mrb[127].mxu0  ;;  %3163 = vrot.lane.b32.xlu1 %v3694_v7, %s9511_s23  ;;  %v10536_v18 = vld [vmem:[#allocation3 + $0x98] sm:$0xff]  ;;  %v14162_v59 = vmax.f32 %v9942_v50, %v14161_v9  ;;  %v10557_v46 = vld [vmem:[#allocation3 + $0x84] sm:$0xff] }
 0x1d9   :  { %2494 = vst [vmem:[#allocation3 + $0xb8] sm:$0xff] %v2445_v16  ;;  %v2345_v55 = vmax.f32 %v14157_v45, %v2296_v31  ;;  %v2297_v3 = vmax.f32 %v1545_v39, %v14158_v61  ;;  %2644 = vst.msk [vmem:[#allocation4 + $0x130] sm:$0xff] %vm2624_vm1, %v10536_v18  ;;  %v14165_v43 = vmax.f32 %v9969_v60, %v10318_v17  ;;  %v14167_v63 = vld [vmem:[#allocation22_spill] sm:$0xff]  ;;  %v14171_v60 = vld [vmem:[#allocation76_spill] sm:$0xff] }
 0x1da   :  { %2493 = vst [vmem:[#allocation3 + $0xb0] sm:$0xff] %v2444_v28  ;;  %v2401_v25 = vadd.f32 %v10408_v19, %v2347_v47  ;;  %v2348_v51 = vmax.f32 %v14160_v54, %v2299_v40  ;;  %2646 = vst.msk [vmem:[#allocation4 + $0x150] sm:$0xff] %vm2624_vm1, %v2611_v33  ;;  %v10554_v28 = vld [vmem:[#allocation3 + $0x96] sm:$0xff]  ;;  %v14168_v4 = vld [vmem:[#allocation74_spill] sm:$0xff]  ;;  %v14173_v33 = vmax.f32 %v9958_v56, %v10308_v26 }
 0x1db   :  { %v2399_v7 = vadd.f32 %v10408_v19, %v2345_v55  ;;  %v2346_v37 = vmax.f32 %v14162_v59, %v2297_v3  ;;  %2759 = vrot.lane.b32.xlu0 %v10530_v5, %s9506_s19  ;;  %5776 = vst.msk [vmem:[#allocation4 + $0x88] sm:$0xff] %vm2624_vm1, %v10554_v28  ;;  %v14166_v47 = vld [vmem:[#allocation56_spill] sm:$0xff]  ;;  %v14169_v45 = vmax.f32 %v14167_v63, %v14168_v4  ;;  %v14170_v61 = vld [vmem:[#allocation50_spill] sm:$0xff]  ;;  %v14181_v63 = vld [vmem:[#allocation55_spill] sm:$0xff] }
 0x1dc   :  { %v2450_v58 = vmax.f32 %v2401_v25, 0.0  ;;  %v2402_v42 = vadd.f32 %v10408_v19, %v2348_v51  ;;  %3368 = vrot.lane.b32.xlu1 %v10436_v29, %s9505_s18  ;;  %v14172_v25 = vmax.f32 %v9979_v0, %v14171_v60  ;;  %v10588_v54 = vld [vmem:[#allocation3 + $0x86] sm:$0xff]  ;;  %v10603_v59 = vld [vmem:[#allocation3 + $0x9e] sm:$0xff] }
 0x1dd   :  { %v2448_v57 = vmax.f32 %v2399_v7, 0.0  ;;  %v2400_v50 = vadd.f32 %v10408_v19, %v2346_v37  ;;  %v9081_v52 = vpop.f32.mrb[128].mxu0  ;;  %v10552_v13 = vld [vmem:[#allocation3 + $0xc0] sm:$0xff]  ;;  %5777 = vst.msk [vmem:[#allocation4 + $0x98] sm:$0xff] %vm2624_vm1, %v10603_v59 }
 0x1de   :  { %2499 = vst [vmem:[#allocation3 + $0xe0] sm:$0xff] %v2450_v58  ;;  %v2451_v44 = vmax.f32 %v2402_v42, 0.0  ;;  %v2302_v22 = vmax.f32 %v9081_v52, %v14163_v34  ;;  %v1558_v20 = vpop.f32.mrb[129].mxu0  ;;  %2649 = vst.msk [vmem:[#allocation4 + $0x180] sm:$0xff] %vm2624_vm1, %v10552_v13 }
 0x1df   :  { %2497 = vst [vmem:[#allocation3 + $0xd0] sm:$0xff] %v2448_v57  ;;  %v2449_v1 = vmax.f32 %v2400_v50, 0.0  ;;  %v2300_v16 = vmax.f32 %v1558_v20, %v14164_v36  ;;  %v9082_v10 = vpop.f32.mrb[130].mxu0  ;;  %2964 = vrot.lane.b32.xlu0 %v10557_v46, %s9510_s22  ;;  %v10574_v39 = vld [vmem:[#allocation3 + $0xc8] sm:$0xff]  ;;  %v14174_v57 = vld [vmem:[#allocation57_spill] sm:$0xff] }
 0x1e0   :  { %2500 = vst [vmem:[#allocation3 + $0xe8] sm:$0xff] %v2451_v44  ;;  %v2351_v49 = vmax.f32 %v14165_v43, %v2302_v22  ;;  %v2303_v27 = vmax.f32 %v9082_v10, %v14166_v47  ;;  %v1561_v40 = vpop.f32.mrb[131].mxu0  ;;  %6482 = vrot.lane.b32.xlu1 %v10436_v29, %s9505_s18  ;;  %2650 = vst.msk [vmem:[#allocation4 + $0x190] sm:$0xff] %vm2624_vm1, %v10574_v39  ;;  %v10590_v51 = vld [vmem:[#allocation3 + $0xb8] sm:$0xff]  ;;  %v14175_v44 = vld [vmem:[#allocation58_spill] sm:$0xff] }
 0x1e1   :  { %v10566_v31 = vld [vmem:[#allocation3 + $0xb0] sm:$0xff]  ;;  %2498 = vst [vmem:[#allocation3 + $0xd8] sm:$0xff] %v2449_v1  ;;  %v2349_v55 = vmax.f32 %v14169_v45, %v2300_v16  ;;  %v2301_v3 = vmax.f32 %v1561_v40, %v14170_v61  ;;  %2648 = vst.msk [vmem:[#allocation4 + $0x170] sm:$0xff] %vm2624_vm1, %v10590_v51  ;;  %v14176_v1 = vmax.f32 %v9985_v2, %v10334_v23  ;;  %v14177_v16 = vld [vmem:[#allocation61_spill] sm:$0xff] }
 0x1e2   :  { %2647 = vst.msk [vmem:[#allocation4 + $0x160] sm:$0xff] %vm2624_vm1, %v10566_v31  ;;  %v2405_v17 = vadd.f32 %v10408_v19, %v2351_v49  ;;  %v2352_v24 = vmax.f32 %v14172_v25, %v2303_v27  ;;  %v14178_v49 = vld [vmem:[#allocation23_spill] sm:$0xff]  ;;  %v14182_v2 = vld [vmem:[#allocation80_spill] sm:$0xff] }
 0x1e3   :  { %v2403_v48 = vadd.f32 %v10408_v19, %v2349_v55  ;;  %v2350_v7 = vmax.f32 %v14173_v33, %v2301_v3  ;;  %3169 = vrot.lane.b32.xlu0 %v10588_v54, %s9511_s23  ;;  %v14179_v47 = vld [vmem:[#allocation79_spill] sm:$0xff]  ;;  %v14183_v55 = vmax.f32 %v9995_v6, %v14182_v2  ;;  %v14196_v2 = vld [vmem:[#allocation25_spill] sm:$0xff] }
 0x1e4   :  { %v2454_v9 = vmax.f32 %v2405_v17, 0.0  ;;  %v2406_v0 = vadd.f32 %v10408_v19, %v2352_v24  ;;  %6078 = vrot.lane.b32.xlu1 %v10481_v53, %s9510_s22  ;;  %v14180_v27 = vmax.f32 %v14178_v49, %v14179_v47  ;;  %v14184_v17 = vld [vmem:[#allocation81_spill] sm:$0xff]  ;;  %v10655_v33 = vld [vmem:[#allocation3 + $0xa6] sm:$0xff] }
 0x1e5   :  { %v2452_v37 = vmax.f32 %v2403_v48, 0.0  ;;  %v2404_v58 = vadd.f32 %v10408_v19, %v2350_v7  ;;  %v9085_v42 = vpop.f32.mrb[132].mxu0  ;;  %v10606_v26 = vld [vmem:[#allocation3 + $0xe0] sm:$0xff]  ;;  %v14185_v60 = vmax.f32 %v9974_v62, %v14184_v17  ;;  %v10648_v24 = vld [vmem:[#allocation3 + $0x76] sm:$0xff]  ;;  %5778 = vst.msk [vmem:[#allocation4 + $0xa8] sm:$0xff] %vm2624_vm1, %v10655_v33  ;;  %v14193_v47 = vld [vmem:[#allocation59_spill] sm:$0xff] }
 0x1e6   :  { %2503 = vst [vmem:[#allocation3 + $0x100] sm:$0xff] %v2454_v9  ;;  %v2455_v56 = vmax.f32 %v2406_v0, 0.0  ;;  %v2306_v50 = vmax.f32 %v9085_v42, %v14174_v57  ;;  %v1574_v52 = vpop.f32.mrb[133].mxu0  ;;  %2653 = vst.msk [vmem:[#allocation4 + $0x1c0] sm:$0xff] %vm2624_vm1, %v10606_v26  ;;  %v10616_v20 = vld [vmem:[#allocation3 + $0xd0] sm:$0xff]  ;;  %v10702_v17 = vld [vmem:[#allocation3 + $0x7e] sm:$0xff] }
 0x1e7   :  { %2501 = vst [vmem:[#allocation3 + $0xf0] sm:$0xff] %v2452_v37  ;;  %v2453_v53 = vmax.f32 %v2404_v58, 0.0  ;;  %v2304_v34 = vmax.f32 %v1574_v52, %v14175_v44  ;;  %v9086_v22 = vpop.f32.mrb[134].mxu0  ;;  %3374 = vrot.lane.b32.xlu0 %v10439_v12, %s9505_s18  ;;  %2651 = vst.msk [vmem:[#allocation4 + $0x1a0] sm:$0xff] %vm2624_vm1, %v10616_v20  ;;  %v10630_v45 = vld [vmem:[#allocation3 + $0xe8] sm:$0xff]  ;;  %v14186_v37 = vld [vmem:[#allocation62_spill] sm:$0xff] }
 0x1e8   :  { %2504 = vst [vmem:[#allocation3 + $0x108] sm:$0xff] %v2455_v56  ;;  %v2355_v36 = vmax.f32 %v14176_v1, %v2306_v50  ;;  %v2307_v10 = vmax.f32 %v9086_v22, %v14177_v16  ;;  %v1577_v43 = vpop.f32.mrb[135].mxu0  ;;  %6282 = vrot.lane.b32.xlu1 %v10479_v38, %s9511_s23  ;;  %v10636_v3 = vld [vmem:[#allocation3 + $0xd8] sm:$0xff]  ;;  %2654 = vst.msk [vmem:[#allocation4 + $0x1d0] sm:$0xff] %vm2624_vm1, %v10630_v45  ;;  %v14187_v56 = vld [vmem:[#allocation64_spill] sm:$0xff] }
 0x1e9   :  { %2502 = vst [vmem:[#allocation3 + $0xf8] sm:$0xff] %v2453_v53  ;;  %v2353_v40 = vmax.f32 %v14180_v27, %v2304_v34  ;;  %v2305_v4 = vmax.f32 %v1577_v43, %v14181_v63  ;;  %2652 = vst.msk [vmem:[#allocation4 + $0x1b0] sm:$0xff] %vm2624_vm1, %v10636_v3  ;;  %v14188_v53 = vmax.f32 %v10001_v8, %v10350_v14  ;;  %v14189_v34 = vld [vmem:[#allocation68_spill] sm:$0xff]  ;;  %v14194_v8 = vld [vmem:[#allocation83_spill] sm:$0xff] }
 0x1ea   :  { %v2409_v23 = vadd.f32 %v10408_v19, %v2355_v36  ;;  %v2356_v61 = vmax.f32 %v14183_v55, %v2307_v10  ;;  %5772 = vst.msk [vmem:[#allocation4 + $0x48] sm:$0xff] %vm2624_vm1, %v10648_v24  ;;  %v14190_v16 = vld [vmem:[#allocation24_spill] sm:$0xff]  ;;  %v14191_v10 = vld [vmem:[#allocation82_spill] sm:$0xff]  ;;  %5773 = vst.msk [vmem:[#allocation4 + $0x58] sm:$0xff] %vm2624_vm1, %v10702_v17 }
 0x1eb   :  { %v2407_v38 = vadd.f32 %v10408_v19, %v2353_v40  ;;  %v2354_v25 = vmax.f32 %v14185_v60, %v2305_v4  ;;  %6690 = vrot.lane.b32.xlu0 %v10530_v5, %s9508_s1  ;;  %v14192_v43 = vmax.f32 %v14190_v16, %v14191_v10  ;;  %v10690_v63 = vld [vmem:[#allocation3 + $0x72] sm:$0xff]  ;;  %v14203_v16 = vld [vmem:[#allocation26_spill] sm:$0xff] }
 0x1ec   :  { %v2458_v6 = vmax.f32 %v2409_v23, 0.0  ;;  %v2410_v48 = vadd.f32 %v10408_v19, %v2356_v61  ;;  %5876 = vrot.lane.b32.xlu1 %v10436_v29, %s9506_s19  ;;  %v14197_v55 = vld [vmem:[#allocation84_spill] sm:$0xff]  ;;  %v14204_v10 = vld [vmem:[#allocation85_spill] sm:$0xff] }
 0x1ed   :  { %v2456_v62 = vmax.f32 %v2407_v38, 0.0  ;;  %v2408_v7 = vadd.f32 %v10408_v19, %v2354_v25  ;;  %v9089_v5 = vpop.f32.mrb[136].mxu0  ;;  %v10658_v9 = vld [vmem:[#allocation3 + $0x100] sm:$0xff]  ;;  %v14198_v61 = vmax.f32 %v14196_v2, %v14197_v55  ;;  %v14210_v55 = vld [vmem:[#allocation27_spill] sm:$0xff] }
 0x1ee   :  { %2507 = vst [vmem:[#allocation3 + $0x120] sm:$0xff] %v2458_v6  ;;  %v2459_v0 = vmax.f32 %v2410_v48, 0.0  ;;  %v2310_v58 = vmax.f32 %v9089_v5, %v14186_v37  ;;  %v1590_v42 = vpop.f32.mrb[137].mxu0  ;;  %2657 = vst.msk [vmem:[#allocation4 + $0x200] sm:$0xff] %vm2624_vm1, %v10658_v9  ;;  %v10668_v52 = vld [vmem:[#allocation3 + $0xf0] sm:$0xff]  ;;  %v10711_v6 = vld [vmem:[#allocation3 + $0x86] sm:$0xff] }
 0x1ef   :  { %2505 = vst [vmem:[#allocation3 + $0x110] sm:$0xff] %v2456_v62  ;;  %v2457_v29 = vmax.f32 %v2408_v7, 0.0  ;;  %v2308_v57 = vmax.f32 %v1590_v42, %v14187_v56  ;;  %v9090_v50 = vpop.f32.mrb[138].mxu0  ;;  %6894 = vrot.lane.b32.xlu0 %v10557_v46, %s9509_s21  ;;  %v10676_v36 = vld [vmem:[#allocation3 + $0x108] sm:$0xff]  ;;  %2655 = vst.msk [vmem:[#allocation4 + $0x1e0] sm:$0xff] %vm2624_vm1, %v10668_v52  ;;  %v10718_v5 = vld [vmem:[#allocation3 + $0xb6] sm:$0xff] }
 0x1f0   :  { %2508 = vst [vmem:[#allocation3 + $0x128] sm:$0xff] %v2459_v0  ;;  %v2359_v44 = vmax.f32 %v14188_v53, %v2310_v58  ;;  %v2311_v22 = vmax.f32 %v9090_v50, %v14189_v34  ;;  %v1593_v1 = vpop.f32.mrb[139].mxu0  ;;  %3573 = vrot.lane.b32.xlu1 %v10557_v46, %s9508_s1  ;;  %2658 = vst.msk [vmem:[#allocation4 + $0x210] sm:$0xff] %vm2624_vm1, %v10676_v36  ;;  %v14195_v46 = vmax.f32 %v10011_v15, %v14194_v8  ;;  %v10692_v4 = vld [vmem:[#allocation3 + $0xf8] sm:$0xff]  ;;  %v10704_v15 = vld [vmem:[#allocation3 + $0xae] sm:$0xff] }
 0x1f1   :  { %2506 = vst [vmem:[#allocation3 + $0x118] sm:$0xff] %v2457_v29  ;;  %v2357_v49 = vmax.f32 %v14192_v43, %v2308_v57  ;;  %v2309_v27 = vmax.f32 %v1593_v1, %v14193_v47  ;;  %2656 = vst.msk [vmem:[#allocation4 + $0x1f0] sm:$0xff] %vm2624_vm1, %v10692_v4  ;;  %v10721_v42 = vld [vmem:[#allocation3 + $0x74] sm:$0xff]  ;;  %v14200_v56 = vld [vmem:[#allocation71_spill] sm:$0xff]  ;;  %v14201_v53 = vmax.f32 %v10017_v21, %v10366_v30 }
 0x1f2   :  { %v2413_v14 = vadd.f32 %v10408_v19, %v2359_v44  ;;  %v2360_v40 = vmax.f32 %v14195_v46, %v2311_v22  ;;  %5779 = vst.msk [vmem:[#allocation4 + $0xb8] sm:$0xff] %vm2624_vm1, %v10704_v15  ;;  %5774 = vst.msk [vmem:[#allocation4 + $0x68] sm:$0xff] %vm2624_vm1, %v10711_v6  ;;  %v14202_v34 = vld [vmem:[#allocation75_spill] sm:$0xff]  ;;  %v14205_v43 = vmax.f32 %v14203_v16, %v14204_v10  ;;  %v14206_v47 = vld [vmem:[#allocation66_spill] sm:$0xff] }
 0x1f3   :  { %v2411_v23 = vadd.f32 %v10408_v19, %v2357_v49  ;;  %v2358_v38 = vmax.f32 %v14198_v61, %v2309_v27  ;;  %2755 = vrot.lane.b32.xlu0 %v10690_v63, %s9506_s19  ;;  %5780 = vst.msk [vmem:[#allocation4 + $0xc8] sm:$0xff] %vm2624_vm1, %v10718_v5  ;;  %v14207_v46 = vld [vmem:[#allocation30_spill] sm:$0xff]  ;;  %v14211_v61 = vld [vmem:[#allocation87_spill] sm:$0xff]  ;;  %v14216_v16 = vld [vmem:[#allocation92_spill] sm:$0xff] }
 0x1f4   :  { %v2462_v60 = vmax.f32 %v2413_v14, 0.0  ;;  %v2414_v25 = vadd.f32 %v10408_v19, %v2360_v40  ;;  %3778 = vrot.lane.b32.xlu1 %v10588_v54, %s9509_s21  ;;  %v14199_v54 = vld [vmem:[#allocation69_spill] sm:$0xff]  ;;  %v10738_v14 = vld [vmem:[#allocation3 + $0x8e] sm:$0xff]  ;;  %v14208_v30 = vld [vmem:[#allocation86_spill] sm:$0xff] }
 0x1f5   :  { %v2460_v48 = vmax.f32 %v2411_v23, 0.0  ;;  %v2412_v62 = vadd.f32 %v10408_v19, %v2358_v38  ;;  %v9093_v7 = vpop.f32.mrb[140].mxu0  ;;  %v14209_v21 = vmax.f32 %v14207_v46, %v14208_v30  ;;  %v10744_v23 = vld [vmem:[#allocation3 + $0x76] sm:$0xff]  ;;  %5775 = vst.msk [vmem:[#allocation4 + $0x78] sm:$0xff] %vm2624_vm1, %v10738_v14  ;;  %v14212_v38 = vmax.f32 %v14210_v55, %v14211_v61 }
 0x1f6   :  { %2511 = vst [vmem:[#allocation3 + $0x140] sm:$0xff] %v2462_v60  ;;  %v2463_v0 = vmax.f32 %v2414_v25, 0.0  ;;  %v2314_v37 = vmax.f32 %v9093_v7, %v14199_v54  ;;  %v1606_v58 = vpop.f32.mrb[141].mxu0  ;;  %v10756_v25 = vld [vmem:[#allocation3 + $0x7a] sm:$0xff]  ;;  %v14219_v46 = vld [vmem:[#allocation28_spill] sm:$0xff] }
 0x1f7   :  { %2509 = vst [vmem:[#allocation3 + $0x130] sm:$0xff] %v2460_v48  ;;  %v2461_v29 = vmax.f32 %v2412_v62, 0.0  ;;  %v2312_v57 = vmax.f32 %v1606_v58, %v14200_v56  ;;  %v9094_v50 = vpop.f32.mrb[142].mxu0  ;;  %2960 = vrot.lane.b32.xlu0 %v10721_v42, %s9510_s22  ;;  %v14220_v30 = vld [vmem:[#allocation88_spill] sm:$0xff] }
 0x1f8   :  { %2512 = vst [vmem:[#allocation3 + $0x148] sm:$0xff] %v2463_v0  ;;  %v2363_v44 = vmax.f32 %v14201_v53, %v2314_v37  ;;  %v2315_v22 = vmax.f32 %v9094_v50, %v14202_v34  ;;  %v1609_v1 = vpop.f32.mrb[143].mxu0  ;;  %3983 = vrot.lane.b32.xlu1 %v10439_v12, %s9504_s17  ;;  %v10748_v12 = vld [vmem:[#allocation3 + $0xbe] sm:$0xff]  ;;  %v10764_v37 = vld [vmem:[#allocation3 + $0xc6] sm:$0xff] }
 0x1f9   :  { %2510 = vst [vmem:[#allocation3 + $0x138] sm:$0xff] %v2461_v29  ;;  %v2361_v49 = vmax.f32 %v14205_v43, %v2312_v57  ;;  %v2313_v27 = vmax.f32 %v1609_v1, %v14206_v47  ;;  %5781 = vst.msk [vmem:[#allocation4 + $0xd8] sm:$0xff] %vm2624_vm1, %v10748_v12  ;;  %v14213_v29 = vld [vmem:[#allocation77_spill] sm:$0xff]  ;;  %v14214_v53 = vld [vmem:[#allocation78_spill] sm:$0xff] }
 0x1fa   :  { %v2417_v8 = vadd.f32 %v10408_v19, %v2363_v44  ;;  %v2364_v40 = vmax.f32 %v14209_v21, %v2315_v22  ;;  %5782 = vst.msk [vmem:[#allocation4 + $0xe8] sm:$0xff] %vm2624_vm1, %v10764_v37  ;;  %v10772_v22 = vld [vmem:[#allocation3 + $0x7c] sm:$0xff]  ;;  %v14215_v1 = vld [vmem:[#allocation32_spill] sm:$0xff]  ;;  %v14221_v21 = vmax.f32 %v14219_v46, %v14220_v30  ;;  %v14233_v30 = vld [vmem:[#allocation91_spill] sm:$0xff] }
 0x1fb   :  { %v2415_v2 = vadd.f32 %v10408_v19, %v2361_v49  ;;  %v2362_v60 = vmax.f32 %v14212_v38, %v2313_v27  ;;  %3165 = vrot.lane.b32.xlu0 %v10744_v23, %s9511_s23  ;;  %v14217_v10 = vmax.f32 %v14215_v1, %v14216_v16  ;;  %v14218_v49 = vld [vmem:[#allocation89_spill] sm:$0xff]  ;;  %v14223_v38 = vld [vmem:[#allocation8_spill] sm:$0xff] }
 0x1fc   :  { %v2466_v48 = vmax.f32 %v2417_v8, 0.0  ;;  %v2418_v62 = vadd.f32 %v10408_v19, %v2364_v40  ;;  %2757 = vrot.lane.b32.xlu1 %v10756_v25, %s9506_s19  ;;  %v10780_v8 = vld [vmem:[#allocation3 + $0xce] sm:$0xff] }
 0x1fd   :  { %v2464_v7 = vmax.f32 %v2415_v2, 0.0  ;;  %v2416_v0 = vadd.f32 %v10408_v19, %v2362_v60  ;;  %v9097_v54 = vpop.f32.mrb[144].mxu0  ;;  %v14222_v2 = vld [vmem:[#allocation73_spill] sm:$0xff]  ;;  %5783 = vst.msk [vmem:[#allocation4 + $0xf8] sm:$0xff] %vm2624_vm1, %v10780_v8  ;;  %v14224_v60 = vld [vmem:[#allocation35_spill] sm:$0xff] }
 0x1fe   :  { %2515 = vst [vmem:[#allocation3 + $0x160] sm:$0xff] %v2466_v48  ;;  %v2467_v58 = vmax.f32 %v2418_v62, 0.0  ;;  %v2318_v56 = vmax.f32 %v9097_v54, %v14213_v29  ;;  %v1622_v57 = vpop.f32.mrb[145].mxu0  ;;  %v14225_v48 = vmax.f32 %v14223_v38, %v14224_v60  ;;  %v14227_v54 = vld [vmem:[#allocation29_spill] sm:$0xff] }
 0x1ff   :  { %2513 = vst [vmem:[#allocation3 + $0x150] sm:$0xff] %v2464_v7  ;;  %v2465_v50 = vmax.f32 %v2416_v0, 0.0  ;;  %v2316_v44 = vmax.f32 %v1622_v57, %v14214_v53  ;;  %v9098_v34 = vpop.f32.mrb[146].mxu0  ;;  %3370 = vrot.lane.b32.xlu0 %v10444_v32, %s9505_s18  ;;  %v10792_v7 = vld [vmem:[#allocation3 + $0xd6] sm:$0xff]  ;;  %v10800_v57 = vld [vmem:[#allocation3 + $0x7e] sm:$0xff] }
 0x200   :  { %2516 = vst [vmem:[#allocation3 + $0x168] sm:$0xff] %v2467_v58  ;;  %v2367_v43 = vmax.f32 %v14217_v10, %v2318_v56  ;;  %v2270_v47 = vmax.f32 %v14218_v49, %v9098_v34  ;;  %v1625_v27 = vpop.f32.mrb[147].mxu0  ;;  %2962 = vrot.lane.b32.xlu1 %v10772_v22, %s9510_s22  ;;  %14226 = vst [vmem:[#allocation33_spill] sm:$0xff] %v10792_v7  ;;  %v14228_v58 = vld [vmem:[#allocation90_spill] sm:$0xff]  ;;  %v14232_v49 = vld [vmem:[#allocation96_spill] sm:$0xff] }
 0x201   :  { %2514 = vst [vmem:[#allocation3 + $0x158] sm:$0xff] %v2465_v50  ;;  %v2365_v40 = vmax.f32 %v14221_v21, %v2316_v44  ;;  %v2317_v55 = vmax.f32 %v1625_v27, %v14222_v2  ;;  %v14229_v29 = vmax.f32 %v14227_v54, %v14228_v58  ;;  %5784 = vst.msk [vmem:[#allocation4 + $0x108] sm:$0xff] %vm2624_vm1, %v10792_v7  ;;  %v10807_v44 = vld [vmem:[#allocation3 + $0xde] sm:$0xff]  ;;  %v10810_v10 = vld [vmem:[#allocation3 + $0xe6] sm:$0xff] }
 0x202   :  { %v2421_v61 = vadd.f32 %v10408_v19, %v2367_v43  ;;  %v2319_v62 = vmax.f32 %v14225_v48, %v2270_v47  ;;  %14230 = vst [vmem:[#allocation45_spill] sm:$0xff] %v10807_v44  ;;  %14231 = vst [vmem:[#allocation20_spill] sm:$0xff] %v10810_v10  ;;  %v14234_v2 = vld [vmem:[#allocation9_spill] sm:$0xff]  ;;  %v14239_v54 = vld [vmem:[#allocation10_spill] sm:$0xff] }
 0x203   :  { %v2419_v0 = vadd.f32 %v10408_v19, %v2365_v40  ;;  %v2366_v56 = vmax.f32 %v14229_v29, %v2317_v55  ;;  %3571 = vrot.lane.b32.xlu0 %v10772_v22, %s9508_s1  ;;  %5785 = vst.msk [vmem:[#allocation4 + $0x118] sm:$0xff] %vm2624_vm1, %v10807_v44  ;;  %5786 = vst.msk [vmem:[#allocation4 + $0x128] sm:$0xff] %vm2624_vm1, %v10810_v10  ;;  %v14235_v55 = vld [vmem:[#allocation37_spill] sm:$0xff]  ;;  %v14240_v58 = vld [vmem:[#allocation31_spill] sm:$0xff] }
 0x204   :  { %v2470_v50 = vmax.f32 %v2421_v61, 0.0  ;;  %v2373_v53 = vadd.f32 %v10408_v19, %v2319_v62  ;;  %3167 = vrot.lane.b32.xlu1 %v10800_v57, %s9511_s23  ;;  %v14236_v61 = vmax.f32 %v14234_v2, %v14235_v55  ;;  %v14237_v60 = vld [vmem:[#allocation93_spill] sm:$0xff]  ;;  %v14241_v29 = vmax.f32 %v14239_v54, %v14240_v58  ;;  %v14251_v54 = vld [vmem:[#allocation100_spill] sm:$0xff]  ;;  %v3709_v44 = vld [vmem:[#allocation3 + $0xe6] sm:$0xff] }
 0x205   :  { %v2468_v34 = vmax.f32 %v2419_v0, 0.0  ;;  %v2420_v1 = vadd.f32 %v10408_v19, %v2366_v56  ;;  %v9101_v16 = vpop.f32.mrb[148].mxu0  ;;  %v10826_v0 = vld [vmem:[#allocation3 + $0xee] sm:$0xff] }
 0x206   :  { %2519 = vst [vmem:[#allocation3 + $0x180] sm:$0xff] %v2470_v50  ;;  %v2422_v43 = vmax.f32 %v2373_v53, 0.0  ;;  %v2273_v47 = vmax.f32 %v14232_v49, %v9101_v16  ;;  %v1638_v27 = vpop.f32.mrb[149].mxu0  ;;  %14238 = vst [vmem:[#allocation60_spill] sm:$0xff] %v10826_v0  ;;  %v14242_v50 = vld [vmem:[#allocation94_spill] sm:$0xff]  ;;  %v14244_v16 = vld [vmem:[#allocation40_spill] sm:$0xff] }
 0x207   :  { %2517 = vst [vmem:[#allocation3 + $0x170] sm:$0xff] %v2468_v34  ;;  %v2469_v46 = vmax.f32 %v2420_v1, 0.0  ;;  %v2271_v21 = vmax.f32 %v14233_v30, %v1638_v27  ;;  %v9102_v40 = vpop.f32.mrb[150].mxu0  ;;  %3776 = vrot.lane.b32.xlu0 %v10800_v57, %s9509_s21  ;;  %5787 = vst.msk [vmem:[#allocation4 + $0x138] sm:$0xff] %vm2624_vm1, %v10826_v0  ;;  %v14243_v1 = vld [vmem:[#allocation12_spill] sm:$0xff]  ;;  %v14248_v30 = vld [vmem:[#allocation34_spill] sm:$0xff] }
 0x208   :  { %2471 = vst [vmem:[#allocation3] sm:$0xff] %v2422_v43  ;;  %v2322_v38 = vmax.f32 %v14236_v61, %v2273_v47  ;;  %v2274_v48 = vmax.f32 %v14237_v60, %v9102_v40  ;;  %v1641_v62 = vpop.f32.mrb[151].mxu0  ;;  %3569 = vrot.lane.b32.xlu1 %v10721_v42, %s9508_s1  ;;  %v14245_v43 = vmax.f32 %v14243_v1, %v14244_v16  ;;  %v10838_v47 = vld [vmem:[#allocation3 + $0xf6] sm:$0xff] }
 0x209   :  { %2518 = vst [vmem:[#allocation3 + $0x178] sm:$0xff] %v2469_v46  ;;  %v2320_v56 = vmax.f32 %v14241_v29, %v2271_v21  ;;  %v2272_v53 = vmax.f32 %v14242_v50, %v1641_v62  ;;  %14246 = vst [vmem:[#allocation38_spill] sm:$0xff] %v10838_v47  ;;  %v14247_v46 = vld [vmem:[#allocation7_spill] sm:$0xff]  ;;  %v14253_v16 = vld [vmem:[#allocation13_spill] sm:$0xff] }
 0x20a   :  { %v2376_v34 = vadd.f32 %v10408_v19, %v2322_v38  ;;  %v2323_v49 = vmax.f32 %v14245_v43, %v2274_v48  ;;  %v14249_v40 = vmax.f32 %v14247_v46, %v14248_v30  ;;  %5788 = vst.msk [vmem:[#allocation4 + $0x148] sm:$0xff] %vm2624_vm1, %v10838_v47  ;;  %v10852_v48 = vld [vmem:[#allocation3 + $0xfe] sm:$0xff]  ;;  %v14252_v50 = vld [vmem:[#allocation95_spill] sm:$0xff]  ;;  %v7532_v7 = vld [vmem:[%s13956_s2 + $0xf0] sm:$0xff] }
 0x20b   :  { %v2374_v27 = vadd.f32 %v10408_v19, %v2320_v56  ;;  %6686 = vrot.lane.b32.xlu0 %v10690_v63, %s9508_s1  ;;  %14250 = vst [vmem:[#allocation63_spill] sm:$0xff] %v10852_v48  ;;  %5789 = vst.msk [vmem:[#allocation4 + $0x158] sm:$0xff] %vm2624_vm1, %v10852_v48  ;;  %v14254_v43 = vld [vmem:[#allocation42_spill] sm:$0xff]  ;;  %v14256_v46 = vld [vmem:[#allocation97_spill] sm:$0xff] }
 0x20c   :  { %v2321_v2 = vmax.f32 %v14249_v40, %v2272_v53  ;;  %v2425_v21 = vmax.f32 %v2376_v34, 0.0  ;;  %v2377_v55 = vadd.f32 %v10408_v19, %v2323_v49  ;;  %3774 = vrot.lane.b32.xlu1 %v10744_v23, %s9509_s21  ;;  %v14255_v49 = vmax.f32 %v14253_v16, %v14254_v43  ;;  %v14266_v16 = vld [vmem:[#allocation39_spill] sm:$0xff] }
 0x20d   :  { %v2423_v61 = vmax.f32 %v2374_v27, 0.0  ;;  %v9105_v60 = vpop.f32.mrb[152].mxu0 }
 0x20e   :  { %v2375_v38 = vadd.f32 %v10408_v19, %v2321_v2  ;;  %2474 = vst [vmem:[#allocation3 + $0x18] sm:$0xff] %v2425_v21  ;;  %v2426_v62 = vmax.f32 %v2377_v55, 0.0  ;;  %v2277_v58 = vmax.f32 %v14251_v54, %v9105_v60  ;;  %v1654_v29 = vpop.f32.mrb[153].mxu0  ;;  %v14257_v2 = vld [vmem:[#allocation14_spill] sm:$0xff]  ;;  %v14258_v21 = vld [vmem:[#allocation36_spill] sm:$0xff] }
 0x20f   :  { %2472 = vst [vmem:[#allocation3 + $0x8] sm:$0xff] %v2423_v61  ;;  %v2275_v53 = vmax.f32 %v14252_v50, %v1654_v29  ;;  %v9106_v34 = vpop.f32.mrb[154].mxu0  ;;  %6890 = vrot.lane.b32.xlu0 %v10721_v42, %s9509_s21  ;;  %v2590_v1 = vld [vmem:[#allocation3] sm:$0xff]  ;;  %v14259_v55 = vmax.f32 %v14257_v2, %v14258_v21 }
 0x210   :  { %v2424_v56 = vmax.f32 %v2375_v38, 0.0  ;;  %2475 = vst [vmem:[#allocation3 + $0x20] sm:$0xff] %v2426_v62  ;;  %v2326_v27 = vmax.f32 %v14255_v49, %v2277_v58  ;;  %v2278_v30 = vmax.f32 %v14256_v46, %v9106_v34  ;;  %v1657_v40 = vpop.f32.mrb[155].mxu0  ;;  %3979 = vrot.lane.b32.xlu1 %v10444_v32, %s9504_s17  ;;  %2625 = vst.msk [vmem:[#allocation4] sm:$0xff] %vm2624_vm1, %v2590_v1  ;;  %v14260_v38 = vld [vmem:[#allocation98_spill] sm:$0xff]  ;;  %v14262_v58 = vld [vmem:[#allocation16_spill] sm:$0xff] }
 0x211   :  { %v2324_v61 = vmax.f32 %v14259_v55, %v2275_v53  ;;  %v2276_v60 = vmax.f32 %v14260_v38, %v1657_v40  ;;  %v10871_v62 = vld [vmem:[#allocation3 + $0x106] sm:$0xff]  ;;  %v10885_v53 = vld [vmem:[#allocation3 + $0x10e] sm:$0xff] }
 0x212   :  { %2473 = vst [vmem:[#allocation3 + $0x10] sm:$0xff] %v2424_v56  ;;  %14261 = vst [vmem:[#allocation65_spill] sm:$0xff] %v10871_v62  ;;  %v2380_v54 = vadd.f32 %v10408_v19, %v2326_v27  ;;  %v14263_v29 = vld [vmem:[#allocation46_spill] sm:$0xff]  ;;  %v14265_v56 = vld [vmem:[#allocation11_spill] sm:$0xff] }
 0x213   :  { %v14264_v50 = vmax.f32 %v14262_v58, %v14263_v29  ;;  %5790 = vst.msk [vmem:[#allocation4 + $0x168] sm:$0xff] %vm2624_vm1, %v10871_v62  ;;  %v2378_v1 = vadd.f32 %v10408_v19, %v2324_v61  ;;  %v14267_v43 = vmax.f32 %v14265_v56, %v14266_v16  ;;  %7094 = vrot.lane.b32.xlu0 %v10744_v23, %s9504_s17  ;;  %14268 = vst [vmem:[#allocation47_spill] sm:$0xff] %v10885_v53  ;;  %v14269_v23 = vld [vmem:[#allocation103_spill] sm:$0xff]  ;;  %v14274_v16 = vld [vmem:[#allocation101_spill] sm:$0xff] }
 0x214   :  { %v2429_v46 = vmax.f32 %v2380_v54, 0.0  ;;  %6484 = vrot.lane.b32.xlu1 %v10444_v32, %s9505_s18  ;;  %5791 = vst.msk [vmem:[#allocation4 + $0x178] sm:$0xff] %vm2624_vm1, %v10885_v53  ;;  %v14270_v54 = vld [vmem:[#allocation99_spill] sm:$0xff] }
 0x215   :  { %v2327_v34 = vmax.f32 %v14264_v50, %v2278_v30  ;;  %v2325_v49 = vmax.f32 %v14267_v43, %v2276_v60  ;;  %v2427_v30 = vmax.f32 %v2378_v1, 0.0  ;;  %v9109_v2 = vpop.f32.mrb[156].mxu0  ;;  %v10893_v21 = vld [vmem:[#allocation3 + $0x18] sm:$0xff] }
 0x216   :  { %2478 = vst [vmem:[#allocation3 + $0x38] sm:$0xff] %v2429_v46  ;;  %v2281_v61 = vmax.f32 %v14269_v23, %v9109_v2  ;;  %v1670_v38 = vpop.f32.mrb[157].mxu0  ;;  %2628 = vst.msk [vmem:[#allocation4 + $0x30] sm:$0xff] %vm2624_vm1, %v10893_v21  ;;  %v14271_v50 = vld [vmem:[#allocation17_spill] sm:$0xff]  ;;  %v10907_v46 = vld [vmem:[#allocation3 + $0x8] sm:$0xff] }
 0x217   :  { %v2381_v27 = vadd.f32 %v10408_v19, %v2327_v34  ;;  %v2379_v40 = vadd.f32 %v10408_v19, %v2325_v49  ;;  %2476 = vst [vmem:[#allocation3 + $0x28] sm:$0xff] %v2427_v30  ;;  %v2279_v58 = vmax.f32 %v14270_v54, %v1670_v38  ;;  %v9110_v29 = vpop.f32.mrb[158].mxu0  ;;  %7298 = vrot.lane.b32.xlu0 %v10444_v32, %s9507_s20  ;;  %v14272_v34 = vld [vmem:[#allocation49_spill] sm:$0xff]  ;;  %v14275_v30 = vld [vmem:[#allocation18_spill] sm:$0xff]  ;;  %2626 = vst.msk [vmem:[#allocation4 + $0x10] sm:$0xff] %vm2624_vm1, %v10907_v46 }
 0x218   :  { %v14273_v1 = vmax.f32 %v14271_v50, %v14272_v34  ;;  %v2282_v43 = vmax.f32 %v14274_v16, %v9110_v29  ;;  %v1673_v49 = vpop.f32.mrb[159].mxu0  ;;  %6080 = vrot.lane.b32.xlu1 %v10690_v63, %s9510_s22  ;;  %v14279_v63 = vld [vmem:[#allocation19_spill] sm:$0xff]  ;;  %v14280_v38 = vld [vmem:[#allocation52_spill] sm:$0xff] }
 0x219   :  { %v2430_v55 = vmax.f32 %v2381_v27, 0.0  ;;  %v2428_v60 = vmax.f32 %v2379_v40, 0.0  ;;  %v10909_v27 = vld [vmem:[#allocation3 + $0x20] sm:$0xff]  ;;  %v14276_v40 = vld [vmem:[#allocation41_spill] sm:$0xff]  ;;  %v14281_v54 = vmax.f32 %v14279_v63, %v14280_v38  ;;  %v10923_v50 = vld [vmem:[#allocation3 + $0x10] sm:$0xff] }
 0x21a   :  { %v2330_v56 = vmax.f32 %v14273_v1, %v2281_v61  ;;  %v14277_v2 = vmax.f32 %v14275_v30, %v14276_v40  ;;  %2629 = vst.msk [vmem:[#allocation4 + $0x40] sm:$0xff] %vm2624_vm1, %v10909_v27  ;;  %v14282_v34 = vld [vmem:[#allocation15_spill] sm:$0xff]  ;;  %2627 = vst.msk [vmem:[#allocation4 + $0x20] sm:$0xff] %vm2624_vm1, %v10923_v50 }
 0x21b   :  { %2479 = vst [vmem:[#allocation3 + $0x40] sm:$0xff] %v2430_v55  ;;  %2477 = vst [vmem:[#allocation3 + $0x30] sm:$0xff] %v2428_v60  ;;  %v14278_v55 = vld [vmem:[#allocation102_spill] sm:$0xff]  ;;  %v2331_v29 = vmax.f32 %v14281_v54, %v2282_v43  ;;  %6688 = vrot.lane.b32.xlu0 %v10756_v25, %s9508_s1  ;;  %v2881_v63 = vld [vmem:[#allocation3 + $0x8c] sm:$0xff] }
 0x21c   :  { %v2328_v32 = vmax.f32 %v14277_v2, %v2279_v58  ;;  %v2280_v23 = vmax.f32 %v14278_v55, %v1673_v49  ;;  %v2384_v61 = vadd.f32 %v10408_v19, %v2330_v56  ;;  %v14283_v58 = vld [vmem:[#allocation44_spill] sm:$0xff]  ;;  %6284 = vrot.lane.b32.xlu1 %v10721_v42, %s9511_s23 }
 0x21d   :  { %v14284_v1 = vmax.f32 %v14282_v34, %v14283_v58  ;;  %v10933_v49 = vld [vmem:[#allocation3 + $0x116] sm:$0xff]  ;;  %v2385_v30 = vadd.f32 %v10408_v19, %v2331_v29  ;;  %v10998_v58 = vld [vmem:[#allocation3 + $0x126] sm:$0xff] }
 0x21e   :  { %v2382_v60 = vadd.f32 %v10408_v19, %v2328_v32  ;;  %14285 = vst [vmem:[#allocation48_spill] sm:$0xff] %v10933_v49  ;;  %v2433_v56 = vmax.f32 %v2384_v61, 0.0  ;;  %5792 = vst.msk [vmem:[#allocation4 + $0x188] sm:$0xff] %vm2624_vm1, %v10933_v49  ;;  %v10941_v2 = vld [vmem:[#allocation3 + $0x38] sm:$0xff]  ;;  %v10943_v32 = vld [vmem:[#allocation3 + $0x28] sm:$0xff] }
 0x21f   :  { %v2329_v16 = vmax.f32 %v14284_v1, %v2280_v23  ;;  %v2434_v25 = vmax.f32 %v2385_v30, 0.0  ;;  %2632 = vst.msk [vmem:[#allocation4 + $0x70] sm:$0xff] %vm2624_vm1, %v10941_v2  ;;  %6892 = vrot.lane.b32.xlu0 %v10772_v22, %s9509_s21  ;;  %2630 = vst.msk [vmem:[#allocation4 + $0x50] sm:$0xff] %vm2624_vm1, %v10943_v32  ;;  %v2676_v22 = vld [vmem:[#allocation3 + $0x8a] sm:$0xff]  ;;  %v10963_v23 = vld [vmem:[#allocation3 + $0x11e] sm:$0xff] }
 0x220   :  { %v2431_v43 = vmax.f32 %v2382_v60, 0.0  ;;  %2482 = vst [vmem:[#allocation3 + $0x58] sm:$0xff] %v2433_v56  ;;  %3380 = vrot.lane.b32.xlu1 %v10468_v41, %s9505_s18  ;;  %14286 = vst [vmem:[#allocation51_spill] sm:$0xff] %v10963_v23  ;;  %v11005_v1 = vld [vmem:[#allocation3 + $0x12e] sm:$0xff]  ;;  %v3496_v56 = vld [vmem:[#allocation3 + $0xa4] sm:$0xff] }
 0x221   :  { %v2383_v40 = vadd.f32 %v10408_v19, %v2329_v16  ;;  %2483 = vst [vmem:[#allocation3 + $0x60] sm:$0xff] %v2434_v25  ;;  %5793 = vst.msk [vmem:[#allocation4 + $0x198] sm:$0xff] %vm2624_vm1, %v10963_v23  ;;  %v11013_v30 = vld [vmem:[#allocation3 + $0x136] sm:$0xff]  ;;  %v2679_v25 = vld [vmem:[#allocation3 + $0xa2] sm:$0xff] }
 0x222   :  { %2480 = vst [vmem:[#allocation3 + $0x48] sm:$0xff] %v2431_v43  ;;  %v10953_v19 = vld [vmem:[#allocation3 + $0x40] sm:$0xff]  ;;  %v10955_v42 = vld [vmem:[#allocation3 + $0x30] sm:$0xff]  ;;  %14287 = vst [vmem:[#allocation21_spill] sm:$0xff] %v10998_v58 }
 0x223   :  { %v2432_v55 = vmax.f32 %v2383_v40, 0.0  ;;  %2633 = vst.msk [vmem:[#allocation4 + $0x80] sm:$0xff] %vm2624_vm1, %v10953_v19  ;;  %2631 = vst.msk [vmem:[#allocation4 + $0x60] sm:$0xff] %vm2624_vm1, %v10955_v42  ;;  %7096 = vrot.lane.b32.xlu0 %v10800_v57, %s9504_s17  ;;  %v5766_v23 = vld [vmem:[#allocation3 + $0x156] sm:$0xff] }
 0x224   :  { %2761 = vrot.lane.b32.xlu1 %v2676_v22, %s9506_s19  ;;  %5794 = vst.msk [vmem:[#allocation4 + $0x1a8] sm:$0xff] %vm2624_vm1, %v10998_v58  ;;  %14288 = vst [vmem:[#allocation67_spill] sm:$0xff] %v11005_v1  ;;  %v3088_v58 = vld [vmem:[#allocation3 + $0x9e] sm:$0xff] }
 0x225   :  { %2481 = vst [vmem:[#allocation3 + $0x50] sm:$0xff] %v2432_v55  ;;  %5795 = vst.msk [vmem:[#allocation4 + $0x1b8] sm:$0xff] %vm2624_vm1, %v11005_v1  ;;  %v11020_v55 = vld [vmem:[#allocation3 + $0x13e] sm:$0xff]  ;;  %v2677_v1 = vld [vmem:[#allocation3 + $0x92] sm:$0xff] }
 0x226   :  { %14289 = vst [vmem:[#allocation43_spill] sm:$0xff] %v11013_v30  ;;  %5796 = vst.msk [vmem:[#allocation4 + $0x1c8] sm:$0xff] %vm2624_vm1, %v11013_v30  ;;  %v11048_v30 = vld [vmem:[#allocation3 + $0x15e] sm:$0xff] }
 0x227   :  { %v10968_v61 = vld [vmem:[#allocation3 + $0x58] sm:$0xff]  ;;  %3989 = vrot.lane.b32.xlu0 %v10468_v41, %s9504_s17  ;;  %v3086_v41 = vld [vmem:[#allocation3 + $0x8e] sm:$0xff]  ;;  %14290 = vst [vmem:[#allocation70_spill] sm:$0xff] %v11020_v55  ;;  %5797 = vst.msk [vmem:[#allocation4 + $0x1d8] sm:$0xff] %vm2624_vm1, %v11020_v55 }
 0x228   :  { %2636 = vst.msk [vmem:[#allocation4 + $0xb0] sm:$0xff] %vm2624_vm1, %v10968_v61  ;;  %v5736_v38 = vld [vmem:[#allocation3 + $0x66] sm:$0xff]  ;;  %2966 = vrot.lane.b32.xlu1 %v2881_v63, %s9510_s22  ;;  %v10978_v57 = vld [vmem:[#allocation3 + $0x5e] sm:$0xff]  ;;  %14293 = vst [vmem:[#allocation54_spill] sm:$0xff] %v11048_v30 }
 0x229   :  { %v10974_v54 = vld [vmem:[#allocation3 + $0x48] sm:$0xff]  ;;  %5770 = vst.msk [vmem:[#allocation4 + $0x28] sm:$0xff] %vm2624_vm1, %v5736_v38  ;;  %v10982_v29 = vld [vmem:[#allocation3 + $0x60] sm:$0xff]  ;;  %5769 = vst.msk [vmem:[#allocation4 + $0x18] sm:$0xff] %vm2624_vm1, %v10978_v57 }
 0x22a   :  { %2634 = vst.msk [vmem:[#allocation4 + $0x90] sm:$0xff] %vm2624_vm1, %v10974_v54  ;;  %2637 = vst.msk [vmem:[#allocation4 + $0xc0] sm:$0xff] %vm2624_vm1, %v10982_v29  ;;  %v2678_v55 = vld [vmem:[#allocation3 + $0x9a] sm:$0xff] }
 0x22b   :  { %3575 = vrot.lane.b32.xlu0 %v2881_v63, %s9508_s1  ;;  %v11029_v63 = vld [vmem:[#allocation3 + $0x146] sm:$0xff]  ;;  %5801 = vst.msk [vmem:[#allocation4 + $0x218] sm:$0xff] %vm2624_vm1, %v11048_v30  ;;  %5800 = vst.msk [vmem:[#allocation4 + $0x208] sm:$0xff] %vm2624_vm1, %v5766_v23 }
 0x22c   :  { %v10989_v60 = vld [vmem:[#allocation3 + $0x56] sm:$0xff]  ;;  %3171 = vrot.lane.b32.xlu1 %v3086_v41, %s9511_s23  ;;  %14291 = vst [vmem:[#allocation72_spill] sm:$0xff] %v11029_v63  ;;  %5798 = vst.msk [vmem:[#allocation4 + $0x1e8] sm:$0xff] %vm2624_vm1, %v11029_v63 }
 0x22d   :  { %v10992_v34 = vld [vmem:[#allocation3 + $0x50] sm:$0xff]  ;;  %5768 = vst.msk [vmem:[#allocation4 + $0x8] sm:$0xff] %vm2624_vm1, %v10989_v60 }
 0x22e   :  { %2635 = vst.msk [vmem:[#allocation4 + $0xa0] sm:$0xff] %vm2624_vm1, %v10992_v34 }
 0x22f   :  { %3780 = vrot.lane.b32.xlu0 %v3086_v41, %s9509_s21  ;;  %v11036_v41 = vld [vmem:[#allocation3 + $0x14e] sm:$0xff] }
 0x230   :  { %3376 = vrot.lane.b32.xlu1 %v10472_v35, %s9505_s18  ;;  %14292 = vst [vmem:[#allocation53_spill] sm:$0xff] %v11036_v41  ;;  %5799 = vst.msk [vmem:[#allocation4 + $0x1f8] sm:$0xff] %vm2624_vm1, %v11036_v41  ;;  %v2883_v41 = vld [vmem:[#allocation3 + $0x9c] sm:$0xff]  ;;  %vm7853_vm1 = vcmask 123904  }
 0x232   :  { %v11009_v16 = vpop.permute.xlu1 %3975  ;;  %v11015_v43 = vpop.permute.xlu0 %3366 }
 0x233   :  { %3985 = vrot.lane.b32.xlu0 %v10472_v35, %s9504_s17  ;;  %v3701_v35 = vld [vmem:[#allocation3 + $0xa6] sm:$0xff] }
 0x234   :  { %3581 = vrot.lane.b32.xlu1 %v3496_v56, %s9508_s1 }
 0x236   :  { %v5875_v40 = vpop.permute.xlu1 %5874 }
 0x237   :  { %5974 = vst.msk [vmem:[#allocation4 + $0x28] sm:$0xff] %vm2829_vm2, %v5875_v40  ;;  %2767 = vrot.lane.b32.xlu0 %v2679_v25, %s9506_s19 }
 0x238   :  { %v11026_v22 = vpop.permute.xlu0 %3981  ;;  %3786 = vrot.lane.b32.xlu1 %v3701_v35, %s9509_s21 }
 0x23a   :  { %v11033_v38 = vpop.permute.xlu1 %3372 }
 0x23b   :  { %2972 = vrot.lane.b32.xlu0 %v3496_v56, %s9510_s22 }
 0x23c   :  { %v11038_v40 = vpop.permute.xlu0 %7300  ;;  %3991 = vrot.lane.b32.xlu1 %v10476_v11, %s9504_s17 }
 0x23e   :  { %v6487_v25 = vpop.permute.xlu1 %6486 }
 0x23f   :  { %3177 = vrot.lane.b32.xlu0 %v3701_v35, %s9511_s23 }
 0x240   :  { %2765 = vrot.lane.b32.xlu1 %v2678_v55, %s9506_s19 }
 0x241   :  { %v11046_v63 = vpop.permute.xlu0 %3567 }
 0x242   :  { %v2754_v56 = vpop.permute.xlu1 %2753 }
 0x243   :  { %2843 = vst.msk [vmem:[#allocation4 + $0xd0] sm:$0xff] %vm2829_vm2, %v2754_v56  ;;  %3382 = vrot.lane.b32.xlu0 %v10476_v11, %s9505_s18  ;;  %v2882_v11 = vld [vmem:[#allocation3 + $0x94] sm:$0xff] }
 0x244   :  { %2970 = vrot.lane.b32.xlu1 %v2883_v41, %s9510_s22 }
 0x245   :  { %v11056_v35 = vpop.permute.xlu0 %3772 }
 0x246   :  { %v2959_v55 = vpop.permute.xlu1 %2958 }
 0x247   :  { %3048 = vst.msk [vmem:[#allocation4 + $0xd0] sm:$0xff] %vm3034_vm3, %v2959_v55  ;;  %2763 = vrot.lane.b32.xlu0 %v2677_v1, %s9506_s19  ;;  %v3087_v55 = vld [vmem:[#allocation3 + $0x96] sm:$0xff] }
 0x248   :  { %3175 = vrot.lane.b32.xlu1 %v3088_v58, %s9511_s23 }
 0x249   :  { %v11061_v56 = vpop.permute.xlu0 %3977 }
 0x24a   :  { %v3164_v30 = vpop.permute.xlu1 %3163 }
 0x24b   :  { %3253 = vst.msk [vmem:[#allocation4 + $0xd0] sm:$0xff] %vm3239_vm4, %v3164_v30  ;;  %2968 = vrot.lane.b32.xlu0 %v2882_v11, %s9510_s22 }
 0x24c   :  { %3577 = vrot.lane.b32.xlu1 %v2882_v11, %s9508_s1 }
 0x24d   :  { %v2760_v49 = vpop.permute.xlu0 %2759 }
 0x24e   :  { %2846 = vst.msk [vmem:[#allocation4 + $0x100] sm:$0xff] %vm2829_vm2, %v2760_v49  ;;  %v3369_v1 = vpop.permute.xlu1 %3368 }
 0x24f   :  { %3458 = vst.msk [vmem:[#allocation4 + $0xd0] sm:$0xff] %vm3444_vm5, %v3369_v1  ;;  %3173 = vrot.lane.b32.xlu0 %v3087_v55, %s9511_s23 }
 0x250   :  { %3782 = vrot.lane.b32.xlu1 %v3087_v55, %s9509_s21 }
 0x251   :  { %v2965_v30 = vpop.permute.xlu0 %2964 }
 0x252   :  { %3051 = vst.msk [vmem:[#allocation4 + $0x100] sm:$0xff] %vm3034_vm3, %v2965_v30  ;;  %v11072_v53 = vpop.permute.xlu1 %6482  ;;  %v2885_v30 = vld [vmem:[#allocation3 + $0xac] sm:$0xff] }
 0x253   :  { %3378 = vrot.lane.b32.xlu0 %v10536_v18, %s9505_s18 }
 0x254   :  { %3987 = vrot.lane.b32.xlu1 %v10536_v18, %s9504_s17  ;;  %v2680_v18 = vld [vmem:[#allocation3 + $0xaa] sm:$0xff] }
 0x255   :  { %v3170_v49 = vpop.permute.xlu0 %3169 }
 0x256   :  { %3256 = vst.msk [vmem:[#allocation4 + $0x100] sm:$0xff] %vm3239_vm4, %v3170_v49  ;;  %v6079_v23 = vpop.permute.xlu1 %6078 }
 0x257   :  { %6178 = vst.msk [vmem:[#allocation4 + $0x28] sm:$0xff] %vm3034_vm3, %v6079_v23  ;;  %3579 = vrot.lane.b32.xlu0 %v2883_v41, %s9508_s1 }
 0x258   :  { %3388 = vrot.lane.b32.xlu1 %v10552_v13, %s9505_s18 }
 0x259   :  { %v3375_v11 = vpop.permute.xlu0 %3374 }
 0x25a   :  { %3461 = vst.msk [vmem:[#allocation4 + $0x100] sm:$0xff] %vm3444_vm5, %v3375_v11  ;;  %v6283_v1 = vpop.permute.xlu1 %6282 }
 0x25b   :  { %6382 = vst.msk [vmem:[#allocation4 + $0x28] sm:$0xff] %vm3239_vm4, %v6283_v1  ;;  %3784 = vrot.lane.b32.xlu0 %v3088_v58, %s9509_s21 }
 0x25c   :  { %6586 = vst.msk [vmem:[#allocation4 + $0x28] sm:$0xff] %vm3444_vm5, %v6487_v25  ;;  %2769 = vrot.lane.b32.xlu1 %v2680_v18, %s9506_s19  ;;  %v3090_v25 = vld [vmem:[#allocation3 + $0xae] sm:$0xff]  ;;  %v3500_v18 = vld [vmem:[#allocation3 + $0xc4] sm:$0xff] }
 0x25d   :  { %v6691_v55 = vpop.permute.xlu0 %6690 }
 0x25e   :  { %6790 = vst.msk [vmem:[#allocation4 + $0x28] sm:$0xff] %vm3649_vm6, %v6691_v55  ;;  %v5877_v41 = vpop.permute.xlu1 %5876 }
 0x25f   :  { %5975 = vst.msk [vmem:[#allocation4 + $0x38] sm:$0xff] %vm2829_vm2, %v5877_v41  ;;  %3997 = vrot.lane.b32.xlu0 %v10552_v13, %s9504_s17 }
 0x260   :  { %2974 = vrot.lane.b32.xlu1 %v2885_v30, %s9510_s22 }
 0x261   :  { %v6895_v58 = vpop.permute.xlu0 %6894 }
 0x262   :  { %6994 = vst.msk [vmem:[#allocation4 + $0x28] sm:$0xff] %vm3854_vm7, %v6895_v58  ;;  %v3574_v49 = vpop.permute.xlu1 %3573  ;;  %v3705_v58 = vld [vmem:[#allocation3 + $0xc6] sm:$0xff] }
 0x263   :  { %3663 = vst.msk [vmem:[#allocation4 + $0xd0] sm:$0xff] %vm3649_vm6, %v3574_v49  ;;  %3583 = vrot.lane.b32.xlu0 %v2885_v30, %s9508_s1  ;;  %v2683_v30 = vld [vmem:[#allocation3 + $0xc2] sm:$0xff] }
 0x264   :  { %3179 = vrot.lane.b32.xlu1 %v3090_v25, %s9511_s23 }
 0x265   :  { %v2756_v23 = vpop.permute.xlu0 %2755 }
 0x266   :  { %2844 = vst.msk [vmem:[#allocation4 + $0xe0] sm:$0xff] %vm2829_vm2, %v2756_v23  ;;  %v3779_v11 = vpop.permute.xlu1 %3778 }
 0x267   :  { %3868 = vst.msk [vmem:[#allocation4 + $0xd0] sm:$0xff] %vm3854_vm7, %v3779_v11  ;;  %3788 = vrot.lane.b32.xlu0 %v3090_v25, %s9509_s21  ;;  %v2682_v11 = vld [vmem:[#allocation3 + $0xba] sm:$0xff] }
 0x268   :  { %3384 = vrot.lane.b32.xlu1 %v10566_v31, %s9505_s18 }
 0x269   :  { %v2961_v13 = vpop.permute.xlu0 %2960 }
 0x26a   :  { %3049 = vst.msk [vmem:[#allocation4 + $0xe0] sm:$0xff] %vm3034_vm3, %v2961_v13  ;;  %v3984_v1 = vpop.permute.xlu1 %3983 }
 0x26b   :  { %4073 = vst.msk [vmem:[#allocation4 + $0xd0] sm:$0xff] %vm4059_vm8, %v3984_v1  ;;  %3993 = vrot.lane.b32.xlu0 %v10566_v31, %s9504_s17 }
 0x26c   :  { %3589 = vrot.lane.b32.xlu1 %v3500_v18, %s9508_s1 }
 0x26d   :  { %v3166_v55 = vpop.permute.xlu0 %3165 }
 0x26e   :  { %3254 = vst.msk [vmem:[#allocation4 + $0xe0] sm:$0xff] %vm3239_vm4, %v3166_v55  ;;  %v2758_v41 = vpop.permute.xlu1 %2757 }
 0x26f   :  { %2845 = vst.msk [vmem:[#allocation4 + $0xf0] sm:$0xff] %vm2829_vm2, %v2758_v41  ;;  %2775 = vrot.lane.b32.xlu0 %v2683_v30, %s9506_s19  ;;  %v2681_v30 = vld [vmem:[#allocation3 + $0xb2] sm:$0xff] }
 0x270   :  { %3794 = vrot.lane.b32.xlu1 %v3705_v58, %s9509_s21 }
 0x271   :  { %v3371_v49 = vpop.permute.xlu0 %3370 }
 0x272   :  { %3459 = vst.msk [vmem:[#allocation4 + $0xe0] sm:$0xff] %vm3444_vm5, %v3371_v49  ;;  %v2963_v25 = vpop.permute.xlu1 %2962 }
 0x273   :  { %3050 = vst.msk [vmem:[#allocation4 + $0xf0] sm:$0xff] %vm3034_vm3, %v2963_v25  ;;  %2980 = vrot.lane.b32.xlu0 %v3500_v18, %s9510_s22  ;;  %v2887_v18 = vld [vmem:[#allocation3 + $0xbc] sm:$0xff]  ;;  %v2886_v25 = vld [vmem:[#allocation3 + $0xb4] sm:$0xff] }
 0x274   :  { %3999 = vrot.lane.b32.xlu1 %v10574_v39, %s9504_s17 }
 0x275   :  { %v11116_v31 = vpop.permute.xlu0 %3571 }
 0x276   :  { %v3168_v23 = vpop.permute.xlu1 %3167 }
 0x277   :  { %3255 = vst.msk [vmem:[#allocation4 + $0xf0] sm:$0xff] %vm3239_vm4, %v3168_v23  ;;  %3185 = vrot.lane.b32.xlu0 %v3705_v58, %s9511_s23 }
 0x278   :  { %3460 = vst.msk [vmem:[#allocation4 + $0xf0] sm:$0xff] %vm3444_vm5, %v11033_v38  ;;  %2773 = vrot.lane.b32.xlu1 %v2682_v11, %s9506_s19  ;;  %v3092_v38 = vld [vmem:[#allocation3 + $0xbe] sm:$0xff]  ;;  %v3091_v11 = vld [vmem:[#allocation3 + $0xb6] sm:$0xff] }
 0x279   :  { %v11123_v13 = vpop.permute.xlu0 %3776 }
 0x27a   :  { %v11125_v1 = vpop.permute.xlu1 %3569 }
 0x27b   :  { %3390 = vrot.lane.b32.xlu0 %v10574_v39, %s9505_s18 }
 0x27c   :  { %2978 = vrot.lane.b32.xlu1 %v2887_v18, %s9510_s22 }
 0x27d   :  { %v11130_v55 = vpop.permute.xlu0 %6686 }
 0x27e   :  { %v11132_v41 = vpop.permute.xlu1 %3774 }
 0x27f   :  { %2771 = vrot.lane.b32.xlu0 %v2681_v30, %s9506_s19 }
 0x280   :  { %3183 = vrot.lane.b32.xlu1 %v3092_v38, %s9511_s23 }
 0x281   :  { %v11136_v58 = vpop.permute.xlu0 %6890 }
 0x282   :  { %v11138_v49 = vpop.permute.xlu1 %3979 }
 0x283   :  { %2976 = vrot.lane.b32.xlu0 %v2886_v25, %s9510_s22 }
 0x284   :  { %3585 = vrot.lane.b32.xlu1 %v2886_v25, %s9508_s1 }
 0x285   :  { %v11142_v39 = vpop.permute.xlu0 %7094 }
 0x286   :  { %v11144_v23 = vpop.permute.xlu1 %6484 }
 0x287   :  { %3181 = vrot.lane.b32.xlu0 %v3091_v11, %s9511_s23 }
 0x288   :  { %3790 = vrot.lane.b32.xlu1 %v3091_v11, %s9509_s21 }
 0x289   :  { %v11148_v30 = vpop.permute.xlu0 %7298 }
 0x28a   :  { %v6081_v62 = vpop.permute.xlu1 %6080 }
 0x28b   :  { %6179 = vst.msk [vmem:[#allocation4 + $0x38] sm:$0xff] %vm3034_vm3, %v6081_v62  ;;  %3386 = vrot.lane.b32.xlu0 %v10590_v51, %s9505_s18  ;;  %v2684_v62 = vld [vmem:[#allocation3 + $0xca] sm:$0xff] }
 0x28c   :  { %3995 = vrot.lane.b32.xlu1 %v10590_v51, %s9504_s17 }
 0x28d   :  { %v11155_v25 = vpop.permute.xlu0 %6688 }
 0x28e   :  { %v6285_v48 = vpop.permute.xlu1 %6284 }
 0x28f   :  { %6383 = vst.msk [vmem:[#allocation4 + $0x38] sm:$0xff] %vm3239_vm4, %v6285_v48  ;;  %3587 = vrot.lane.b32.xlu0 %v2887_v18, %s9508_s1  ;;  %v2889_v48 = vld [vmem:[#allocation3 + $0xcc] sm:$0xff] }
 0x290   :  { %3396 = vrot.lane.b32.xlu1 %v10606_v26, %s9505_s18 }
 0x291   :  { %v11161_v11 = vpop.permute.xlu0 %6892 }
 0x292   :  { %v11163_v47 = vpop.permute.xlu1 %3380 }
 0x293   :  { %3792 = vrot.lane.b32.xlu0 %v3092_v38, %s9509_s21  ;;  %v3094_v38 = vld [vmem:[#allocation3 + $0xce] sm:$0xff] }
 0x294   :  { %2777 = vrot.lane.b32.xlu1 %v2684_v62, %s9506_s19 }
 0x295   :  { %v11167_v51 = vpop.permute.xlu0 %7096 }
 0x296   :  { %v2762_v0 = vpop.permute.xlu1 %2761 }
 0x297   :  { %2847 = vst.msk [vmem:[#allocation4 + $0x110] sm:$0xff] %vm2829_vm2, %v2762_v0  ;;  %4005 = vrot.lane.b32.xlu0 %v10606_v26, %s9504_s17 }
 0x298   :  { %2982 = vrot.lane.b32.xlu1 %v2889_v48, %s9510_s22 }
 0x299   :  { %v11173_v18 = vpop.permute.xlu0 %3989 }
 0x29a   :  { %v2967_v10 = vpop.permute.xlu1 %2966 }
 0x29b   :  { %3052 = vst.msk [vmem:[#allocation4 + $0x110] sm:$0xff] %vm3034_vm3, %v2967_v10  ;;  %3591 = vrot.lane.b32.xlu0 %v2889_v48, %s9508_s1  ;;  %v3504_v48 = vld [vmem:[#allocation3 + $0xe4] sm:$0xff] }
 0x29c   :  { %3187 = vrot.lane.b32.xlu1 %v3094_v38, %s9511_s23 }
 0x29d   :  { %v3576_v62 = vpop.permute.xlu0 %3575 }
 0x29e   :  { %3664 = vst.msk [vmem:[#allocation4 + $0xe0] sm:$0xff] %vm3649_vm6, %v3576_v62  ;;  %v3172_v0 = vpop.permute.xlu1 %3171 }
 0x29f   :  { %3257 = vst.msk [vmem:[#allocation4 + $0x110] sm:$0xff] %vm3239_vm4, %v3172_v0  ;;  %3796 = vrot.lane.b32.xlu0 %v3094_v38, %s9509_s21  ;;  %v2687_v38 = vld [vmem:[#allocation3 + $0xe2] sm:$0xff] }
 0x2a0   :  { %3392 = vrot.lane.b32.xlu1 %v10616_v20, %s9505_s18 }
 0x2a1   :  { %v3781_v26 = vpop.permute.xlu0 %3780 }
 0x2a2   :  { %3869 = vst.msk [vmem:[#allocation4 + $0xe0] sm:$0xff] %vm3854_vm7, %v3781_v26  ;;  %v3377_v10 = vpop.permute.xlu1 %3376 }
 0x2a3   :  { %3462 = vst.msk [vmem:[#allocation4 + $0x110] sm:$0xff] %vm3444_vm5, %v3377_v10  ;;  %4001 = vrot.lane.b32.xlu0 %v10616_v20, %s9504_s17  ;;  %v2686_v20 = vld [vmem:[#allocation3 + $0xda] sm:$0xff] }
 0x2a4   :  { %3597 = vrot.lane.b32.xlu1 %v3504_v48, %s9508_s1 }
 0x2a5   :  { %v3986_v62 = vpop.permute.xlu0 %3985 }
 0x2a6   :  { %4074 = vst.msk [vmem:[#allocation4 + $0xe0] sm:$0xff] %vm4059_vm8, %v3986_v62  ;;  %v3582_v0 = vpop.permute.xlu1 %3581 }
 0x2a7   :  { %3667 = vst.msk [vmem:[#allocation4 + $0x110] sm:$0xff] %vm3649_vm6, %v3582_v0  ;;  %2783 = vrot.lane.b32.xlu0 %v2687_v38, %s9506_s19  ;;  %v2891_v38 = vld [vmem:[#allocation3 + $0xdc] sm:$0xff] }
 0x2a8   :  { %3802 = vrot.lane.b32.xlu1 %v3709_v44, %s9509_s21 }
 0x2a9   :  { %v2768_v26 = vpop.permute.xlu0 %2767 }
 0x2aa   :  { %2850 = vst.msk [vmem:[#allocation4 + $0x140] sm:$0xff] %vm2829_vm2, %v2768_v26  ;;  %v3787_v10 = vpop.permute.xlu1 %3786 }
 0x2ab   :  { %3872 = vst.msk [vmem:[#allocation4 + $0x110] sm:$0xff] %vm3854_vm7, %v3787_v10  ;;  %2988 = vrot.lane.b32.xlu0 %v3504_v48, %s9510_s22  ;;  %v3096_v48 = vld [vmem:[#allocation3 + $0xde] sm:$0xff] }
 0x2ac   :  { %2781 = vrot.lane.b32.xlu1 %v2686_v20, %s9506_s19 }
 0x2ad   :  { %v2973_v62 = vpop.permute.xlu0 %2972 }
 0x2ae   :  { %3055 = vst.msk [vmem:[#allocation4 + $0x140] sm:$0xff] %vm3034_vm3, %v2973_v62  ;;  %v3992_v0 = vpop.permute.xlu1 %3991 }
 0x2af   :  { %4077 = vst.msk [vmem:[#allocation4 + $0x110] sm:$0xff] %vm4059_vm8, %v3992_v0  ;;  %3193 = vrot.lane.b32.xlu0 %v3709_v44, %s9511_s23  ;;  %v2685_v44 = vld [vmem:[#allocation3 + $0xd2] sm:$0xff] }
 0x2b0   :  { %2986 = vrot.lane.b32.xlu1 %v2891_v38, %s9510_s22  ;;  %v3502_v0 = vld [vmem:[#allocation3 + $0xd4] sm:$0xff] }
 0x2b1   :  { %v3178_v26 = vpop.permute.xlu0 %3177 }
 0x2b2   :  { %3260 = vst.msk [vmem:[#allocation4 + $0x140] sm:$0xff] %vm3239_vm4, %v3178_v26  ;;  %v2766_v10 = vpop.permute.xlu1 %2765 }
 0x2b3   :  { %2849 = vst.msk [vmem:[#allocation4 + $0x130] sm:$0xff] %vm2829_vm2, %v2766_v10  ;;  %3398 = vrot.lane.b32.xlu0 %v10630_v45, %s9505_s18  ;;  %v3707_v45 = vld [vmem:[#allocation3 + $0xd6] sm:$0xff] }
 0x2b4   :  { %3191 = vrot.lane.b32.xlu1 %v3096_v48, %s9511_s23 }
 0x2b5   :  { %v3383_v20 = vpop.permute.xlu0 %3382 }
 0x2b6   :  { %3465 = vst.msk [vmem:[#allocation4 + $0x140] sm:$0xff] %vm3444_vm5, %v3383_v20  ;;  %v2971_v62 = vpop.permute.xlu1 %2970 }
 0x2b7   :  { %3054 = vst.msk [vmem:[#allocation4 + $0x130] sm:$0xff] %vm3034_vm3, %v2971_v62  ;;  %2779 = vrot.lane.b32.xlu0 %v2685_v44, %s9506_s19 }
 0x2b8   :  { %3593 = vrot.lane.b32.xlu1 %v3502_v0, %s9508_s1 }
 0x2b9   :  { %v2764_v26 = vpop.permute.xlu0 %2763 }
 0x2ba   :  { %2848 = vst.msk [vmem:[#allocation4 + $0x120] sm:$0xff] %vm2829_vm2, %v2764_v26  ;;  %v3176_v10 = vpop.permute.xlu1 %3175 }
 0x2bb   :  { %3259 = vst.msk [vmem:[#allocation4 + $0x130] sm:$0xff] %vm3239_vm4, %v3176_v10  ;;  %2984 = vrot.lane.b32.xlu0 %v3502_v0, %s9510_s22  ;;  %v2688_v10 = vld [vmem:[#allocation3 + $0xea] sm:$0xff] }
 0x2bc   :  { %3464 = vst.msk [vmem:[#allocation4 + $0x130] sm:$0xff] %vm3444_vm5, %v11163_v47  ;;  %3798 = vrot.lane.b32.xlu1 %v3707_v45, %s9509_s21 }
 0x2bd   :  { %v2969_v20 = vpop.permute.xlu0 %2968 }
 0x2be   :  { %3053 = vst.msk [vmem:[#allocation4 + $0x120] sm:$0xff] %vm3034_vm3, %v2969_v20  ;;  %v3578_v62 = vpop.permute.xlu1 %3577 }
 0x2bf   :  { %3665 = vst.msk [vmem:[#allocation4 + $0xf0] sm:$0xff] %vm3649_vm6, %v3578_v62  ;;  %3189 = vrot.lane.b32.xlu0 %v3707_v45, %s9511_s23 }
 0x2c0   :  { %4003 = vrot.lane.b32.xlu1 %v10636_v3, %s9504_s17 }
 0x2c1   :  { %v3174_v44 = vpop.permute.xlu0 %3173 }
 0x2c2   :  { %3258 = vst.msk [vmem:[#allocation4 + $0x120] sm:$0xff] %vm3239_vm4, %v3174_v44  ;;  %v3783_v0 = vpop.permute.xlu1 %3782 }
 0x2c3   :  { %3870 = vst.msk [vmem:[#allocation4 + $0xf0] sm:$0xff] %vm3854_vm7, %v3783_v0  ;;  %3394 = vrot.lane.b32.xlu0 %v10636_v3, %s9505_s18  ;;  %v2893_v3 = vld [vmem:[#allocation3 + $0xec] sm:$0xff] }
 0x2c4   :  { %3404 = vrot.lane.b32.xlu1 %v10658_v9, %s9505_s18 }
 0x2c5   :  { %v3379_v47 = vpop.permute.xlu0 %3378 }
 0x2c6   :  { %3463 = vst.msk [vmem:[#allocation4 + $0x120] sm:$0xff] %vm3444_vm5, %v3379_v47  ;;  %v3988_v26 = vpop.permute.xlu1 %3987  ;;  %v2691_v47 = vld [vmem:[#allocation3 + $0x102] sm:$0xff] }
 0x2c7   :  { %4075 = vst.msk [vmem:[#allocation4 + $0xf0] sm:$0xff] %vm4059_vm8, %v3988_v26  ;;  %3595 = vrot.lane.b32.xlu0 %v2891_v38, %s9508_s1  ;;  %v3098_v38 = vld [vmem:[#allocation3 + $0xee] sm:$0xff]  ;;  %v3508_v26 = vld [vmem:[#allocation3 + $0x104] sm:$0xff] }
 0x2c8   :  { %2785 = vrot.lane.b32.xlu1 %v2688_v10, %s9506_s19 }
 0x2c9   :  { %v3580_v45 = vpop.permute.xlu0 %3579 }
 0x2ca   :  { %3666 = vst.msk [vmem:[#allocation4 + $0x100] sm:$0xff] %vm3649_vm6, %v3580_v45  ;;  %v11231_v20 = vpop.permute.xlu1 %3388 }
 0x2cb   :  { %3800 = vrot.lane.b32.xlu0 %v3096_v48, %s9509_s21 }
 0x2cc   :  { %2990 = vrot.lane.b32.xlu1 %v2893_v3, %s9510_s22 }
 0x2cd   :  { %v3785_v9 = vpop.permute.xlu0 %3784 }
 0x2ce   :  { %3871 = vst.msk [vmem:[#allocation4 + $0x100] sm:$0xff] %vm3854_vm7, %v3785_v9  ;;  %v2770_v62 = vpop.permute.xlu1 %2769 }
 0x2cf   :  { %4076 = vst.msk [vmem:[#allocation4 + $0x100] sm:$0xff] %vm4059_vm8, %v11173_v18  ;;  %3599 = vrot.lane.b32.xlu0 %v2893_v3, %s9508_s1 }
 0x2d0   :  { %2851 = vst.msk [vmem:[#allocation4 + $0x150] sm:$0xff] %vm2829_vm2, %v2770_v62  ;;  %3195 = vrot.lane.b32.xlu1 %v3098_v38, %s9511_s23  ;;  %v2690_v62 = vld [vmem:[#allocation3 + $0xfa] sm:$0xff] }
 0x2d1   :  { %v11241_v44 = vpop.permute.xlu0 %3997 }
 0x2d2   :  { %v2975_v48 = vpop.permute.xlu1 %2974 }
 0x2d3   :  { %3056 = vst.msk [vmem:[#allocation4 + $0x150] sm:$0xff] %vm3034_vm3, %v2975_v48  ;;  %3804 = vrot.lane.b32.xlu0 %v3098_v38, %s9509_s21 }
 0x2d4   :  { %3400 = vrot.lane.b32.xlu1 %v10668_v52, %s9505_s18  ;;  %v3713_v52 = vld [vmem:[#allocation3 + $0x106] sm:$0xff] }
 0x2d5   :  { %v3584_v0 = vpop.permute.xlu0 %3583 }
 0x2d6   :  { %3668 = vst.msk [vmem:[#allocation4 + $0x120] sm:$0xff] %vm3649_vm6, %v3584_v0  ;;  %v3180_v18 = vpop.permute.xlu1 %3179  ;;  %v2895_v0 = vld [vmem:[#allocation3 + $0xfc] sm:$0xff] }
 0x2d7   :  { %3261 = vst.msk [vmem:[#allocation4 + $0x150] sm:$0xff] %vm3239_vm4, %v3180_v18  ;;  %2791 = vrot.lane.b32.xlu0 %v2691_v47, %s9506_s19 }
 0x2d8   :  { %3605 = vrot.lane.b32.xlu1 %v3508_v26, %s9508_s1 }
 0x2d9   :  { %v3789_v10 = vpop.permute.xlu0 %3788 }
 0x2da   :  { %3873 = vst.msk [vmem:[#allocation4 + $0x120] sm:$0xff] %vm3854_vm7, %v3789_v10  ;;  %v3385_v45 = vpop.permute.xlu1 %3384  ;;  %v3100_v10 = vld [vmem:[#allocation3 + $0xfe] sm:$0xff] }
 0x2db   :  { %3466 = vst.msk [vmem:[#allocation4 + $0x150] sm:$0xff] %vm3444_vm5, %v3385_v45  ;;  %2996 = vrot.lane.b32.xlu0 %v3508_v26, %s9510_s22  ;;  %v2689_v26 = vld [vmem:[#allocation3 + $0xf2] sm:$0xff] }
 0x2dc   :  { %3810 = vrot.lane.b32.xlu1 %v3713_v52, %s9509_s21 }
 0x2dd   :  { %v3994_v3 = vpop.permute.xlu0 %3993 }
 0x2de   :  { %4078 = vst.msk [vmem:[#allocation4 + $0x120] sm:$0xff] %vm4059_vm8, %v3994_v3  ;;  %v3590_v9 = vpop.permute.xlu1 %3589 }
 0x2df   :  { %3671 = vst.msk [vmem:[#allocation4 + $0x150] sm:$0xff] %vm3649_vm6, %v3590_v9  ;;  %3201 = vrot.lane.b32.xlu0 %v3713_v52, %s9511_s23 }
 0x2e0   :  { %2789 = vrot.lane.b32.xlu1 %v2690_v62, %s9506_s19  ;;  %v3099_v62 = vld [vmem:[#allocation3 + $0xf6] sm:$0xff] }
 0x2e1   :  { %v2776_v38 = vpop.permute.xlu0 %2775 }
 0x2e2   :  { %2854 = vst.msk [vmem:[#allocation4 + $0x180] sm:$0xff] %vm2829_vm2, %v2776_v38  ;;  %v3795_v48 = vpop.permute.xlu1 %3794 }
 0x2e3   :  { %3876 = vst.msk [vmem:[#allocation4 + $0x150] sm:$0xff] %vm3854_vm7, %v3795_v48  ;;  %3406 = vrot.lane.b32.xlu0 %v10676_v36, %s9505_s18  ;;  %v2894_v36 = vld [vmem:[#allocation3 + $0xf4] sm:$0xff] }
 0x2e4   :  { %2994 = vrot.lane.b32.xlu1 %v2895_v0, %s9510_s22 }
 0x2e5   :  { %v2981_v18 = vpop.permute.xlu0 %2980 }
 0x2e6   :  { %3059 = vst.msk [vmem:[#allocation4 + $0x180] sm:$0xff] %vm3034_vm3, %v2981_v18  ;;  %v4000_v47 = vpop.permute.xlu1 %3999  ;;  %v2692_v18 = vld [vmem:[#allocation3 + $0x10a] sm:$0xff] }
 0x2e7   :  { %4081 = vst.msk [vmem:[#allocation4 + $0x150] sm:$0xff] %vm4059_vm8, %v4000_v47  ;;  %2787 = vrot.lane.b32.xlu0 %v2689_v26, %s9506_s19 }
 0x2e8   :  { %3199 = vrot.lane.b32.xlu1 %v3100_v10, %s9511_s23 }
 0x2e9   :  { %v3186_v45 = vpop.permute.xlu0 %3185 }
 0x2ea   :  { %3264 = vst.msk [vmem:[#allocation4 + $0x180] sm:$0xff] %vm3239_vm4, %v3186_v45  ;;  %v2774_v52 = vpop.permute.xlu1 %2773  ;;  %v2897_v45 = vld [vmem:[#allocation3 + $0x10c] sm:$0xff] }
 0x2eb   :  { %2853 = vst.msk [vmem:[#allocation4 + $0x170] sm:$0xff] %vm2829_vm2, %v2774_v52  ;;  %2992 = vrot.lane.b32.xlu0 %v2894_v36, %s9510_s22 }
 0x2ec   :  { %3601 = vrot.lane.b32.xlu1 %v2894_v36, %s9508_s1 }
 0x2ed   :  { %v3391_v3 = vpop.permute.xlu0 %3390 }
 0x2ee   :  { %3469 = vst.msk [vmem:[#allocation4 + $0x180] sm:$0xff] %vm3444_vm5, %v3391_v3  ;;  %v2979_v9 = vpop.permute.xlu1 %2978 }
 0x2ef   :  { %3058 = vst.msk [vmem:[#allocation4 + $0x170] sm:$0xff] %vm3034_vm3, %v2979_v9  ;;  %3197 = vrot.lane.b32.xlu0 %v3099_v62, %s9511_s23 }
 0x2f0   :  { %3806 = vrot.lane.b32.xlu1 %v3099_v62, %s9509_s21 }
 0x2f1   :  { %v2772_v38 = vpop.permute.xlu0 %2771 }
 0x2f2   :  { %2852 = vst.msk [vmem:[#allocation4 + $0x160] sm:$0xff] %vm2829_vm2, %v2772_v38  ;;  %v3184_v48 = vpop.permute.xlu1 %3183 }
 0x2f3   :  { %3263 = vst.msk [vmem:[#allocation4 + $0x170] sm:$0xff] %vm3239_vm4, %v3184_v48  ;;  %3402 = vrot.lane.b32.xlu0 %v10692_v4, %s9505_s18 }
 0x2f4   :  { %3468 = vst.msk [vmem:[#allocation4 + $0x170] sm:$0xff] %vm3444_vm5, %v11231_v20  ;;  %2793 = vrot.lane.b32.xlu1 %v2692_v18, %s9506_s19  ;;  %v3102_v20 = vld [vmem:[#allocation3 + $0x10e] sm:$0xff]  ;;  %v3511_v18 = vld [vmem:[#allocation3 + $0x11c] sm:$0xff] }
 0x2f5   :  { %v2977_v47 = vpop.permute.xlu0 %2976 }
 0x2f6   :  { %3057 = vst.msk [vmem:[#allocation4 + $0x160] sm:$0xff] %vm3034_vm3, %v2977_v47  ;;  %v3586_v26 = vpop.permute.xlu1 %3585  ;;  %v3717_v47 = vld [vmem:[#allocation3 + $0x126] sm:$0xff] }
 0x2f7   :  { %3669 = vst.msk [vmem:[#allocation4 + $0x130] sm:$0xff] %vm3649_vm6, %v3586_v26  ;;  %3603 = vrot.lane.b32.xlu0 %v2895_v0, %s9508_s1  ;;  %v3307_v0 = vld [vmem:[#allocation3 + $0x110] sm:$0xff] }
 0x2f8   :  { %2998 = vrot.lane.b32.xlu1 %v2897_v45, %s9510_s22 }
 0x2f9   :  { %v3182_v52 = vpop.permute.xlu0 %3181 }
 0x2fa   :  { %3262 = vst.msk [vmem:[#allocation4 + $0x160] sm:$0xff] %vm3239_vm4, %v3182_v52  ;;  %v3791_v4 = vpop.permute.xlu1 %3790  ;;  %v3716_v52 = vld [vmem:[#allocation3 + $0x11e] sm:$0xff] }
 0x2fb   :  { %3874 = vst.msk [vmem:[#allocation4 + $0x130] sm:$0xff] %vm3854_vm7, %v3791_v4  ;;  %3808 = vrot.lane.b32.xlu0 %v3100_v10, %s9509_s21  ;;  %v3512_v10 = vld [vmem:[#allocation3 + $0x124] sm:$0xff]  ;;  %v3510_v4 = vld [vmem:[#allocation3 + $0x114] sm:$0xff] }
 0x2fc   :  { %3203 = vrot.lane.b32.xlu1 %v3102_v20, %s9511_s23 }
 0x2fd   :  { %v3387_v36 = vpop.permute.xlu0 %3386 }
 0x2fe   :  { %3467 = vst.msk [vmem:[#allocation4 + $0x160] sm:$0xff] %vm3444_vm5, %v3387_v36  ;;  %v3996_v3 = vpop.permute.xlu1 %3995  ;;  %v3715_v36 = vld [vmem:[#allocation3 + $0x116] sm:$0xff] }
 0x2ff   :  { %4079 = vst.msk [vmem:[#allocation4 + $0x130] sm:$0xff] %vm4059_vm8, %v3996_v3  ;;  %3607 = vrot.lane.b32.xlu0 %v2897_v45, %s9508_s1 }
 0x300   :  { %3408 = vrot.lane.b32.xlu1 %v3307_v0, %s9505_s18 }
 0x301   :  { %v3588_v9 = vpop.permute.xlu0 %3587 }
 0x302   :  { %3670 = vst.msk [vmem:[#allocation4 + $0x140] sm:$0xff] %vm3649_vm6, %v3588_v9  ;;  %v11296_v62 = vpop.permute.xlu1 %3396  ;;  %v2659_v9 = vld [vmem:[#allocation3 + $0x2] sm:$0xff] }
 0x303   :  { %3812 = vrot.lane.b32.xlu0 %v3102_v20, %s9509_s21 }
 0x304   :  { %3613 = vrot.lane.b32.xlu1 %v3512_v10, %s9508_s1  ;;  %v2662_v10 = vld [vmem:[#allocation3 + $0x1a] sm:$0xff] }
 0x305   :  { %v3793_v38 = vpop.permute.xlu0 %3792 }
 0x306   :  { %3875 = vst.msk [vmem:[#allocation4 + $0x140] sm:$0xff] %vm3854_vm7, %v3793_v38  ;;  %v2778_v48 = vpop.permute.xlu1 %2777 }
 0x307   :  { %4080 = vst.msk [vmem:[#allocation4 + $0x140] sm:$0xff] %vm4059_vm8, %v11241_v44  ;;  %3611 = vrot.lane.b32.xlu0 %v3511_v18, %s9508_s1  ;;  %v2867_v18 = vld [vmem:[#allocation3 + $0x1c] sm:$0xff] }
 0x308   :  { %2855 = vst.msk [vmem:[#allocation4 + $0x190] sm:$0xff] %vm2829_vm2, %v2778_v48  ;;  %3818 = vrot.lane.b32.xlu1 %v3717_v47, %s9509_s21 }
 0x309   :  { %v11306_v26 = vpop.permute.xlu0 %4005 }
 0x30a   :  { %v2983_v45 = vpop.permute.xlu1 %2982 }
 0x30b   :  { %3060 = vst.msk [vmem:[#allocation4 + $0x190] sm:$0xff] %vm3034_vm3, %v2983_v45  ;;  %3816 = vrot.lane.b32.xlu0 %v3716_v52, %s9509_s21  ;;  %v3069_v52 = vld [vmem:[#allocation3 + $0x6] sm:$0xff] }
 0x30c   :  { %3609 = vrot.lane.b32.xlu1 %v3510_v4, %s9508_s1  ;;  %v3072_v4 = vld [vmem:[#allocation3 + $0x1e] sm:$0xff] }
 0x30d   :  { %v3592_v20 = vpop.permute.xlu0 %3591 }
 0x30e   :  { %3672 = vst.msk [vmem:[#allocation4 + $0x160] sm:$0xff] %vm3649_vm6, %v3592_v20  ;;  %v3188_v44 = vpop.permute.xlu1 %3187 }
 0x30f   :  { %3265 = vst.msk [vmem:[#allocation4 + $0x190] sm:$0xff] %vm3239_vm4, %v3188_v44  ;;  %3346 = vrot.lane.b32.xlu0 %v10893_v21, %s9505_s18  ;;  %v2864_v21 = vld [vmem:[#allocation3 + $0x4] sm:$0xff] }
 0x310   :  { %3814 = vrot.lane.b32.xlu1 %v3715_v36, %s9509_s21 }
 0x311   :  { %v3797_v3 = vpop.permute.xlu0 %3796 }
 0x312   :  { %3877 = vst.msk [vmem:[#allocation4 + $0x160] sm:$0xff] %vm3854_vm7, %v3797_v3  ;;  %v3393_v0 = vpop.permute.xlu1 %3392 }
 0x313   :  { %3470 = vst.msk [vmem:[#allocation4 + $0x190] sm:$0xff] %vm3444_vm5, %v3393_v0  ;;  %2727 = vrot.lane.b32.xlu0 %v2659_v9, %s9506_s19  ;;  %v2661_v0 = vld [vmem:[#allocation3 + $0x12] sm:$0xff] }
 0x314   :  { %2733 = vrot.lane.b32.xlu1 %v2662_v10, %s9506_s19 }
 0x315   :  { %v4002_v38 = vpop.permute.xlu0 %4001 }
 0x316   :  { %4082 = vst.msk [vmem:[#allocation4 + $0x160] sm:$0xff] %vm4059_vm8, %v4002_v38  ;;  %v3598_v48 = vpop.permute.xlu1 %3597 }
 0x317   :  { %3675 = vst.msk [vmem:[#allocation4 + $0x190] sm:$0xff] %vm3649_vm6, %v3598_v48  ;;  %2932 = vrot.lane.b32.xlu0 %v2864_v21, %s9510_s22  ;;  %v3070_v21 = vld [vmem:[#allocation3 + $0xe] sm:$0xff] }
 0x318   :  { %2938 = vrot.lane.b32.xlu1 %v2867_v18, %s9510_s22 }
 0x319   :  { %v2784_v47 = vpop.permute.xlu0 %2783 }
 0x31a   :  { %2858 = vst.msk [vmem:[#allocation4 + $0x1c0] sm:$0xff] %vm2829_vm2, %v2784_v47  ;;  %v3803_v45 = vpop.permute.xlu1 %3802 }
 0x31b   :  { %3880 = vst.msk [vmem:[#allocation4 + $0x190] sm:$0xff] %vm3854_vm7, %v3803_v45  ;;  %3137 = vrot.lane.b32.xlu0 %v3069_v52, %s9511_s23  ;;  %v2660_v45 = vld [vmem:[#allocation3 + $0xa] sm:$0xff] }
 0x31c   :  { %3143 = vrot.lane.b32.xlu1 %v3072_v4, %s9511_s23 }
 0x31d   :  { %v2989_v20 = vpop.permute.xlu0 %2988 }
 0x31e   :  { %3063 = vst.msk [vmem:[#allocation4 + $0x1c0] sm:$0xff] %vm3034_vm3, %v2989_v20  ;;  %v2782_v44 = vpop.permute.xlu1 %2781 }
 0x31f   :  { %2857 = vst.msk [vmem:[#allocation4 + $0x1b0] sm:$0xff] %vm2829_vm2, %v2782_v44  ;;  %3342 = vrot.lane.b32.xlu0 %v10907_v46, %s9505_s18  ;;  %v2865_v46 = vld [vmem:[#allocation3 + $0xc] sm:$0xff]  ;;  %v3071_v44 = vld [vmem:[#allocation3 + $0x16] sm:$0xff] }
 0x320   :  { %3348 = vrot.lane.b32.xlu1 %v10909_v27, %s9505_s18 }
 0x321   :  { %v3194_v36 = vpop.permute.xlu0 %3193 }
 0x322   :  { %3268 = vst.msk [vmem:[#allocation4 + $0x1c0] sm:$0xff] %vm3239_vm4, %v3194_v36  ;;  %v2987_v3 = vpop.permute.xlu1 %2986 }
 0x323   :  { %3062 = vst.msk [vmem:[#allocation4 + $0x1b0] sm:$0xff] %vm3034_vm3, %v2987_v3  ;;  %3547 = vrot.lane.b32.xlu0 %v2867_v18, %s9508_s1 }
 0x324   :  { %2731 = vrot.lane.b32.xlu1 %v2661_v0, %s9506_s19  ;;  %v3685_v0 = vld [vmem:[#allocation3 + $0x26] sm:$0xff] }
 0x325   :  { %v3399_v9 = vpop.permute.xlu0 %3398 }
 0x326   :  { %3473 = vst.msk [vmem:[#allocation4 + $0x1c0] sm:$0xff] %vm3444_vm5, %v3399_v9  ;;  %v3192_v10 = vpop.permute.xlu1 %3191 }
 0x327   :  { %3267 = vst.msk [vmem:[#allocation4 + $0x1b0] sm:$0xff] %vm3239_vm4, %v3192_v10  ;;  %3752 = vrot.lane.b32.xlu0 %v3072_v4, %s9509_s21 }
 0x328   :  { %3472 = vst.msk [vmem:[#allocation4 + $0x1b0] sm:$0xff] %vm3444_vm5, %v11296_v62  ;;  %2934 = vrot.lane.b32.xlu1 %v2865_v46, %s9510_s22 }
 0x329   :  { %v2780_v38 = vpop.permute.xlu0 %2779 }
 0x32a   :  { %2856 = vst.msk [vmem:[#allocation4 + $0x1a0] sm:$0xff] %vm2829_vm2, %v2780_v38  ;;  %v3594_v48 = vpop.permute.xlu1 %3593 }
 0x32b   :  { %3673 = vst.msk [vmem:[#allocation4 + $0x170] sm:$0xff] %vm3649_vm6, %v3594_v48  ;;  %3957 = vrot.lane.b32.xlu0 %v10909_v27, %s9504_s17  ;;  %v2866_v27 = vld [vmem:[#allocation3 + $0x14] sm:$0xff]  ;;  %v2663_v48 = vld [vmem:[#allocation3 + $0x22] sm:$0xff] }
 0x32c   :  { %3139 = vrot.lane.b32.xlu1 %v3070_v21, %s9511_s23  ;;  %v2666_v21 = vld [vmem:[#allocation3 + $0x3a] sm:$0xff] }
 0x32d   :  { %v2985_v18 = vpop.permute.xlu0 %2984 }
 0x32e   :  { %3061 = vst.msk [vmem:[#allocation4 + $0x1a0] sm:$0xff] %vm3034_vm3, %v2985_v18  ;;  %v3799_v47 = vpop.permute.xlu1 %3798 }
 0x32f   :  { %3878 = vst.msk [vmem:[#allocation4 + $0x170] sm:$0xff] %vm3854_vm7, %v3799_v47  ;;  %2729 = vrot.lane.b32.xlu0 %v2660_v45, %s9506_s19 }
 0x330   :  { %3344 = vrot.lane.b32.xlu1 %v10923_v50, %s9505_s18  ;;  %v3480_v50 = vld [vmem:[#allocation3 + $0x24] sm:$0xff] }
 0x331   :  { %v3190_v62 = vpop.permute.xlu0 %3189 }
 0x332   :  { %3266 = vst.msk [vmem:[#allocation4 + $0x1a0] sm:$0xff] %vm3239_vm4, %v3190_v62  ;;  %v4004_v52 = vpop.permute.xlu1 %4003  ;;  %v3076_v62 = vld [vmem:[#allocation3 + $0x3e] sm:$0xff] }
 0x333   :  { %4083 = vst.msk [vmem:[#allocation4 + $0x170] sm:$0xff] %vm4059_vm8, %v4004_v52  ;;  %2936 = vrot.lane.b32.xlu0 %v2866_v27, %s9510_s22 }
 0x334   :  { %3963 = vrot.lane.b32.xlu1 %v10941_v2, %s9504_s17 }
 0x335   :  { %v3395_v4 = vpop.permute.xlu0 %3394 }
 0x336   :  { %3471 = vst.msk [vmem:[#allocation4 + $0x1a0] sm:$0xff] %vm3444_vm5, %v3395_v4  ;;  %v11360_v20 = vpop.permute.xlu1 %3404 }
 0x337   :  { %3141 = vrot.lane.b32.xlu0 %v3071_v44, %s9511_s23 }
 0x338   :  { %3549 = vrot.lane.b32.xlu1 %v3480_v50, %s9508_s1 }
 0x339   :  { %v3596_v36 = vpop.permute.xlu0 %3595 }
 0x33a   :  { %3674 = vst.msk [vmem:[#allocation4 + $0x180] sm:$0xff] %vm3649_vm6, %v3596_v36  ;;  %v2786_v3 = vpop.permute.xlu1 %2785 }
 0x33b   :  { %2859 = vst.msk [vmem:[#allocation4 + $0x1d0] sm:$0xff] %vm2829_vm2, %v2786_v3  ;;  %3354 = vrot.lane.b32.xlu0 %v10941_v2, %s9505_s18 }
 0x33c   :  { %3754 = vrot.lane.b32.xlu1 %v3685_v0, %s9509_s21 }
 0x33d   :  { %v3801_v9 = vpop.permute.xlu0 %3800 }
 0x33e   :  { %3879 = vst.msk [vmem:[#allocation4 + $0x180] sm:$0xff] %vm3854_vm7, %v3801_v9  ;;  %v2991_v10 = vpop.permute.xlu1 %2990 }
 0x33f   :  { %4084 = vst.msk [vmem:[#allocation4 + $0x180] sm:$0xff] %vm4059_vm8, %v11306_v26  ;;  %4572 = vrot.lane.b32.xlu0 %v10941_v2, %s9512_s24  ;;  %v2871_v2 = vld [vmem:[#allocation3 + $0x3c] sm:$0xff] }
 0x340   :  { %3064 = vst.msk [vmem:[#allocation4 + $0x1d0] sm:$0xff] %vm3034_vm3, %v2991_v10  ;;  %3959 = vrot.lane.b32.xlu1 %v10943_v32, %s9504_s17 }
 0x341   :  { %v3600_v46 = vpop.permute.xlu0 %3599 }
 0x342   :  { %3676 = vst.msk [vmem:[#allocation4 + $0x1a0] sm:$0xff] %vm3649_vm6, %v3600_v46  ;;  %v3196_v38 = vpop.permute.xlu1 %3195 }
 0x343   :  { %3269 = vst.msk [vmem:[#allocation4 + $0x1d0] sm:$0xff] %vm3239_vm4, %v3196_v38  ;;  %2735 = vrot.lane.b32.xlu0 %v2663_v48, %s9506_s19 }
 0x344   :  { %2741 = vrot.lane.b32.xlu1 %v2666_v21, %s9506_s19 }
 0x345   :  { %v3805_v26 = vpop.permute.xlu0 %3804 }
 0x346   :  { %3881 = vst.msk [vmem:[#allocation4 + $0x1a0] sm:$0xff] %vm3854_vm7, %v3805_v26  ;;  %v3401_v18 = vpop.permute.xlu1 %3400 }
 0x347   :  { %3474 = vst.msk [vmem:[#allocation4 + $0x1d0] sm:$0xff] %vm3444_vm5, %v3401_v18  ;;  %2940 = vrot.lane.b32.xlu0 %v3480_v50, %s9510_s22  ;;  %v3074_v18 = vld [vmem:[#allocation3 + $0x2e] sm:$0xff] }
 0x348   :  { %2946 = vrot.lane.b32.xlu1 %v2871_v2, %s9510_s22 }
 0x349   :  { %v2792_v47 = vpop.permute.xlu0 %2791 }
 0x34a   :  { %2862 = vst.msk [vmem:[#allocation4 + $0x200] sm:$0xff] %vm2829_vm2, %v2792_v47  ;;  %v3606_v45 = vpop.permute.xlu1 %3605 }
 0x34b   :  { %3679 = vst.msk [vmem:[#allocation4 + $0x1d0] sm:$0xff] %vm3649_vm6, %v3606_v45  ;;  %3145 = vrot.lane.b32.xlu0 %v3685_v0, %s9511_s23 }
 0x34c   :  { %3151 = vrot.lane.b32.xlu1 %v3076_v62, %s9511_s23 }
 0x34d   :  { %v2997_v52 = vpop.permute.xlu0 %2996 }
 0x34e   :  { %3067 = vst.msk [vmem:[#allocation4 + $0x200] sm:$0xff] %vm3034_vm3, %v2997_v52  ;;  %v3811_v27 = vpop.permute.xlu1 %3810 }
 0x34f   :  { %3884 = vst.msk [vmem:[#allocation4 + $0x1d0] sm:$0xff] %vm3854_vm7, %v3811_v27  ;;  %3350 = vrot.lane.b32.xlu0 %v10943_v32, %s9505_s18 }
 0x350   :  { %3356 = vrot.lane.b32.xlu1 %v10953_v19, %s9505_s18 }
 0x351   :  { %v3202_v4 = vpop.permute.xlu0 %3201 }
 0x352   :  { %3272 = vst.msk [vmem:[#allocation4 + $0x200] sm:$0xff] %vm3239_vm4, %v3202_v4  ;;  %v2790_v44 = vpop.permute.xlu1 %2789 }
 0x353   :  { %2861 = vst.msk [vmem:[#allocation4 + $0x1f0] sm:$0xff] %vm2829_vm2, %v2790_v44  ;;  %4162 = vrot.lane.b32.xlu0 %v2663_v48, %s9507_s20 }
 0x354   :  { %4574 = vrot.lane.b32.xlu1 %v10953_v19, %s9512_s24 }
 0x355   :  { %v3407_v36 = vpop.permute.xlu0 %3406 }
 0x356   :  { %3477 = vst.msk [vmem:[#allocation4 + $0x200] sm:$0xff] %vm3444_vm5, %v3407_v36  ;;  %v2995_v3 = vpop.permute.xlu1 %2994 }
 0x357   :  { %3066 = vst.msk [vmem:[#allocation4 + $0x1f0] sm:$0xff] %vm3034_vm3, %v2995_v3  ;;  %4367 = vrot.lane.b32.xlu0 %v3480_v50, %s9513_s25  ;;  %v2664_v50 = vld [vmem:[#allocation3 + $0x2a] sm:$0xff]  ;;  %v2665_v3 = vld [vmem:[#allocation3 + $0x32] sm:$0xff] }
 0x358   :  { %4168 = vrot.lane.b32.xlu1 %v2666_v21, %s9507_s20 }
 0x359   :  { %v2788_v32 = vpop.permute.xlu0 %2787 }
 0x35a   :  { %2860 = vst.msk [vmem:[#allocation4 + $0x1e0] sm:$0xff] %vm2829_vm2, %v2788_v32  ;;  %v3200_v0 = vpop.permute.xlu1 %3199 }
 0x35b   :  { %3271 = vst.msk [vmem:[#allocation4 + $0x1f0] sm:$0xff] %vm3239_vm4, %v3200_v0  ;;  %3555 = vrot.lane.b32.xlu0 %v2871_v2, %s9508_s1 }
 0x35c   :  { %3476 = vst.msk [vmem:[#allocation4 + $0x1f0] sm:$0xff] %vm3444_vm5, %v11360_v20  ;;  %4373 = vrot.lane.b32.xlu1 %v2871_v2, %s9513_s25  ;;  %v2869_v20 = vld [vmem:[#allocation3 + $0x2c] sm:$0xff] }
 0x35d   :  { %v2993_v9 = vpop.permute.xlu0 %2992 }
 0x35e   :  { %3065 = vst.msk [vmem:[#allocation4 + $0x1e0] sm:$0xff] %vm3034_vm3, %v2993_v9  ;;  %v3602_v10 = vpop.permute.xlu1 %3601 }
 0x35f   :  { %3677 = vst.msk [vmem:[#allocation4 + $0x1b0] sm:$0xff] %vm3649_vm6, %v3602_v10  ;;  %3760 = vrot.lane.b32.xlu0 %v3076_v62, %s9509_s21 }
 0x360   :  { %2737 = vrot.lane.b32.xlu1 %v2664_v50, %s9506_s19 }
 0x361   :  { %v3198_v46 = vpop.permute.xlu0 %3197 }
 0x362   :  { %3270 = vst.msk [vmem:[#allocation4 + $0x1e0] sm:$0xff] %vm3239_vm4, %v3198_v46  ;;  %v3807_v38 = vpop.permute.xlu1 %3806 }
 0x363   :  { %3882 = vst.msk [vmem:[#allocation4 + $0x1b0] sm:$0xff] %vm3854_vm7, %v3807_v38  ;;  %3965 = vrot.lane.b32.xlu0 %v10953_v19, %s9504_s17 }
 0x364   :  { %2942 = vrot.lane.b32.xlu1 %v2869_v20, %s9510_s22 }
 0x365   :  { %v3403_v48 = vpop.permute.xlu0 %3402 }
 0x366   :  { %3475 = vst.msk [vmem:[#allocation4 + $0x1e0] sm:$0xff] %vm3444_vm5, %v3403_v48  ;;  %v2794_v26 = vpop.permute.xlu1 %2793 }
 0x367   :  { %2863 = vst.msk [vmem:[#allocation4 + $0x210] sm:$0xff] %vm2829_vm2, %v2794_v26  ;;  %4777 = vrot.lane.b32.xlu0 %v2666_v21, %s9514_s26  ;;  %v3482_v21 = vld [vmem:[#allocation3 + $0x34] sm:$0xff] }
 0x368   :  { %3147 = vrot.lane.b32.xlu1 %v3074_v18, %s9511_s23 }
 0x369   :  { %v3604_v47 = vpop.permute.xlu0 %3603 }
 0x36a   :  { %3678 = vst.msk [vmem:[#allocation4 + $0x1c0] sm:$0xff] %vm3649_vm6, %v3604_v47  ;;  %v2999_v45 = vpop.permute.xlu1 %2998 }
 0x36b   :  { %3068 = vst.msk [vmem:[#allocation4 + $0x210] sm:$0xff] %vm3034_vm3, %v2999_v45  ;;  %4982 = vrot.lane.b32.xlu0 %v2871_v2, %s9515_s27  ;;  %v3687_v2 = vld [vmem:[#allocation3 + $0x36] sm:$0xff] }
 0x36c   :  { %3352 = vrot.lane.b32.xlu1 %v10955_v42, %s9505_s18 }
 0x36d   :  { %v3809_v52 = vpop.permute.xlu0 %3808 }
 0x36e   :  { %3883 = vst.msk [vmem:[#allocation4 + $0x1c0] sm:$0xff] %vm3854_vm7, %v3809_v52  ;;  %v3204_v27 = vpop.permute.xlu1 %3203  ;;  %v11474_v52 = vld [vmem:[#allocation3 + $0x42] sm:$0xff] }
 0x36f   :  { %3273 = vst.msk [vmem:[#allocation4 + $0x210] sm:$0xff] %vm3239_vm4, %v3204_v27  ;;  %5187 = vrot.lane.b32.xlu0 %v3076_v62, %s9516_s28  ;;  %v3689_v27 = vld [vmem:[#allocation3 + $0x46] sm:$0xff] }
 0x370   :  { %3553 = vrot.lane.b32.xlu1 %v3482_v21, %s9508_s1 }
 0x371   :  { %v3608_v4 = vpop.permute.xlu0 %3607 }
 0x372   :  { %3680 = vst.msk [vmem:[#allocation4 + $0x1e0] sm:$0xff] %vm3649_vm6, %v3608_v4  ;;  %v3409_v44 = vpop.permute.xlu1 %3408 }
 0x373   :  { %3478 = vst.msk [vmem:[#allocation4 + $0x210] sm:$0xff] %vm3444_vm5, %v3409_v44  ;;  %5392 = vrot.lane.b32.xlu0 %v10953_v19, %s9517_s29 }
 0x374   :  { %3758 = vrot.lane.b32.xlu1 %v3687_v2, %s9509_s21 }
 0x375   :  { %v3813_v36 = vpop.permute.xlu0 %3812 }
 0x376   :  { %3885 = vst.msk [vmem:[#allocation4 + $0x1e0] sm:$0xff] %vm3854_vm7, %v3813_v36  ;;  %v3614_v62 = vpop.permute.xlu1 %3613 }
 0x377   :  { %3683 = vst.msk [vmem:[#allocation4 + $0x210] sm:$0xff] %vm3649_vm6, %v3614_v62  ;;  %2739 = vrot.lane.b32.xlu0 %v2665_v3, %s9506_s19 }
 0x378   :  { %4164 = vrot.lane.b32.xlu1 %v2664_v50, %s9507_s20 }
 0x379   :  { %v3612_v32 = vpop.permute.xlu0 %3611 }
 0x37a   :  { %3682 = vst.msk [vmem:[#allocation4 + $0x200] sm:$0xff] %vm3649_vm6, %v3612_v32  ;;  %v3819_v0 = vpop.permute.xlu1 %3818  ;;  %v7503_v32 = vld [vmem:[%s13956_s2 + $0x8] sm:$0xff] }
 0x37b   :  { %3888 = vst.msk [vmem:[#allocation4 + $0x210] sm:$0xff] %vm3854_vm7, %v3819_v0  ;;  %2944 = vrot.lane.b32.xlu0 %v3482_v21, %s9510_s22  ;;  %v9518_v0 = vmov 0.0|0.0  }
 0x37c   :  { %4369 = vrot.lane.b32.xlu1 %v2869_v20, %s9513_s25  ;;  %9217 = vmatprep.subr.bf16.mxu1 %v9518_v0 }
 0x37d   :  { %v3817_v19 = vpop.permute.xlu0 %3816 }
 0x37e   :  { %3887 = vst.msk [vmem:[#allocation4 + $0x200] sm:$0xff] %vm3854_vm7, %v3817_v19  ;;  %v3610_v9 = vpop.permute.xlu1 %3609 }
 0x37f   :  { %3681 = vst.msk [vmem:[#allocation4 + $0x1f0] sm:$0xff] %vm3649_vm6, %v3610_v9  ;;  %3149 = vrot.lane.b32.xlu0 %v3687_v2, %s9511_s23 }
 0x380   :  { %4166 = vrot.lane.b32.xlu1 %v2665_v3, %s9507_s20  ;;  %v7502_v3 = vld [vmem:[%s13956_s2] sm:$0xff] }
 0x381   :  { %v11449_v10 = vpop.permute.xlu0 %3346  ;;  %v9218_v19 = vpack.c.bf16 %v7503_v32, %v7502_v3  ;;  %v7508_v3 = vld [vmem:[%s13956_s2 + $0x30] sm:$0xff] }
 0x382   :  { %v3815_v50 = vpop.permute.xlu1 %3814 }
 0x383   :  { %3886 = vst.msk [vmem:[#allocation4 + $0x1f0] sm:$0xff] %vm3854_vm7, %v3815_v50  ;;  %3551 = vrot.lane.b32.xlu0 %v2869_v20, %s9508_s1  ;;  %9219 = vmatpush1.bf16.msra.mxu1 %v9218_v19  ;;  %v7511_v19 = vld [vmem:[%s13956_s2 + $0x48] sm:$0xff] }
 0x384   :  { %4371 = vrot.lane.b32.xlu1 %v3482_v21, %s9513_s25  ;;  %9220 = vmatprep.subr.bf16.mxu1 %v9518_v0 }
 0x385   :  { %v2728_v46 = vpop.permute.xlu0 %2727 }
 0x386   :  { %2830 = vst.msk [vmem:[#allocation4] sm:$0xff] %vm2829_vm2, %v2728_v46  ;;  %v2734_v38 = vpop.permute.xlu1 %2733  ;;  %v7504_v46 = vld [vmem:[%s13956_s2 + $0x10] sm:$0xff] }
 0x387   :  { %2833 = vst.msk [vmem:[#allocation4 + $0x30] sm:$0xff] %vm2829_vm2, %v2734_v38  ;;  %3756 = vrot.lane.b32.xlu0 %v3074_v18, %s9509_s21  ;;  %v11469_v18 = vld [vmem:[#allocation3 + $0x44] sm:$0xff]  ;;  %v7505_v38 = vld [vmem:[%s13956_s2 + $0x18] sm:$0xff] }
 0x388   :  { %3971 = vrot.lane.b32.xlu1 %v10968_v61, %s9504_s17 }
 0x389   :  { %v2933_v48 = vpop.permute.xlu0 %2932 }
 0x38a   :  { %3035 = vst.msk [vmem:[#allocation4] sm:$0xff] %vm3034_vm3, %v2933_v48  ;;  %v2939_v26 = vpop.permute.xlu1 %2938  ;;  %v11513_v48 = vld [vmem:[#allocation3 + $0x5a] sm:$0xff] }
 0x38b   :  { %3038 = vst.msk [vmem:[#allocation4 + $0x30] sm:$0xff] %vm3034_vm3, %v2939_v26  ;;  %3961 = vrot.lane.b32.xlu0 %v10955_v42, %s9504_s17  ;;  %v9221_v26 = vpack.c.bf16 %v7505_v38, %v7504_v46  ;;  %v11566_v38 = vld [vmem:[#allocation3 + $0x64] sm:$0xff] }
 0x38c   :  { %5870 = vrot.lane.b32.xlu1 %v10968_v61, %s9506_s19 }
 0x38d   :  { %v3138_v20 = vpop.permute.xlu0 %3137  ;;  %9222 = vmatpush1.bf16.msra.mxu1 %v9221_v26  ;;  %v7512_v26 = vld [vmem:[%s13956_s2 + $0x50] sm:$0xff] }
 0x38e   :  { %3240 = vst.msk [vmem:[#allocation4] sm:$0xff] %vm3239_vm4, %v3138_v20  ;;  %v3144_v47 = vpop.permute.xlu1 %3143  ;;  %9223 = vmatprep.subr.bf16.mxu1 %v9518_v0 }
 0x38f   :  { %3243 = vst.msk [vmem:[#allocation4 + $0x30] sm:$0xff] %vm3239_vm4, %v3144_v47  ;;  %3362 = vrot.lane.b32.xlu0 %v10968_v61, %s9505_s18 }
 0x390   :  { %3557 = vrot.lane.b32.xlu1 %v11469_v18, %s9508_s1 }
 0x391   :  { %v3343_v45 = vpop.permute.xlu0 %3342 }
 0x392   :  { %3445 = vst.msk [vmem:[#allocation4] sm:$0xff] %vm3444_vm5, %v3343_v45  ;;  %v3349_v42 = vpop.permute.xlu1 %3348  ;;  %v7506_v45 = vld [vmem:[%s13956_s2 + $0x20] sm:$0xff] }
 0x393   :  { %3448 = vst.msk [vmem:[#allocation4 + $0x30] sm:$0xff] %vm3444_vm5, %v3349_v42  ;;  %2743 = vrot.lane.b32.xlu0 %v11474_v52, %s9506_s19  ;;  %v7507_v42 = vld [vmem:[%s13956_s2 + $0x28] sm:$0xff] }
 0x394   :  { %3762 = vrot.lane.b32.xlu1 %v3689_v27, %s9509_s21 }
 0x395   :  { %v3548_v21 = vpop.permute.xlu0 %3547 }
 0x396   :  { %3650 = vst.msk [vmem:[#allocation4] sm:$0xff] %vm3649_vm6, %v3548_v21  ;;  %v2732_v4 = vpop.permute.xlu1 %2731  ;;  %v11530_v21 = vld [vmem:[#allocation3 + $0x5c] sm:$0xff] }
 0x397   :  { %2832 = vst.msk [vmem:[#allocation4 + $0x20] sm:$0xff] %vm2829_vm2, %v2732_v4  ;;  %2948 = vrot.lane.b32.xlu0 %v11469_v18, %s9510_s22  ;;  %v9224_v4 = vpack.c.bf16 %v7507_v42, %v7506_v45 }
 0x398   :  { %3967 = vrot.lane.b32.xlu1 %v10974_v54, %s9504_s17 }
 0x399   :  { %v3753_v44 = vpop.permute.xlu0 %3752  ;;  %9225 = vmatpush1.bf16.msra.mxu1 %v9224_v4 }
 0x39a   :  { %3855 = vst.msk [vmem:[#allocation4] sm:$0xff] %vm3854_vm7, %v3753_v44  ;;  %v2935_v2 = vpop.permute.xlu1 %2934  ;;  %9226 = vmatprep.subr.bf16.mxu1 %v9518_v0 }
 0x39b   :  { %3153 = vrot.lane.b32.xlu0 %v3689_v27, %s9511_s23 }
 0x39c   :  { %4779 = vrot.lane.b32.xlu1 %v11474_v52, %s9514_s26 }
 0x39d   :  { %v3958_v36 = vpop.permute.xlu0 %3957 }
 0x39e   :  { %4060 = vst.msk [vmem:[#allocation4] sm:$0xff] %vm4059_vm8, %v3958_v36  ;;  %v3140_v62 = vpop.permute.xlu1 %3139  ;;  %v11545_v36 = vld [vmem:[#allocation3 + $0x62] sm:$0xff] }
 0x39f   :  { %3358 = vrot.lane.b32.xlu0 %v10974_v54, %s9505_s18 }
 0x3a0   :  { %4576 = vrot.lane.b32.xlu1 %v10974_v54, %s9512_s24 }
 0x3a1   :  { %v2730_v9 = vpop.permute.xlu0 %2729 }
 0x3a2   :  { %2831 = vst.msk [vmem:[#allocation4 + $0x10] sm:$0xff] %vm2829_vm2, %v2730_v9  ;;  %v3345_v50 = vpop.permute.xlu1 %3344 }
 0x3a3   :  { %3036 = vst.msk [vmem:[#allocation4 + $0x10] sm:$0xff] %vm3034_vm3, %v2935_v2  ;;  %4984 = vrot.lane.b32.xlu0 %v11469_v18, %s9515_s27 }
 0x3a4   :  { %3241 = vst.msk [vmem:[#allocation4 + $0x10] sm:$0xff] %vm3239_vm4, %v3140_v62  ;;  %2749 = vrot.lane.b32.xlu1 %v11513_v48, %s9506_s19 }
 0x3a5   :  { %3446 = vst.msk [vmem:[#allocation4 + $0x10] sm:$0xff] %vm3444_vm5, %v3345_v50  ;;  %v2937_v20 = vpop.permute.xlu0 %2936 }
 0x3a6   :  { %3037 = vst.msk [vmem:[#allocation4 + $0x20] sm:$0xff] %vm3034_vm3, %v2937_v20  ;;  %v11520_v47 = vpop.permute.xlu1 %3963  ;;  %v7513_v20 = vld [vmem:[%s13956_s2 + $0x58] sm:$0xff] }
 0x3a7   :  { %5189 = vrot.lane.b32.xlu0 %v3689_v27, %s9516_s28  ;;  %v9233_v42 = vpack.c.bf16 %v7513_v20, %v7512_v26  ;;  %v7518_v20 = vld [vmem:[%s13956_s2 + $0x80] sm:$0xff] }
 0x3a8   :  { %2954 = vrot.lane.b32.xlu1 %v11530_v21, %s9510_s22 }
 0x3a9   :  { %v3142_v44 = vpop.permute.xlu0 %3141 }
 0x3aa   :  { %3242 = vst.msk [vmem:[#allocation4 + $0x20] sm:$0xff] %vm3239_vm4, %v3142_v44  ;;  %v3550_v2 = vpop.permute.xlu1 %3549  ;;  %v11581_v44 = vld [vmem:[#allocation3 + $0x66] sm:$0xff] }
 0x3ab   :  { %3447 = vst.msk [vmem:[#allocation4 + $0x20] sm:$0xff] %vm3444_vm5, %v11449_v10  ;;  %5394 = vrot.lane.b32.xlu0 %v10974_v54, %s9517_s29  ;;  %v7509_v10 = vld [vmem:[%s13956_s2 + $0x38] sm:$0xff]  ;;  %v7510_v54 = vld [vmem:[%s13956_s2 + $0x40] sm:$0xff] }
 0x3ac   :  { %3651 = vst.msk [vmem:[#allocation4 + $0x10] sm:$0xff] %vm3649_vm6, %v3550_v2  ;;  %3159 = vrot.lane.b32.xlu1 %v10978_v57, %s9511_s23  ;;  %v9227_v32 = vpack.c.bf16 %v7509_v10, %v7508_v3  ;;  %v9230_v50 = vpack.c.bf16 %v7511_v19, %v7510_v54  ;;  %v7514_v2 = vld [vmem:[%s13956_s2 + $0x60] sm:$0xff]  ;;  %v7517_v19 = vld [vmem:[%s13956_s2 + $0x78] sm:$0xff] }
 0x3ad   :  { %v11543_v27 = vpop.permute.xlu0 %3354 }
 0x3ae   :  { %v3755_v62 = vpop.permute.xlu1 %3754  ;;  %9228 = vmatpush1.bf16.msra.mxu1 %v9227_v32  ;;  %v7516_v32 = vld [vmem:[%s13956_s2 + $0x70] sm:$0xff] }
 0x3af   :  { %3856 = vst.msk [vmem:[#allocation4 + $0x10] sm:$0xff] %vm3854_vm7, %v3755_v62  ;;  %2751 = vrot.lane.b32.xlu0 %v11545_v36, %s9506_s19  ;;  %9229 = vmatprep.subr.bf16.mxu1 %v9518_v0  ;;  %v7515_v62 = vld [vmem:[%s13956_s2 + $0x68] sm:$0xff] }
 0x3b0   :  { %3364 = vrot.lane.b32.xlu1 %v10982_v29, %s9505_s18  ;;  %v9236_v10 = vpack.c.bf16 %v7515_v62, %v7514_v2  ;;  %v7520_v62 = vld [vmem:[%s13956_s2 + $0x90] sm:$0xff] }
 0x3b1   :  { %v11564_v9 = vpop.permute.xlu0 %4572 }
 0x3b2   :  { %v3960_v46 = vpop.permute.xlu1 %3959  ;;  %9231 = vmatpush1.bf16.msra.mxu1 %v9230_v50 }
 0x3b3   :  { %4061 = vst.msk [vmem:[#allocation4 + $0x10] sm:$0xff] %vm4059_vm8, %v3960_v46  ;;  %2956 = vrot.lane.b32.xlu0 %v11566_v38, %s9510_s22  ;;  %9232 = vmatprep.subr.bf16.mxu1 %v9518_v0  ;;  %v9239_v46 = vpack.c.bf16 %v7517_v19, %v7516_v32 }
 0x3b4   :  { %3565 = vrot.lane.b32.xlu1 %v11566_v38, %s9508_s1 }
 0x3b5   :  { %v2736_v45 = vpop.permute.xlu0 %2735 }
 0x3b6   :  { %2834 = vst.msk [vmem:[#allocation4 + $0x40] sm:$0xff] %vm2829_vm2, %v2736_v45  ;;  %v2742_v4 = vpop.permute.xlu1 %2741  ;;  %9234 = vmatpush1.bf16.msra.mxu1 %v9233_v42  ;;  %v7519_v45 = vld [vmem:[%s13956_s2 + $0x88] sm:$0xff] }
 0x3b7   :  { %2837 = vst.msk [vmem:[#allocation4 + $0x70] sm:$0xff] %vm2829_vm2, %v2742_v4  ;;  %3161 = vrot.lane.b32.xlu0 %v11581_v44, %s9511_s23  ;;  %9235 = vmatprep.subr.bf16.mxu1 %v9518_v0  ;;  %v9242_v4 = vpack.c.bf16 %v7519_v45, %v7518_v20  ;;  %v7523_v20 = vld [vmem:[%s13956_s2 + $0xa8] sm:$0xff]  ;;  %v7524_v45 = vld [vmem:[%s13956_s2 + $0xb0] sm:$0xff] }
 0x3b8   :  { %3770 = vrot.lane.b32.xlu1 %v11581_v44, %s9509_s21 }
 0x3b9   :  { %v2941_v3 = vpop.permute.xlu0 %2940 }
 0x3ba   :  { %3039 = vst.msk [vmem:[#allocation4 + $0x40] sm:$0xff] %vm3034_vm3, %v2941_v3  ;;  %v2947_v54 = vpop.permute.xlu1 %2946  ;;  %9237 = vmatpush1.bf16.msra.mxu1 %v9236_v10  ;;  %v7521_v3 = vld [vmem:[%s13956_s2 + $0x98] sm:$0xff] }
 0x3bb   :  { %3042 = vst.msk [vmem:[#allocation4 + $0x70] sm:$0xff] %vm3034_vm3, %v2947_v54  ;;  %3563 = vrot.lane.b32.xlu0 %v11530_v21, %s9508_s1  ;;  %9238 = vmatprep.subr.bf16.mxu1 %v9518_v0  ;;  %v9245_v54 = vpack.c.bf16 %v7521_v3, %v7520_v62 }
 0x3bc   :  { %6074 = vrot.lane.b32.xlu1 %v11513_v48, %s9510_s22 }
 0x3bd   :  { %v3146_v50 = vpop.permute.xlu0 %3145 }
 0x3be   :  { %3244 = vst.msk [vmem:[#allocation4 + $0x40] sm:$0xff] %vm3239_vm4, %v3146_v50  ;;  %v3152_v26 = vpop.permute.xlu1 %3151  ;;  %9240 = vmatpush1.bf16.msra.mxu1 %v9239_v46  ;;  %v11642_v50 = vld [vmem:[#allocation3 + $0x52] sm:$0xff] }
 0x3bf   :  { %3247 = vst.msk [vmem:[#allocation4 + $0x70] sm:$0xff] %vm3239_vm4, %v3152_v26  ;;  %3768 = vrot.lane.b32.xlu0 %v10978_v57, %s9509_s21  ;;  %9241 = vmatprep.subr.bf16.mxu1 %v9518_v0  ;;  %v7522_v26 = vld [vmem:[%s13956_s2 + $0xa0] sm:$0xff] }
 0x3c0   :  { %6278 = vrot.lane.b32.xlu1 %v11530_v21, %s9511_s23 }
 0x3c1   :  { %v3351_v42 = vpop.permute.xlu0 %3350 }
 0x3c2   :  { %3449 = vst.msk [vmem:[#allocation4 + $0x40] sm:$0xff] %vm3444_vm5, %v3351_v42  ;;  %v3357_v2 = vpop.permute.xlu1 %3356  ;;  %9243 = vmatpush1.bf16.msra.mxu1 %v9242_v4  ;;  %v9248_v42 = vpack.c.bf16 %v7523_v20, %v7522_v26  ;;  %v7525_v4 = vld [vmem:[%s13956_s2 + $0xb8] sm:$0xff] }
 0x3c3   :  { %3452 = vst.msk [vmem:[#allocation4 + $0x70] sm:$0xff] %vm3444_vm5, %v3357_v2  ;;  %3973 = vrot.lane.b32.xlu0 %v10982_v29, %s9504_s17  ;;  %9244 = vmatprep.subr.bf16.mxu1 %v9518_v0  ;;  %v9251_v62 = vpack.c.bf16 %v7525_v4, %v7524_v45  ;;  %v7529_v4 = vld [vmem:[%s13956_s2 + $0xd8] sm:$0xff] }
 0x3c4   :  { %5872 = vrot.lane.b32.xlu1 %v10982_v29, %s9506_s19 }
 0x3c5   :  { %v4163_v10 = vpop.permute.xlu0 %4162 }
 0x3c6   :  { %4265 = vst.msk [vmem:[#allocation4] sm:$0xff] %vm4264_vm9, %v4163_v10  ;;  %v11635_v32 = vpop.permute.xlu1 %4574  ;;  %9246 = vmatpush1.bf16.msra.mxu1 %v9245_v54  ;;  %v11669_v10 = vld [vmem:[#allocation3 + $0x54] sm:$0xff]  ;;  %v7527_v54 = vld [vmem:[%s13956_s2 + $0xc8] sm:$0xff] }
 0x3c7   :  { %5599 = vrot.lane.b32.xlu0 %v11530_v21, %s9519_s13  ;;  %9247 = vmatprep.subr.bf16.mxu1 %v9518_v0 }
 0x3c8   :  { %6076 = vrot.lane.b32.xlu1 %v11545_v36, %s9510_s22 }
 0x3c9   :  { %v4368_v19 = vpop.permute.xlu0 %4367 }
 0x3ca   :  { %4470 = vst.msk [vmem:[#allocation4] sm:$0xff] %vm4469_vm10, %v4368_v19  ;;  %v11645_v46 = vpop.permute.xlu1 %4168  ;;  %9249 = vmatpush1.bf16.msra.mxu1 %v9248_v42  ;;  %v11680_v19 = vld [vmem:[#allocation3 + $0x4a] sm:$0xff] }
 0x3cb   :  { %2747 = vrot.lane.b32.xlu0 %v11642_v50, %s9506_s19  ;;  %4675 = vst.msk [vmem:[#allocation4] sm:$0xff] %vm4674_vm11, %v11564_v9  ;;  %9250 = vmatprep.subr.bf16.mxu1 %v9518_v0  ;;  %v7526_v9 = vld [vmem:[%s13956_s2 + $0xc0] sm:$0xff]  ;;  %v7528_v42 = vld [vmem:[%s13956_s2 + $0xd0] sm:$0xff] }
 0x3cc   :  { %6280 = vrot.lane.b32.xlu1 %v11566_v38, %s9511_s23  ;;  %v9254_v20 = vpack.c.bf16 %v7527_v54, %v7526_v9  ;;  %v9257_v9 = vpack.c.bf16 %v7529_v4, %v7528_v42 }
 0x3cd   :  { %v3556_v2 = vpop.permute.xlu0 %3555 }
 0x3ce   :  { %3654 = vst.msk [vmem:[#allocation4 + $0x40] sm:$0xff] %vm3649_vm6, %v3556_v2  ;;  %v11667_v3 = vpop.permute.xlu1 %4373  ;;  %9252 = vmatpush1.bf16.msra.mxu1 %v9251_v62  ;;  %v11695_v2 = vld [vmem:[#allocation3 + $0x4c] sm:$0xff] }
 0x3cf   :  { %2952 = vrot.lane.b32.xlu0 %v11669_v10, %s9510_s22  ;;  %9253 = vmatprep.subr.bf16.mxu1 %v9518_v0 }
 0x3d0   :  { %2745 = vrot.lane.b32.xlu1 %v11680_v19, %s9506_s19 }
 0x3d1   :  { %v3761_v26 = vpop.permute.xlu0 %3760 }
 0x3d2   :  { %3859 = vst.msk [vmem:[#allocation4 + $0x40] sm:$0xff] %vm3854_vm7, %v3761_v26  ;;  %v2738_v45 = vpop.permute.xlu1 %2737  ;;  %9255 = vmatpush1.bf16.msra.mxu1 %v9254_v20  ;;  %v7530_v26 = vld [vmem:[%s13956_s2 + $0xe0] sm:$0xff]  ;;  %v3078_v20 = vld [vmem:[#allocation3 + $0x4e] sm:$0xff] }
 0x3d3   :  { %2835 = vst.msk [vmem:[#allocation4 + $0x50] sm:$0xff] %vm2829_vm2, %v2738_v45  ;;  %3157 = vrot.lane.b32.xlu0 %v10989_v60, %s9511_s23  ;;  %9256 = vmatprep.subr.bf16.mxu1 %v9518_v0  ;;  %v7531_v45 = vld [vmem:[%s13956_s2 + $0xe8] sm:$0xff] }
 0x3d4   :  { %2950 = vrot.lane.b32.xlu1 %v11695_v2, %s9510_s22  ;;  %v9260_v4 = vpack.c.bf16 %v7531_v45, %v7530_v26 }
 0x3d5   :  { %v3966_v62 = vpop.permute.xlu0 %3965 }
 0x3d6   :  { %4064 = vst.msk [vmem:[#allocation4 + $0x40] sm:$0xff] %vm4059_vm8, %v3966_v62  ;;  %v2943_v54 = vpop.permute.xlu1 %2942  ;;  %9258 = vmatpush1.bf16.msra.mxu1 %v9257_v9 }
 0x3d7   :  { %3040 = vst.msk [vmem:[#allocation4 + $0x50] sm:$0xff] %vm3034_vm3, %v2943_v54  ;;  %3559 = vrot.lane.b32.xlu0 %v11695_v2, %s9508_s1  ;;  %9259 = vmatprep.subr.bf16.mxu1 %v9518_v0  ;;  %v7533_v54 = vld [vmem:[%s13956_s2 + $0xf8] sm:$0xff] }
 0x3d8   :  { %3155 = vrot.lane.b32.xlu1 %v3078_v20, %s9511_s23  ;;  %v9263_v26 = vpack.c.bf16 %v7533_v54, %v7532_v7 }
 0x3d9   :  { %v4778_v42 = vpop.permute.xlu0 %4777 }
 0x3da   :  { %4880 = vst.msk [vmem:[#allocation4] sm:$0xff] %vm4879_vm12, %v4778_v42  ;;  %v3148_v62 = vpop.permute.xlu1 %3147  ;;  %9261 = vmatpush1.bf16.msra.mxu1 %v9260_v4 }
 0x3db   :  { %3245 = vst.msk [vmem:[#allocation4 + $0x50] sm:$0xff] %vm3239_vm4, %v3148_v62  ;;  %3764 = vrot.lane.b32.xlu0 %v3078_v20, %s9509_s21  ;;  %9262 = vmatprep.subr.bf16.mxu1 %v9518_v0 }
 0x3dc   :  { %3360 = vrot.lane.b32.xlu1 %v10992_v34, %s9505_s18 }
 0x3dd   :  { %v4983_v9 = vpop.permute.xlu0 %4982 }
 0x3de   :  { %5085 = vst.msk [vmem:[#allocation4] sm:$0xff] %vm5084_vm13, %v4983_v9  ;;  %v3353_v45 = vpop.permute.xlu1 %3352  ;;  %9264 = vmatpush1.bf16.msra.mxu1 %v9263_v26 }
 0x3df   :  { %3450 = vst.msk [vmem:[#allocation4 + $0x50] sm:$0xff] %vm3444_vm5, %v3353_v45  ;;  %3969 = vrot.lane.b32.xlu0 %v10992_v34, %s9504_s17  ;;  %v7028_v45 = vld [vmem:[#allocation3 + $0x86] sm:$0xff] }
 0x3e0   :  { %3561 = vrot.lane.b32.xlu1 %v11669_v10, %s9508_s1 }
 0x3e1   :  { %v5188_v42 = vpop.permute.xlu0 %5187 }
 0x3e2   :  { %5290 = vst.msk [vmem:[#allocation4] sm:$0xff] %vm5289_vm14, %v5188_v42  ;;  %v3554_v4 = vpop.permute.xlu1 %3553 }
 0x3e3   :  { %3653 = vst.msk [vmem:[#allocation4 + $0x30] sm:$0xff] %vm3649_vm6, %v3554_v4  ;;  %5597 = vrot.lane.b32.xlu0 %v11669_v10, %s9519_s13  ;;  %v11772_v4 = vld [vmem:[#allocation3 + $0x78] sm:$0xff] }
 0x3e4   :  { %3766 = vrot.lane.b32.xlu1 %v10989_v60, %s9509_s21 }
 0x3e5   :  { %v5393_v7 = vpop.permute.xlu0 %5392 }
 0x3e6   :  { %5495 = vst.msk [vmem:[#allocation4] sm:$0xff] %vm5494_vm15, %v5393_v7  ;;  %v3759_v62 = vpop.permute.xlu1 %3758 }
 0x3e7   :  { %3858 = vst.msk [vmem:[#allocation4 + $0x30] sm:$0xff] %vm3854_vm7, %v3759_v62  ;;  %4986 = vrot.lane.b32.xlu0 %v11695_v2, %s9515_s27 }
 0x3e8   :  { %4063 = vst.msk [vmem:[#allocation4 + $0x30] sm:$0xff] %vm4059_vm8, %v11520_v47  ;;  %4781 = vrot.lane.b32.xlu1 %v11680_v19, %s9514_s26 }
 0x3e9   :  { %4268 = vst.msk [vmem:[#allocation4 + $0x30] sm:$0xff] %vm4264_vm9, %v11645_v46  ;;  %v2740_v54 = vpop.permute.xlu0 %2739  ;;  %v11756_v46 = vld [vmem:[#allocation3 + $0x88] sm:$0xff] }
 0x3ea   :  { %4473 = vst.msk [vmem:[#allocation4 + $0x30] sm:$0xff] %vm4469_vm10, %v11667_v3  ;;  %v4165_v9 = vpop.permute.xlu1 %4164 }
 0x3eb   :  { %2836 = vst.msk [vmem:[#allocation4 + $0x60] sm:$0xff] %vm2829_vm2, %v2740_v54  ;;  %5191 = vrot.lane.b32.xlu0 %v3078_v20, %s9516_s28  ;;  %v11784_v54 = vld [vmem:[#allocation3 + $0x8a] sm:$0xff] }
 0x3ec   :  { %4266 = vst.msk [vmem:[#allocation4 + $0x10] sm:$0xff] %vm4264_vm9, %v4165_v9  ;;  %4578 = vrot.lane.b32.xlu1 %v10992_v34, %s9512_s24  ;;  %v11790_v9 = vld [vmem:[#allocation3 + $0x7a] sm:$0xff] }
 0x3ed   :  { %v2945_v47 = vpop.permute.xlu0 %2944 }
 0x3ee   :  { %3041 = vst.msk [vmem:[#allocation4 + $0x60] sm:$0xff] %vm3034_vm3, %v2945_v47  ;;  %v4370_v26 = vpop.permute.xlu1 %4369 }
 0x3ef   :  { %4471 = vst.msk [vmem:[#allocation4 + $0x10] sm:$0xff] %vm4469_vm10, %v4370_v26  ;;  %7098 = vrot.lane.b32.xlu0 %v7028_v45, %s9504_s17 }
 0x3f0   :  { %4676 = vst.msk [vmem:[#allocation4 + $0x10] sm:$0xff] %vm4674_vm11, %v11635_v32  ;;  %6488 = vrot.lane.b32.xlu1 %v11756_v46, %s9505_s18 }
 0x3f1   :  { %v3150_v3 = vpop.permute.xlu0 %3149 }
 0x3f2   :  { %3246 = vst.msk [vmem:[#allocation4 + $0x60] sm:$0xff] %vm3239_vm4, %v3150_v3  ;;  %v4167_v20 = vpop.permute.xlu1 %4166  ;;  %v11803_v3 = vld [vmem:[#allocation3 + $0x8c] sm:$0xff] }
 0x3f3   :  { %3451 = vst.msk [vmem:[#allocation4 + $0x60] sm:$0xff] %vm3444_vm5, %v11543_v27  ;;  %5396 = vrot.lane.b32.xlu0 %v10992_v34, %s9517_s29 }
 0x3f4   :  { %4783 = vrot.lane.b32.xlu1 %v11642_v50, %s9514_s26 }
 0x3f5   :  { %v3552_v42 = vpop.permute.xlu0 %3551 }
 0x3f6   :  { %3652 = vst.msk [vmem:[#allocation4 + $0x20] sm:$0xff] %vm3649_vm6, %v3552_v42  ;;  %v4372_v32 = vpop.permute.xlu1 %4371 }
 0x3f7   :  { %7302 = vrot.lane.b32.xlu0 %v11756_v46, %s9507_s20 }
 0x3f8   :  { %5878 = vrot.lane.b32.xlu1 %v11772_v4, %s9506_s19 }
 0x3f9   :  { %v3757_v7 = vpop.permute.xlu0 %3756 }
 0x3fa   :  { %3857 = vst.msk [vmem:[#allocation4 + $0x20] sm:$0xff] %vm3854_vm7, %v3757_v7  ;;  %v11777_v27 = vpop.permute.xlu1 %3971 }
 0x3fb   :  { %5601 = vrot.lane.b32.xlu0 %v11566_v38, %s9519_s13 }
 0x3fc   :  { %4170 = vrot.lane.b32.xlu1 %v11474_v52, %s9507_s20 }
 0x3fd   :  { %v3962_v34 = vpop.permute.xlu0 %3961 }
 0x3fe   :  { %4062 = vst.msk [vmem:[#allocation4 + $0x20] sm:$0xff] %vm4059_vm8, %v3962_v34  ;;  %v5871_v62 = vpop.permute.xlu1 %5870  ;;  %v7029_v34 = vld [vmem:[#allocation3 + $0x8e] sm:$0xff] }
 0x3ff   :  { %4267 = vst.msk [vmem:[#allocation4 + $0x20] sm:$0xff] %vm4264_vm9, %v4167_v20  ;;  %6692 = vrot.lane.b32.xlu0 %v11784_v54, %s9508_s1  ;;  %v11808_v20 = vld [vmem:[#allocation3 + $0x7c] sm:$0xff] }
 0x400   :  { %5972 = vst.msk [vmem:[#allocation4 + $0x8] sm:$0xff] %vm2829_vm2, %v5871_v62  ;;  %6082 = vrot.lane.b32.xlu1 %v11790_v9, %s9510_s22  ;;  %v11821_v62 = vld [vmem:[#allocation3 + $0x90] sm:$0xff] }
 0x401   :  { %4472 = vst.msk [vmem:[#allocation4 + $0x20] sm:$0xff] %vm4469_vm10, %v4372_v32  ;;  %v11795_v52 = vpop.permute.xlu0 %3362 }
 0x402   :  { %v3558_v47 = vpop.permute.xlu1 %3557 }
 0x403   :  { %3655 = vst.msk [vmem:[#allocation4 + $0x50] sm:$0xff] %vm3649_vm6, %v3558_v47  ;;  %4988 = vrot.lane.b32.xlu0 %v11669_v10, %s9515_s27 }
 0x404   :  { %4375 = vrot.lane.b32.xlu1 %v11469_v18, %s9513_s25 }
 0x405   :  { %v2744_v26 = vpop.permute.xlu0 %2743 }
 0x406   :  { %2838 = vst.msk [vmem:[#allocation4 + $0x80] sm:$0xff] %vm2829_vm2, %v2744_v26  ;;  %v3763_v45 = vpop.permute.xlu1 %3762 }
 0x407   :  { %3860 = vst.msk [vmem:[#allocation4 + $0x50] sm:$0xff] %vm3854_vm7, %v3763_v45  ;;  %6896 = vrot.lane.b32.xlu0 %v11803_v3, %s9509_s21 }
 0x408   :  { %6286 = vrot.lane.b32.xlu1 %v11808_v20, %s9511_s23 }
 0x409   :  { %v2949_v42 = vpop.permute.xlu0 %2948 }
 0x40a   :  { %3043 = vst.msk [vmem:[#allocation4 + $0x80] sm:$0xff] %vm3034_vm3, %v2949_v42  ;;  %v3968_v18 = vpop.permute.xlu1 %3967  ;;  %v11835_v42 = vld [vmem:[#allocation3 + $0x80] sm:$0xff] }
 0x40b   :  { %4065 = vst.msk [vmem:[#allocation4 + $0x50] sm:$0xff] %vm4059_vm8, %v3968_v18  ;;  %5193 = vrot.lane.b32.xlu0 %v10989_v60, %s9516_s28 }
 0x40c   :  { %4580 = vrot.lane.b32.xlu1 %v10968_v61, %s9512_s24 }
 0x40d   :  { %v3154_v32 = vpop.permute.xlu0 %3153 }
 0x40e   :  { %3248 = vst.msk [vmem:[#allocation4 + $0x80] sm:$0xff] %vm3239_vm4, %v3154_v32  ;;  %v4780_v7 = vpop.permute.xlu1 %4779  ;;  %v11840_v32 = vld [vmem:[#allocation3 + $0x6c] sm:$0xff] }
 0x40f   :  { %4881 = vst.msk [vmem:[#allocation4 + $0x10] sm:$0xff] %vm4879_vm12, %v4780_v7  ;;  %7100 = vrot.lane.b32.xlu0 %v7029_v34, %s9504_s17 }
 0x410   :  { %6490 = vrot.lane.b32.xlu1 %v11821_v62, %s9505_s18 }
 0x411   :  { %v3359_v47 = vpop.permute.xlu0 %3358 }
 0x412   :  { %3453 = vst.msk [vmem:[#allocation4 + $0x80] sm:$0xff] %vm3444_vm5, %v3359_v47  ;;  %v4577_v60 = vpop.permute.xlu1 %4576  ;;  %v11848_v47 = vld [vmem:[#allocation3 + $0x92] sm:$0xff] }
 0x413   :  { %4677 = vst.msk [vmem:[#allocation4 + $0x20] sm:$0xff] %vm4674_vm11, %v4577_v60  ;;  %5398 = vrot.lane.b32.xlu0 %v10968_v61, %s9517_s29  ;;  %v11853_v60 = vld [vmem:[#allocation3 + $0x82] sm:$0xff] }
 0x414   :  { %4785 = vrot.lane.b32.xlu1 %v11513_v48, %s9514_s26 }
 0x415   :  { %v4985_v26 = vpop.permute.xlu0 %4984 }
 0x416   :  { %5086 = vst.msk [vmem:[#allocation4 + $0x10] sm:$0xff] %vm5084_vm13, %v4985_v26  ;;  %v2750_v45 = vpop.permute.xlu1 %2749 }
 0x417   :  { %2841 = vst.msk [vmem:[#allocation4 + $0xb0] sm:$0xff] %vm2829_vm2, %v2750_v45  ;;  %7304 = vrot.lane.b32.xlu0 %v11821_v62, %s9507_s20 }
 0x418   :  { %5880 = vrot.lane.b32.xlu1 %v11835_v42, %s9506_s19 }
 0x419   :  { %v5190_v18 = vpop.permute.xlu0 %5189 }
 0x41a   :  { %5291 = vst.msk [vmem:[#allocation4 + $0x10] sm:$0xff] %vm5289_vm14, %v5190_v18  ;;  %v2955_v61 = vpop.permute.xlu1 %2954 }
 0x41b   :  { %3046 = vst.msk [vmem:[#allocation4 + $0xb0] sm:$0xff] %vm3034_vm3, %v2955_v61  ;;  %5603 = vrot.lane.b32.xlu0 %v11840_v32, %s9519_s13  ;;  %v11872_v61 = vld [vmem:[#allocation3 + $0x94] sm:$0xff] }
 0x41c   :  { %4172 = vrot.lane.b32.xlu1 %v11680_v19, %s9507_s20 }
 0x41d   :  { %v5395_v7 = vpop.permute.xlu0 %5394 }
 0x41e   :  { %5496 = vst.msk [vmem:[#allocation4 + $0x10] sm:$0xff] %vm5494_vm15, %v5395_v7  ;;  %v3160_v34 = vpop.permute.xlu1 %3159 }
 0x41f   :  { %3251 = vst.msk [vmem:[#allocation4 + $0xb0] sm:$0xff] %vm3239_vm4, %v3160_v34  ;;  %6694 = vrot.lane.b32.xlu0 %v11848_v47, %s9508_s1 }
 0x420   :  { %6084 = vrot.lane.b32.xlu1 %v11853_v60, %s9510_s22 }
 0x421   :  { %v2752_v26 = vpop.permute.xlu0 %2751 }
 0x422   :  { %2842 = vst.msk [vmem:[#allocation4 + $0xc0] sm:$0xff] %vm2829_vm2, %v2752_v26  ;;  %v3365_v19 = vpop.permute.xlu1 %3364 }
 0x423   :  { %3456 = vst.msk [vmem:[#allocation4 + $0xb0] sm:$0xff] %vm3444_vm5, %v3365_v19  ;;  %4990 = vrot.lane.b32.xlu0 %v11530_v21, %s9515_s27 }
 0x424   :  { %3661 = vst.msk [vmem:[#allocation4 + $0xb0] sm:$0xff] %vm3649_vm6, %v11125_v1  ;;  %4377 = vrot.lane.b32.xlu1 %v11695_v2, %s9513_s25  ;;  %v11876_v1 = vld [vmem:[#allocation3 + $0x84] sm:$0xff] }
 0x425   :  { %3866 = vst.msk [vmem:[#allocation4 + $0xb0] sm:$0xff] %vm3854_vm7, %v11132_v41  ;;  %v2957_v45 = vpop.permute.xlu0 %2956 }
 0x426   :  { %4071 = vst.msk [vmem:[#allocation4 + $0xb0] sm:$0xff] %vm4059_vm8, %v11138_v49  ;;  %v11870_v18 = vpop.permute.xlu1 %3565 }
 0x427   :  { %3047 = vst.msk [vmem:[#allocation4 + $0xc0] sm:$0xff] %vm3034_vm3, %v2957_v45  ;;  %6898 = vrot.lane.b32.xlu0 %v11872_v61, %s9509_s21 }
 0x428   :  { %6288 = vrot.lane.b32.xlu1 %v11876_v1, %s9511_s23 }
 0x429   :  { %v3162_v21 = vpop.permute.xlu0 %3161 }
 0x42a   :  { %3252 = vst.msk [vmem:[#allocation4 + $0xc0] sm:$0xff] %vm3239_vm4, %v3162_v21  ;;  %v11881_v41 = vpop.permute.xlu1 %3770  ;;  %v4306_v21 = vld [vmem:[#allocation3 + $0x5c] sm:$0xff] }
 0x42b   :  { %3457 = vst.msk [vmem:[#allocation4 + $0xc0] sm:$0xff] %vm3444_vm5, %v11015_v43  ;;  %5195 = vrot.lane.b32.xlu0 %v10978_v57, %s9516_s28  ;;  %v11899_v57 = vld [vmem:[#allocation3 + $0x98] sm:$0xff] }
 0x42c   :  { %3662 = vst.msk [vmem:[#allocation4 + $0xc0] sm:$0xff] %vm3649_vm6, %v11116_v31  ;;  %4582 = vrot.lane.b32.xlu1 %v10982_v29, %s9512_s24 }
 0x42d   :  { %3867 = vst.msk [vmem:[#allocation4 + $0xc0] sm:$0xff] %vm3854_vm7, %v11123_v13  ;;  %v3564_v49 = vpop.permute.xlu0 %3563  ;;  %v11926_v13 = vld [vmem:[#allocation3 + $0x74] sm:$0xff] }
 0x42e   :  { %4072 = vst.msk [vmem:[#allocation4 + $0xc0] sm:$0xff] %vm4059_vm8, %v11026_v22  ;;  %v6075_v2 = vpop.permute.xlu1 %6074 }
 0x42f   :  { %3658 = vst.msk [vmem:[#allocation4 + $0x80] sm:$0xff] %vm3649_vm6, %v3564_v49  ;;  %7102 = vrot.lane.b32.xlu0 %v10554_v28, %s9504_s17  ;;  %v12027_v49 = vld [vmem:[#allocation3 + $0xa4] sm:$0xff] }
 0x430   :  { %6176 = vst.msk [vmem:[#allocation4 + $0x8] sm:$0xff] %vm3034_vm3, %v6075_v2  ;;  %6492 = vrot.lane.b32.xlu1 %v11899_v57, %s9505_s18 }
 0x431   :  { %v3769_v43 = vpop.permute.xlu0 %3768 }
 0x432   :  { %3863 = vst.msk [vmem:[#allocation4 + $0x80] sm:$0xff] %vm3854_vm7, %v3769_v43  ;;  %v6279_v31 = vpop.permute.xlu1 %6278  ;;  %v5125_v43 = vld [vmem:[#allocation3 + $0x6e] sm:$0xff] }
 0x433   :  { %6380 = vst.msk [vmem:[#allocation4 + $0x8] sm:$0xff] %vm3239_vm4, %v6279_v31  ;;  %5400 = vrot.lane.b32.xlu0 %v10982_v29, %s9517_s29 }
 0x434   :  { %6584 = vst.msk [vmem:[#allocation4 + $0x8] sm:$0xff] %vm3444_vm5, %v11072_v53  ;;  %4787 = vrot.lane.b32.xlu1 %v11545_v36, %s9514_s26 }
 0x435   :  { %6788 = vst.msk [vmem:[#allocation4 + $0x8] sm:$0xff] %vm3649_vm6, %v11130_v55  ;;  %v3974_v28 = vpop.permute.xlu0 %3973 }
 0x436   :  { %6992 = vst.msk [vmem:[#allocation4 + $0x8] sm:$0xff] %vm3854_vm7, %v11136_v58  ;;  %v5873_v22 = vpop.permute.xlu1 %5872 }
 0x437   :  { %4068 = vst.msk [vmem:[#allocation4 + $0x80] sm:$0xff] %vm4059_vm8, %v3974_v28  ;;  %7196 = vst.msk [vmem:[#allocation4 + $0x8] sm:$0xff] %vm4059_vm8, %v11142_v39  ;;  %7306 = vrot.lane.b32.xlu0 %v11899_v57, %s9507_s20  ;;  %v11934_v39 = vld [vmem:[#allocation3 + $0x9a] sm:$0xff]  ;;  %v4511_v28 = vld [vmem:[#allocation3 + $0x70] sm:$0xff] }
 0x438   :  { %5973 = vst.msk [vmem:[#allocation4 + $0x18] sm:$0xff] %vm2829_vm2, %v5873_v22  ;;  %5882 = vrot.lane.b32.xlu1 %v11756_v46, %s9506_s19  ;;  %v11995_v46 = vld [vmem:[#allocation3 + $0x6a] sm:$0xff] }
 0x439   :  { %7400 = vst.msk [vmem:[#allocation4 + $0x8] sm:$0xff] %vm4264_vm9, %v11148_v30  ;;  %v5600_v53 = vpop.permute.xlu0 %5599 }
 0x43a   :  { %5701 = vst.msk [vmem:[#allocation4 + $0x10] sm:$0xff] %vm5699_vm0, %v5600_v53  ;;  %v6077_v29 = vpop.permute.xlu1 %6076 }
 0x43b   :  { %6177 = vst.msk [vmem:[#allocation4 + $0x18] sm:$0xff] %vm3034_vm3, %v6077_v29  ;;  %5605 = vrot.lane.b32.xlu0 %v11926_v13, %s9519_s13  ;;  %v12042_v29 = vld [vmem:[#allocation3 + $0xa8] sm:$0xff] }
 0x43c   :  { %4174 = vrot.lane.b32.xlu1 %v11642_v50, %s9507_s20 }
 0x43d   :  { %v2748_v55 = vpop.permute.xlu0 %2747 }
 0x43e   :  { %2840 = vst.msk [vmem:[#allocation4 + $0xa0] sm:$0xff] %vm2829_vm2, %v2748_v55  ;;  %v6281_v58 = vpop.permute.xlu1 %6280 }
 0x43f   :  { %6381 = vst.msk [vmem:[#allocation4 + $0x18] sm:$0xff] %vm3239_vm4, %v6281_v58  ;;  %6696 = vrot.lane.b32.xlu0 %v11934_v39, %s9508_s1 }
 0x440   :  { %v7435_v30 = vld [vmem:[#allocation4 + $0x8] sm:$0xff]  ;;  %6585 = vst.msk [vmem:[#allocation4 + $0x18] sm:$0xff] %vm3444_vm5, %v11144_v23  ;;  %6086 = vrot.lane.b32.xlu1 %v11784_v54, %s9510_s22 }
 0x441   :  { %7603 = vmatprep.mubr.f32.mxu1 %v7435_v30  ;;  %6789 = vst.msk [vmem:[#allocation4 + $0x18] sm:$0xff] %vm3649_vm6, %v11155_v25  ;;  %v2953_v36 = vpop.permute.xlu0 %2952  ;;  %v11958_v25 = vld [vmem:[#allocation3 + $0x9c] sm:$0xff] }
 0x442   :  { %6993 = vst.msk [vmem:[#allocation4 + $0x18] sm:$0xff] %vm3854_vm7, %v11161_v11  ;;  %v2746_v50 = vpop.permute.xlu1 %2745 }
 0x443   :  { %3045 = vst.msk [vmem:[#allocation4 + $0xa0] sm:$0xff] %vm3034_vm3, %v2953_v36  ;;  %4992 = vrot.lane.b32.xlu0 %v11566_v38, %s9515_s27  ;;  %v4510_v38 = vld [vmem:[#allocation3 + $0x68] sm:$0xff]  ;;  %v12049_v36 = vld [vmem:[#allocation3 + $0x72] sm:$0xff] }
 0x444   :  { %7197 = vst.msk [vmem:[#allocation4 + $0x18] sm:$0xff] %vm4059_vm8, %v11167_v51  ;;  %4379 = vrot.lane.b32.xlu1 %v11669_v10, %s9513_s25 }
 0x445   :  { %2839 = vst.msk [vmem:[#allocation4 + $0x90] sm:$0xff] %vm2829_vm2, %v2746_v50  ;;  %v3158_v23 = vpop.permute.xlu0 %3157 }
 0x446   :  { %7401 = vst.msk [vmem:[#allocation4 + $0x18] sm:$0xff] %vm4264_vm9, %v11038_v40  ;;  %v2951_v11 = vpop.permute.xlu1 %2950 }
 0x447   :  { %3250 = vst.msk [vmem:[#allocation4 + $0xa0] sm:$0xff] %vm3239_vm4, %v3158_v23  ;;  %6900 = vrot.lane.b32.xlu0 %v11958_v25, %s9509_s21 }
 0x448   :  { %3455 = vst.msk [vmem:[#allocation4 + $0xa0] sm:$0xff] %vm3444_vm5, %v11795_v52  ;;  %6290 = vrot.lane.b32.xlu1 %v11803_v3, %s9511_s23 }
 0x449   :  { %3044 = vst.msk [vmem:[#allocation4 + $0x90] sm:$0xff] %vm3034_vm3, %v2951_v11  ;;  %v3560_v40 = vpop.permute.xlu0 %3559 }
 0x44a   :  { %3660 = vst.msk [vmem:[#allocation4 + $0xa0] sm:$0xff] %vm3649_vm6, %v11046_v63  ;;  %3656 = vst.msk [vmem:[#allocation4 + $0x60] sm:$0xff] %vm3649_vm6, %v3560_v40  ;;  %v3156_v51 = vpop.permute.xlu1 %3155 }
 0x44b   :  { %3865 = vst.msk [vmem:[#allocation4 + $0xa0] sm:$0xff] %vm3854_vm7, %v11056_v35  ;;  %5197 = vrot.lane.b32.xlu0 %v11581_v44, %s9516_s28  ;;  %v11982_v35 = vld [vmem:[#allocation3 + $0xa0] sm:$0xff] }
 0x44c   :  { %4070 = vst.msk [vmem:[#allocation4 + $0xa0] sm:$0xff] %vm4059_vm8, %v11061_v56  ;;  %4584 = vrot.lane.b32.xlu1 %v4510_v38, %s9512_s24 }
 0x44d   :  { %3249 = vst.msk [vmem:[#allocation4 + $0x90] sm:$0xff] %vm3239_vm4, %v3156_v51  ;;  %v3765_v63 = vpop.permute.xlu0 %3764 }
 0x44e   :  { %3861 = vst.msk [vmem:[#allocation4 + $0x60] sm:$0xff] %vm3854_vm7, %v3765_v63  ;;  %v3361_v10 = vpop.permute.xlu1 %3360 }
 0x44f   :  { %7104 = vrot.lane.b32.xlu0 %v10603_v59, %s9504_s17  ;;  %3454 = vst.msk [vmem:[#allocation4 + $0x90] sm:$0xff] %vm3444_vm5, %v3361_v10  ;;  %v12065_v10 = vld [vmem:[#allocation3 + $0xaa] sm:$0xff] }
 0x450   :  { %3659 = vst.msk [vmem:[#allocation4 + $0x90] sm:$0xff] %vm3649_vm6, %v11870_v18  ;;  %6494 = vrot.lane.b32.xlu1 %v11982_v35, %s9505_s18 }
 0x451   :  { %3864 = vst.msk [vmem:[#allocation4 + $0x90] sm:$0xff] %vm3854_vm7, %v11881_v41  ;;  %v3970_v56 = vpop.permute.xlu0 %3969 }
 0x452   :  { %4066 = vst.msk [vmem:[#allocation4 + $0x60] sm:$0xff] %vm4059_vm8, %v3970_v56  ;;  %4069 = vst.msk [vmem:[#allocation4 + $0x90] sm:$0xff] %vm4059_vm8, %v11009_v16  ;;  %v3562_v44 = vpop.permute.xlu1 %3561 }
 0x453   :  { %5402 = vrot.lane.b32.xlu0 %v4510_v38, %s9517_s29  ;;  %3657 = vst.msk [vmem:[#allocation4 + $0x70] sm:$0xff] %vm3649_vm6, %v3562_v44  ;;  %v4102_v38 = vld [vmem:[#allocation3 + $0x62] sm:$0xff] }
 0x454   :  { %4789 = vrot.lane.b32.xlu1 %v11995_v46, %s9514_s26 }
 0x455   :  { %v5598_v54 = vpop.permute.xlu0 %5597 }
 0x456   :  { %5700 = vst.msk [vmem:[#allocation4] sm:$0xff] %vm5699_vm0, %v5598_v54  ;;  %v3767_v52 = vpop.permute.xlu1 %3766  ;;  %v4307_v54 = vld [vmem:[#allocation3 + $0x64] sm:$0xff] }
 0x457   :  { %7308 = vrot.lane.b32.xlu0 %v11982_v35, %s9507_s20  ;;  %3862 = vst.msk [vmem:[#allocation4 + $0x70] sm:$0xff] %vm3854_vm7, %v3767_v52 }
 0x458   :  { %4067 = vst.msk [vmem:[#allocation4 + $0x70] sm:$0xff] %vm4059_vm8, %v11777_v27  ;;  %5884 = vrot.lane.b32.xlu1 %v11821_v62, %s9506_s19  ;;  %v12014_v27 = vld [vmem:[#allocation3 + $0xa2] sm:$0xff]  ;;  %v7437_v62 = vld [vmem:[#allocation4 + $0x18] sm:$0xff] }
 0x459   :  { %v4987_v16 = vpop.permute.xlu0 %4986 }
 0x45a   :  { %v4782_v7 = vpop.permute.xlu1 %4781 }
 0x45b   :  { %5607 = vrot.lane.b32.xlu0 %v11808_v20, %s9519_s13  ;;  %4882 = vst.msk [vmem:[#allocation4 + $0x20] sm:$0xff] %vm4879_vm12, %v4782_v7 }
 0x45c   :  { %5087 = vst.msk [vmem:[#allocation4 + $0x20] sm:$0xff] %vm5084_vm13, %v4987_v16  ;;  %4176 = vrot.lane.b32.xlu1 %v11513_v48, %s9507_s20  ;;  %v7436_v48 = vld [vmem:[#allocation4 + $0x10] sm:$0xff] }
 0x45d   :  { %v5192_v34 = vpop.permute.xlu0 %5191  ;;  %v7434_v26 = vld [vmem:[#allocation4] sm:$0xff]  ;;  %v12078_v16 = vld [vmem:[#allocation3 + $0xac] sm:$0xff] }
 0x45e   :  { %5292 = vst.msk [vmem:[#allocation4 + $0x20] sm:$0xff] %vm5289_vm14, %v5192_v34  ;;  %7604 = vmatmul.mubr.f32.vlgmr.msra.gmra.mrb[36].mxu1 %v7434_v26  ;;  %v4579_v19 = vpop.permute.xlu1 %4578 }
 0x45f   :  { %6698 = vrot.lane.b32.xlu0 %v12014_v27, %s9508_s1  ;;  %7608 = vmatprep.mubr.f32.mxu1 %v7437_v62  ;;  %4678 = vst.msk [vmem:[#allocation4 + $0x30] sm:$0xff] %vm4674_vm11, %v4579_v19  ;;  %v12095_v19 = vld [vmem:[#allocation3 + $0xb0] sm:$0xff] }
 0x460   :  { %6088 = vrot.lane.b32.xlu1 %v11848_v47, %s9510_s22 }
 0x461   :  { %v7099_v45 = vpop.permute.xlu0 %7098 }
 0x462   :  { %7198 = vst.msk [vmem:[#allocation4 + $0x28] sm:$0xff] %vm4059_vm8, %v7099_v45  ;;  %7609 = vmatmul.mubr.f32.gmra.mrb[38].mxu1 %v7436_v48  ;;  %v6489_v18 = vpop.permute.xlu1 %6488 }
 0x463   :  { %4994 = vrot.lane.b32.xlu0 %v11840_v32, %s9515_s27  ;;  %6587 = vst.msk [vmem:[#allocation4 + $0x38] sm:$0xff] %vm3444_vm5, %v6489_v18 }
 0x464   :  { %4381 = vrot.lane.b32.xlu1 %v4306_v21, %s9513_s25 }
 0x465   :  { %v5397_v41 = vpop.permute.xlu0 %5396 }
 0x466   :  { %5497 = vst.msk [vmem:[#allocation4 + $0x20] sm:$0xff] %vm5494_vm15, %v5397_v41  ;;  %v4784_v47 = vpop.permute.xlu1 %4783 }
 0x467   :  { %6902 = vrot.lane.b32.xlu0 %v12027_v49, %s9509_s21  ;;  %4883 = vst.msk [vmem:[#allocation4 + $0x30] sm:$0xff] %vm4879_vm12, %v4784_v47 }
 0x468   :  { %6292 = vrot.lane.b32.xlu1 %v11872_v61, %s9511_s23 }
 0x469   :  { %v7303_v2 = vpop.permute.xlu0 %7302 }
 0x46a   :  { %7402 = vst.msk [vmem:[#allocation4 + $0x28] sm:$0xff] %vm4264_vm9, %v7303_v2  ;;  %v5879_v31 = vpop.permute.xlu1 %5878  ;;  %v12118_v2 = vld [vmem:[#allocation3 + $0xb2] sm:$0xff] }
 0x46b   :  { %5199 = vrot.lane.b32.xlu0 %v5125_v43, %s9516_s28  ;;  %5976 = vst.msk [vmem:[#allocation4 + $0x48] sm:$0xff] %vm2829_vm2, %v5879_v31 }
 0x46c   :  { %4586 = vrot.lane.b32.xlu1 %v4511_v28, %s9512_s24 }
 0x46d   :  { %v5602_v22 = vpop.permute.xlu0 %5601 }
 0x46e   :  { %5702 = vst.msk [vmem:[#allocation4 + $0x20] sm:$0xff] %vm5699_vm0, %v5602_v22  ;;  %v4171_v53 = vpop.permute.xlu1 %4170 }
 0x46f   :  { %7106 = vrot.lane.b32.xlu0 %v10655_v33, %s9504_s17  ;;  %4269 = vst.msk [vmem:[#allocation4 + $0x40] sm:$0xff] %vm4264_vm9, %v4171_v53 }
 0x470   :  { %6496 = vrot.lane.b32.xlu1 %v12042_v29, %s9505_s18 }
 0x471   :  { %v6693_v55 = vpop.permute.xlu0 %6692  ;;  %v7439_v58 = vld [vmem:[#allocation4 + $0x28] sm:$0xff] }
 0x472   :  { %6791 = vst.msk [vmem:[#allocation4 + $0x38] sm:$0xff] %vm3649_vm6, %v6693_v55  ;;  %7613 = vmatprep.mubr.f32.mxu1 %v7439_v58  ;;  %v6083_v30 = vpop.permute.xlu1 %6082  ;;  %v12149_v58 = vld [vmem:[#allocation3 + $0xb8] sm:$0xff] }
 0x473   :  { %5404 = vrot.lane.b32.xlu0 %v4511_v28, %s9517_s29  ;;  %6180 = vst.msk [vmem:[#allocation4 + $0x48] sm:$0xff] %vm3034_vm3, %v6083_v30  ;;  %v12132_v28 = vld [vmem:[#allocation3 + $0xb4] sm:$0xff] }
 0x474   :  { %4791 = vrot.lane.b32.xlu1 %v12049_v36, %s9514_s26 }
 0x475   :  { %v4989_v50 = vpop.permute.xlu0 %4988  ;;  %v7438_v23 = vld [vmem:[#allocation4 + $0x20] sm:$0xff] }
 0x476   :  { %5088 = vst.msk [vmem:[#allocation4 + $0x30] sm:$0xff] %vm5084_vm13, %v4989_v50  ;;  %7614 = vmatmul.mubr.f32.gmra.mrb[40].mxu1 %v7438_v23  ;;  %v4376_v11 = vpop.permute.xlu1 %4375 }
 0x477   :  { %7310 = vrot.lane.b32.xlu0 %v12042_v29, %s9507_s20  ;;  %4474 = vst.msk [vmem:[#allocation4 + $0x40] sm:$0xff] %vm4469_vm10, %v4376_v11 }
 0x478   :  { %5886 = vrot.lane.b32.xlu1 %v11899_v57, %s9506_s19 }
 0x479   :  { %v6897_v40 = vpop.permute.xlu0 %6896 }
 0x47a   :  { %6995 = vst.msk [vmem:[#allocation4 + $0x38] sm:$0xff] %vm3854_vm7, %v6897_v40  ;;  %v6287_v51 = vpop.permute.xlu1 %6286 }
 0x47b   :  { %5609 = vrot.lane.b32.xlu0 %v11876_v1, %s9519_s13  ;;  %6384 = vst.msk [vmem:[#allocation4 + $0x48] sm:$0xff] %vm3239_vm4, %v6287_v51 }
 0x47c   :  { %4178 = vrot.lane.b32.xlu1 %v4102_v38, %s9507_s20  ;;  %v12172_v38 = vld [vmem:[#allocation3 + $0xba] sm:$0xff] }
 0x47d   :  { %v5194_v63 = vpop.permute.xlu0 %5193 }
 0x47e   :  { %5293 = vst.msk [vmem:[#allocation4 + $0x30] sm:$0xff] %vm5289_vm14, %v5194_v63  ;;  %v4581_v56 = vpop.permute.xlu1 %4580 }
 0x47f   :  { %6700 = vrot.lane.b32.xlu0 %v12065_v10, %s9508_s1  ;;  %4679 = vst.msk [vmem:[#allocation4 + $0x40] sm:$0xff] %vm4674_vm11, %v4581_v56 }
 0x480   :  { %6090 = vrot.lane.b32.xlu1 %v11934_v39, %s9510_s22 }
 0x481   :  { %v7101_v57 = vpop.permute.xlu0 %7100 }
 0x482   :  { %7199 = vst.msk [vmem:[#allocation4 + $0x38] sm:$0xff] %vm4059_vm8, %v7101_v57  ;;  %v6491_v44 = vpop.permute.xlu1 %6490  ;;  %v12186_v57 = vld [vmem:[#allocation3 + $0xbc] sm:$0xff] }
 0x483   :  { %4996 = vrot.lane.b32.xlu0 %v11926_v13, %s9515_s27  ;;  %6588 = vst.msk [vmem:[#allocation4 + $0x48] sm:$0xff] %vm3444_vm5, %v6491_v44 }
 0x484   :  { %4383 = vrot.lane.b32.xlu1 %v4307_v54, %s9513_s25 }
 0x485   :  { %v5399_v52 = vpop.permute.xlu0 %5398 }
 0x486   :  { %5498 = vst.msk [vmem:[#allocation4 + $0x30] sm:$0xff] %vm5494_vm15, %v5399_v52  ;;  %v4786_v7 = vpop.permute.xlu1 %4785 }
 0x487   :  { %6904 = vrot.lane.b32.xlu0 %v12078_v16, %s9509_s21  ;;  %4884 = vst.msk [vmem:[#allocation4 + $0x40] sm:$0xff] %vm4879_vm12, %v4786_v7 }
 0x488   :  { %6294 = vrot.lane.b32.xlu1 %v11958_v25, %s9511_s23 }
 0x489   :  { %v7305_v39 = vpop.permute.xlu0 %7304 }
 0x48a   :  { %7403 = vst.msk [vmem:[#allocation4 + $0x38] sm:$0xff] %vm4264_vm9, %v7305_v39  ;;  %v5881_v34 = vpop.permute.xlu1 %5880  ;;  %v12202_v39 = vld [vmem:[#allocation3 + $0xc0] sm:$0xff] }
 0x48b   :  { %5201 = vrot.lane.b32.xlu0 %v10648_v24, %s9516_s28  ;;  %5977 = vst.msk [vmem:[#allocation4 + $0x58] sm:$0xff] %vm2829_vm2, %v5881_v34 }
 0x48c   :  { %4588 = vrot.lane.b32.xlu1 %v11772_v4, %s9512_s24 }
 0x48d   :  { %v5604_v26 = vpop.permute.xlu0 %5603 }
 0x48e   :  { %5703 = vst.msk [vmem:[#allocation4 + $0x30] sm:$0xff] %vm5699_vm0, %v5604_v26  ;;  %v4173_v62 = vpop.permute.xlu1 %4172 }
 0x48f   :  { %7108 = vrot.lane.b32.xlu0 %v10704_v15, %s9504_s17  ;;  %4270 = vst.msk [vmem:[#allocation4 + $0x50] sm:$0xff] %vm4264_vm9, %v4173_v62  ;;  %v12209_v62 = vld [vmem:[#allocation3 + $0x8a] sm:$0xff] }
 0x490   :  { %6498 = vrot.lane.b32.xlu1 %v12095_v19, %s9505_s18 }
 0x491   :  { %v6695_v24 = vpop.permute.xlu0 %6694  ;;  %v7441_v45 = vld [vmem:[#allocation4 + $0x38] sm:$0xff] }
 0x492   :  { %6792 = vst.msk [vmem:[#allocation4 + $0x48] sm:$0xff] %vm3649_vm6, %v6695_v24  ;;  %7618 = vmatprep.mubr.f32.mxu1 %v7441_v45  ;;  %v6085_v48 = vpop.permute.xlu1 %6084 }
 0x493   :  { %5406 = vrot.lane.b32.xlu0 %v11772_v4, %s9517_s29  ;;  %6181 = vst.msk [vmem:[#allocation4 + $0x58] sm:$0xff] %vm3034_vm3, %v6085_v48 }
 0x494   :  { %4793 = vrot.lane.b32.xlu1 %v11790_v9, %s9514_s26 }
 0x495   :  { %v4991_v18 = vpop.permute.xlu0 %4990  ;;  %v7440_v21 = vld [vmem:[#allocation4 + $0x30] sm:$0xff] }
 0x496   :  { %5089 = vst.msk [vmem:[#allocation4 + $0x40] sm:$0xff] %vm5084_vm13, %v4991_v18  ;;  %7619 = vmatmul.mubr.f32.gmra.mrb[42].mxu1 %v7440_v21  ;;  %v4378_v41 = vpop.permute.xlu1 %4377 }
 0x497   :  { %7312 = vrot.lane.b32.xlu0 %v12095_v19, %s9507_s20  ;;  %4475 = vst.msk [vmem:[#allocation4 + $0x50] sm:$0xff] %vm4469_vm10, %v4378_v41  ;;  %v4105_v41 = vld [vmem:[#allocation3 + $0x7a] sm:$0xff] }
 0x498   :  { %5888 = vrot.lane.b32.xlu1 %v11982_v35, %s9506_s19 }
 0x499   :  { %v6899_v4 = vpop.permute.xlu0 %6898 }
 0x49a   :  { %6996 = vst.msk [vmem:[#allocation4 + $0x48] sm:$0xff] %vm3854_vm7, %v6899_v4  ;;  %v6289_v47 = vpop.permute.xlu1 %6288 }
 0x49b   :  { %5611 = vrot.lane.b32.xlu0 %v11803_v3, %s9519_s13  ;;  %6385 = vst.msk [vmem:[#allocation4 + $0x58] sm:$0xff] %vm3239_vm4, %v6289_v47  ;;  %v12225_v47 = vld [vmem:[#allocation3 + $0xc2] sm:$0xff] }
 0x49c   :  { %4180 = vrot.lane.b32.xlu1 %v11995_v46, %s9507_s20 }
 0x49d   :  { %v5196_v9 = vpop.permute.xlu0 %5195 }
 0x49e   :  { %5294 = vst.msk [vmem:[#allocation4 + $0x40] sm:$0xff] %vm5289_vm14, %v5196_v9  ;;  %v4583_v43 = vpop.permute.xlu1 %4582 }
 0x49f   :  { %6702 = vrot.lane.b32.xlu0 %v12118_v2, %s9508_s1  ;;  %4680 = vst.msk [vmem:[#allocation4 + $0x50] sm:$0xff] %vm4674_vm11, %v4583_v43 }
 0x4a0   :  { %6092 = vrot.lane.b32.xlu1 %v12014_v27, %s9510_s22 }
 0x4a1   :  { %v7103_v3 = vpop.permute.xlu0 %7102 }
 0x4a2   :  { %7200 = vst.msk [vmem:[#allocation4 + $0x48] sm:$0xff] %vm4059_vm8, %v7103_v3  ;;  %v6493_v31 = vpop.permute.xlu1 %6492  ;;  %v12233_v3 = vld [vmem:[#allocation3 + $0x8c] sm:$0xff] }
 0x4a3   :  { %4998 = vrot.lane.b32.xlu0 %v11808_v20, %s9515_s27  ;;  %6589 = vst.msk [vmem:[#allocation4 + $0x58] sm:$0xff] %vm3444_vm5, %v6493_v31 }
 0x4a4   :  { %4385 = vrot.lane.b32.xlu1 %v11840_v32, %s9513_s25 }
 0x4a5   :  { %v5401_v46 = vpop.permute.xlu0 %5400 }
 0x4a6   :  { %5499 = vst.msk [vmem:[#allocation4 + $0x40] sm:$0xff] %vm5494_vm15, %v5401_v46  ;;  %v4788_v22 = vpop.permute.xlu1 %4787  ;;  %v4310_v46 = vld [vmem:[#allocation3 + $0x7c] sm:$0xff] }
 0x4a7   :  { %6906 = vrot.lane.b32.xlu0 %v12132_v28, %s9509_s21  ;;  %4885 = vst.msk [vmem:[#allocation4 + $0x50] sm:$0xff] %vm4879_vm12, %v4788_v22 }
 0x4a8   :  { %6296 = vrot.lane.b32.xlu1 %v12027_v49, %s9511_s23 }
 0x4a9   :  { %v7307_v20 = vpop.permute.xlu0 %7306 }
 0x4aa   :  { %7404 = vst.msk [vmem:[#allocation4 + $0x48] sm:$0xff] %vm4264_vm9, %v7307_v20  ;;  %v5883_v53 = vpop.permute.xlu1 %5882  ;;  %v12240_v20 = vld [vmem:[#allocation3 + $0xc4] sm:$0xff] }
 0x4ab   :  { %5203 = vrot.lane.b32.xlu0 %v10702_v17, %s9516_s28  ;;  %5978 = vst.msk [vmem:[#allocation4 + $0x68] sm:$0xff] %vm2829_vm2, %v5883_v53 }
 0x4ac   :  { %4590 = vrot.lane.b32.xlu1 %v11835_v42, %s9512_s24 }
 0x4ad   :  { %v5606_v32 = vpop.permute.xlu0 %5605 }
 0x4ae   :  { %5704 = vst.msk [vmem:[#allocation4 + $0x40] sm:$0xff] %vm5699_vm0, %v5606_v32  ;;  %v4175_v55 = vpop.permute.xlu1 %4174 }
 0x4af   :  { %7110 = vrot.lane.b32.xlu0 %v10718_v5, %s9504_s17  ;;  %4271 = vst.msk [vmem:[#allocation4 + $0x60] sm:$0xff] %vm4264_vm9, %v4175_v55 }
 0x4b0   :  { %6500 = vrot.lane.b32.xlu1 %v12149_v58, %s9505_s18 }
 0x4b1   :  { %v6697_v17 = vpop.permute.xlu0 %6696  ;;  %v7443_v30 = vld [vmem:[#allocation4 + $0x48] sm:$0xff] }
 0x4b2   :  { %6793 = vst.msk [vmem:[#allocation4 + $0x58] sm:$0xff] %vm3649_vm6, %v6697_v17  ;;  %7623 = vmatprep.mubr.f32.mxu1 %v7443_v30  ;;  %v6087_v50 = vpop.permute.xlu1 %6086  ;;  %v4515_v17 = vld [vmem:[#allocation3 + $0x90] sm:$0xff] }
 0x4b3   :  { %5408 = vrot.lane.b32.xlu0 %v11835_v42, %s9517_s29  ;;  %6182 = vst.msk [vmem:[#allocation4 + $0x68] sm:$0xff] %vm3034_vm3, %v6087_v50 }
 0x4b4   :  { %4795 = vrot.lane.b32.xlu1 %v11853_v60, %s9514_s26 }
 0x4b5   :  { %v4993_v23 = vpop.permute.xlu0 %4992  ;;  %v7442_v11 = vld [vmem:[#allocation4 + $0x40] sm:$0xff] }
 0x4b6   :  { %5090 = vst.msk [vmem:[#allocation4 + $0x50] sm:$0xff] %vm5084_vm13, %v4993_v23  ;;  %7624 = vmatmul.mubr.f32.gmra.mrb[44].mxu1 %v7442_v11  ;;  %v4380_v40 = vpop.permute.xlu1 %4379  ;;  %v12256_v23 = vld [vmem:[#allocation3 + $0xc8] sm:$0xff] }
 0x4b7   :  { %7314 = vrot.lane.b32.xlu0 %v12149_v58, %s9507_s20  ;;  %4476 = vst.msk [vmem:[#allocation4 + $0x60] sm:$0xff] %vm4469_vm10, %v4380_v40 }
 0x4b8   :  { %5890 = vrot.lane.b32.xlu1 %v12042_v29, %s9506_s19 }
 0x4b9   :  { %v6901_v42 = vpop.permute.xlu0 %6900 }
 0x4ba   :  { %6997 = vst.msk [vmem:[#allocation4 + $0x58] sm:$0xff] %vm3854_vm7, %v6901_v42  ;;  %v6291_v51 = vpop.permute.xlu1 %6290  ;;  %v12263_v42 = vld [vmem:[#allocation3 + $0x92] sm:$0xff] }
 0x4bb   :  { %5613 = vrot.lane.b32.xlu0 %v11872_v61, %s9519_s13  ;;  %6386 = vst.msk [vmem:[#allocation4 + $0x68] sm:$0xff] %vm3239_vm4, %v6291_v51 }
 0x4bc   :  { %4182 = vrot.lane.b32.xlu1 %v12049_v36, %s9507_s20 }
 0x4bd   :  { %v5198_v60 = vpop.permute.xlu0 %5197 }
 0x4be   :  { %5295 = vst.msk [vmem:[#allocation4 + $0x50] sm:$0xff] %vm5289_vm14, %v5198_v60  ;;  %v4585_v63 = vpop.permute.xlu1 %4584 }
 0x4bf   :  { %6704 = vrot.lane.b32.xlu0 %v12172_v38, %s9508_s1  ;;  %4681 = vst.msk [vmem:[#allocation4 + $0x60] sm:$0xff] %vm4674_vm11, %v4585_v63 }
 0x4c0   :  { %6094 = vrot.lane.b32.xlu1 %v12065_v10, %s9510_s22 }
 0x4c1   :  { %v7105_v61 = vpop.permute.xlu0 %7104 }
 0x4c2   :  { %7201 = vst.msk [vmem:[#allocation4 + $0x58] sm:$0xff] %vm4059_vm8, %v7105_v61  ;;  %v6495_v56 = vpop.permute.xlu1 %6494 }
 0x4c3   :  { %5000 = vrot.lane.b32.xlu0 %v11876_v1, %s9515_s27  ;;  %6590 = vst.msk [vmem:[#allocation4 + $0x68] sm:$0xff] %vm3444_vm5, %v6495_v56  ;;  %v4106_v56 = vld [vmem:[#allocation3 + $0x82] sm:$0xff] }
 0x4c4   :  { %4387 = vrot.lane.b32.xlu1 %v11926_v13, %s9513_s25  ;;  %v4514_v13 = vld [vmem:[#allocation3 + $0x88] sm:$0xff] }
 0x4c5   :  { %v5403_v36 = vpop.permute.xlu0 %5402 }
 0x4c6   :  { %5500 = vst.msk [vmem:[#allocation4 + $0x50] sm:$0xff] %vm5494_vm15, %v5403_v36  ;;  %v4790_v44 = vpop.permute.xlu1 %4789 }
 0x4c7   :  { %6908 = vrot.lane.b32.xlu0 %v12186_v57, %s9509_s21  ;;  %4886 = vst.msk [vmem:[#allocation4 + $0x60] sm:$0xff] %vm4879_vm12, %v4790_v44  ;;  %v12279_v44 = vld [vmem:[#allocation3 + $0xca] sm:$0xff] }
 0x4c8   :  { %6298 = vrot.lane.b32.xlu1 %v12078_v16, %s9511_s23 }
 0x4c9   :  { %v7309_v1 = vpop.permute.xlu0 %7308 }
 0x4ca   :  { %7405 = vst.msk [vmem:[#allocation4 + $0x58] sm:$0xff] %vm4264_vm9, %v7309_v1  ;;  %v5885_v54 = vpop.permute.xlu1 %5884 }
 0x4cb   :  { %5205 = vrot.lane.b32.xlu0 %v10711_v6, %s9516_s28  ;;  %5979 = vst.msk [vmem:[#allocation4 + $0x78] sm:$0xff] %vm2829_vm2, %v5885_v54 }
 0x4cc   :  { %4592 = vrot.lane.b32.xlu1 %v4514_v13, %s9512_s24 }
 0x4cd   :  { %v5608_v52 = vpop.permute.xlu0 %5607 }
 0x4ce   :  { %5705 = vst.msk [vmem:[#allocation4 + $0x50] sm:$0xff] %vm5699_vm0, %v5608_v52  ;;  %v4177_v7 = vpop.permute.xlu1 %4176 }
 0x4cf   :  { %7112 = vrot.lane.b32.xlu0 %v10748_v12, %s9504_s17  ;;  %4272 = vst.msk [vmem:[#allocation4 + $0x70] sm:$0xff] %vm4264_vm9, %v4177_v7  ;;  %v4311_v7 = vld [vmem:[#allocation3 + $0x84] sm:$0xff] }
 0x4d0   :  { %6502 = vrot.lane.b32.xlu1 %v12202_v39, %s9505_s18 }
 0x4d1   :  { %v6699_v6 = vpop.permute.xlu0 %6698  ;;  %v7445_v34 = vld [vmem:[#allocation4 + $0x58] sm:$0xff] }
 0x4d2   :  { %6794 = vst.msk [vmem:[#allocation4 + $0x68] sm:$0xff] %vm3649_vm6, %v6699_v6  ;;  %7628 = vmatprep.mubr.f32.mxu1 %v7445_v34  ;;  %v6089_v26 = vpop.permute.xlu1 %6088  ;;  %v12294_v34 = vld [vmem:[#allocation3 + $0xcc] sm:$0xff] }
 0x4d3   :  { %5410 = vrot.lane.b32.xlu0 %v4514_v13, %s9517_s29  ;;  %6183 = vst.msk [vmem:[#allocation4 + $0x78] sm:$0xff] %vm3034_vm3, %v6089_v26  ;;  %v12287_v13 = vld [vmem:[#allocation3 + $0x94] sm:$0xff] }
 0x4d4   :  { %4797 = vrot.lane.b32.xlu1 %v12209_v62, %s9514_s26 }
 0x4d5   :  { %v4995_v24 = vpop.permute.xlu0 %4994  ;;  %v7444_v45 = vld [vmem:[#allocation4 + $0x50] sm:$0xff] }
 0x4d6   :  { %5091 = vst.msk [vmem:[#allocation4 + $0x60] sm:$0xff] %vm5084_vm13, %v4995_v24  ;;  %7629 = vmatmul.mubr.f32.gmra.mrb[46].mxu1 %v7444_v45  ;;  %v4382_v48 = vpop.permute.xlu1 %4381  ;;  %v5130_v45 = vld [vmem:[#allocation3 + $0x96] sm:$0xff] }
 0x4d7   :  { %7316 = vrot.lane.b32.xlu0 %v12202_v39, %s9507_s20  ;;  %4477 = vst.msk [vmem:[#allocation4 + $0x70] sm:$0xff] %vm4469_vm10, %v4382_v48 }
 0x4d8   :  { %5892 = vrot.lane.b32.xlu1 %v12095_v19, %s9506_s19 }
 0x4d9   :  { %v6903_v18 = vpop.permute.xlu0 %6902 }
 0x4da   :  { %6998 = vst.msk [vmem:[#allocation4 + $0x68] sm:$0xff] %vm3854_vm7, %v6903_v18  ;;  %v6293_v21 = vpop.permute.xlu1 %6292  ;;  %v4516_v18 = vld [vmem:[#allocation3 + $0x98] sm:$0xff] }
 0x4db   :  { %5615 = vrot.lane.b32.xlu0 %v11958_v25, %s9519_s13  ;;  %6387 = vst.msk [vmem:[#allocation4 + $0x78] sm:$0xff] %vm3239_vm4, %v6293_v21 }
 0x4dc   :  { %4184 = vrot.lane.b32.xlu1 %v4105_v41, %s9507_s20 }
 0x4dd   :  { %v5200_v4 = vpop.permute.xlu0 %5199 }
 0x4de   :  { %5296 = vst.msk [vmem:[#allocation4 + $0x60] sm:$0xff] %vm5289_vm14, %v5200_v4  ;;  %v4587_v9 = vpop.permute.xlu1 %4586  ;;  %v12309_v4 = vld [vmem:[#allocation3 + $0xd0] sm:$0xff] }
 0x4df   :  { %6706 = vrot.lane.b32.xlu0 %v12225_v47, %s9508_s1  ;;  %4682 = vst.msk [vmem:[#allocation4 + $0x70] sm:$0xff] %vm4674_vm11, %v4587_v9 }
 0x4e0   :  { %6096 = vrot.lane.b32.xlu1 %v12118_v2, %s9510_s22 }
 0x4e1   :  { %v7107_v43 = vpop.permute.xlu0 %7106 }
 0x4e2   :  { %7202 = vst.msk [vmem:[#allocation4 + $0x68] sm:$0xff] %vm4059_vm8, %v7107_v43  ;;  %v6497_v31 = vpop.permute.xlu1 %6496 }
 0x4e3   :  { %5002 = vrot.lane.b32.xlu0 %v12233_v3, %s9515_s27  ;;  %6591 = vst.msk [vmem:[#allocation4 + $0x78] sm:$0xff] %vm3444_vm5, %v6497_v31 }
 0x4e4   :  { %4389 = vrot.lane.b32.xlu1 %v4310_v46, %s9513_s25  ;;  %v12316_v46 = vld [vmem:[#allocation3 + $0x9a] sm:$0xff] }
 0x4e5   :  { %v5405_v22 = vpop.permute.xlu0 %5404 }
 0x4e6   :  { %5501 = vst.msk [vmem:[#allocation4 + $0x60] sm:$0xff] %vm5494_vm15, %v5405_v22  ;;  %v4792_v53 = vpop.permute.xlu1 %4791 }
 0x4e7   :  { %6910 = vrot.lane.b32.xlu0 %v12240_v20, %s9509_s21  ;;  %4887 = vst.msk [vmem:[#allocation4 + $0x70] sm:$0xff] %vm4879_vm12, %v4792_v53 }
 0x4e8   :  { %6300 = vrot.lane.b32.xlu1 %v12132_v28, %s9511_s23 }
 0x4e9   :  { %v7311_v32 = vpop.permute.xlu0 %7310 }
 0x4ea   :  { %7406 = vst.msk [vmem:[#allocation4 + $0x68] sm:$0xff] %vm4264_vm9, %v7311_v32  ;;  %v5887_v55 = vpop.permute.xlu1 %5886 }
 0x4eb   :  { %5207 = vrot.lane.b32.xlu0 %v10738_v14, %s9516_s28  ;;  %5980 = vst.msk [vmem:[#allocation4 + $0x88] sm:$0xff] %vm2829_vm2, %v5887_v55 }
 0x4ec   :  { %4594 = vrot.lane.b32.xlu1 %v4515_v17, %s9512_s24 }
 0x4ed   :  { %v5610_v30 = vpop.permute.xlu0 %5609 }
 0x4ee   :  { %5706 = vst.msk [vmem:[#allocation4 + $0x60] sm:$0xff] %vm5699_vm0, %v5610_v30  ;;  %v4179_v50 = vpop.permute.xlu1 %4178  ;;  %v12333_v30 = vld [vmem:[#allocation3 + $0xd2] sm:$0xff] }
 0x4ef   :  { %7114 = vrot.lane.b32.xlu0 %v10764_v37, %s9504_s17  ;;  %4273 = vst.msk [vmem:[#allocation4 + $0x80] sm:$0xff] %vm4264_vm9, %v4179_v50 }
 0x4f0   :  { %6504 = vrot.lane.b32.xlu1 %v12256_v23, %s9505_s18 }
 0x4f1   :  { %v6701_v14 = vpop.permute.xlu0 %6700  ;;  %v7447_v11 = vld [vmem:[#allocation4 + $0x68] sm:$0xff] }
 0x4f2   :  { %6795 = vst.msk [vmem:[#allocation4 + $0x78] sm:$0xff] %vm3649_vm6, %v6701_v14  ;;  %7633 = vmatprep.mubr.f32.mxu1 %v7447_v11  ;;  %v6091_v40 = vpop.permute.xlu1 %6090  ;;  %v12347_v11 = vld [vmem:[#allocation3 + $0xd4] sm:$0xff] }
 0x4f3   :  { %5412 = vrot.lane.b32.xlu0 %v4515_v17, %s9517_s29  ;;  %6184 = vst.msk [vmem:[#allocation4 + $0x88] sm:$0xff] %vm3034_vm3, %v6091_v40 }
 0x4f4   :  { %4799 = vrot.lane.b32.xlu1 %v12263_v42, %s9514_s26 }
 0x4f5   :  { %v4997_v37 = vpop.permute.xlu0 %4996  ;;  %v7446_v51 = vld [vmem:[#allocation4 + $0x60] sm:$0xff] }
 0x4f6   :  { %5092 = vst.msk [vmem:[#allocation4 + $0x70] sm:$0xff] %vm5084_vm13, %v4997_v37  ;;  %7634 = vmatmul.mubr.f32.gmra.mrb[48].mxu1 %v7446_v51  ;;  %v4384_v60 = vpop.permute.xlu1 %4383 }
 0x4f7   :  { %7318 = vrot.lane.b32.xlu0 %v12256_v23, %s9507_s20  ;;  %4478 = vst.msk [vmem:[#allocation4 + $0x80] sm:$0xff] %vm4469_vm10, %v4384_v60  ;;  %v14294_v60 = vld [vmem:[#allocation33_spill] sm:$0xff] }
 0x4f8   :  { %5894 = vrot.lane.b32.xlu1 %v12149_v58, %s9506_s19 }
 0x4f9   :  { %v6905_v63 = vpop.permute.xlu0 %6904 }
 0x4fa   :  { %6999 = vst.msk [vmem:[#allocation4 + $0x78] sm:$0xff] %vm3854_vm7, %v6905_v63  ;;  %v6295_v61 = vpop.permute.xlu1 %6294  ;;  %v12367_v63 = vld [vmem:[%s13956_s2 + $0x401] ss:$0 sm:$0xff] }
 0x4fb   :  { %5617 = vrot.lane.b32.xlu0 %v12027_v49, %s9519_s13  ;;  %6388 = vst.msk [vmem:[#allocation4 + $0x88] sm:$0xff] %vm3239_vm4, %v6295_v61 }
 0x4fc   :  { %4186 = vrot.lane.b32.xlu1 %v4106_v56, %s9507_s20 }
 0x4fd   :  { %v5202_v36 = vpop.permute.xlu0 %5201 }
 0x4fe   :  { %5297 = vst.msk [vmem:[#allocation4 + $0x70] sm:$0xff] %vm5289_vm14, %v5202_v36  ;;  %v4589_v1 = vpop.permute.xlu1 %4588 }
 0x4ff   :  { %6708 = vrot.lane.b32.xlu0 %v12279_v44, %s9508_s1  ;;  %4683 = vst.msk [vmem:[#allocation4 + $0x80] sm:$0xff] %vm4674_vm11, %v4589_v1 }
 0x500   :  { %6098 = vrot.lane.b32.xlu1 %v12172_v38, %s9510_s22 }
 0x501   :  { %v7109_v54 = vpop.permute.xlu0 %7108 }
 0x502   :  { %7203 = vst.msk [vmem:[#allocation4 + $0x78] sm:$0xff] %vm4059_vm8, %v7109_v54  ;;  %v6499_v52 = vpop.permute.xlu1 %6498  ;;  %v5336_v54 = vld [vmem:[#allocation3 + $0xa0] sm:$0xff] }
 0x503   :  { %5004 = vrot.lane.b32.xlu0 %v12287_v13, %s9515_s27  ;;  %6592 = vst.msk [vmem:[#allocation4 + $0x88] sm:$0xff] %vm3444_vm5, %v6499_v52 }
 0x504   :  { %4391 = vrot.lane.b32.xlu1 %v4311_v7, %s9513_s25 }
 0x505   :  { %v5407_v6 = vpop.permute.xlu0 %5406 }
 0x506   :  { %5502 = vst.msk [vmem:[#allocation4 + $0x70] sm:$0xff] %vm5494_vm15, %v5407_v6  ;;  %v4794_v26 = vpop.permute.xlu1 %4793 }
 0x507   :  { %6912 = vrot.lane.b32.xlu0 %v12294_v34, %s9509_s21  ;;  %4888 = vst.msk [vmem:[#allocation4 + $0x80] sm:$0xff] %vm4879_vm12, %v4794_v26 }
 0x508   :  { %6302 = vrot.lane.b32.xlu1 %v12186_v57, %s9511_s23 }
 0x509   :  { %v7313_v24 = vpop.permute.xlu0 %7312 }
 0x50a   :  { %7407 = vst.msk [vmem:[#allocation4 + $0x78] sm:$0xff] %vm4264_vm9, %v7313_v24  ;;  %v5889_v48 = vpop.permute.xlu1 %5888 }
 0x50b   :  { %5209 = vrot.lane.b32.xlu0 %v5130_v45, %s9516_s28  ;;  %5981 = vst.msk [vmem:[#allocation4 + $0x98] sm:$0xff] %vm2829_vm2, %v5889_v48 }
 0x50c   :  { %4596 = vrot.lane.b32.xlu1 %v4516_v18, %s9512_s24 }
 0x50d   :  { %v5612_v21 = vpop.permute.xlu0 %5611 }
 0x50e   :  { %5707 = vst.msk [vmem:[#allocation4 + $0x70] sm:$0xff] %vm5699_vm0, %v5612_v21  ;;  %v4181_v41 = vpop.permute.xlu1 %4180 }
 0x50f   :  { %7116 = vrot.lane.b32.xlu0 %v10780_v8, %s9504_s17  ;;  %4274 = vst.msk [vmem:[#allocation4 + $0x90] sm:$0xff] %vm4264_vm9, %v4181_v41 }
 0x510   :  { %6506 = vrot.lane.b32.xlu1 %v12309_v4, %s9505_s18 }
 0x511   :  { %v6703_v9 = vpop.permute.xlu0 %6702  ;;  %v7449_v43 = vld [vmem:[#allocation4 + $0x78] sm:$0xff] }
 0x512   :  { %6796 = vst.msk [vmem:[#allocation4 + $0x88] sm:$0xff] %vm3649_vm6, %v6703_v9  ;;  %7638 = vmatprep.mubr.f32.mxu1 %v7449_v43  ;;  %v6093_v31 = vpop.permute.xlu1 %6092  ;;  %v12393_v43 = vld [vmem:[#allocation3 + $0xda] sm:$0xff] }
 0x513   :  { %5414 = vrot.lane.b32.xlu0 %v4516_v18, %s9517_s29  ;;  %6185 = vst.msk [vmem:[#allocation4 + $0x98] sm:$0xff] %vm3034_vm3, %v6093_v31 }
 0x514   :  { %4801 = vrot.lane.b32.xlu1 %v12316_v46, %s9514_s26 }
 0x515   :  { %v4999_v8 = vpop.permute.xlu0 %4998  ;;  %v7448_v22 = vld [vmem:[#allocation4 + $0x70] sm:$0xff] }
 0x516   :  { %5093 = vst.msk [vmem:[#allocation4 + $0x80] sm:$0xff] %vm5084_vm13, %v4999_v8  ;;  %7639 = vmatmul.mubr.f32.gmra.mrb[50].mxu1 %v7448_v22  ;;  %v4386_v53 = vpop.permute.xlu1 %4385  ;;  %v12407_v22 = vld [vmem:[#allocation3 + $0xdc] sm:$0xff] }
 0x517   :  { %7320 = vrot.lane.b32.xlu0 %v12309_v4, %s9507_s20  ;;  %4479 = vst.msk [vmem:[#allocation4 + $0x90] sm:$0xff] %vm4469_vm10, %v4386_v53 }
 0x518   :  { %5896 = vrot.lane.b32.xlu1 %v12202_v39, %s9506_s19 }
 0x519   :  { %v6907_v32 = vpop.permute.xlu0 %6906 }
 0x51a   :  { %7000 = vst.msk [vmem:[#allocation4 + $0x88] sm:$0xff] %vm3854_vm7, %v6907_v32  ;;  %v6297_v55 = vpop.permute.xlu1 %6296 }
 0x51b   :  { %5619 = vrot.lane.b32.xlu0 %v12078_v16, %s9519_s13  ;;  %6389 = vst.msk [vmem:[#allocation4 + $0x98] sm:$0xff] %vm3239_vm4, %v6297_v55 }
 0x51c   :  { %4188 = vrot.lane.b32.xlu1 %v12209_v62, %s9507_s20 }
 0x51d   :  { %v5204_v17 = vpop.permute.xlu0 %5203 }
 0x51e   :  { %5298 = vst.msk [vmem:[#allocation4 + $0x80] sm:$0xff] %vm5289_vm14, %v5204_v17  ;;  %v4591_v50 = vpop.permute.xlu1 %4590 }
 0x51f   :  { %6710 = vrot.lane.b32.xlu0 %v12333_v30, %s9508_s1  ;;  %4684 = vst.msk [vmem:[#allocation4 + $0x90] sm:$0xff] %vm4674_vm11, %v4591_v50 }
 0x520   :  { %6100 = vrot.lane.b32.xlu1 %v12225_v47, %s9510_s22 }
 0x521   :  { %v7111_v39 = vpop.permute.xlu0 %7110 }
 0x522   :  { %7204 = vst.msk [vmem:[#allocation4 + $0x88] sm:$0xff] %vm4059_vm8, %v7111_v39  ;;  %v6501_v14 = vpop.permute.xlu1 %6500 }
 0x523   :  { %5006 = vrot.lane.b32.xlu0 %v11958_v25, %s9515_s27  ;;  %6593 = vst.msk [vmem:[#allocation4 + $0x98] sm:$0xff] %vm3444_vm5, %v6501_v14 }
 0x524   :  { %4393 = vrot.lane.b32.xlu1 %v12233_v3, %s9513_s25 }
 0x525   :  { %v5409_v62 = vpop.permute.xlu0 %5408 }
 0x526   :  { %5503 = vst.msk [vmem:[#allocation4 + $0x80] sm:$0xff] %vm5494_vm15, %v5409_v62  ;;  %v4796_v40 = vpop.permute.xlu1 %4795  ;;  %v14295_v62 = vld [vmem:[#allocation45_spill] sm:$0xff] }
 0x527   :  { %6914 = vrot.lane.b32.xlu0 %v12347_v11, %s9509_s21  ;;  %4889 = vst.msk [vmem:[#allocation4 + $0x90] sm:$0xff] %vm4879_vm12, %v4796_v40  ;;  %v12425_v40 = vld [vmem:[#allocation3 + $0xe0] sm:$0xff] }
 0x528   :  { %6304 = vrot.lane.b32.xlu1 %v12240_v20, %s9511_s23 }
 0x529   :  { %v7315_v25 = vpop.permute.xlu0 %7314 }
 0x52a   :  { %7408 = vst.msk [vmem:[#allocation4 + $0x88] sm:$0xff] %vm4264_vm9, %v7315_v25  ;;  %v5891_v37 = vpop.permute.xlu1 %5890 }
 0x52b   :  { %5211 = vrot.lane.b32.xlu0 %v10603_v59, %s9516_s28  ;;  %5982 = vst.msk [vmem:[#allocation4 + $0xa8] sm:$0xff] %vm2829_vm2, %v5891_v37  ;;  %v12369_v59 = vld [vmem:[#allocation3 + $0xd8] sm:$0xff] }
 0x52c   :  { %4598 = vrot.lane.b32.xlu1 %v11982_v35, %s9512_s24 }
 0x52d   :  { %v5614_v3 = vpop.permute.xlu0 %5613 }
 0x52e   :  { %5708 = vst.msk [vmem:[#allocation4 + $0x80] sm:$0xff] %vm5699_vm0, %v5614_v3  ;;  %v4183_v51 = vpop.permute.xlu1 %4182 }
 0x52f   :  { %7118 = vrot.lane.b32.xlu0 %v14294_v60, %s9504_s17  ;;  %4275 = vst.msk [vmem:[#allocation4 + $0xa0] sm:$0xff] %vm4264_vm9, %v4183_v51 }
 0x530   :  { %6508 = vrot.lane.b32.xlu1 %v12369_v59, %s9505_s18 }
 0x531   :  { %v7605_v35 = vpop.f32.mrb[36].mxu1  ;;  %v6705_v61 = vpop.permute.xlu0 %6704  ;;  %v7451_v56 = vld [vmem:[#allocation4 + $0x88] sm:$0xff] }
 0x532   :  { %v7606_v36 = vadd.f32 %v12367_v63, %v7605_v35  ;;  %6797 = vst.msk [vmem:[#allocation4 + $0x98] sm:$0xff] %vm3649_vm6, %v6705_v61  ;;  %v7607_v1 = vpop.f32.mrb[37].mxu1  ;;  %7643 = vmatprep.mubr.f32.mxu1 %v7451_v56  ;;  %v6095_v52 = vpop.permute.xlu1 %6094  ;;  %v12448_v61 = vld [vmem:[#allocation3 + $0xe2] sm:$0xff] }
 0x533   :  { %5416 = vrot.lane.b32.xlu0 %v5336_v54, %s9517_s29  ;;  %6186 = vst.msk [vmem:[#allocation4 + $0xa8] sm:$0xff] %vm3034_vm3, %v6095_v52  ;;  %v12461_v54 = vld [vmem:[#allocation3 + $0xe4] sm:$0xff] }
 0x534   :  { %v7774_v7 = vmax.f32 %v7606_v36, 0.0  ;;  %4803 = vrot.lane.b32.xlu1 %v12014_v27, %s9514_s26 }
 0x535   :  { %v7610_v6 = vpop.f32.mrb[38].mxu1  ;;  %v5001_v26 = vpop.permute.xlu0 %5000  ;;  %v7450_v24 = vld [vmem:[#allocation4 + $0x80] sm:$0xff] }
 0x536   :  { %7808 = vst [vmem:[#allocation5] sm:$0xff] %v7774_v7  ;;  %v7611_v45 = vadd.f32 %v12367_v63, %v7610_v6  ;;  %5094 = vst.msk [vmem:[#allocation4 + $0x90] sm:$0xff] %vm5084_vm13, %v5001_v26  ;;  %v7612_v48 = vpop.f32.mrb[39].mxu1  ;;  %7644 = vmatmul.mubr.f32.gmra.mrb[52].mxu1 %v7450_v24  ;;  %v4388_v18 = vpop.permute.xlu1 %4387 }
 0x537   :  { %7322 = vrot.lane.b32.xlu0 %v12369_v59, %s9507_s20  ;;  %4480 = vst.msk [vmem:[#allocation4 + $0xa0] sm:$0xff] %vm4469_vm10, %v4388_v18 }
 0x538   :  { %v7775_v21 = vmax.f32 %v7611_v45, 0.0  ;;  %5898 = vrot.lane.b32.xlu1 %v12256_v23, %s9506_s19 }
 0x539   :  { %v6909_v27 = vpop.permute.xlu0 %6908 }
 0x53a   :  { %7809 = vst [vmem:[#allocation5 + $0x8] sm:$0xff] %v7775_v21  ;;  %7001 = vst.msk [vmem:[#allocation4 + $0x98] sm:$0xff] %vm3854_vm7, %v6909_v27  ;;  %v6299_v41 = vpop.permute.xlu1 %6298  ;;  %v14296_v21 = vld [vmem:[#allocation20_spill] sm:$0xff]  ;;  %v12479_v27 = vld [vmem:[#allocation3 + $0xe8] sm:$0xff] }
 0x53b   :  { %5621 = vrot.lane.b32.xlu0 %v12132_v28, %s9519_s13  ;;  %6390 = vst.msk [vmem:[#allocation4 + $0xa8] sm:$0xff] %vm3239_vm4, %v6299_v41 }
 0x53c   :  { %4190 = vrot.lane.b32.xlu1 %v12263_v42, %s9507_s20 }
 0x53d   :  { %v5206_v9 = vpop.permute.xlu0 %5205 }
 0x53e   :  { %5299 = vst.msk [vmem:[#allocation4 + $0x90] sm:$0xff] %vm5289_vm14, %v5206_v9  ;;  %v4593_v31 = vpop.permute.xlu1 %4592  ;;  %v7846_v9 = vld [vmem:[#allocation5] sm:$0x3] }
 0x53f   :  { %6712 = vrot.lane.b32.xlu0 %v12393_v43, %s9508_s1  ;;  %4685 = vst.msk [vmem:[#allocation4 + $0xa0] sm:$0xff] %vm4674_vm11, %v4593_v31  ;;  %v7847_v31 = vld [vmem:[#allocation5 + $0x2] sm:$0x3] }
 0x540   :  { %6102 = vrot.lane.b32.xlu1 %v12279_v44, %s9510_s22 }
 0x541   :  { %v7113_v23 = vpop.permute.xlu0 %7112 }
 0x542   :  { %7205 = vst.msk [vmem:[#allocation4 + $0x98] sm:$0xff] %vm4059_vm8, %v7113_v23  ;;  %v6503_v8 = vpop.permute.xlu1 %6502 }
 0x543   :  { %5008 = vrot.lane.b32.xlu0 %v12027_v49, %s9515_s27  ;;  %6594 = vst.msk [vmem:[#allocation4 + $0xa8] sm:$0xff] %vm3444_vm5, %v6503_v8  ;;  %v7848_v8 = vmax.f32 %v7846_v9, %v7847_v31  ;;  %v12566_v9 = vld [vmem:[#allocation3 + $0xf4] sm:$0xff] }
 0x544   :  { %4395 = vrot.lane.b32.xlu1 %v12287_v13, %s9513_s25 }
 0x545   :  { %v5411_v42 = vpop.permute.xlu0 %5410 }
 0x546   :  { %5504 = vst.msk [vmem:[#allocation4 + $0x90] sm:$0xff] %vm5494_vm15, %v5411_v42  ;;  %v4798_v53 = vpop.permute.xlu1 %4797 }
 0x547   :  { %6916 = vrot.lane.b32.xlu0 %v12407_v22, %s9509_s21  ;;  %4890 = vst.msk [vmem:[#allocation4 + $0xa0] sm:$0xff] %vm4879_vm12, %v4798_v53 }
 0x548   :  { %6306 = vrot.lane.b32.xlu1 %v12294_v34, %s9511_s23 }
 0x549   :  { %v7317_v49 = vpop.permute.xlu0 %7316  ;;  %v7615_v32 = vpop.f32.mrb[40].mxu1 }
 0x54a   :  { %7409 = vst.msk [vmem:[#allocation4 + $0x98] sm:$0xff] %vm4264_vm9, %v7317_v49  ;;  %v7616_v13 = vadd.f32 %v12367_v63, %v7615_v32  ;;  %v7617_v55 = vpop.f32.mrb[41].mxu1  ;;  %v5893_v17 = vpop.permute.xlu1 %5892 }
 0x54b   :  { %5213 = vrot.lane.b32.xlu0 %v10655_v33, %s9516_s28  ;;  %5983 = vst.msk [vmem:[#allocation4 + $0xb8] sm:$0xff] %vm2829_vm2, %v5893_v17 }
 0x54c   :  { %v7776_v50 = vmax.f32 %v7616_v13, 0.0  ;;  %4600 = vrot.lane.b32.xlu1 %v12042_v29, %s9512_s24 }
 0x54d   :  { %v5616_v39 = vpop.permute.xlu0 %5615 }
 0x54e   :  { %7810 = vst [vmem:[#allocation5 + $0x10] sm:$0xff] %v7776_v50  ;;  %5709 = vst.msk [vmem:[#allocation4 + $0x90] sm:$0xff] %vm5699_vm0, %v5616_v39  ;;  %v4185_v14 = vpop.permute.xlu1 %4184  ;;  %v4110_v39 = vld [vmem:[#allocation3 + $0xa2] sm:$0xff] }
 0x54f   :  { %7120 = vrot.lane.b32.xlu0 %v14295_v62, %s9504_s17  ;;  %4276 = vst.msk [vmem:[#allocation4 + $0xb0] sm:$0xff] %vm4264_vm9, %v4185_v14  ;;  %v12501_v62 = vld [vmem:[#allocation3 + $0xea] sm:$0xff] }
 0x550   :  { %6510 = vrot.lane.b32.xlu1 %v12425_v40, %s9505_s18 }
 0x551   :  { %v6707_v33 = vpop.permute.xlu0 %6706  ;;  %v7453_v25 = vld [vmem:[#allocation4 + $0x98] sm:$0xff] }
 0x552   :  { %6798 = vst.msk [vmem:[#allocation4 + $0xa8] sm:$0xff] %vm3649_vm6, %v6707_v33  ;;  %7648 = vmatprep.mubr.f32.mxu1 %v7453_v25  ;;  %v6097_v37 = vpop.permute.xlu1 %6096  ;;  %v4315_v25 = vld [vmem:[#allocation3 + $0xa4] sm:$0xff] }
 0x553   :  { %5418 = vrot.lane.b32.xlu0 %v12042_v29, %s9517_s29  ;;  %6187 = vst.msk [vmem:[#allocation4 + $0xb8] sm:$0xff] %vm3034_vm3, %v6097_v37 }
 0x554   :  { %4805 = vrot.lane.b32.xlu1 %v12065_v10, %s9514_s26 }
 0x555   :  { %v5003_v3 = vpop.permute.xlu0 %5002  ;;  %v7452_v51 = vld [vmem:[#allocation4 + $0x90] sm:$0xff] }
 0x556   :  { %5095 = vst.msk [vmem:[#allocation4 + $0xa0] sm:$0xff] %vm5084_vm13, %v5003_v3  ;;  %7649 = vmatmul.mubr.f32.gmra.mrb[54].mxu1 %v7452_v51  ;;  %v4390_v60 = vpop.permute.xlu1 %4389  ;;  %v12514_v3 = vld [vmem:[#allocation3 + $0xec] sm:$0xff] }
 0x557   :  { %7324 = vrot.lane.b32.xlu0 %v12425_v40, %s9507_s20  ;;  %4481 = vst.msk [vmem:[#allocation4 + $0xb0] sm:$0xff] %vm4469_vm10, %v4390_v60 }
 0x558   :  { %5900 = vrot.lane.b32.xlu1 %v12309_v4, %s9506_s19 }
 0x559   :  { %v6911_v29 = vpop.permute.xlu0 %6910 }
 0x55a   :  { %7002 = vst.msk [vmem:[#allocation4 + $0xa8] sm:$0xff] %vm3854_vm7, %v6911_v29  ;;  %v6301_v35 = vpop.permute.xlu1 %6300 }
 0x55b   :  { %5623 = vrot.lane.b32.xlu0 %v12186_v57, %s9519_s13  ;;  %6391 = vst.msk [vmem:[#allocation4 + $0xb8] sm:$0xff] %vm3239_vm4, %v6301_v35 }
 0x55c   :  { %4192 = vrot.lane.b32.xlu1 %v12316_v46, %s9507_s20  ;;  %v4314_v46 = vld [vmem:[#allocation3 + $0x9c] sm:$0xff] }
 0x55d   :  { %v5208_v10 = vpop.permute.xlu0 %5207 }
 0x55e   :  { %5300 = vst.msk [vmem:[#allocation4 + $0xa0] sm:$0xff] %vm5289_vm14, %v5208_v10  ;;  %v4595_v56 = vpop.permute.xlu1 %4594 }
 0x55f   :  { %6714 = vrot.lane.b32.xlu0 %v12448_v61, %s9508_s1  ;;  %4686 = vst.msk [vmem:[#allocation4 + $0xb0] sm:$0xff] %vm4674_vm11, %v4595_v56 }
 0x560   :  { %6104 = vrot.lane.b32.xlu1 %v12333_v30, %s9510_s22 }
 0x561   :  { %v7115_v4 = vpop.permute.xlu0 %7114 }
 0x562   :  { %7206 = vst.msk [vmem:[#allocation4 + $0xa8] sm:$0xff] %vm4059_vm8, %v7115_v4  ;;  %v6505_v36 = vpop.permute.xlu1 %6504 }
 0x563   :  { %5010 = vrot.lane.b32.xlu0 %v12078_v16, %s9515_s27  ;;  %6595 = vst.msk [vmem:[#allocation4 + $0xb8] sm:$0xff] %vm3444_vm5, %v6505_v36 }
 0x564   :  { %4397 = vrot.lane.b32.xlu1 %v4314_v46, %s9513_s25  ;;  %v14297_v46 = vld [vmem:[#allocation60_spill] sm:$0xff] }
 0x565   :  { %v5413_v1 = vpop.permute.xlu0 %5412 }
 0x566   :  { %5505 = vst.msk [vmem:[#allocation4 + $0xa0] sm:$0xff] %vm5494_vm15, %v5413_v1  ;;  %v4800_v52 = vpop.permute.xlu1 %4799  ;;  %v12532_v1 = vld [vmem:[#allocation3 + $0xf0] sm:$0xff] }
 0x567   :  { %6918 = vrot.lane.b32.xlu0 %v12461_v54, %s9509_s21  ;;  %4891 = vst.msk [vmem:[#allocation4 + $0xb0] sm:$0xff] %vm4879_vm12, %v4800_v52 }
 0x568   :  { %6308 = vrot.lane.b32.xlu1 %v12347_v11, %s9511_s23 }
 0x569   :  { %v7319_v16 = vpop.permute.xlu0 %7318  ;;  %v7620_v7 = vpop.f32.mrb[42].mxu1 }
 0x56a   :  { %7410 = vst.msk [vmem:[#allocation4 + $0xa8] sm:$0xff] %vm4264_vm9, %v7319_v16  ;;  %v7621_v6 = vadd.f32 %v12367_v63, %v7620_v7  ;;  %v7622_v26 = vpop.f32.mrb[43].mxu1  ;;  %v5895_v24 = vpop.permute.xlu1 %5894 }
 0x56b   :  { %5215 = vrot.lane.b32.xlu0 %v10704_v15, %s9516_s28  ;;  %5984 = vst.msk [vmem:[#allocation4 + $0xc8] sm:$0xff] %vm2829_vm2, %v5895_v24 }
 0x56c   :  { %v7777_v45 = vmax.f32 %v7621_v6, 0.0  ;;  %4602 = vrot.lane.b32.xlu1 %v12095_v19, %s9512_s24  ;;  %v5338_v19 = vld [vmem:[#allocation3 + $0xb0] sm:$0xff] }
 0x56d   :  { %v5618_v48 = vpop.permute.xlu0 %5617 }
 0x56e   :  { %7811 = vst [vmem:[#allocation5 + $0x18] sm:$0xff] %v7777_v45  ;;  %5710 = vst.msk [vmem:[#allocation4 + $0xa0] sm:$0xff] %vm5699_vm0, %v5618_v48  ;;  %v4187_v18 = vpop.permute.xlu1 %4186 }
 0x56f   :  { %7122 = vrot.lane.b32.xlu0 %v14296_v21, %s9504_s17  ;;  %4277 = vst.msk [vmem:[#allocation4 + $0xc0] sm:$0xff] %vm4264_vm9, %v4187_v18  ;;  %v12553_v18 = vld [vmem:[#allocation3 + $0xf2] sm:$0xff] }
 0x570   :  { %6512 = vrot.lane.b32.xlu1 %v12479_v27, %s9505_s18 }
 0x571   :  { %v6709_v15 = vpop.permute.xlu0 %6708  ;;  %v7455_v41 = vld [vmem:[#allocation4 + $0xa8] sm:$0xff] }
 0x572   :  { %6799 = vst.msk [vmem:[#allocation4 + $0xb8] sm:$0xff] %vm3649_vm6, %v6709_v15  ;;  %7653 = vmatprep.mubr.f32.mxu1 %v7455_v41  ;;  %v6099_v23 = vpop.permute.xlu1 %6098  ;;  %v4316_v15 = vld [vmem:[#allocation3 + $0xac] sm:$0xff] }
 0x573   :  { %5420 = vrot.lane.b32.xlu0 %v5338_v19, %s9517_s29  ;;  %6188 = vst.msk [vmem:[#allocation4 + $0xc8] sm:$0xff] %vm3034_vm3, %v6099_v23 }
 0x574   :  { %4807 = vrot.lane.b32.xlu1 %v12118_v2, %s9514_s26 }
 0x575   :  { %v5005_v42 = vpop.permute.xlu0 %5004  ;;  %v7454_v53 = vld [vmem:[#allocation4 + $0xa0] sm:$0xff]  ;;  %v7849_v49 = vld [vmem:[#allocation5 + $0x1c] sm:$0x3]  ;;  %v7851_v55 = vld [vmem:[#allocation5 + $0x1e] sm:$0x3] }
 0x576   :  { %5096 = vst.msk [vmem:[#allocation4 + $0xb0] sm:$0xff] %vm5084_vm13, %v5005_v42  ;;  %7654 = vmatmul.mubr.f32.gmra.mrb[56].mxu1 %v7454_v53  ;;  %v4392_v32 = vpop.permute.xlu1 %4391  ;;  %v7850_v13 = vmax.f32 %v7848_v8, %v7849_v49  ;;  %v4521_v53 = vld [vmem:[#allocation3 + $0xc0] sm:$0xff] }
 0x577   :  { %7326 = vrot.lane.b32.xlu0 %v12479_v27, %s9507_s20  ;;  %4482 = vst.msk [vmem:[#allocation4 + $0xc0] sm:$0xff] %vm4469_vm10, %v4392_v32 }
 0x578   :  { %5902 = vrot.lane.b32.xlu1 %v12369_v59, %s9506_s19  ;;  %v7852_v2 = vmax.f32 %v7850_v13, %v7851_v55  ;;  %v14298_v55 = vld [vmem:[#allocation38_spill] sm:$0xff] }
 0x579   :  { %v6913_v17 = vpop.permute.xlu0 %6912 }
 0x57a   :  { %7003 = vst.msk [vmem:[#allocation4 + $0xb8] sm:$0xff] %vm3854_vm7, %v6913_v17  ;;  %v6303_v50 = vpop.permute.xlu1 %6302 }
 0x57b   :  { %7854 = vst.msk [vmem:[#allocation6] sm:$0x3] %vm7853_vm1, %v7852_v2  ;;  %5625 = vrot.lane.b32.xlu0 %v12240_v20, %s9519_s13  ;;  %v12583_v2 = vld [vmem:[#allocation3 + $0xf8] sm:$0xff] }
 0x57c   :  { %6392 = vst.msk [vmem:[#allocation4 + $0xc8] sm:$0xff] %vm3239_vm4, %v6303_v50  ;;  %4194 = vrot.lane.b32.xlu1 %v4110_v39, %s9507_s20 }
 0x57d   :  { %v5210_v14 = vpop.permute.xlu0 %5209 }
 0x57e   :  { %5301 = vst.msk [vmem:[#allocation4 + $0xb0] sm:$0xff] %vm5289_vm14, %v5210_v14  ;;  %v4597_v59 = vpop.permute.xlu1 %4596 }
 0x57f   :  { %6716 = vrot.lane.b32.xlu0 %v12501_v62, %s9508_s1  ;;  %4687 = vst.msk [vmem:[#allocation4 + $0xc0] sm:$0xff] %vm4674_vm11, %v4597_v59 }
 0x580   :  { %6106 = vrot.lane.b32.xlu1 %v12393_v43, %s9510_s22 }
 0x581   :  { %v7117_v20 = vpop.permute.xlu0 %7116 }
 0x582   :  { %7207 = vst.msk [vmem:[#allocation4 + $0xb8] sm:$0xff] %vm4059_vm8, %v7117_v20  ;;  %v6507_v33 = vpop.permute.xlu1 %6506 }
 0x583   :  { %5012 = vrot.lane.b32.xlu0 %v12132_v28, %s9515_s27  ;;  %6596 = vst.msk [vmem:[#allocation4 + $0xc8] sm:$0xff] %vm3444_vm5, %v6507_v33 }
 0x584   :  { %4399 = vrot.lane.b32.xlu1 %v4315_v25, %s9513_s25 }
 0x585   :  { %v5415_v37 = vpop.permute.xlu0 %5414 }
 0x586   :  { %5506 = vst.msk [vmem:[#allocation4 + $0xb0] sm:$0xff] %vm5494_vm15, %v5415_v37  ;;  %v4802_v51 = vpop.permute.xlu1 %4801  ;;  %v12604_v37 = vld [vmem:[#allocation3 + $0xfa] sm:$0xff] }
 0x587   :  { %6920 = vrot.lane.b32.xlu0 %v12514_v3, %s9509_s21  ;;  %4892 = vst.msk [vmem:[#allocation4 + $0xc0] sm:$0xff] %vm4879_vm12, %v4802_v51 }
 0x588   :  { %6310 = vrot.lane.b32.xlu1 %v12407_v22, %s9511_s23 }
 0x589   :  { %v7321_v28 = vpop.permute.xlu0 %7320  ;;  %v7625_v60 = vpop.f32.mrb[44].mxu1 }
 0x58a   :  { %7411 = vst.msk [vmem:[#allocation4 + $0xb8] sm:$0xff] %vm4264_vm9, %v7321_v28  ;;  %v7626_v29 = vadd.f32 %v12367_v63, %v7625_v60  ;;  %v7627_v35 = vpop.f32.mrb[45].mxu1  ;;  %v5897_v10 = vpop.permute.xlu1 %5896  ;;  %v4317_v60 = vld [vmem:[#allocation3 + $0xb4] sm:$0xff] }
 0x58b   :  { %5217 = vrot.lane.b32.xlu0 %v10718_v5, %s9516_s28  ;;  %5985 = vst.msk [vmem:[#allocation4 + $0xd8] sm:$0xff] %vm2829_vm2, %v5897_v10  ;;  %v12619_v35 = vld [vmem:[#allocation3 + $0xfc] sm:$0xff] }
 0x58c   :  { %v7778_v56 = vmax.f32 %v7626_v29, 0.0  ;;  %4604 = vrot.lane.b32.xlu1 %v12149_v58, %s9512_s24  ;;  %v5339_v58 = vld [vmem:[#allocation3 + $0xb8] sm:$0xff] }
 0x58d   :  { %v5620_v4 = vpop.permute.xlu0 %5619 }
 0x58e   :  { %7812 = vst [vmem:[#allocation5 + $0x20] sm:$0xff] %v7778_v56  ;;  %5711 = vst.msk [vmem:[#allocation4 + $0xb0] sm:$0xff] %vm5699_vm0, %v5620_v4  ;;  %v4189_v36 = vpop.permute.xlu1 %4188 }
 0x58f   :  { %7124 = vrot.lane.b32.xlu0 %v14297_v46, %s9504_s17  ;;  %4278 = vst.msk [vmem:[#allocation4 + $0xd0] sm:$0xff] %vm4264_vm9, %v4189_v36  ;;  %v5136_v46 = vld [vmem:[#allocation3 + $0xc6] sm:$0xff] }
 0x590   :  { %6514 = vrot.lane.b32.xlu1 %v12532_v1, %s9505_s18 }
 0x591   :  { %v6711_v5 = vpop.permute.xlu0 %6710  ;;  %v7457_v52 = vld [vmem:[#allocation4 + $0xb8] sm:$0xff] }
 0x592   :  { %6800 = vst.msk [vmem:[#allocation4 + $0xc8] sm:$0xff] %vm3649_vm6, %v6711_v5  ;;  %7658 = vmatprep.mubr.f32.mxu1 %v7457_v52  ;;  %v6101_v16 = vpop.permute.xlu1 %6100  ;;  %v4522_v52 = vld [vmem:[#allocation3 + $0xc8] sm:$0xff] }
 0x593   :  { %5422 = vrot.lane.b32.xlu0 %v5339_v58, %s9517_s29  ;;  %6189 = vst.msk [vmem:[#allocation4 + $0xd8] sm:$0xff] %vm3034_vm3, %v6101_v16 }
 0x594   :  { %4809 = vrot.lane.b32.xlu1 %v12172_v38, %s9514_s26  ;;  %v4111_v38 = vld [vmem:[#allocation3 + $0xaa] sm:$0xff] }
 0x595   :  { %v5007_v7 = vpop.permute.xlu0 %5006  ;;  %v7456_v6 = vld [vmem:[#allocation4 + $0xb0] sm:$0xff] }
 0x596   :  { %5097 = vst.msk [vmem:[#allocation4 + $0xc0] sm:$0xff] %vm5084_vm13, %v5007_v7  ;;  %7659 = vmatmul.mubr.f32.gmra.mrb[58].mxu1 %v7456_v6  ;;  %v4394_v26 = vpop.permute.xlu1 %4393  ;;  %v14299_v7 = vld [vmem:[#allocation63_spill] sm:$0xff]  ;;  %v12634_v6 = vld [vmem:[#allocation3 + $0x100] sm:$0xff] }
 0x597   :  { %7328 = vrot.lane.b32.xlu0 %v12532_v1, %s9507_s20  ;;  %4483 = vst.msk [vmem:[#allocation4 + $0xd0] sm:$0xff] %vm4469_vm10, %v4394_v26 }
 0x598   :  { %5904 = vrot.lane.b32.xlu1 %v12425_v40, %s9506_s19 }
 0x599   :  { %v6915_v24 = vpop.permute.xlu0 %6914 }
 0x59a   :  { %7004 = vst.msk [vmem:[#allocation4 + $0xc8] sm:$0xff] %vm3854_vm7, %v6915_v24  ;;  %v6305_v45 = vpop.permute.xlu1 %6304 }
 0x59b   :  { %5627 = vrot.lane.b32.xlu0 %v12294_v34, %s9519_s13  ;;  %6393 = vst.msk [vmem:[#allocation4 + $0xd8] sm:$0xff] %vm3239_vm4, %v6305_v45 }
 0x59c   :  { %4196 = vrot.lane.b32.xlu1 %v4111_v38, %s9507_s20 }
 0x59d   :  { %v5212_v48 = vpop.permute.xlu0 %5211 }
 0x59e   :  { %5302 = vst.msk [vmem:[#allocation4 + $0xc0] sm:$0xff] %vm5289_vm14, %v5212_v48  ;;  %v4599_v21 = vpop.permute.xlu1 %4598 }
 0x59f   :  { %6718 = vrot.lane.b32.xlu0 %v12553_v18, %s9508_s1  ;;  %4688 = vst.msk [vmem:[#allocation4 + $0xd0] sm:$0xff] %vm4674_vm11, %v4599_v21 }
 0x5a0   :  { %6108 = vrot.lane.b32.xlu1 %v12448_v61, %s9510_s22 }
 0x5a1   :  { %v7119_v34 = vpop.permute.xlu0 %7118 }
 0x5a2   :  { %7208 = vst.msk [vmem:[#allocation4 + $0xc8] sm:$0xff] %vm4059_vm8, %v7119_v34  ;;  %v6509_v40 = vpop.permute.xlu1 %6508 }
 0x5a3   :  { %5014 = vrot.lane.b32.xlu0 %v12186_v57, %s9515_s27  ;;  %6597 = vst.msk [vmem:[#allocation4 + $0xd8] sm:$0xff] %vm3444_vm5, %v6509_v40 }
 0x5a4   :  { %4401 = vrot.lane.b32.xlu1 %v4316_v15, %s9513_s25 }
 0x5a5   :  { %v5417_v41 = vpop.permute.xlu0 %5416 }
 0x5a6   :  { %5507 = vst.msk [vmem:[#allocation4 + $0xc0] sm:$0xff] %vm5494_vm15, %v5417_v41  ;;  %v4804_v31 = vpop.permute.xlu1 %4803  ;;  %v12655_v41 = vld [vmem:[#allocation3 + $0x102] sm:$0xff] }
 0x5a7   :  { %6922 = vrot.lane.b32.xlu0 %v12566_v9, %s9509_s21  ;;  %4893 = vst.msk [vmem:[#allocation4 + $0xd0] sm:$0xff] %vm4879_vm12, %v4804_v31 }
 0x5a8   :  { %6312 = vrot.lane.b32.xlu1 %v12461_v54, %s9511_s23 }
 0x5a9   :  { %v7323_v57 = vpop.permute.xlu0 %7322  ;;  %v7630_v19 = vpop.f32.mrb[46].mxu1 }
 0x5aa   :  { %7412 = vst.msk [vmem:[#allocation4 + $0xc8] sm:$0xff] %vm4264_vm9, %v7323_v57  ;;  %v7631_v23 = vadd.f32 %v12367_v63, %v7630_v19  ;;  %v7632_v8 = vpop.f32.mrb[47].mxu1  ;;  %v5899_v42 = vpop.permute.xlu1 %5898  ;;  %v4318_v19 = vld [vmem:[#allocation3 + $0xbc] sm:$0xff] }
 0x5ab   :  { %5219 = vrot.lane.b32.xlu0 %v10748_v12, %s9516_s28  ;;  %5986 = vst.msk [vmem:[#allocation4 + $0xe8] sm:$0xff] %vm2829_vm2, %v5899_v42  ;;  %v12670_v8 = vld [vmem:[#allocation3 + $0x104] sm:$0xff] }
 0x5ac   :  { %v7779_v49 = vmax.f32 %v7631_v23, 0.0  ;;  %4606 = vrot.lane.b32.xlu1 %v4521_v53, %s9512_s24 }
 0x5ad   :  { %v5622_v32 = vpop.permute.xlu0 %5621 }
 0x5ae   :  { %7813 = vst [vmem:[#allocation5 + $0x28] sm:$0xff] %v7779_v49  ;;  %5712 = vst.msk [vmem:[#allocation4 + $0xc0] sm:$0xff] %vm5699_vm0, %v5622_v32  ;;  %v4191_v13 = vpop.permute.xlu1 %4190 }
 0x5af   :  { %7126 = vrot.lane.b32.xlu0 %v14298_v55, %s9504_s17  ;;  %4279 = vst.msk [vmem:[#allocation4 + $0xe0] sm:$0xff] %vm4264_vm9, %v4191_v13  ;;  %v5137_v55 = vld [vmem:[#allocation3 + $0xce] sm:$0xff] }
 0x5b0   :  { %6516 = vrot.lane.b32.xlu1 %v12583_v2, %s9505_s18 }
 0x5b1   :  { %v6713_v12 = vpop.permute.xlu0 %6712  ;;  %v7459_v17 = vld [vmem:[#allocation4 + $0xc8] sm:$0xff] }
 0x5b2   :  { %6801 = vst.msk [vmem:[#allocation4 + $0xd8] sm:$0xff] %vm3649_vm6, %v6713_v12  ;;  %7663 = vmatprep.mubr.f32.mxu1 %v7459_v17  ;;  %v6103_v50 = vpop.permute.xlu1 %6102  ;;  %v4523_v17 = vld [vmem:[#allocation3 + $0xd0] sm:$0xff] }
 0x5b3   :  { %5424 = vrot.lane.b32.xlu0 %v4521_v53, %s9517_s29  ;;  %6190 = vst.msk [vmem:[#allocation4 + $0xe8] sm:$0xff] %vm3034_vm3, %v6103_v50 }
 0x5b4   :  { %4811 = vrot.lane.b32.xlu1 %v12225_v47, %s9514_s26  ;;  %v4112_v47 = vld [vmem:[#allocation3 + $0xb2] sm:$0xff] }
 0x5b5   :  { %v5009_v39 = vpop.permute.xlu0 %5008  ;;  %v7458_v14 = vld [vmem:[#allocation4 + $0xc0] sm:$0xff] }
 0x5b6   :  { %5098 = vst.msk [vmem:[#allocation4 + $0xd0] sm:$0xff] %vm5084_vm13, %v5009_v39  ;;  %7664 = vmatmul.mubr.f32.gmra.mrb[60].mxu1 %v7458_v14  ;;  %v4396_v59 = vpop.permute.xlu1 %4395 }
 0x5b7   :  { %7330 = vrot.lane.b32.xlu0 %v12583_v2, %s9507_s20  ;;  %4484 = vst.msk [vmem:[#allocation4 + $0xe0] sm:$0xff] %vm4469_vm10, %v4396_v59  ;;  %v14300_v59 = vld [vmem:[#allocation65_spill] sm:$0xff] }
 0x5b8   :  { %5906 = vrot.lane.b32.xlu1 %v12479_v27, %s9506_s19  ;;  %v12612_v27 = vld [vmem:[#allocation3 + $0xc4] sm:$0xff] }
 0x5b9   :  { %v6917_v20 = vpop.permute.xlu0 %6916 }
 0x5ba   :  { %7005 = vst.msk [vmem:[#allocation4 + $0xd8] sm:$0xff] %vm3854_vm7, %v6917_v20  ;;  %v6307_v33 = vpop.permute.xlu1 %6306  ;;  %v12686_v20 = vld [vmem:[#allocation3 + $0x108] sm:$0xff] }
 0x5bb   :  { %5629 = vrot.lane.b32.xlu0 %v12347_v11, %s9519_s13  ;;  %6394 = vst.msk [vmem:[#allocation4 + $0xe8] sm:$0xff] %vm3239_vm4, %v6307_v33 }
 0x5bc   :  { %4198 = vrot.lane.b32.xlu1 %v4112_v47, %s9507_s20 }
 0x5bd   :  { %v5214_v25 = vpop.permute.xlu0 %5213 }
 0x5be   :  { %5303 = vst.msk [vmem:[#allocation4 + $0xd0] sm:$0xff] %vm5289_vm14, %v5214_v25  ;;  %v4601_v51 = vpop.permute.xlu1 %4600 }
 0x5bf   :  { %6720 = vrot.lane.b32.xlu0 %v12604_v37, %s9508_s1  ;;  %4689 = vst.msk [vmem:[#allocation4 + $0xe0] sm:$0xff] %vm4674_vm11, %v4601_v51 }
 0x5c0   :  { %6110 = vrot.lane.b32.xlu1 %v12501_v62, %s9510_s22 }
 0x5c1   :  { %v7121_v11 = vpop.permute.xlu0 %7120 }
 0x5c2   :  { %7209 = vst.msk [vmem:[#allocation4 + $0xd8] sm:$0xff] %vm4059_vm8, %v7121_v11  ;;  %v6511_v28 = vpop.permute.xlu1 %6510 }
 0x5c3   :  { %5016 = vrot.lane.b32.xlu0 %v12612_v27, %s9515_s27  ;;  %6598 = vst.msk [vmem:[#allocation4 + $0xe8] sm:$0xff] %vm3444_vm5, %v6511_v28 }
 0x5c4   :  { %4403 = vrot.lane.b32.xlu1 %v4317_v60, %s9513_s25 }
 0x5c5   :  { %v5419_v29 = vpop.permute.xlu0 %5418 }
 0x5c6   :  { %5508 = vst.msk [vmem:[#allocation4 + $0xd0] sm:$0xff] %vm5494_vm15, %v5419_v29  ;;  %v4806_v10 = vpop.permute.xlu1 %4805 }
 0x5c7   :  { %6924 = vrot.lane.b32.xlu0 %v12619_v35, %s9509_s21  ;;  %4894 = vst.msk [vmem:[#allocation4 + $0xe0] sm:$0xff] %vm4879_vm12, %v4806_v10 }
 0x5c8   :  { %6314 = vrot.lane.b32.xlu1 %v12514_v3, %s9511_s23 }
 0x5c9   :  { %v7325_v56 = vpop.permute.xlu0 %7324  ;;  %v7635_v4 = vpop.f32.mrb[48].mxu1 }
 0x5ca   :  { %7413 = vst.msk [vmem:[#allocation4 + $0xd8] sm:$0xff] %vm4264_vm9, %v7325_v56  ;;  %v7637_v36 = vpop.f32.mrb[49].mxu1  ;;  %v5901_v5 = vpop.permute.xlu1 %5900  ;;  %v12707_v56 = vld [vmem:[#allocation3 + $0x10a] sm:$0xff] }
 0x5cb   :  { %5221 = vrot.lane.b32.xlu0 %v5136_v46, %s9516_s28  ;;  %5987 = vst.msk [vmem:[#allocation4 + $0xf8] sm:$0xff] %vm2829_vm2, %v5901_v5  ;;  %v12723_v5 = vld [vmem:[#allocation3 + $0x10c] sm:$0xff] }
 0x5cc   :  { %4608 = vrot.lane.b32.xlu1 %v4522_v52, %s9512_s24 }
 0x5cd   :  { %v5624_v58 = vpop.permute.xlu0 %5623 }
 0x5ce   :  { %5713 = vst.msk [vmem:[#allocation4 + $0xd0] sm:$0xff] %vm5699_vm0, %v5624_v58  ;;  %v4193_v16 = vpop.permute.xlu1 %4192 }
 0x5cf   :  { %7128 = vrot.lane.b32.xlu0 %v14299_v7, %s9504_s17  ;;  %4280 = vst.msk [vmem:[#allocation4 + $0xf0] sm:$0xff] %vm4264_vm9, %v4193_v16 }
 0x5d0   :  { %6518 = vrot.lane.b32.xlu1 %v12634_v6, %s9505_s18 }
 0x5d1   :  { %v6715_v26 = vpop.permute.xlu0 %6714  ;;  %v7461_v24 = vld [vmem:[#allocation4 + $0xd8] sm:$0xff] }
 0x5d2   :  { %6802 = vst.msk [vmem:[#allocation4 + $0xe8] sm:$0xff] %vm3649_vm6, %v6715_v26  ;;  %7668 = vmatprep.mubr.f32.mxu1 %v7461_v24  ;;  %v6105_v45 = vpop.permute.xlu1 %6104  ;;  %v5138_v26 = vld [vmem:[#allocation3 + $0xd6] sm:$0xff] }
 0x5d3   :  { %5426 = vrot.lane.b32.xlu0 %v4522_v52, %s9517_s29  ;;  %6191 = vst.msk [vmem:[#allocation4 + $0xf8] sm:$0xff] %vm3034_vm3, %v6105_v45  ;;  %v4524_v45 = vld [vmem:[#allocation3 + $0xd8] sm:$0xff] }
 0x5d4   :  { %4813 = vrot.lane.b32.xlu1 %v12279_v44, %s9514_s26  ;;  %v4113_v44 = vld [vmem:[#allocation3 + $0xba] sm:$0xff] }
 0x5d5   :  { %v5011_v38 = vpop.permute.xlu0 %5010  ;;  %v7460_v48 = vld [vmem:[#allocation4 + $0xd0] sm:$0xff] }
 0x5d6   :  { %5099 = vst.msk [vmem:[#allocation4 + $0xe0] sm:$0xff] %vm5084_vm13, %v5011_v38  ;;  %7669 = vmatmul.mubr.f32.gmra.mrb[62].mxu1 %v7460_v48  ;;  %v4398_v21 = vpop.permute.xlu1 %4397 }
 0x5d7   :  { %7332 = vrot.lane.b32.xlu0 %v12634_v6, %s9507_s20  ;;  %4485 = vst.msk [vmem:[#allocation4 + $0xf0] sm:$0xff] %vm4469_vm10, %v4398_v21 }
 0x5d8   :  { %5908 = vrot.lane.b32.xlu1 %v12532_v1, %s9506_s19  ;;  %v12663_v1 = vld [vmem:[#allocation3 + $0xcc] sm:$0xff] }
 0x5d9   :  { %v6919_v34 = vpop.permute.xlu0 %6918 }
 0x5da   :  { %7006 = vst.msk [vmem:[#allocation4 + $0xe8] sm:$0xff] %vm3854_vm7, %v6919_v34  ;;  %v6309_v40 = vpop.permute.xlu1 %6308  ;;  %v14301_v34 = vld [vmem:[#allocation47_spill] sm:$0xff] }
 0x5db   :  { %5631 = vrot.lane.b32.xlu0 %v12407_v22, %s9519_s13  ;;  %6395 = vst.msk [vmem:[#allocation4 + $0xf8] sm:$0xff] %vm3239_vm4, %v6309_v40 }
 0x5dc   :  { %4200 = vrot.lane.b32.xlu1 %v4113_v44, %s9507_s20 }
 0x5dd   :  { %v5216_v15 = vpop.permute.xlu0 %5215 }
 0x5de   :  { %5304 = vst.msk [vmem:[#allocation4 + $0xe0] sm:$0xff] %vm5289_vm14, %v5216_v15  ;;  %v4603_v31 = vpop.permute.xlu1 %4602 }
 0x5df   :  { %6722 = vrot.lane.b32.xlu0 %v12655_v41, %s9508_s1  ;;  %4690 = vst.msk [vmem:[#allocation4 + $0xf0] sm:$0xff] %vm4674_vm11, %v4603_v31 }
 0x5e0   :  { %6112 = vrot.lane.b32.xlu1 %v12553_v18, %s9510_s22 }
 0x5e1   :  { %v7123_v22 = vpop.permute.xlu0 %7122 }
 0x5e2   :  { %7210 = vst.msk [vmem:[#allocation4 + $0xe8] sm:$0xff] %vm4059_vm8, %v7123_v22  ;;  %v6513_v57 = vpop.permute.xlu1 %6512 }
 0x5e3   :  { %5018 = vrot.lane.b32.xlu0 %v12663_v1, %s9515_s27  ;;  %6599 = vst.msk [vmem:[#allocation4 + $0xf8] sm:$0xff] %vm3444_vm5, %v6513_v57 }
 0x5e4   :  { %4405 = vrot.lane.b32.xlu1 %v4318_v19, %s9513_s25 }
 0x5e5   :  { %v5421_v23 = vpop.permute.xlu0 %5420 }
 0x5e6   :  { %5509 = vst.msk [vmem:[#allocation4 + $0xe0] sm:$0xff] %vm5494_vm15, %v5421_v23  ;;  %v4808_v42 = vpop.permute.xlu1 %4807 }
 0x5e7   :  { %6926 = vrot.lane.b32.xlu0 %v12670_v8, %s9509_s21  ;;  %4895 = vst.msk [vmem:[#allocation4 + $0xf0] sm:$0xff] %vm4879_vm12, %v4808_v42 }
 0x5e8   :  { %6316 = vrot.lane.b32.xlu1 %v12566_v9, %s9511_s23 }
 0x5e9   :  { %v7327_v53 = vpop.permute.xlu0 %7326  ;;  %v7640_v49 = vpop.f32.mrb[50].mxu1 }
 0x5ea   :  { %7414 = vst.msk [vmem:[#allocation4 + $0xe8] sm:$0xff] %vm4264_vm9, %v7327_v53  ;;  %v7641_v32 = vadd.f32 %v12367_v63, %v7640_v49  ;;  %v7642_v13 = vpop.f32.mrb[51].mxu1  ;;  %v5903_v12 = vpop.permute.xlu1 %5902  ;;  %v12760_v53 = vld [vmem:[#allocation3 + $0x112] sm:$0xff] }
 0x5eb   :  { %5223 = vrot.lane.b32.xlu0 %v5137_v55, %s9516_s28  ;;  %5988 = vst.msk [vmem:[#allocation4 + $0x108] sm:$0xff] %vm2829_vm2, %v5903_v12  ;;  %v12776_v55 = vld [vmem:[#allocation3 + $0x114] sm:$0xff] }
 0x5ec   :  { %v7781_v50 = vmax.f32 %v7641_v32, 0.0  ;;  %4610 = vrot.lane.b32.xlu1 %v4523_v17, %s9512_s24 }
 0x5ed   :  { %v5626_v39 = vpop.permute.xlu0 %5625 }
 0x5ee   :  { %7815 = vst [vmem:[#allocation5 + $0x38] sm:$0xff] %v7781_v50  ;;  %5714 = vst.msk [vmem:[#allocation4 + $0xe0] sm:$0xff] %vm5699_vm0, %v5626_v39  ;;  %v4195_v14 = vpop.permute.xlu1 %4194 }
 0x5ef   :  { %7130 = vrot.lane.b32.xlu0 %v14300_v59, %s9504_s17  ;;  %4281 = vst.msk [vmem:[#allocation4 + $0x100] sm:$0xff] %vm4264_vm9, %v4195_v14  ;;  %v5139_v14 = vld [vmem:[#allocation3 + $0xde] sm:$0xff] }
 0x5f0   :  { %6520 = vrot.lane.b32.xlu1 %v12686_v20, %s9505_s18 }
 0x5f1   :  { %v6717_v33 = vpop.permute.xlu0 %6716  ;;  %v7463_v47 = vld [vmem:[#allocation4 + $0xe8] sm:$0xff] }
 0x5f2   :  { %6803 = vst.msk [vmem:[#allocation4 + $0xf8] sm:$0xff] %vm3649_vm6, %v6717_v33  ;;  %7673 = vmatprep.mubr.f32.mxu1 %v7463_v47  ;;  %v6107_v25 = vpop.permute.xlu1 %6106  ;;  %v4525_v33 = vld [vmem:[#allocation3 + $0xe0] sm:$0xff] }
 0x5f3   :  { %5428 = vrot.lane.b32.xlu0 %v4523_v17, %s9517_s29  ;;  %6192 = vst.msk [vmem:[#allocation4 + $0x108] sm:$0xff] %vm3034_vm3, %v6107_v25 }
 0x5f4   :  { %4815 = vrot.lane.b32.xlu1 %v12333_v30, %s9514_s26  ;;  %v4114_v30 = vld [vmem:[#allocation3 + $0xc2] sm:$0xff] }
 0x5f5   :  { %v5013_v51 = vpop.permute.xlu0 %5012  ;;  %v7462_v11 = vld [vmem:[#allocation4 + $0xe0] sm:$0xff] }
 0x5f6   :  { %5100 = vst.msk [vmem:[#allocation4 + $0xf0] sm:$0xff] %vm5084_vm13, %v5013_v51  ;;  %7674 = vmatmul.mubr.f32.gmra.mrb[64].mxu1 %v7462_v11  ;;  %v4400_v28 = vpop.permute.xlu1 %4399  ;;  %v14302_v11 = vld [vmem:[#allocation48_spill] sm:$0xff] }
 0x5f7   :  { %7334 = vrot.lane.b32.xlu0 %v12686_v20, %s9507_s20  ;;  %4486 = vst.msk [vmem:[#allocation4 + $0x100] sm:$0xff] %vm4469_vm10, %v4400_v28  ;;  %v12797_v28 = vld [vmem:[#allocation3 + $0x118] sm:$0xff] }
 0x5f8   :  { %5910 = vrot.lane.b32.xlu1 %v12583_v2, %s9506_s19  ;;  %v12715_v2 = vld [vmem:[#allocation3 + $0xd4] sm:$0xff] }
 0x5f9   :  { %v6921_v60 = vpop.permute.xlu0 %6920 }
 0x5fa   :  { %7007 = vst.msk [vmem:[#allocation4 + $0xf8] sm:$0xff] %vm3854_vm7, %v6921_v60  ;;  %v6311_v29 = vpop.permute.xlu1 %6310 }
 0x5fb   :  { %5633 = vrot.lane.b32.xlu0 %v12461_v54, %s9519_s13  ;;  %6396 = vst.msk [vmem:[#allocation4 + $0x108] sm:$0xff] %vm3239_vm4, %v6311_v29 }
 0x5fc   :  { %4202 = vrot.lane.b32.xlu1 %v4114_v30, %s9507_s20 }
 0x5fd   :  { %v5218_v10 = vpop.permute.xlu0 %5217 }
 0x5fe   :  { %5305 = vst.msk [vmem:[#allocation4 + $0xf0] sm:$0xff] %vm5289_vm14, %v5218_v10  ;;  %v4605_v4 = vpop.permute.xlu1 %4604 }
 0x5ff   :  { %6724 = vrot.lane.b32.xlu0 %v12707_v56, %s9508_s1  ;;  %4691 = vst.msk [vmem:[#allocation4 + $0x100] sm:$0xff] %vm4674_vm11, %v4605_v4 }
 0x600   :  { %6114 = vrot.lane.b32.xlu1 %v12604_v37, %s9510_s22 }
 0x601   :  { %v7125_v54 = vpop.permute.xlu0 %7124 }
 0x602   :  { %7211 = vst.msk [vmem:[#allocation4 + $0xf8] sm:$0xff] %vm4059_vm8, %v7125_v54  ;;  %v6515_v36 = vpop.permute.xlu1 %6514 }
 0x603   :  { %5020 = vrot.lane.b32.xlu0 %v12715_v2, %s9515_s27  ;;  %6600 = vst.msk [vmem:[#allocation4 + $0x108] sm:$0xff] %vm3444_vm5, %v6515_v36 }
 0x604   :  { %4407 = vrot.lane.b32.xlu1 %v12612_v27, %s9513_s25 }
 0x605   :  { %v5423_v46 = vpop.permute.xlu0 %5422 }
 0x606   :  { %5510 = vst.msk [vmem:[#allocation4 + $0xf0] sm:$0xff] %vm5494_vm15, %v5423_v46  ;;  %v4810_v37 = vpop.permute.xlu1 %4809 }
 0x607   :  { %6928 = vrot.lane.b32.xlu0 %v12723_v5, %s9509_s21  ;;  %4896 = vst.msk [vmem:[#allocation4 + $0x100] sm:$0xff] %vm4879_vm12, %v4810_v37 }
 0x608   :  { %6318 = vrot.lane.b32.xlu1 %v12619_v35, %s9511_s23 }
 0x609   :  { %v7329_v52 = vpop.permute.xlu0 %7328  ;;  %v7645_v58 = vpop.f32.mrb[52].mxu1 }
 0x60a   :  { %7415 = vst.msk [vmem:[#allocation4 + $0xf8] sm:$0xff] %vm4264_vm9, %v7329_v52  ;;  %v7646_v27 = vadd.f32 %v12367_v63, %v7645_v58  ;;  %v7647_v16 = vpop.f32.mrb[53].mxu1  ;;  %v5905_v24 = vpop.permute.xlu1 %5904  ;;  %v12739_v63 = vld [vmem:[#allocation3 + $0x110] sm:$0xff]  ;;  %v12818_v52 = vld [vmem:[#allocation3 + $0x11a] sm:$0xff] }
 0x60b   :  { %5225 = vrot.lane.b32.xlu0 %v5138_v26, %s9516_s28  ;;  %5989 = vst.msk [vmem:[#allocation4 + $0x118] sm:$0xff] %vm2829_vm2, %v5905_v24  ;;  %v12834_v26 = vld [vmem:[#allocation3 + $0x11c] sm:$0xff] }
 0x60c   :  { %v7782_v38 = vmax.f32 %v7646_v27, 0.0  ;;  %4612 = vrot.lane.b32.xlu1 %v4524_v45, %s9512_s24 }
 0x60d   :  { %v5628_v48 = vpop.permute.xlu0 %5627 }
 0x60e   :  { %7816 = vst [vmem:[#allocation5 + $0x40] sm:$0xff] %v7782_v38  ;;  %5715 = vst.msk [vmem:[#allocation4 + $0xf0] sm:$0xff] %vm5699_vm0, %v5628_v48  ;;  %v4197_v21 = vpop.permute.xlu1 %4196  ;;  %v5140_v48 = vld [vmem:[#allocation3 + $0xe6] sm:$0xff] }
 0x60f   :  { %7132 = vrot.lane.b32.xlu0 %v14301_v34, %s9504_s17  ;;  %4282 = vst.msk [vmem:[#allocation4 + $0x110] sm:$0xff] %vm4264_vm9, %v4197_v21  ;;  %v12845_v34 = vld [vmem:[#allocation3 + $0xe8] sm:$0xff] }
 0x610   :  { %6522 = vrot.lane.b32.xlu1 %v12739_v63, %s9505_s18 }
 0x611   :  { %v6719_v40 = vpop.permute.xlu0 %6718  ;;  %v7465_v44 = vld [vmem:[#allocation4 + $0xf8] sm:$0xff] }
 0x612   :  { %6804 = vst.msk [vmem:[#allocation4 + $0x108] sm:$0xff] %vm3649_vm6, %v6719_v40  ;;  %7678 = vmatprep.mubr.f32.mxu1 %v7465_v44  ;;  %v6109_v15 = vpop.permute.xlu1 %6108 }
 0x613   :  { %5430 = vrot.lane.b32.xlu0 %v4524_v45, %s9517_s29  ;;  %6193 = vst.msk [vmem:[#allocation4 + $0x118] sm:$0xff] %vm3034_vm3, %v6109_v15 }
 0x614   :  { %4817 = vrot.lane.b32.xlu1 %v12393_v43, %s9514_s26  ;;  %v4115_v43 = vld [vmem:[#allocation3 + $0xca] sm:$0xff] }
 0x615   :  { %v5015_v31 = vpop.permute.xlu0 %5014  ;;  %v7464_v22 = vld [vmem:[#allocation4 + $0xf0] sm:$0xff] }
 0x616   :  { %5101 = vst.msk [vmem:[#allocation4 + $0x100] sm:$0xff] %vm5084_vm13, %v5015_v31  ;;  %7679 = vmatmul.mubr.f32.gmra.mrb[66].mxu1 %v7464_v22  ;;  %v4402_v57 = vpop.permute.xlu1 %4401  ;;  %v14303_v31 = vld [vmem:[#allocation51_spill] sm:$0xff]  ;;  %v12853_v22 = vld [vmem:[#allocation3 + $0x120] sm:$0xff] }
 0x617   :  { %7336 = vrot.lane.b32.xlu0 %v12739_v63, %s9507_s20  ;;  %4487 = vst.msk [vmem:[#allocation4 + $0x110] sm:$0xff] %vm4469_vm10, %v4402_v57 }
 0x618   :  { %5912 = vrot.lane.b32.xlu1 %v12634_v6, %s9506_s19  ;;  %v12768_v6 = vld [vmem:[#allocation3 + $0xdc] sm:$0xff] }
 0x619   :  { %v6923_v19 = vpop.permute.xlu0 %6922 }
 0x61a   :  { %7008 = vst.msk [vmem:[#allocation4 + $0x108] sm:$0xff] %vm3854_vm7, %v6923_v19  ;;  %v6313_v23 = vpop.permute.xlu1 %6312 }
 0x61b   :  { %5635 = vrot.lane.b32.xlu0 %v12514_v3, %s9519_s13  ;;  %6397 = vst.msk [vmem:[#allocation4 + $0x118] sm:$0xff] %vm3239_vm4, %v6313_v23 }
 0x61c   :  { %4204 = vrot.lane.b32.xlu1 %v4115_v43, %s9507_s20 }
 0x61d   :  { %v5220_v42 = vpop.permute.xlu0 %5219 }
 0x61e   :  { %5306 = vst.msk [vmem:[#allocation4 + $0x100] sm:$0xff] %vm5289_vm14, %v5220_v42  ;;  %v4607_v49 = vpop.permute.xlu1 %4606 }
 0x61f   :  { %6726 = vrot.lane.b32.xlu0 %v12760_v53, %s9508_s1  ;;  %4692 = vst.msk [vmem:[#allocation4 + $0x110] sm:$0xff] %vm4674_vm11, %v4607_v49 }
 0x620   :  { %6116 = vrot.lane.b32.xlu1 %v12655_v41, %s9510_s22 }
 0x621   :  { %v7127_v3 = vpop.permute.xlu0 %7126 }
 0x622   :  { %7212 = vst.msk [vmem:[#allocation4 + $0x108] sm:$0xff] %vm4059_vm8, %v7127_v3  ;;  %v6517_v32 = vpop.permute.xlu1 %6516 }
 0x623   :  { %5022 = vrot.lane.b32.xlu0 %v12768_v6, %s9515_s27  ;;  %6601 = vst.msk [vmem:[#allocation4 + $0x118] sm:$0xff] %vm3444_vm5, %v6517_v32 }
 0x624   :  { %4409 = vrot.lane.b32.xlu1 %v12663_v1, %s9513_s25  ;;  %v12787_v1 = vld [vmem:[%s13956_s2 + $0x401] ss:$0 sm:$0xff] }
 0x625   :  { %v5425_v13 = vpop.permute.xlu0 %5424 }
 0x626   :  { %5511 = vst.msk [vmem:[#allocation4 + $0x100] sm:$0xff] %vm5494_vm15, %v5425_v13  ;;  %v4812_v41 = vpop.permute.xlu1 %4811 }
 0x627   :  { %6930 = vrot.lane.b32.xlu0 %v12776_v55, %s9509_s21  ;;  %4897 = vst.msk [vmem:[#allocation4 + $0x110] sm:$0xff] %vm4879_vm12, %v4812_v41  ;;  %v12875_v41 = vld [vmem:[#allocation3 + $0x122] sm:$0xff] }
 0x628   :  { %6320 = vrot.lane.b32.xlu1 %v12670_v8, %s9511_s23 }
 0x629   :  { %v7331_v12 = vpop.permute.xlu0 %7330  ;;  %v7650_v17 = vpop.f32.mrb[54].mxu1 }
 0x62a   :  { %7416 = vst.msk [vmem:[#allocation4 + $0x108] sm:$0xff] %vm4264_vm9, %v7331_v12  ;;  %v7651_v50 = vadd.f32 %v12787_v1, %v7650_v17  ;;  %v7652_v39 = vpop.f32.mrb[55].mxu1  ;;  %v5907_v59 = vpop.permute.xlu1 %5906 }
 0x62b   :  { %5227 = vrot.lane.b32.xlu0 %v5139_v14, %s9516_s28  ;;  %5990 = vst.msk [vmem:[#allocation4 + $0x128] sm:$0xff] %vm2829_vm2, %v5907_v59  ;;  %v12891_v39 = vld [vmem:[#allocation3 + $0x124] sm:$0xff] }
 0x62c   :  { %v7783_v47 = vmax.f32 %v7651_v50, 0.0  ;;  %4614 = vrot.lane.b32.xlu1 %v4525_v33, %s9512_s24 }
 0x62d   :  { %v5630_v25 = vpop.permute.xlu0 %5629 }
 0x62e   :  { %7817 = vst [vmem:[#allocation5 + $0x48] sm:$0xff] %v7783_v47  ;;  %5716 = vst.msk [vmem:[#allocation4 + $0x100] sm:$0xff] %vm5699_vm0, %v5630_v25  ;;  %v4199_v51 = vpop.permute.xlu1 %4198  ;;  %v5141_v47 = vld [vmem:[#allocation3 + $0xee] sm:$0xff] }
 0x62f   :  { %7134 = vrot.lane.b32.xlu0 %v14302_v11, %s9504_s17  ;;  %4283 = vst.msk [vmem:[#allocation4 + $0x120] sm:$0xff] %vm4264_vm9, %v4199_v51  ;;  %v12902_v51 = vld [vmem:[#allocation3 + $0xf0] sm:$0xff] }
 0x630   :  { %6524 = vrot.lane.b32.xlu1 %v12797_v28, %s9505_s18 }
 0x631   :  { %v6721_v60 = vpop.permute.xlu0 %6720  ;;  %v7467_v29 = vld [vmem:[#allocation4 + $0x108] sm:$0xff] }
 0x632   :  { %6805 = vst.msk [vmem:[#allocation4 + $0x118] sm:$0xff] %vm3649_vm6, %v6721_v60  ;;  %7683 = vmatprep.mubr.f32.mxu1 %v7467_v29  ;;  %v6111_v30 = vpop.permute.xlu1 %6110 }
 0x633   :  { %5432 = vrot.lane.b32.xlu0 %v4525_v33, %s9517_s29  ;;  %6194 = vst.msk [vmem:[#allocation4 + $0x128] sm:$0xff] %vm3034_vm3, %v6111_v30  ;;  %v14304_v30 = vld [vmem:[#allocation21_spill] sm:$0xff] }
 0x634   :  { %4819 = vrot.lane.b32.xlu1 %v12448_v61, %s9514_s26  ;;  %v4116_v61 = vld [vmem:[#allocation3 + $0xd2] sm:$0xff] }
 0x635   :  { %v5017_v10 = vpop.permute.xlu0 %5016  ;;  %v7466_v4 = vld [vmem:[#allocation4 + $0x100] sm:$0xff] }
 0x636   :  { %5102 = vst.msk [vmem:[#allocation4 + $0x110] sm:$0xff] %vm5084_vm13, %v5017_v10  ;;  %7684 = vmatmul.mubr.f32.gmra.mrb[68].mxu1 %v7466_v4  ;;  %v4404_v54 = vpop.permute.xlu1 %4403  ;;  %v12910_v10 = vld [vmem:[#allocation3 + $0x128] sm:$0xff] }
 0x637   :  { %7338 = vrot.lane.b32.xlu0 %v12797_v28, %s9507_s20  ;;  %4488 = vst.msk [vmem:[#allocation4 + $0x120] sm:$0xff] %vm4469_vm10, %v4404_v54 }
 0x638   :  { %5914 = vrot.lane.b32.xlu1 %v12686_v20, %s9506_s19  ;;  %v12826_v20 = vld [vmem:[#allocation3 + $0xe4] sm:$0xff] }
 0x639   :  { %v6925_v36 = vpop.permute.xlu0 %6924 }
 0x63a   :  { %7009 = vst.msk [vmem:[#allocation4 + $0x118] sm:$0xff] %vm3854_vm7, %v6925_v36  ;;  %v6315_v46 = vpop.permute.xlu1 %6314 }
 0x63b   :  { %5637 = vrot.lane.b32.xlu0 %v12566_v9, %s9519_s13  ;;  %6398 = vst.msk [vmem:[#allocation4 + $0x128] sm:$0xff] %vm3239_vm4, %v6315_v46 }
 0x63c   :  { %4206 = vrot.lane.b32.xlu1 %v4116_v61, %s9507_s20 }
 0x63d   :  { %v5222_v37 = vpop.permute.xlu0 %5221 }
 0x63e   :  { %5307 = vst.msk [vmem:[#allocation4 + $0x110] sm:$0xff] %vm5289_vm14, %v5222_v37  ;;  %v4609_v58 = vpop.permute.xlu1 %4608 }
 0x63f   :  { %6728 = vrot.lane.b32.xlu0 %v12818_v52, %s9508_s1  ;;  %4693 = vst.msk [vmem:[#allocation4 + $0x120] sm:$0xff] %vm4674_vm11, %v4609_v58 }
 0x640   :  { %6118 = vrot.lane.b32.xlu1 %v12707_v56, %s9510_s22 }
 0x641   :  { %v7129_v9 = vpop.permute.xlu0 %7128 }
 0x642   :  { %7213 = vst.msk [vmem:[#allocation4 + $0x118] sm:$0xff] %vm4059_vm8, %v7129_v9  ;;  %v6519_v27 = vpop.permute.xlu1 %6518 }
 0x643   :  { %5024 = vrot.lane.b32.xlu0 %v12826_v20, %s9515_s27  ;;  %6602 = vst.msk [vmem:[#allocation4 + $0x128] sm:$0xff] %vm3444_vm5, %v6519_v27 }
 0x644   :  { %4411 = vrot.lane.b32.xlu1 %v12715_v2, %s9513_s25 }
 0x645   :  { %v5427_v16 = vpop.permute.xlu0 %5426 }
 0x646   :  { %5512 = vst.msk [vmem:[#allocation4 + $0x110] sm:$0xff] %vm5494_vm15, %v5427_v16  ;;  %v4814_v56 = vpop.permute.xlu1 %4813  ;;  %v12932_v16 = vld [vmem:[#allocation3 + $0x12a] sm:$0xff] }
 0x647   :  { %6932 = vrot.lane.b32.xlu0 %v12834_v26, %s9509_s21  ;;  %4898 = vst.msk [vmem:[#allocation4 + $0x120] sm:$0xff] %vm4879_vm12, %v4814_v56 }
 0x648   :  { %6322 = vrot.lane.b32.xlu1 %v12723_v5, %s9511_s23 }
 0x649   :  { %v7333_v24 = vpop.permute.xlu0 %7332  ;;  %v7655_v45 = vpop.f32.mrb[56].mxu1 }
 0x64a   :  { %7417 = vst.msk [vmem:[#allocation4 + $0x118] sm:$0xff] %vm4264_vm9, %v7333_v24  ;;  %v7656_v2 = vadd.f32 %v12787_v1, %v7655_v45  ;;  %v7657_v38 = vpop.f32.mrb[57].mxu1  ;;  %v5909_v21 = vpop.permute.xlu1 %5908 }
 0x64b   :  { %5229 = vrot.lane.b32.xlu0 %v5140_v48, %s9516_s28  ;;  %5991 = vst.msk [vmem:[#allocation4 + $0x138] sm:$0xff] %vm2829_vm2, %v5909_v21 }
 0x64c   :  { %v7784_v40 = vmax.f32 %v7656_v2, 0.0  ;;  %4616 = vrot.lane.b32.xlu1 %v12845_v34, %s9512_s24  ;;  %v12948_v2 = vld [vmem:[#allocation3 + $0x12c] sm:$0xff] }
 0x64d   :  { %v5632_v44 = vpop.permute.xlu0 %5631 }
 0x64e   :  { %7818 = vst [vmem:[#allocation5 + $0x50] sm:$0xff] %v7784_v40  ;;  %5717 = vst.msk [vmem:[#allocation4 + $0x110] sm:$0xff] %vm5699_vm0, %v5632_v44  ;;  %v4201_v15 = vpop.permute.xlu1 %4200  ;;  %v5142_v40 = vld [vmem:[#allocation3 + $0xf6] sm:$0xff] }
 0x64f   :  { %7136 = vrot.lane.b32.xlu0 %v14303_v31, %s9504_s17  ;;  %4284 = vst.msk [vmem:[#allocation4 + $0x130] sm:$0xff] %vm4264_vm9, %v4201_v15  ;;  %v12959_v15 = vld [vmem:[#allocation3 + $0xf8] sm:$0xff] }
 0x650   :  { %6526 = vrot.lane.b32.xlu1 %v12853_v22, %s9505_s18 }
 0x651   :  { %v6723_v57 = vpop.permute.xlu0 %6722  ;;  %v7469_v19 = vld [vmem:[#allocation4 + $0x118] sm:$0xff] }
 0x652   :  { %6806 = vst.msk [vmem:[#allocation4 + $0x128] sm:$0xff] %vm3649_vm6, %v6723_v57  ;;  %7688 = vmatprep.mubr.f32.mxu1 %v7469_v19  ;;  %v6113_v23 = vpop.permute.xlu1 %6112 }
 0x653   :  { %5434 = vrot.lane.b32.xlu0 %v12845_v34, %s9517_s29  ;;  %6195 = vst.msk [vmem:[#allocation4 + $0x138] sm:$0xff] %vm3034_vm3, %v6113_v23  ;;  %v14305_v23 = vld [vmem:[#allocation67_spill] sm:$0xff] }
 0x654   :  { %4821 = vrot.lane.b32.xlu1 %v12501_v62, %s9514_s26  ;;  %v4117_v62 = vld [vmem:[#allocation3 + $0xda] sm:$0xff] }
 0x655   :  { %v5019_v43 = vpop.permute.xlu0 %5018  ;;  %v7468_v42 = vld [vmem:[#allocation4 + $0x110] sm:$0xff] }
 0x656   :  { %5103 = vst.msk [vmem:[#allocation4 + $0x120] sm:$0xff] %vm5084_vm13, %v5019_v43  ;;  %7689 = vmatmul.mubr.f32.gmra.mrb[70].mxu1 %v7468_v42  ;;  %v4406_v49 = vpop.permute.xlu1 %4405  ;;  %v12967_v43 = vld [vmem:[#allocation3 + $0x130] sm:$0xff] }
 0x657   :  { %7340 = vrot.lane.b32.xlu0 %v12853_v22, %s9507_s20  ;;  %4489 = vst.msk [vmem:[#allocation4 + $0x130] sm:$0xff] %vm4469_vm10, %v4406_v49 }
 0x658   :  { %5916 = vrot.lane.b32.xlu1 %v12739_v63, %s9506_s19  ;;  %v12883_v63 = vld [vmem:[#allocation3 + $0xec] sm:$0xff] }
 0x659   :  { %v6927_v3 = vpop.permute.xlu0 %6926 }
 0x65a   :  { %7010 = vst.msk [vmem:[#allocation4 + $0x128] sm:$0xff] %vm3854_vm7, %v6927_v3  ;;  %v6317_v32 = vpop.permute.xlu1 %6316 }
 0x65b   :  { %5639 = vrot.lane.b32.xlu0 %v12619_v35, %s9519_s13  ;;  %6399 = vst.msk [vmem:[#allocation4 + $0x138] sm:$0xff] %vm3239_vm4, %v6317_v32  ;;  %v7946_v32 = vld [vmem:[#allocation5 + $0x44] sm:$0x3] }
 0x65c   :  { %4208 = vrot.lane.b32.xlu1 %v4117_v62, %s9507_s20  ;;  %v7947_v62 = vld [vmem:[#allocation5 + $0x46] sm:$0x3] }
 0x65d   :  { %v5224_v13 = vpop.permute.xlu0 %5223 }
 0x65e   :  { %5308 = vst.msk [vmem:[#allocation4 + $0x120] sm:$0xff] %vm5289_vm14, %v5224_v13  ;;  %v4611_v12 = vpop.permute.xlu1 %4610 }
 0x65f   :  { %6730 = vrot.lane.b32.xlu0 %v12875_v41, %s9508_s1  ;;  %4694 = vst.msk [vmem:[#allocation4 + $0x130] sm:$0xff] %vm4674_vm11, %v4611_v12 }
 0x660   :  { %6120 = vrot.lane.b32.xlu1 %v12760_v53, %s9510_s22 }
 0x661   :  { %v7131_v35 = vpop.permute.xlu0 %7130 }
 0x662   :  { %7214 = vst.msk [vmem:[#allocation4 + $0x128] sm:$0xff] %vm4059_vm8, %v7131_v35  ;;  %v6521_v17 = vpop.permute.xlu1 %6520  ;;  %v7948_v35 = vmax.f32 %v7946_v32, %v7947_v62  ;;  %v5144_v62 = vld [vmem:[#allocation3 + $0x106] sm:$0xff] }
 0x663   :  { %5026 = vrot.lane.b32.xlu0 %v12883_v63, %s9515_s27  ;;  %6603 = vst.msk [vmem:[#allocation4 + $0x138] sm:$0xff] %vm3444_vm5, %v6521_v17 }
 0x664   :  { %4413 = vrot.lane.b32.xlu1 %v12768_v6, %s9513_s25 }
 0x665   :  { %v5429_v50 = vpop.permute.xlu0 %5428 }
 0x666   :  { %5513 = vst.msk [vmem:[#allocation4 + $0x120] sm:$0xff] %vm5494_vm15, %v5429_v50  ;;  %v4816_v53 = vpop.permute.xlu1 %4815 }
 0x667   :  { %6934 = vrot.lane.b32.xlu0 %v12891_v39, %s9509_s21  ;;  %4899 = vst.msk [vmem:[#allocation4 + $0x130] sm:$0xff] %vm4879_vm12, %v4816_v53 }
 0x668   :  { %6324 = vrot.lane.b32.xlu1 %v12776_v55, %s9511_s23 }
 0x669   :  { %v7335_v14 = vpop.permute.xlu0 %7334  ;;  %v7660_v59 = vpop.f32.mrb[58].mxu1 }
 0x66a   :  { %7418 = vst.msk [vmem:[#allocation4 + $0x128] sm:$0xff] %vm4264_vm9, %v7335_v14  ;;  %v7661_v6 = vadd.f32 %v12787_v1, %v7660_v59  ;;  %v7662_v33 = vpop.f32.mrb[59].mxu1  ;;  %v5911_v25 = vpop.permute.xlu1 %5910 }
 0x66b   :  { %5231 = vrot.lane.b32.xlu0 %v5141_v47, %s9516_s28  ;;  %5992 = vst.msk [vmem:[#allocation4 + $0x148] sm:$0xff] %vm2829_vm2, %v5911_v25  ;;  %v12989_v47 = vld [vmem:[#allocation3 + $0x132] sm:$0xff] }
 0x66c   :  { %v7785_v11 = vmax.f32 %v7661_v6, 0.0  ;;  %4618 = vrot.lane.b32.xlu1 %v12902_v51, %s9512_s24  ;;  %v12984_v6 = vld [vmem:[#allocation3 + $0xfa] sm:$0xff] }
 0x66d   :  { %v5634_v60 = vpop.permute.xlu0 %5633 }
 0x66e   :  { %7819 = vst [vmem:[#allocation5 + $0x58] sm:$0xff] %v7785_v11  ;;  %5718 = vst.msk [vmem:[#allocation4 + $0x120] sm:$0xff] %vm5699_vm0, %v5634_v60  ;;  %v4203_v29 = vpop.permute.xlu1 %4202  ;;  %v12998_v11 = vld [vmem:[#allocation3 + $0xfc] sm:$0xff] }
 0x66f   :  { %7138 = vrot.lane.b32.xlu0 %v14304_v30, %s9504_s17  ;;  %4285 = vst.msk [vmem:[#allocation4 + $0x140] sm:$0xff] %vm4264_vm9, %v4203_v29  ;;  %v4119_v29 = vld [vmem:[#allocation3 + $0xea] sm:$0xff] }
 0x670   :  { %6528 = vrot.lane.b32.xlu1 %v12910_v10, %s9505_s18 }
 0x671   :  { %v6725_v4 = vpop.permute.xlu0 %6724  ;;  %v7471_v54 = vld [vmem:[#allocation4 + $0x128] sm:$0xff] }
 0x672   :  { %6807 = vst.msk [vmem:[#allocation4 + $0x138] sm:$0xff] %vm3649_vm6, %v6725_v4  ;;  %7693 = vmatprep.mubr.f32.mxu1 %v7471_v54  ;;  %v6115_v36 = vpop.permute.xlu1 %6114  ;;  %v13005_v4 = vld [vmem:[#allocation3 + $0x134] sm:$0xff] }
 0x673   :  { %5436 = vrot.lane.b32.xlu0 %v12902_v51, %s9517_s29  ;;  %6196 = vst.msk [vmem:[#allocation4 + $0x148] sm:$0xff] %vm3034_vm3, %v6115_v36 }
 0x674   :  { %4823 = vrot.lane.b32.xlu1 %v12553_v18, %s9514_s26  ;;  %v4118_v18 = vld [vmem:[#allocation3 + $0xe2] sm:$0xff] }
 0x675   :  { %v5021_v46 = vpop.permute.xlu0 %5020  ;;  %v7470_v61 = vld [vmem:[#allocation4 + $0x120] sm:$0xff] }
 0x676   :  { %5104 = vst.msk [vmem:[#allocation4 + $0x130] sm:$0xff] %vm5084_vm13, %v5021_v46  ;;  %7694 = vmatmul.mubr.f32.gmra.mrb[72].mxu1 %v7470_v61  ;;  %v4408_v37 = vpop.permute.xlu1 %4407 }
 0x677   :  { %7342 = vrot.lane.b32.xlu0 %v12910_v10, %s9507_s20  ;;  %4490 = vst.msk [vmem:[#allocation4 + $0x140] sm:$0xff] %vm4469_vm10, %v4408_v37 }
 0x678   :  { %5918 = vrot.lane.b32.xlu1 %v12797_v28, %s9506_s19  ;;  %v12940_v28 = vld [vmem:[#allocation3 + $0xf4] sm:$0xff] }
 0x679   :  { %v6929_v58 = vpop.permute.xlu0 %6928 }
 0x67a   :  { %7011 = vst.msk [vmem:[#allocation4 + $0x138] sm:$0xff] %vm3854_vm7, %v6929_v58  ;;  %v6319_v9 = vpop.permute.xlu1 %6318  ;;  %v14306_v58 = vld [vmem:[#allocation43_spill] sm:$0xff] }
 0x67b   :  { %5641 = vrot.lane.b32.xlu0 %v12670_v8, %s9519_s13  ;;  %6400 = vst.msk [vmem:[#allocation4 + $0x148] sm:$0xff] %vm3239_vm4, %v6319_v9 }
 0x67c   :  { %4210 = vrot.lane.b32.xlu1 %v4118_v18, %s9507_s20 }
 0x67d   :  { %v5226_v27 = vpop.permute.xlu0 %5225 }
 0x67e   :  { %5309 = vst.msk [vmem:[#allocation4 + $0x130] sm:$0xff] %vm5289_vm14, %v5226_v27  ;;  %v4613_v56 = vpop.permute.xlu1 %4612 }
 0x67f   :  { %6732 = vrot.lane.b32.xlu0 %v12932_v16, %s9508_s1  ;;  %4695 = vst.msk [vmem:[#allocation4 + $0x140] sm:$0xff] %vm4674_vm11, %v4613_v56  ;;  %v13033_v56 = vld [vmem:[#allocation3 + $0x138] sm:$0xff] }
 0x680   :  { %6122 = vrot.lane.b32.xlu1 %v12818_v52, %s9510_s22 }
 0x681   :  { %v7133_v8 = vpop.permute.xlu0 %7132 }
 0x682   :  { %7215 = vst.msk [vmem:[#allocation4 + $0x138] sm:$0xff] %vm4059_vm8, %v7133_v8  ;;  %v6523_v24 = vpop.permute.xlu1 %6522 }
 0x683   :  { %5028 = vrot.lane.b32.xlu0 %v12940_v28, %s9515_s27  ;;  %6604 = vst.msk [vmem:[#allocation4 + $0x148] sm:$0xff] %vm3444_vm5, %v6523_v24 }
 0x684   :  { %4415 = vrot.lane.b32.xlu1 %v12826_v20, %s9513_s25 }
 0x685   :  { %v5431_v45 = vpop.permute.xlu0 %5430 }
 0x686   :  { %5514 = vst.msk [vmem:[#allocation4 + $0x130] sm:$0xff] %vm5494_vm15, %v5431_v45  ;;  %v4818_v52 = vpop.permute.xlu1 %4817 }
 0x687   :  { %6936 = vrot.lane.b32.xlu0 %v12948_v2, %s9509_s21  ;;  %4900 = vst.msk [vmem:[#allocation4 + $0x140] sm:$0xff] %vm4879_vm12, %v4818_v52  ;;  %v13041_v52 = vld [vmem:[#allocation3 + $0x102] sm:$0xff] }
 0x688   :  { %6326 = vrot.lane.b32.xlu1 %v12834_v26, %s9511_s23 }
 0x689   :  { %v7337_v38 = vpop.permute.xlu0 %7336  ;;  %v7665_v48 = vpop.f32.mrb[60].mxu1 }
 0x68a   :  { %7419 = vst.msk [vmem:[#allocation4 + $0x138] sm:$0xff] %vm4264_vm9, %v7337_v38  ;;  %v7666_v20 = vadd.f32 %v12787_v1, %v7665_v48  ;;  %v7667_v21 = vpop.f32.mrb[61].mxu1  ;;  %v5913_v44 = vpop.permute.xlu1 %5912 }
 0x68b   :  { %5233 = vrot.lane.b32.xlu0 %v5142_v40, %s9516_s28  ;;  %5993 = vst.msk [vmem:[#allocation4 + $0x158] sm:$0xff] %vm2829_vm2, %v5913_v44  ;;  %v4120_v40 = vld [vmem:[#allocation3 + $0xf2] sm:$0xff] }
 0x68c   :  { %v7786_v31 = vmax.f32 %v7666_v20, 0.0  ;;  %4620 = vrot.lane.b32.xlu1 %v12959_v15, %s9512_s24 }
 0x68d   :  { %v5636_v57 = vpop.permute.xlu0 %5635 }
 0x68e   :  { %7820 = vst [vmem:[#allocation5 + $0x60] sm:$0xff] %v7786_v31  ;;  %5719 = vst.msk [vmem:[#allocation4 + $0x130] sm:$0xff] %vm5699_vm0, %v5636_v57  ;;  %v4205_v19 = vpop.permute.xlu1 %4204 }
 0x68f   :  { %7140 = vrot.lane.b32.xlu0 %v14305_v23, %s9504_s17  ;;  %4286 = vst.msk [vmem:[#allocation4 + $0x150] sm:$0xff] %vm4264_vm9, %v4205_v19 }
 0x690   :  { %6530 = vrot.lane.b32.xlu1 %v12967_v43, %s9505_s18 }
 0x691   :  { %v6727_v42 = vpop.permute.xlu0 %6726  ;;  %v7473_v49 = vld [vmem:[#allocation4 + $0x138] sm:$0xff] }
 0x692   :  { %6808 = vst.msk [vmem:[#allocation4 + $0x148] sm:$0xff] %vm3649_vm6, %v6727_v42  ;;  %7698 = vmatprep.mubr.f32.mxu1 %v7473_v49  ;;  %v6117_v3 = vpop.permute.xlu1 %6116  ;;  %v13074_v49 = vld [vmem:[#allocation3 + $0x13c] sm:$0xff] }
 0x693   :  { %5438 = vrot.lane.b32.xlu0 %v12959_v15, %s9517_s29  ;;  %6197 = vst.msk [vmem:[#allocation4 + $0x158] sm:$0xff] %vm3034_vm3, %v6117_v3 }
 0x694   :  { %4007 = vrot.lane.b32.xlu1 %v12845_v34, %s9504_s17 }
 0x695   :  { %v5023_v13 = vpop.permute.xlu0 %5022  ;;  %v7472_v12 = vld [vmem:[#allocation4 + $0x130] sm:$0xff]  ;;  %v7949_v50 = vld [vmem:[#allocation5 + $0x60] sm:$0x3]  ;;  %v7951_v14 = vld [vmem:[#allocation5 + $0x62] sm:$0x3] }
 0x696   :  { %5105 = vst.msk [vmem:[#allocation4 + $0x140] sm:$0xff] %vm5084_vm13, %v5023_v13  ;;  %7699 = vmatmul.mubr.f32.gmra.mrb[74].mxu1 %v7472_v12  ;;  %v4410_v17 = vpop.permute.xlu1 %4409  ;;  %v7950_v53 = vmax.f32 %v7948_v35, %v7949_v50  ;;  %v13084_v12 = vld [vmem:[#allocation3 + $0x108] sm:$0xff] }
 0x697   :  { %7344 = vrot.lane.b32.xlu0 %v12967_v43, %s9507_s20  ;;  %4491 = vst.msk [vmem:[#allocation4 + $0x150] sm:$0xff] %vm4469_vm10, %v4410_v17 }
 0x698   :  { %5643 = vrot.lane.b32.xlu1 %v12723_v5, %s9519_s13  ;;  %v7952_v34 = vmax.f32 %v7950_v53, %v7951_v14  ;;  %v14307_v53 = vld [vmem:[#allocation70_spill] sm:$0xff] }
 0x699   :  { %v6931_v59 = vpop.permute.xlu0 %6930  ;;  %v13092_v14 = vld [vmem:[#allocation3 + $0x140] sm:$0xff] }
 0x69a   :  { %7012 = vst.msk [vmem:[#allocation4 + $0x148] sm:$0xff] %vm3854_vm7, %v6931_v59  ;;  %v6321_v33 = vpop.permute.xlu1 %6320 }
 0x69b   :  { %4825 = vrot.lane.b32.xlu0 %v12984_v6, %s9514_s26  ;;  %6401 = vst.msk [vmem:[#allocation4 + $0x158] sm:$0xff] %vm3239_vm4, %v6321_v33 }
 0x69c   :  { %7953 = vst.msk [vmem:[#allocation6 + $0x8] sm:$0x3] %vm7853_vm1, %v7952_v34  ;;  %6734 = vrot.lane.b32.xlu1 %v12989_v47, %s9508_s1 }
 0x69d   :  { %v5228_v5 = vpop.permute.xlu0 %5227 }
 0x69e   :  { %5310 = vst.msk [vmem:[#allocation4 + $0x140] sm:$0xff] %vm5289_vm14, %v5228_v5  ;;  %v4615_v25 = vpop.permute.xlu1 %4614 }
 0x69f   :  { %5920 = vrot.lane.b32.xlu0 %v12853_v22, %s9506_s19  ;;  %4696 = vst.msk [vmem:[#allocation4 + $0x150] sm:$0xff] %vm4674_vm11, %v4615_v25 }
 0x6a0   :  { %5030 = vrot.lane.b32.xlu1 %v12998_v11, %s9515_s27 }
 0x6a1   :  { %v7135_v60 = vpop.permute.xlu0 %7134 }
 0x6a2   :  { %7216 = vst.msk [vmem:[#allocation4 + $0x148] sm:$0xff] %vm4059_vm8, %v7135_v60  ;;  %v6525_v30 = vpop.permute.xlu1 %6524 }
 0x6a3   :  { %4212 = vrot.lane.b32.xlu0 %v4119_v29, %s9507_s20  ;;  %6605 = vst.msk [vmem:[#allocation4 + $0x158] sm:$0xff] %vm3444_vm5, %v6525_v30  ;;  %v13109_v29 = vld [vmem:[#allocation3 + $0x10a] sm:$0xff] }
 0x6a4   :  { %6938 = vrot.lane.b32.xlu1 %v13005_v4, %s9509_s21 }
 0x6a5   :  { %v5433_v22 = vpop.permute.xlu0 %5432 }
 0x6a6   :  { %5515 = vst.msk [vmem:[#allocation4 + $0x140] sm:$0xff] %vm5494_vm15, %v5433_v22  ;;  %v4820_v54 = vpop.permute.xlu1 %4819 }
 0x6a7   :  { %6124 = vrot.lane.b32.xlu0 %v12875_v41, %s9510_s22  ;;  %4901 = vst.msk [vmem:[#allocation4 + $0x150] sm:$0xff] %vm4879_vm12, %v4820_v54  ;;  %v13122_v54 = vld [vmem:[#allocation3 + $0x10c] sm:$0xff] }
 0x6a8   :  { %5235 = vrot.lane.b32.xlu1 %v14299_v7, %s9516_s28  ;;  %v13025_v7 = vld [vmem:[#allocation3 + $0x100] sm:$0xff] }
 0x6a9   :  { %v7339_v36 = vpop.permute.xlu0 %7338  ;;  %v7670_v46 = vpop.f32.mrb[62].mxu1 }
 0x6aa   :  { %7420 = vst.msk [vmem:[#allocation4 + $0x148] sm:$0xff] %vm4264_vm9, %v7339_v36  ;;  %v7672_v61 = vpop.f32.mrb[63].mxu1  ;;  %v5915_v37 = vpop.permute.xlu1 %5914 }
 0x6ab   :  { %4417 = vrot.lane.b32.xlu0 %v12883_v63, %s9513_s25  ;;  %5994 = vst.msk [vmem:[#allocation4 + $0x168] sm:$0xff] %vm2829_vm2, %v5915_v37  ;;  %v13130_v61 = vld [vmem:[#allocation3 + $0x144] sm:$0xff] }
 0x6ac   :  { %7142 = vrot.lane.b32.xlu1 %v14306_v58, %s9504_s17 }
 0x6ad   :  { %v5638_v41 = vpop.permute.xlu0 %5637 }
 0x6ae   :  { %5720 = vst.msk [vmem:[#allocation4 + $0x140] sm:$0xff] %vm5699_vm0, %v5638_v41  ;;  %v4207_v9 = vpop.permute.xlu1 %4206 }
 0x6af   :  { %6328 = vrot.lane.b32.xlu0 %v12891_v39, %s9511_s23  ;;  %4287 = vst.msk [vmem:[#allocation4 + $0x160] sm:$0xff] %vm4264_vm9, %v4207_v9 }
 0x6b0   :  { %5440 = vrot.lane.b32.xlu1 %v13025_v7, %s9517_s29 }
 0x6b1   :  { %v6729_v63 = vpop.permute.xlu0 %6728  ;;  %v7475_v18 = vld [vmem:[#allocation4 + $0x148] sm:$0xff] }
 0x6b2   :  { %6809 = vst.msk [vmem:[#allocation4 + $0x158] sm:$0xff] %vm3649_vm6, %v6729_v63  ;;  %7703 = vmatprep.mubr.f32.mxu1 %v7475_v18  ;;  %v6119_v27 = vpop.permute.xlu1 %6118 }
 0x6b3   :  { %4622 = vrot.lane.b32.xlu0 %v13025_v7, %s9512_s24  ;;  %6198 = vst.msk [vmem:[#allocation4 + $0x168] sm:$0xff] %vm3034_vm3, %v6119_v27 }
 0x6b4   :  { %7346 = vrot.lane.b32.xlu1 %v13033_v56, %s9507_s20 }
 0x6b5   :  { %v5025_v8 = vpop.permute.xlu0 %5024  ;;  %v7474_v24 = vld [vmem:[#allocation4 + $0x140] sm:$0xff] }
 0x6b6   :  { %5106 = vst.msk [vmem:[#allocation4 + $0x150] sm:$0xff] %vm5084_vm13, %v5025_v8  ;;  %7704 = vmatmul.mubr.f32.gmra.mrb[76].mxu1 %v7474_v24  ;;  %v4412_v45 = vpop.permute.xlu1 %4411  ;;  %v14308_v8 = vld [vmem:[#allocation72_spill] sm:$0xff] }
 0x6b7   :  { %6532 = vrot.lane.b32.xlu0 %v13033_v56, %s9505_s18  ;;  %4492 = vst.msk [vmem:[#allocation4 + $0x160] sm:$0xff] %vm4469_vm10, %v4412_v45 }
 0x6b8   :  { %4827 = vrot.lane.b32.xlu1 %v13041_v52, %s9514_s26 }
 0x6b9   :  { %v6933_v38 = vpop.permute.xlu0 %6932 }
 0x6ba   :  { %7013 = vst.msk [vmem:[#allocation4 + $0x158] sm:$0xff] %vm3854_vm7, %v6933_v38  ;;  %v6323_v48 = vpop.permute.xlu1 %6322  ;;  %v13150_v38 = vld [vmem:[#allocation3 + $0x110] sm:$0xff] }
 0x6bb   :  { %4009 = vrot.lane.b32.xlu0 %v12902_v51, %s9504_s17  ;;  %6402 = vst.msk [vmem:[#allocation4 + $0x168] sm:$0xff] %vm3239_vm4, %v6323_v48  ;;  %v13057_v51 = vld [vmem:[#allocation3 + $0x13a] sm:$0xff] }
 0x6bc   :  { %5922 = vrot.lane.b32.xlu1 %v12910_v10, %s9506_s19  ;;  %v13065_v10 = vld [vmem:[#allocation3 + $0x104] sm:$0xff] }
 0x6bd   :  { %v5230_v20 = vpop.permute.xlu0 %5229 }
 0x6be   :  { %5311 = vst.msk [vmem:[#allocation4 + $0x150] sm:$0xff] %vm5289_vm14, %v5230_v20  ;;  %v4617_v21 = vpop.permute.xlu1 %4616 }
 0x6bf   :  { %5645 = vrot.lane.b32.xlu0 %v12776_v55, %s9519_s13  ;;  %4697 = vst.msk [vmem:[#allocation4 + $0x160] sm:$0xff] %vm4674_vm11, %v4617_v21  ;;  %v13158_v21 = vld [vmem:[#allocation3 + $0x148] sm:$0xff] }
 0x6c0   :  { %4214 = vrot.lane.b32.xlu1 %v4120_v40, %s9507_s20 }
 0x6c1   :  { %v7137_v44 = vpop.permute.xlu0 %7136 }
 0x6c2   :  { %7217 = vst.msk [vmem:[#allocation4 + $0x158] sm:$0xff] %vm4059_vm8, %v7137_v44  ;;  %v6527_v31 = vpop.permute.xlu1 %6526 }
 0x6c3   :  { %6736 = vrot.lane.b32.xlu0 %v13057_v51, %s9508_s1  ;;  %6606 = vst.msk [vmem:[#allocation4 + $0x168] sm:$0xff] %vm3444_vm5, %v6527_v31  ;;  %v13166_v31 = vld [vmem:[#allocation3 + $0x112] sm:$0xff] }
 0x6c4   :  { %6126 = vrot.lane.b32.xlu1 %v12932_v16, %s9510_s22 }
 0x6c5   :  { %v5435_v55 = vpop.permute.xlu0 %5434 }
 0x6c6   :  { %5516 = vst.msk [vmem:[#allocation4 + $0x150] sm:$0xff] %vm5494_vm15, %v5435_v55  ;;  %v4822_v57 = vpop.permute.xlu1 %4821 }
 0x6c7   :  { %5032 = vrot.lane.b32.xlu0 %v13065_v10, %s9515_s27  ;;  %4902 = vst.msk [vmem:[#allocation4 + $0x160] sm:$0xff] %vm4879_vm12, %v4822_v57 }
 0x6c8   :  { %4419 = vrot.lane.b32.xlu1 %v12940_v28, %s9513_s25 }
 0x6c9   :  { %v7341_v19 = vpop.permute.xlu0 %7340  ;;  %v7675_v23 = vpop.f32.mrb[64].mxu1 }
 0x6ca   :  { %7421 = vst.msk [vmem:[#allocation4 + $0x158] sm:$0xff] %vm4264_vm9, %v7341_v19  ;;  %v7676_v16 = vadd.f32 %v12787_v1, %v7675_v23  ;;  %v7677_v42 = vpop.f32.mrb[65].mxu1  ;;  %v5917_v3 = vpop.permute.xlu1 %5916 }
 0x6cb   :  { %6940 = vrot.lane.b32.xlu0 %v13074_v49, %s9509_s21  ;;  %5995 = vst.msk [vmem:[#allocation4 + $0x178] sm:$0xff] %vm2829_vm2, %v5917_v3 }
 0x6cc   :  { %v7788_v32 = vmax.f32 %v7676_v16, 0.0  ;;  %6330 = vrot.lane.b32.xlu1 %v12948_v2, %s9511_s23 }
 0x6cd   :  { %v5640_v28 = vpop.permute.xlu0 %5639 }
 0x6ce   :  { %7822 = vst [vmem:[#allocation5 + $0x70] sm:$0xff] %v7788_v32  ;;  %5721 = vst.msk [vmem:[#allocation4 + $0x150] sm:$0xff] %vm5699_vm0, %v5640_v28  ;;  %v4209_v13 = vpop.permute.xlu1 %4208  ;;  %v13192_v32 = vld [vmem:[#allocation3 + $0x114] sm:$0xff] }
 0x6cf   :  { %5237 = vrot.lane.b32.xlu0 %v5144_v62, %s9516_s28  ;;  %4288 = vst.msk [vmem:[#allocation4 + $0x170] sm:$0xff] %vm4264_vm9, %v4209_v13  ;;  %v13200_v13 = vld [vmem:[#allocation3 + $0x14c] sm:$0xff] }
 0x6d0   :  { %4624 = vrot.lane.b32.xlu1 %v13084_v12, %s9512_s24 }
 0x6d1   :  { %v6731_v35 = vpop.permute.xlu0 %6730  ;;  %v7477_v17 = vld [vmem:[#allocation4 + $0x158] sm:$0xff] }
 0x6d2   :  { %6810 = vst.msk [vmem:[#allocation4 + $0x168] sm:$0xff] %vm3649_vm6, %v6731_v35  ;;  %7708 = vmatprep.mubr.f32.mxu1 %v7477_v17  ;;  %v6121_v50 = vpop.permute.xlu1 %6120 }
 0x6d3   :  { %7144 = vrot.lane.b32.xlu0 %v14307_v53, %s9504_s17  ;;  %6199 = vst.msk [vmem:[#allocation4 + $0x178] sm:$0xff] %vm3034_vm3, %v6121_v50 }
 0x6d4   :  { %6534 = vrot.lane.b32.xlu1 %v13092_v14, %s9505_s18 }
 0x6d5   :  { %v5027_v59 = vpop.permute.xlu0 %5026  ;;  %v7476_v34 = vld [vmem:[#allocation4 + $0x150] sm:$0xff] }
 0x6d6   :  { %5107 = vst.msk [vmem:[#allocation4 + $0x160] sm:$0xff] %vm5084_vm13, %v5027_v59  ;;  %7709 = vmatmul.mubr.f32.gmra.mrb[78].mxu1 %v7476_v34  ;;  %v4414_v33 = vpop.permute.xlu1 %4413  ;;  %v13210_v59 = vld [vmem:[#allocation3 + $0x118] sm:$0xff] }
 0x6d7   :  { %5442 = vrot.lane.b32.xlu0 %v13084_v12, %s9517_s29  ;;  %4493 = vst.msk [vmem:[#allocation4 + $0x170] sm:$0xff] %vm4469_vm10, %v4414_v33 }
 0x6d8   :  { %4011 = vrot.lane.b32.xlu1 %v12959_v15, %s9504_s17  ;;  %v13114_v15 = vld [vmem:[#allocation3 + $0x142] sm:$0xff] }
 0x6d9   :  { %v6935_v5 = vpop.permute.xlu0 %6934 }
 0x6da   :  { %7014 = vst.msk [vmem:[#allocation4 + $0x168] sm:$0xff] %vm3854_vm7, %v6935_v5  ;;  %v6325_v25 = vpop.permute.xlu1 %6324  ;;  %v14309_v5 = vld [vmem:[#allocation53_spill] sm:$0xff] }
 0x6db   :  { %7348 = vrot.lane.b32.xlu0 %v13092_v14, %s9507_s20  ;;  %6403 = vst.msk [vmem:[#allocation4 + $0x178] sm:$0xff] %vm3239_vm4, %v6325_v25  ;;  %v13218_v25 = vld [vmem:[#allocation3 + $0x150] sm:$0xff] }
 0x6dc   :  { %5647 = vrot.lane.b32.xlu1 %v12834_v26, %s9519_s13 }
 0x6dd   :  { %v5232_v60 = vpop.permute.xlu0 %5231 }
 0x6de   :  { %5312 = vst.msk [vmem:[#allocation4 + $0x160] sm:$0xff] %vm5289_vm14, %v5232_v60  ;;  %v4619_v30 = vpop.permute.xlu1 %4618 }
 0x6df   :  { %4829 = vrot.lane.b32.xlu0 %v13109_v29, %s9514_s26  ;;  %4698 = vst.msk [vmem:[#allocation4 + $0x170] sm:$0xff] %vm4674_vm11, %v4619_v30 }
 0x6e0   :  { %6738 = vrot.lane.b32.xlu1 %v13114_v15, %s9508_s1 }
 0x6e1   :  { %v7139_v22 = vpop.permute.xlu0 %7138 }
 0x6e2   :  { %7218 = vst.msk [vmem:[#allocation4 + $0x168] sm:$0xff] %vm4059_vm8, %v7139_v22  ;;  %v6529_v26 = vpop.permute.xlu1 %6528 }
 0x6e3   :  { %5924 = vrot.lane.b32.xlu0 %v12967_v43, %s9506_s19  ;;  %6607 = vst.msk [vmem:[#allocation4 + $0x178] sm:$0xff] %vm3444_vm5, %v6529_v26 }
 0x6e4   :  { %5034 = vrot.lane.b32.xlu1 %v13122_v54, %s9515_s27 }
 0x6e5   :  { %v5437_v36 = vpop.permute.xlu0 %5436 }
 0x6e6   :  { %5517 = vst.msk [vmem:[#allocation4 + $0x160] sm:$0xff] %vm5494_vm15, %v5437_v36  ;;  %v4824_v46 = vpop.permute.xlu1 %4823 }
 0x6e7   :  { %4216 = vrot.lane.b32.xlu0 %v12984_v6, %s9507_s20  ;;  %4903 = vst.msk [vmem:[#allocation4 + $0x170] sm:$0xff] %vm4879_vm12, %v4824_v46  ;;  %v5145_v6 = vld [vmem:[#allocation3 + $0x10e] sm:$0xff]  ;;  %v13235_v46 = vld [vmem:[#allocation3 + $0x11a] sm:$0xff] }
 0x6e8   :  { %6942 = vrot.lane.b32.xlu1 %v13130_v61, %s9509_s21 }
 0x6e9   :  { %v7343_v43 = vpop.permute.xlu0 %7342  ;;  %v7680_v37 = vpop.f32.mrb[66].mxu1 }
 0x6ea   :  { %7422 = vst.msk [vmem:[#allocation4 + $0x168] sm:$0xff] %vm4264_vm9, %v7343_v43  ;;  %v7681_v58 = vadd.f32 %v12787_v1, %v7680_v37  ;;  %v7682_v41 = vpop.f32.mrb[67].mxu1  ;;  %v5919_v9 = vpop.permute.xlu1 %5918 }
 0x6eb   :  { %6128 = vrot.lane.b32.xlu0 %v12989_v47, %s9510_s22  ;;  %5996 = vst.msk [vmem:[#allocation4 + $0x188] sm:$0xff] %vm2829_vm2, %v5919_v9 }
 0x6ec   :  { %v7789_v63 = vmax.f32 %v7681_v58, 0.0  ;;  %5239 = vrot.lane.b32.xlu1 %v5145_v6, %s9516_s28  ;;  %v13248_v58 = vld [vmem:[#allocation3 + $0x11c] sm:$0xff] }
 0x6ed   :  { %v5642_v18 = vpop.permute.xlu0 %5641  ;;  %v13256_v6 = vld [vmem:[%s13956_s2 + $0x401] ss:$0 sm:$0xff] }
 0x6ee   :  { %7823 = vst [vmem:[#allocation5 + $0x78] sm:$0xff] %v7789_v63  ;;  %5722 = vst.msk [vmem:[#allocation4 + $0x160] sm:$0xff] %vm5699_vm0, %v5642_v18  ;;  %v4211_v27 = vpop.permute.xlu1 %4210 }
 0x6ef   :  { %4421 = vrot.lane.b32.xlu0 %v12998_v11, %s9513_s25  ;;  %4289 = vst.msk [vmem:[#allocation4 + $0x180] sm:$0xff] %vm4264_vm9, %v4211_v27  ;;  %v13262_v27 = vld [vmem:[#allocation3 + $0x154] sm:$0xff] }
 0x6f0   :  { %7146 = vrot.lane.b32.xlu1 %v14308_v8, %s9504_s17 }
 0x6f1   :  { %v6733_v47 = vpop.permute.xlu0 %6732  ;;  %v7479_v24 = vld [vmem:[#allocation4 + $0x168] sm:$0xff] }
 0x6f2   :  { %6811 = vst.msk [vmem:[#allocation4 + $0x178] sm:$0xff] %vm3649_vm6, %v6733_v47  ;;  %7713 = vmatprep.mubr.f32.mxu1 %v7479_v24  ;;  %v6123_v45 = vpop.permute.xlu1 %6122 }
 0x6f3   :  { %6332 = vrot.lane.b32.xlu0 %v13005_v4, %s9511_s23  ;;  %6200 = vst.msk [vmem:[#allocation4 + $0x188] sm:$0xff] %vm3034_vm3, %v6123_v45 }
 0x6f4   :  { %5444 = vrot.lane.b32.xlu1 %v13150_v38, %s9517_s29 }
 0x6f5   :  { %v5029_v11 = vpop.permute.xlu0 %5028  ;;  %v7478_v48 = vld [vmem:[#allocation4 + $0x160] sm:$0xff] }
 0x6f6   :  { %5108 = vst.msk [vmem:[#allocation4 + $0x170] sm:$0xff] %vm5084_vm13, %v5029_v11  ;;  %7714 = vmatmul.mubr.f32.gmra.mrb[80].mxu1 %v7478_v48  ;;  %v4416_v20 = vpop.permute.xlu1 %4415 }
 0x6f7   :  { %4626 = vrot.lane.b32.xlu0 %v13150_v38, %s9512_s24  ;;  %4494 = vst.msk [vmem:[#allocation4 + $0x180] sm:$0xff] %vm4469_vm10, %v4416_v20  ;;  %v7054_v20 = vld [vmem:[#allocation3 + $0x156] sm:$0xff] }
 0x6f8   :  { %7350 = vrot.lane.b32.xlu1 %v13158_v21, %s9507_s20 }
 0x6f9   :  { %v6937_v40 = vpop.permute.xlu0 %6936 }
 0x6fa   :  { %7015 = vst.msk [vmem:[#allocation4 + $0x178] sm:$0xff] %vm3854_vm7, %v6937_v40  ;;  %v6327_v44 = vpop.permute.xlu1 %6326 }
 0x6fb   :  { %6536 = vrot.lane.b32.xlu0 %v13158_v21, %s9505_s18  ;;  %6404 = vst.msk [vmem:[#allocation4 + $0x188] sm:$0xff] %vm3239_vm4, %v6327_v44  ;;  %v13280_v44 = vld [vmem:[#allocation3 + $0x120] sm:$0xff] }
 0x6fc   :  { %4831 = vrot.lane.b32.xlu1 %v13166_v31, %s9514_s26 }
 0x6fd   :  { %v5234_v55 = vpop.permute.xlu0 %5233 }
 0x6fe   :  { %5313 = vst.msk [vmem:[#allocation4 + $0x170] sm:$0xff] %vm5289_vm14, %v5234_v55  ;;  %v4621_v57 = vpop.permute.xlu1 %4620 }
 0x6ff   :  { %4013 = vrot.lane.b32.xlu0 %v13025_v7, %s9504_s17  ;;  %4699 = vst.msk [vmem:[#allocation4 + $0x180] sm:$0xff] %vm4674_vm11, %v4621_v57  ;;  %v13183_v7 = vld [vmem:[#allocation3 + $0x14a] sm:$0xff] }
 0x700   :  { %5926 = vrot.lane.b32.xlu1 %v13033_v56, %s9506_s19 }
 0x701   :  { %v7141_v19 = vpop.permute.xlu0 %7140 }
 0x702   :  { %7219 = vst.msk [vmem:[#allocation4 + $0x178] sm:$0xff] %vm4059_vm8, %v7141_v19  ;;  %v6531_v23 = vpop.permute.xlu1 %6530  ;;  %v13288_v19 = vld [vmem:[#allocation3 + $0x158] sm:$0xff] }
 0x703   :  { %5649 = vrot.lane.b32.xlu0 %v12891_v39, %s9519_s13  ;;  %6608 = vst.msk [vmem:[#allocation4 + $0x188] sm:$0xff] %vm3444_vm5, %v6531_v23 }
 0x704   :  { %4218 = vrot.lane.b32.xlu1 %v13041_v52, %s9507_s20 }
 0x705   :  { %v5439_v16 = vpop.permute.xlu0 %5438 }
 0x706   :  { %5518 = vst.msk [vmem:[#allocation4 + $0x170] sm:$0xff] %vm5494_vm15, %v5439_v16  ;;  %v4008_v42 = vpop.permute.xlu1 %4007 }
 0x707   :  { %6740 = vrot.lane.b32.xlu0 %v13183_v7, %s9508_s1  ;;  %4085 = vst.msk [vmem:[#allocation4 + $0x190] sm:$0xff] %vm4059_vm8, %v4008_v42  ;;  %v13296_v42 = vld [vmem:[#allocation3 + $0x122] sm:$0xff] }
 0x708   :  { %6130 = vrot.lane.b32.xlu1 %v13057_v51, %s9510_s22 }
 0x709   :  { %v7345_v39 = vpop.permute.xlu0 %7344  ;;  %v7685_v56 = vpop.f32.mrb[68].mxu1 }
 0x70a   :  { %7423 = vst.msk [vmem:[#allocation4 + $0x178] sm:$0xff] %vm4264_vm9, %v7345_v39  ;;  %v7686_v52 = vadd.f32 %v12787_v1, %v7685_v56  ;;  %v7687_v3 = vpop.f32.mrb[69].mxu1  ;;  %v5644_v28 = vpop.permute.xlu1 %5643 }
 0x70b   :  { %5036 = vrot.lane.b32.xlu0 %v13192_v32, %s9515_s27  ;;  %5723 = vst.msk [vmem:[#allocation4 + $0x170] sm:$0xff] %vm5699_vm0, %v5644_v28 }
 0x70c   :  { %v7790_v62 = vmax.f32 %v7686_v52, 0.0  ;;  %4423 = vrot.lane.b32.xlu1 %v13065_v10, %s9513_s25  ;;  %v5146_v10 = vld [vmem:[#allocation3 + $0x116] sm:$0xff] }
 0x70d   :  { %v4826_v51 = vpop.permute.xlu0 %4825 }
 0x70e   :  { %7824 = vst [vmem:[#allocation5 + $0x80] sm:$0xff] %v7790_v62  ;;  %4904 = vst.msk [vmem:[#allocation4 + $0x180] sm:$0xff] %vm4879_vm12, %v4826_v51  ;;  %v6735_v1 = vpop.permute.xlu1 %6734 }
 0x70f   :  { %6944 = vrot.lane.b32.xlu0 %v13200_v13, %s9509_s21  ;;  %6812 = vst.msk [vmem:[#allocation4 + $0x188] sm:$0xff] %vm3649_vm6, %v6735_v1  ;;  %v13314_v1 = vld [vmem:[#allocation3 + $0x15a] sm:$0xff] }
 0x710   :  { %6334 = vrot.lane.b32.xlu1 %v13074_v49, %s9511_s23 }
 0x711   :  { %v5921_v35 = vpop.permute.xlu0 %5920  ;;  %v7481_v17 = vld [vmem:[#allocation4 + $0x178] sm:$0xff] }
 0x712   :  { %5997 = vst.msk [vmem:[#allocation4 + $0x198] sm:$0xff] %vm2829_vm2, %v5921_v35  ;;  %7718 = vmatprep.mubr.f32.mxu1 %v7481_v17  ;;  %v5031_v50 = vpop.permute.xlu1 %5030  ;;  %v7480_v53 = vld [vmem:[#allocation4 + $0x170] sm:$0xff] }
 0x713   :  { %5241 = vrot.lane.b32.xlu0 %v5146_v10, %s9516_s28  ;;  %5109 = vst.msk [vmem:[#allocation4 + $0x180] sm:$0xff] %vm5084_vm13, %v5031_v50  ;;  %7719 = vmatmul.mubr.f32.gmra.mrb[82].mxu1 %v7480_v53  ;;  %v13322_v17 = vld [vmem:[#allocation3 + $0x124] sm:$0xff]  ;;  %v13330_v53 = vld [vmem:[#allocation3 + $0x15c] sm:$0xff] }
 0x714   :  { %4628 = vrot.lane.b32.xlu1 %v13210_v59, %s9512_s24 }
 0x715   :  { %v4213_v34 = vpop.permute.xlu0 %4212 }
 0x716   :  { %4290 = vst.msk [vmem:[#allocation4 + $0x190] sm:$0xff] %vm4264_vm9, %v4213_v34  ;;  %v6939_v33 = vpop.permute.xlu1 %6938 }
 0x717   :  { %7148 = vrot.lane.b32.xlu0 %v14309_v5, %s9504_s17  ;;  %7016 = vst.msk [vmem:[#allocation4 + $0x188] sm:$0xff] %vm3854_vm7, %v6939_v33 }
 0x718   :  { %6538 = vrot.lane.b32.xlu1 %v13218_v25, %s9505_s18 }
 0x719   :  { %v6125_v60 = vpop.permute.xlu0 %6124 }
 0x71a   :  { %6201 = vst.msk [vmem:[#allocation4 + $0x198] sm:$0xff] %vm3034_vm3, %v6125_v60  ;;  %v5236_v30 = vpop.permute.xlu1 %5235 }
 0x71b   :  { %5446 = vrot.lane.b32.xlu0 %v13210_v59, %s9517_s29  ;;  %5314 = vst.msk [vmem:[#allocation4 + $0x180] sm:$0xff] %vm5289_vm14, %v5236_v30  ;;  %v13340_v30 = vld [vmem:[#allocation3 + $0x128] sm:$0xff] }
 0x71c   :  { %4015 = vrot.lane.b32.xlu1 %v13084_v12, %s9504_s17  ;;  %v13240_v12 = vld [vmem:[#allocation3 + $0x152] sm:$0xff] }
 0x71d   :  { %v4418_v22 = vpop.permute.xlu0 %4417 }
 0x71e   :  { %4495 = vst.msk [vmem:[#allocation4 + $0x190] sm:$0xff] %vm4469_vm10, %v4418_v22  ;;  %v7143_v26 = vpop.permute.xlu1 %7142 }
 0x71f   :  { %7352 = vrot.lane.b32.xlu0 %v13218_v25, %s9507_s20  ;;  %7220 = vst.msk [vmem:[#allocation4 + $0x188] sm:$0xff] %vm4059_vm8, %v7143_v26 }
 0x720   :  { %5651 = vrot.lane.b32.xlu1 %v12948_v2, %s9519_s13 }
 0x721   :  { %v6329_v36 = vpop.permute.xlu0 %6328 }
 0x722   :  { %6405 = vst.msk [vmem:[#allocation4 + $0x198] sm:$0xff] %vm3239_vm4, %v6329_v36  ;;  %v5441_v43 = vpop.permute.xlu1 %5440  ;;  %v14310_v36 = vld [vmem:[#allocation54_spill] sm:$0xff] }
 0x723   :  { %4833 = vrot.lane.b32.xlu0 %v13235_v46, %s9514_s26  ;;  %5519 = vst.msk [vmem:[#allocation4 + $0x180] sm:$0xff] %vm5494_vm15, %v5441_v43  ;;  %v13348_v43 = vld [vmem:[#allocation3 + $0x160] sm:$0xff] }
 0x724   :  { %6742 = vrot.lane.b32.xlu1 %v13240_v12, %s9508_s1 }
 0x725   :  { %v4623_v37 = vpop.permute.xlu0 %4622 }
 0x726   :  { %4700 = vst.msk [vmem:[#allocation4 + $0x190] sm:$0xff] %vm4674_vm11, %v4623_v37  ;;  %v7347_v2 = vpop.permute.xlu1 %7346 }
 0x727   :  { %5928 = vrot.lane.b32.xlu0 %v13092_v14, %s9506_s19  ;;  %7424 = vst.msk [vmem:[#allocation4 + $0x188] sm:$0xff] %vm4264_vm9, %v7347_v2 }
 0x728   :  { %5038 = vrot.lane.b32.xlu1 %v13248_v58, %s9515_s27 }
 0x729   :  { %v6533_v41 = vpop.permute.xlu0 %6532  ;;  %v7690_v9 = vpop.f32.mrb[70].mxu1 }
 0x72a   :  { %6609 = vst.msk [vmem:[#allocation4 + $0x198] sm:$0xff] %vm3444_vm5, %v6533_v41  ;;  %v7691_v63 = vadd.f32 %v13256_v6, %v7690_v9  ;;  %v7692_v18 = vpop.f32.mrb[71].mxu1  ;;  %v4828_v14 = vpop.permute.xlu1 %4827 }
 0x72b   :  { %4220 = vrot.lane.b32.xlu0 %v13109_v29, %s9507_s20  ;;  %4905 = vst.msk [vmem:[#allocation4 + $0x190] sm:$0xff] %vm4879_vm12, %v4828_v14  ;;  %v5147_v29 = vld [vmem:[#allocation3 + $0x11e] sm:$0xff]  ;;  %v13365_v18 = vld [vmem:[#allocation3 + $0x12a] sm:$0xff] }
 0x72c   :  { %v7791_v8 = vmax.f32 %v7691_v63, 0.0  ;;  %6946 = vrot.lane.b32.xlu1 %v13262_v27, %s9509_s21 }
 0x72d   :  { %v4010_v47 = vpop.permute.xlu0 %4009 }
 0x72e   :  { %7825 = vst [vmem:[#allocation5 + $0x88] sm:$0xff] %v7791_v8  ;;  %4086 = vst.msk [vmem:[#allocation4 + $0x1a0] sm:$0xff] %vm4059_vm8, %v4010_v47  ;;  %v5923_v24 = vpop.permute.xlu1 %5922  ;;  %v7483_v45 = vld [vmem:[#allocation4 + $0x188] sm:$0xff] }
 0x72f   :  { %6132 = vrot.lane.b32.xlu0 %v13114_v15, %s9510_s22  ;;  %5998 = vst.msk [vmem:[#allocation4 + $0x1a8] sm:$0xff] %vm2829_vm2, %v5923_v24  ;;  %7723 = vmatprep.mubr.f32.mxu1 %v7483_v45 }
 0x730   :  { %5243 = vrot.lane.b32.xlu1 %v5147_v29, %s9516_s28  ;;  %v13379_v29 = vld [vmem:[#allocation3 + $0x12c] sm:$0xff] }
 0x731   :  { %v5646_v11 = vpop.permute.xlu0 %5645 }
 0x732   :  { %5724 = vst.msk [vmem:[#allocation4 + $0x180] sm:$0xff] %vm5699_vm0, %v5646_v11  ;;  %v4215_v48 = vpop.permute.xlu1 %4214 }
 0x733   :  { %4425 = vrot.lane.b32.xlu0 %v13122_v54, %s9513_s25  ;;  %4291 = vst.msk [vmem:[#allocation4 + $0x1a0] sm:$0xff] %vm4264_vm9, %v4215_v48 }
 0x734   :  { %7150 = vrot.lane.b32.xlu1 %v7054_v20, %s9504_s17 }
 0x735   :  { %v6737_v40 = vpop.permute.xlu0 %6736 }
 0x736   :  { %6813 = vst.msk [vmem:[#allocation4 + $0x198] sm:$0xff] %vm3649_vm6, %v6737_v40  ;;  %v6127_v15 = vpop.permute.xlu1 %6126  ;;  %v13387_v40 = vld [vmem:[#allocation3 + $0x164] sm:$0xff] }
 0x737   :  { %6336 = vrot.lane.b32.xlu0 %v13130_v61, %s9511_s23  ;;  %6202 = vst.msk [vmem:[#allocation4 + $0x1a8] sm:$0xff] %vm3034_vm3, %v6127_v15 }
 0x738   :  { %5448 = vrot.lane.b32.xlu1 %v13280_v44, %s9517_s29 }
 0x739   :  { %v5033_v54 = vpop.permute.xlu0 %5032  ;;  %v7482_v55 = vld [vmem:[#allocation4 + $0x180] sm:$0xff] }
 0x73a   :  { %5110 = vst.msk [vmem:[#allocation4 + $0x190] sm:$0xff] %vm5084_vm13, %v5033_v54  ;;  %7724 = vmatmul.mubr.f32.gmra.mrb[84].mxu1 %v7482_v55  ;;  %v4420_v57 = vpop.permute.xlu1 %4419  ;;  %v5149_v55 = vld [vmem:[#allocation3 + $0x12e] sm:$0xff] }
 0x73b   :  { %4630 = vrot.lane.b32.xlu0 %v13280_v44, %s9512_s24  ;;  %4496 = vst.msk [vmem:[#allocation4 + $0x1a0] sm:$0xff] %vm4469_vm10, %v4420_v57 }
 0x73c   :  { %7354 = vrot.lane.b32.xlu1 %v13288_v19, %s9507_s20 }
 0x73d   :  { %v6941_v23 = vpop.permute.xlu0 %6940 }
 0x73e   :  { %7017 = vst.msk [vmem:[#allocation4 + $0x198] sm:$0xff] %vm3854_vm7, %v6941_v23  ;;  %v6331_v16 = vpop.permute.xlu1 %6330  ;;  %v7056_v23 = vld [vmem:[#allocation3 + $0x166] sm:$0xff] }
 0x73f   :  { %6540 = vrot.lane.b32.xlu0 %v13288_v19, %s9505_s18  ;;  %6406 = vst.msk [vmem:[#allocation4 + $0x1a8] sm:$0xff] %vm3239_vm4, %v6331_v16 }
 0x740   :  { %4835 = vrot.lane.b32.xlu1 %v13296_v42, %s9514_s26 }
 0x741   :  { %v5238_v39 = vpop.permute.xlu0 %5237 }
 0x742   :  { %5315 = vst.msk [vmem:[#allocation4 + $0x190] sm:$0xff] %vm5289_vm14, %v5238_v39  ;;  %v4625_v56 = vpop.permute.xlu1 %4624  ;;  %v5354_v39 = vld [vmem:[#allocation3 + $0x130] sm:$0xff] }
 0x743   :  { %4017 = vrot.lane.b32.xlu0 %v13150_v38, %s9504_s17  ;;  %4701 = vst.msk [vmem:[#allocation4 + $0x1a0] sm:$0xff] %vm4674_vm11, %v4625_v56 }
 0x744   :  { %5930 = vrot.lane.b32.xlu1 %v13158_v21, %s9506_s19 }
 0x745   :  { %v7145_v52 = vpop.permute.xlu0 %7144 }
 0x746   :  { %7221 = vst.msk [vmem:[#allocation4 + $0x198] sm:$0xff] %vm4059_vm8, %v7145_v52  ;;  %v6535_v3 = vpop.permute.xlu1 %6534 }
 0x747   :  { %5653 = vrot.lane.b32.xlu0 %v13005_v4, %s9519_s13  ;;  %6610 = vst.msk [vmem:[#allocation4 + $0x1a8] sm:$0xff] %vm3444_vm5, %v6535_v3  ;;  %v7260_v3 = vld [vmem:[#allocation3 + $0x168] sm:$0xff] }
 0x748   :  { %4222 = vrot.lane.b32.xlu1 %v13166_v31, %s9507_s20 }
 0x749   :  { %v5443_v28 = vpop.permute.xlu0 %5442  ;;  %v7695_v62 = vpop.f32.mrb[72].mxu1 }
 0x74a   :  { %5520 = vst.msk [vmem:[#allocation4 + $0x190] sm:$0xff] %vm5494_vm15, %v5443_v28  ;;  %v7696_v38 = vadd.f32 %v13256_v6, %v7695_v62  ;;  %v7697_v51 = vpop.f32.mrb[73].mxu1  ;;  %v4012_v35 = vpop.permute.xlu1 %4011 }
 0x74b   :  { %6744 = vrot.lane.b32.xlu0 %v13314_v1, %s9508_s1  ;;  %4087 = vst.msk [vmem:[#allocation4 + $0x1b0] sm:$0xff] %vm4059_vm8, %v4012_v35 }
 0x74c   :  { %v7792_v4 = vmax.f32 %v7696_v38, 0.0  ;;  %6134 = vrot.lane.b32.xlu1 %v13183_v7, %s9510_s22  ;;  %v4740_v38 = vld [vmem:[#allocation3 + $0x132] sm:$0xff] }
 0x74d   :  { %v7349_v31 = vpop.permute.xlu0 %7348 }
 0x74e   :  { %7826 = vst [vmem:[#allocation5 + $0x90] sm:$0xff] %v7792_v4  ;;  %7425 = vst.msk [vmem:[#allocation4 + $0x198] sm:$0xff] %vm4264_vm9, %v7349_v31  ;;  %v5648_v10 = vpop.permute.xlu1 %5647 }
 0x74f   :  { %5040 = vrot.lane.b32.xlu0 %v13322_v17, %s9515_s27  ;;  %5725 = vst.msk [vmem:[#allocation4 + $0x190] sm:$0xff] %vm5699_vm0, %v5648_v10 }
 0x750   :  { %4427 = vrot.lane.b32.xlu1 %v13192_v32, %s9513_s25  ;;  %v5148_v32 = vld [vmem:[#allocation3 + $0x126] sm:$0xff] }
 0x751   :  { %v4830_v50 = vpop.permute.xlu0 %4829 }
 0x752   :  { %4906 = vst.msk [vmem:[#allocation4 + $0x1a0] sm:$0xff] %vm4879_vm12, %v4830_v50  ;;  %v6739_v7 = vpop.permute.xlu1 %6738 }
 0x753   :  { %6948 = vrot.lane.b32.xlu0 %v13330_v53, %s9509_s21  ;;  %6814 = vst.msk [vmem:[#allocation4 + $0x1a8] sm:$0xff] %vm3649_vm6, %v6739_v7  ;;  %v6649_v7 = vld [vmem:[#allocation3 + $0x16a] sm:$0xff] }
 0x754   :  { %6338 = vrot.lane.b32.xlu1 %v13200_v13, %s9511_s23 }
 0x755   :  { %v5925_v34 = vpop.permute.xlu0 %5924  ;;  %v7485_v33 = vld [vmem:[#allocation4 + $0x198] sm:$0xff] }
 0x756   :  { %5999 = vst.msk [vmem:[#allocation4 + $0x1b8] sm:$0xff] %vm2829_vm2, %v5925_v34  ;;  %7728 = vmatprep.mubr.f32.mxu1 %v7485_v33  ;;  %v5035_v5 = vpop.permute.xlu1 %5034  ;;  %v7484_v60 = vld [vmem:[#allocation4 + $0x190] sm:$0xff] }
 0x757   :  { %5245 = vrot.lane.b32.xlu0 %v5148_v32, %s9516_s28  ;;  %5111 = vst.msk [vmem:[#allocation4 + $0x1a0] sm:$0xff] %vm5084_vm13, %v5035_v5  ;;  %7729 = vmatmul.mubr.f32.gmra.mrb[86].mxu1 %v7484_v60  ;;  %v6853_v32 = vld [vmem:[#allocation3 + $0x16c] sm:$0xff] }
 0x758   :  { %4632 = vrot.lane.b32.xlu1 %v13340_v30, %s9512_s24 }
 0x759   :  { %v4217_v22 = vpop.permute.xlu0 %4216 }
 0x75a   :  { %4292 = vst.msk [vmem:[#allocation4 + $0x1b0] sm:$0xff] %vm4264_vm9, %v4217_v22  ;;  %v6943_v26 = vpop.permute.xlu1 %6942  ;;  %v5150_v22 = vld [vmem:[#allocation3 + $0x136] sm:$0xff] }
 0x75b   :  { %7152 = vrot.lane.b32.xlu0 %v14310_v36, %s9504_s17  ;;  %7018 = vst.msk [vmem:[#allocation4 + $0x1a8] sm:$0xff] %vm3854_vm7, %v6943_v26  ;;  %v4536_v36 = vld [vmem:[#allocation3 + $0x138] sm:$0xff] }
 0x75c   :  { %6542 = vrot.lane.b32.xlu1 %v13348_v43, %s9505_s18 }
 0x75d   :  { %v6129_v37 = vpop.permute.xlu0 %6128 }
 0x75e   :  { %6203 = vst.msk [vmem:[#allocation4 + $0x1b8] sm:$0xff] %vm3034_vm3, %v6129_v37  ;;  %v5240_v2 = vpop.permute.xlu1 %5239 }
 0x75f   :  { %5450 = vrot.lane.b32.xlu0 %v13340_v30, %s9517_s29  ;;  %5316 = vst.msk [vmem:[#allocation4 + $0x1a0] sm:$0xff] %vm5289_vm14, %v5240_v2  ;;  %v7057_v2 = vld [vmem:[#allocation3 + $0x16e] sm:$0xff] }
 0x760   :  { %4019 = vrot.lane.b32.xlu1 %v13210_v59, %s9504_s17  ;;  %v13370_v59 = vld [vmem:[#allocation3 + $0x162] sm:$0xff] }
 0x761   :  { %v4422_v41 = vpop.permute.xlu0 %4421 }
 0x762   :  { %4497 = vst.msk [vmem:[#allocation4 + $0x1b0] sm:$0xff] %vm4469_vm10, %v4422_v41  ;;  %v7147_v9 = vpop.permute.xlu1 %7146 }
 0x763   :  { %7356 = vrot.lane.b32.xlu0 %v13348_v43, %s9507_s20  ;;  %7222 = vst.msk [vmem:[#allocation4 + $0x1a8] sm:$0xff] %vm4059_vm8, %v7147_v9  ;;  %v6446_v9 = vld [vmem:[#allocation3 + $0x170] sm:$0xff] }
 0x764   :  { %5655 = vrot.lane.b32.xlu1 %v13074_v49, %s9519_s13 }
 0x765   :  { %v6333_v63 = vpop.permute.xlu0 %6332 }
 0x766   :  { %6407 = vst.msk [vmem:[#allocation4 + $0x1b8] sm:$0xff] %vm3239_vm4, %v6333_v63  ;;  %v5445_v14 = vpop.permute.xlu1 %5444 }
 0x767   :  { %4837 = vrot.lane.b32.xlu0 %v13365_v18, %s9514_s26  ;;  %5521 = vst.msk [vmem:[#allocation4 + $0x1a0] sm:$0xff] %vm5494_vm15, %v5445_v14 }
 0x768   :  { %6746 = vrot.lane.b32.xlu1 %v13370_v59, %s9508_s1 }
 0x769   :  { %v4627_v8 = vpop.permute.xlu0 %4626  ;;  %v7700_v47 = vpop.f32.mrb[74].mxu1 }
 0x76a   :  { %4702 = vst.msk [vmem:[#allocation4 + $0x1b0] sm:$0xff] %vm4674_vm11, %v4627_v8  ;;  %v7701_v49 = vadd.f32 %v13256_v6, %v7700_v47  ;;  %v7702_v24 = vpop.f32.mrb[75].mxu1  ;;  %v7351_v45 = vpop.permute.xlu1 %7350 }
 0x76b   :  { %5932 = vrot.lane.b32.xlu0 %v13218_v25, %s9506_s19  ;;  %7426 = vst.msk [vmem:[#allocation4 + $0x1a8] sm:$0xff] %vm4264_vm9, %v7351_v45 }
 0x76c   :  { %v7793_v11 = vmax.f32 %v7701_v49, 0.0  ;;  %5042 = vrot.lane.b32.xlu1 %v13379_v29, %s9515_s27 }
 0x76d   :  { %v6537_v48 = vpop.permute.xlu0 %6536 }
 0x76e   :  { %7827 = vst [vmem:[#allocation5 + $0x98] sm:$0xff] %v7793_v11  ;;  %6611 = vst.msk [vmem:[#allocation4 + $0x1b8] sm:$0xff] %vm3444_vm5, %v6537_v48  ;;  %v4832_v20 = vpop.permute.xlu1 %4831  ;;  %v4741_v48 = vld [vmem:[#allocation3 + $0x13a] sm:$0xff] }
 0x76f   :  { %4224 = vrot.lane.b32.xlu0 %v13235_v46, %s9507_s20  ;;  %4907 = vst.msk [vmem:[#allocation4 + $0x1b0] sm:$0xff] %vm4879_vm12, %v4832_v20  ;;  %v6650_v20 = vld [vmem:[#allocation3 + $0x172] sm:$0xff] }
 0x770   :  { %6950 = vrot.lane.b32.xlu1 %v13387_v40, %s9509_s21 }
 0x771   :  { %v4014_v25 = vpop.permute.xlu0 %4013 }
 0x772   :  { %4088 = vst.msk [vmem:[#allocation4 + $0x1c0] sm:$0xff] %vm4059_vm8, %v4014_v25  ;;  %v5927_v15 = vpop.permute.xlu1 %5926  ;;  %v7487_v54 = vld [vmem:[#allocation4 + $0x1a8] sm:$0xff] }
 0x773   :  { %6136 = vrot.lane.b32.xlu0 %v13240_v12, %s9510_s22  ;;  %6000 = vst.msk [vmem:[#allocation4 + $0x1c8] sm:$0xff] %vm2829_vm2, %v5927_v15  ;;  %7733 = vmatprep.mubr.f32.mxu1 %v7487_v54  ;;  %v4946_v54 = vld [vmem:[#allocation3 + $0x13c] sm:$0xff] }
 0x774   :  { %5247 = vrot.lane.b32.xlu1 %v5149_v55, %s9516_s28 }
 0x775   :  { %v5650_v46 = vpop.permute.xlu0 %5649 }
 0x776   :  { %5726 = vst.msk [vmem:[#allocation4 + $0x1a0] sm:$0xff] %vm5699_vm0, %v5650_v46  ;;  %v4219_v57 = vpop.permute.xlu1 %4218 }
 0x777   :  { %4429 = vrot.lane.b32.xlu0 %v13248_v58, %s9513_s25  ;;  %4293 = vst.msk [vmem:[#allocation4 + $0x1c0] sm:$0xff] %vm4264_vm9, %v4219_v57  ;;  %v6854_v57 = vld [vmem:[#allocation3 + $0x174] sm:$0xff] }
 0x778   :  { %7154 = vrot.lane.b32.xlu1 %v7056_v23, %s9504_s17 }
 0x779   :  { %v6741_v16 = vpop.permute.xlu0 %6740 }
 0x77a   :  { %6815 = vst.msk [vmem:[#allocation4 + $0x1b8] sm:$0xff] %vm3649_vm6, %v6741_v16  ;;  %v6131_v12 = vpop.permute.xlu1 %6130 }
 0x77b   :  { %6340 = vrot.lane.b32.xlu0 %v13262_v27, %s9511_s23  ;;  %6204 = vst.msk [vmem:[#allocation4 + $0x1c8] sm:$0xff] %vm3034_vm3, %v6131_v12  ;;  %v5151_v12 = vld [vmem:[#allocation3 + $0x13e] sm:$0xff] }
 0x77c   :  { %5452 = vrot.lane.b32.xlu1 %v5354_v39, %s9517_s29 }
 0x77d   :  { %v5037_v56 = vpop.permute.xlu0 %5036  ;;  %v7486_v52 = vld [vmem:[#allocation4 + $0x1a0] sm:$0xff] }
 0x77e   :  { %5112 = vst.msk [vmem:[#allocation4 + $0x1b0] sm:$0xff] %vm5084_vm13, %v5037_v56  ;;  %7734 = vmatmul.mubr.f32.gmra.mrb[88].mxu1 %v7486_v52  ;;  %v4424_v58 = vpop.permute.xlu1 %4423  ;;  %v7058_v56 = vld [vmem:[#allocation3 + $0x176] sm:$0xff] }
 0x77f   :  { %4634 = vrot.lane.b32.xlu0 %v5354_v39, %s9512_s24  ;;  %4498 = vst.msk [vmem:[#allocation4 + $0x1c0] sm:$0xff] %vm4469_vm10, %v4424_v58  ;;  %v5356_v58 = vld [vmem:[#allocation3 + $0x140] sm:$0xff] }
 0x780   :  { %7358 = vrot.lane.b32.xlu1 %v7260_v3, %s9507_s20 }
 0x781   :  { %v6945_v28 = vpop.permute.xlu0 %6944 }
 0x782   :  { %7019 = vst.msk [vmem:[#allocation4 + $0x1b8] sm:$0xff] %vm3854_vm7, %v6945_v28  ;;  %v6335_v62 = vpop.permute.xlu1 %6334 }
 0x783   :  { %6544 = vrot.lane.b32.xlu0 %v7260_v3, %s9505_s18  ;;  %6408 = vst.msk [vmem:[#allocation4 + $0x1c8] sm:$0xff] %vm3239_vm4, %v6335_v62  ;;  %v7262_v62 = vld [vmem:[#allocation3 + $0x178] sm:$0xff] }
 0x784   :  { %4839 = vrot.lane.b32.xlu1 %v4740_v38, %s9514_s26 }
 0x785   :  { %v5242_v51 = vpop.permute.xlu0 %5241 }
 0x786   :  { %5317 = vst.msk [vmem:[#allocation4 + $0x1b0] sm:$0xff] %vm5289_vm14, %v5242_v51  ;;  %v4629_v35 = vpop.permute.xlu1 %4628 }
 0x787   :  { %4021 = vrot.lane.b32.xlu0 %v13280_v44, %s9504_s17  ;;  %4703 = vst.msk [vmem:[#allocation4 + $0x1c0] sm:$0xff] %vm4674_vm11, %v4629_v35 }
 0x788   :  { %5934 = vrot.lane.b32.xlu1 %v13288_v19, %s9506_s19 }
 0x789   :  { %v7149_v4 = vpop.permute.xlu0 %7148  ;;  %v7705_v31 = vpop.f32.mrb[76].mxu1 }
 0x78a   :  { %7223 = vst.msk [vmem:[#allocation4 + $0x1b8] sm:$0xff] %vm4059_vm8, %v7149_v4  ;;  %v7707_v10 = vpop.f32.mrb[77].mxu1  ;;  %v6539_v50 = vpop.permute.xlu1 %6538 }
 0x78b   :  { %5657 = vrot.lane.b32.xlu0 %v13130_v61, %s9519_s13  ;;  %6612 = vst.msk [vmem:[#allocation4 + $0x1c8] sm:$0xff] %vm3444_vm5, %v6539_v50  ;;  %v4945_v61 = vld [vmem:[#allocation3 + $0x134] sm:$0xff]  ;;  %v4742_v10 = vld [vmem:[#allocation3 + $0x142] sm:$0xff] }
 0x78c   :  { %4226 = vrot.lane.b32.xlu1 %v13296_v42, %s9507_s20 }
 0x78d   :  { %v5447_v44 = vpop.permute.xlu0 %5446 }
 0x78e   :  { %5522 = vst.msk [vmem:[#allocation4 + $0x1b0] sm:$0xff] %vm5494_vm15, %v5447_v44  ;;  %v4016_v34 = vpop.permute.xlu1 %4015  ;;  %v4947_v44 = vld [vmem:[#allocation3 + $0x144] sm:$0xff] }
 0x78f   :  { %6748 = vrot.lane.b32.xlu0 %v6649_v7, %s9508_s1  ;;  %4089 = vst.msk [vmem:[#allocation4 + $0x1d0] sm:$0xff] %vm4059_vm8, %v4016_v34 }
 0x790   :  { %6138 = vrot.lane.b32.xlu1 %v13314_v1, %s9510_s22 }
 0x791   :  { %v7353_v19 = vpop.permute.xlu0 %7352 }
 0x792   :  { %7427 = vst.msk [vmem:[#allocation4 + $0x1b8] sm:$0xff] %vm4264_vm9, %v7353_v19  ;;  %v5652_v33 = vpop.permute.xlu1 %5651 }
 0x793   :  { %5044 = vrot.lane.b32.xlu0 %v4945_v61, %s9515_s27  ;;  %5727 = vst.msk [vmem:[#allocation4 + $0x1b0] sm:$0xff] %vm5699_vm0, %v5652_v33  ;;  %v5152_v61 = vld [vmem:[#allocation3 + $0x146] sm:$0xff] }
 0x794   :  { %4431 = vrot.lane.b32.xlu1 %v13322_v17, %s9513_s25 }
 0x795   :  { %v4834_v42 = vpop.permute.xlu0 %4833 }
 0x796   :  { %4908 = vst.msk [vmem:[#allocation4 + $0x1c0] sm:$0xff] %vm4879_vm12, %v4834_v42  ;;  %v6743_v5 = vpop.permute.xlu1 %6742  ;;  %v7855_v42 = vld [vmem:[#allocation5 + $0x4] sm:$0x3] }
 0x797   :  { %6952 = vrot.lane.b32.xlu0 %v6853_v32, %s9509_s21  ;;  %6816 = vst.msk [vmem:[#allocation4 + $0x1c8] sm:$0xff] %vm3649_vm6, %v6743_v5  ;;  %v7856_v32 = vld [vmem:[#allocation5 + $0x6] sm:$0x3] }
 0x798   :  { %6342 = vrot.lane.b32.xlu1 %v13330_v53, %s9511_s23  ;;  %v6855_v5 = vld [vmem:[#allocation3 + $0x17c] sm:$0xff] }
 0x799   :  { %v5929_v1 = vpop.permute.xlu0 %5928  ;;  %v7489_v60 = vld [vmem:[#allocation4 + $0x1b8] sm:$0xff] }
 0x79a   :  { %6001 = vst.msk [vmem:[#allocation4 + $0x1d8] sm:$0xff] %vm2829_vm2, %v5929_v1  ;;  %7738 = vmatprep.mubr.f32.mxu1 %v7489_v60  ;;  %v5039_v26 = vpop.permute.xlu1 %5038  ;;  %v7488_v17 = vld [vmem:[#allocation4 + $0x1b0] sm:$0xff]  ;;  %v7858_v60 = vld [vmem:[#allocation5 + $0x20] sm:$0x3] }
 0x79b   :  { %5249 = vrot.lane.b32.xlu0 %v5150_v22, %s9516_s28  ;;  %5113 = vst.msk [vmem:[#allocation4 + $0x1c0] sm:$0xff] %vm5084_vm13, %v5039_v26  ;;  %7739 = vmatmul.mubr.f32.gmra.mrb[90].mxu1 %v7488_v17  ;;  %v7857_v22 = vmax.f32 %v7855_v42, %v7856_v32  ;;  %v7954_v26 = vld [vmem:[#allocation5 + $0x48] sm:$0x3]  ;;  %v7955_v17 = vld [vmem:[#allocation5 + $0x4a] sm:$0x3] }
 0x79c   :  { %4636 = vrot.lane.b32.xlu1 %v4536_v36, %s9512_s24  ;;  %v7993_v32 = vld [vmem:[#allocation5 + $0x94] sm:$0x3] }
 0x79d   :  { %v4221_v37 = vpop.permute.xlu0 %4220 }
 0x79e   :  { %4294 = vst.msk [vmem:[#allocation4 + $0x1d0] sm:$0xff] %vm4264_vm9, %v4221_v37  ;;  %v6947_v41 = vpop.permute.xlu1 %6946  ;;  %v7868_v37 = vld [vmem:[#allocation5 + $0x8] sm:$0x3] }
 0x79f   :  { %7156 = vrot.lane.b32.xlu0 %v7057_v2, %s9504_s17  ;;  %7020 = vst.msk [vmem:[#allocation4 + $0x1c8] sm:$0xff] %vm3854_vm7, %v6947_v41  ;;  %v7869_v2 = vld [vmem:[#allocation5 + $0xa] sm:$0x3] }
 0x7a0   :  { %6546 = vrot.lane.b32.xlu1 %v6446_v9, %s9505_s18  ;;  %v7059_v41 = vld [vmem:[#allocation3 + $0x17e] sm:$0xff] }
 0x7a1   :  { %v6133_v63 = vpop.permute.xlu0 %6132 }
 0x7a2   :  { %6205 = vst.msk [vmem:[#allocation4 + $0x1d8] sm:$0xff] %vm3034_vm3, %v6133_v63  ;;  %v5244_v14 = vpop.permute.xlu1 %5243  ;;  %v7859_v63 = vmax.f32 %v7857_v22, %v7858_v60  ;;  %v7983_v60 = vld [vmem:[#allocation5 + $0x92] sm:$0x3] }
 0x7a3   :  { %5454 = vrot.lane.b32.xlu0 %v4536_v36, %s9517_s29  ;;  %5318 = vst.msk [vmem:[#allocation4 + $0x1c0] sm:$0xff] %vm5289_vm14, %v5244_v14  ;;  %v7957_v14 = vld [vmem:[#allocation5 + $0x64] sm:$0x3] }
 0x7a4   :  { %4023 = vrot.lane.b32.xlu1 %v13340_v30, %s9504_s17 }
 0x7a5   :  { %v4426_v8 = vpop.permute.xlu0 %4425 }
 0x7a6   :  { %4499 = vst.msk [vmem:[#allocation4 + $0x1d0] sm:$0xff] %vm4469_vm10, %v4426_v8  ;;  %v7151_v47 = vpop.permute.xlu1 %7150  ;;  %v7956_v8 = vmax.f32 %v7954_v26, %v7955_v17  ;;  %v8002_v26 = vld [vmem:[#allocation5 + $0x7c] sm:$0x3]  ;;  %v8003_v17 = vld [vmem:[#allocation5 + $0x7e] sm:$0x3] }
 0x7a7   :  { %7360 = vrot.lane.b32.xlu0 %v6446_v9, %s9507_s20  ;;  %7224 = vst.msk [vmem:[#allocation4 + $0x1c8] sm:$0xff] %vm4059_vm8, %v7151_v47  ;;  %v7871_v47 = vld [vmem:[#allocation5 + $0x24] sm:$0x3] }
 0x7a8   :  { %5659 = vrot.lane.b32.xlu1 %v13200_v13, %s9519_s13 }
 0x7a9   :  { %v6337_v49 = vpop.permute.xlu0 %6336  ;;  %v7710_v24 = vpop.f32.mrb[78].mxu1 }
 0x7aa   :  { %6409 = vst.msk [vmem:[#allocation4 + $0x1d8] sm:$0xff] %vm3239_vm4, %v6337_v49  ;;  %v7711_v45 = vadd.f32 %v13256_v6, %v7710_v24  ;;  %v7712_v11 = vpop.f32.mrb[79].mxu1  ;;  %v5449_v30 = vpop.permute.xlu1 %5448  ;;  %v7966_v49 = vld [vmem:[#allocation5 + $0x70] sm:$0x3]  ;;  %v7967_v24 = vld [vmem:[#allocation5 + $0x72] sm:$0x3] }
 0x7ab   :  { %4841 = vrot.lane.b32.xlu0 %v4741_v48, %s9514_s26  ;;  %5523 = vst.msk [vmem:[#allocation4 + $0x1c0] sm:$0xff] %vm5494_vm15, %v5449_v30  ;;  %v7860_v11 = vld [vmem:[#allocation5 + $0x22] sm:$0x3]  ;;  %v7958_v48 = vmax.f32 %v7956_v8, %v7957_v14  ;;  %v7881_v30 = vld [vmem:[#allocation5 + $0xc] sm:$0x3] }
 0x7ac   :  { %v7795_v25 = vmax.f32 %v7711_v45, 0.0  ;;  %6750 = vrot.lane.b32.xlu1 %v6650_v20, %s9508_s1  ;;  %v7882_v20 = vld [vmem:[#allocation5 + $0xe] sm:$0x3] }
 0x7ad   :  { %v4631_v15 = vpop.permute.xlu0 %4630 }
 0x7ae   :  { %7829 = vst [vmem:[#allocation5 + $0xa8] sm:$0xff] %v7795_v25  ;;  %4704 = vst.msk [vmem:[#allocation4 + $0x1d0] sm:$0xff] %vm4674_vm11, %v4631_v15  ;;  %v7355_v13 = vpop.permute.xlu1 %7354  ;;  %v7263_v25 = vld [vmem:[#allocation3 + $0x180] sm:$0xff] }
 0x7af   :  { %5936 = vrot.lane.b32.xlu0 %v13348_v43, %s9506_s19  ;;  %7428 = vst.msk [vmem:[#allocation4 + $0x1c8] sm:$0xff] %vm4264_vm9, %v7355_v13  ;;  %v7861_v13 = vmax.f32 %v7859_v63, %v7860_v11  ;;  %v7921_v63 = vld [vmem:[#allocation5 + $0x3e] sm:$0x3]  ;;  %v8004_v11 = vmax.f32 %v8002_v26, %v8003_v17  ;;  %v8163_v26 = vld [vmem:[%s13956_s2 + $0x1a8] sm:$0xff] }
 0x7b0   :  { %5046 = vrot.lane.b32.xlu1 %v4946_v54, %s9515_s27 }
 0x7b1   :  { %v6541_v55 = vpop.permute.xlu0 %6540 }
 0x7b2   :  { %6613 = vst.msk [vmem:[#allocation4 + $0x1d8] sm:$0xff] %vm3444_vm5, %v6541_v55  ;;  %v4836_v46 = vpop.permute.xlu1 %4835  ;;  %v7969_v55 = vld [vmem:[#allocation5 + $0x8c] sm:$0x3] }
 0x7b3   :  { %4228 = vrot.lane.b32.xlu0 %v13365_v18, %s9507_s20  ;;  %4909 = vst.msk [vmem:[#allocation4 + $0x1d0] sm:$0xff] %vm4879_vm12, %v4836_v46  ;;  %v7884_v46 = vld [vmem:[#allocation5 + $0x28] sm:$0x3] }
 0x7b4   :  { %6954 = vrot.lane.b32.xlu1 %v6854_v57, %s9509_s21  ;;  %v7894_v57 = vld [vmem:[#allocation5 + $0x10] sm:$0x3] }
 0x7b5   :  { %v4018_v23 = vpop.permute.xlu0 %4017 }
 0x7b6   :  { %4090 = vst.msk [vmem:[#allocation4 + $0x1e0] sm:$0xff] %vm4059_vm8, %v4018_v23  ;;  %v5931_v43 = vpop.permute.xlu1 %5930  ;;  %v7491_v16 = vld [vmem:[#allocation4 + $0x1c8] sm:$0xff]  ;;  %v7959_v23 = vld [vmem:[#allocation5 + $0x66] sm:$0x3] }
 0x7b7   :  { %6140 = vrot.lane.b32.xlu0 %v13370_v59, %s9510_s22  ;;  %6002 = vst.msk [vmem:[#allocation4 + $0x1e8] sm:$0xff] %vm2829_vm2, %v5931_v43  ;;  %7743 = vmatprep.mubr.f32.mxu1 %v7491_v16  ;;  %v7883_v43 = vmax.f32 %v7881_v30, %v7882_v20  ;;  %v7978_v16 = vld [vmem:[#allocation5 + $0x74] sm:$0x3]  ;;  %v7933_v30 = vld [vmem:[#allocation5 + $0x40] sm:$0x3] }
 0x7b8   :  { %5251 = vrot.lane.b32.xlu1 %v5151_v12, %s9516_s28  ;;  %v7979_v12 = vld [vmem:[#allocation5 + $0x76] sm:$0x3] }
 0x7b9   :  { %v5654_v18 = vpop.permute.xlu0 %5653  ;;  %v7995_v20 = vld [vmem:[#allocation5 + $0x96] sm:$0x3] }
 0x7ba   :  { %5728 = vst.msk [vmem:[#allocation4 + $0x1c0] sm:$0xff] %vm5699_vm0, %v5654_v18  ;;  %v4223_v39 = vpop.permute.xlu1 %4222 }
 0x7bb   :  { %4433 = vrot.lane.b32.xlu0 %v13379_v29, %s9513_s25  ;;  %4295 = vst.msk [vmem:[#allocation4 + $0x1e0] sm:$0xff] %vm4264_vm9, %v4223_v39 }
 0x7bc   :  { %7158 = vrot.lane.b32.xlu1 %v7058_v56, %s9504_s17  ;;  %v7960_v56 = vmax.f32 %v7958_v48, %v7959_v23  ;;  %v7923_v48 = vld [vmem:[#allocation5 + $0x58] sm:$0x3]  ;;  %v7934_v23 = vld [vmem:[#allocation5 + $0x42] sm:$0x3] }
 0x7bd   :  { %v6745_v52 = vpop.permute.xlu0 %6744 }
 0x7be   :  { %6817 = vst.msk [vmem:[#allocation4 + $0x1d8] sm:$0xff] %vm3649_vm6, %v6745_v52  ;;  %v6135_v59 = vpop.permute.xlu1 %6134  ;;  %v7873_v52 = vld [vmem:[#allocation5 + $0x26] sm:$0x3] }
 0x7bf   :  { %6344 = vrot.lane.b32.xlu0 %v13387_v40, %s9511_s23  ;;  %6206 = vst.msk [vmem:[#allocation4 + $0x1e8] sm:$0xff] %vm3034_vm3, %v6135_v59 }
 0x7c0   :  { %5456 = vrot.lane.b32.xlu1 %v5356_v58, %s9517_s29 }
 0x7c1   :  { %v5041_v3 = vpop.permute.xlu0 %5040  ;;  %v7490_v28 = vld [vmem:[#allocation4 + $0x1c0] sm:$0xff] }
 0x7c2   :  { %5114 = vst.msk [vmem:[#allocation4 + $0x1d0] sm:$0xff] %vm5084_vm13, %v5041_v3  ;;  %7744 = vmatmul.mubr.f32.gmra.mrb[92].mxu1 %v7490_v28  ;;  %v4428_v29 = vpop.permute.xlu1 %4427 }
 0x7c3   :  { %4638 = vrot.lane.b32.xlu0 %v5356_v58, %s9512_s24  ;;  %4500 = vst.msk [vmem:[#allocation4 + $0x1e0] sm:$0xff] %vm4469_vm10, %v4428_v29  ;;  %v7895_v58 = vld [vmem:[#allocation5 + $0x12] sm:$0x3] }
 0x7c4   :  { %7362 = vrot.lane.b32.xlu1 %v7262_v62, %s9507_s20 }
 0x7c5   :  { %v6949_v38 = vpop.permute.xlu0 %6948 }
 0x7c6   :  { %7021 = vst.msk [vmem:[#allocation4 + $0x1d8] sm:$0xff] %vm3854_vm7, %v6949_v38  ;;  %v6339_v40 = vpop.permute.xlu1 %6338  ;;  %v7981_v38 = vld [vmem:[#allocation5 + $0x90] sm:$0x3] }
 0x7c7   :  { %6548 = vrot.lane.b32.xlu0 %v7262_v62, %s9505_s18  ;;  %6410 = vst.msk [vmem:[#allocation4 + $0x1e8] sm:$0xff] %vm3239_vm4, %v6339_v40  ;;  %v7885_v62 = vmax.f32 %v7883_v43, %v7884_v46  ;;  %v7980_v40 = vmax.f32 %v7978_v16, %v7979_v12  ;;  %v7912_v46 = vld [vmem:[#allocation5 + $0x56] sm:$0x3]  ;;  %v8017_v12 = vld [vmem:[#allocation5 + $0x9c] sm:$0x3] }
 0x7c8   :  { %5661 = vrot.lane.b32.xlu1 %v13262_v27, %s9519_s13  ;;  %v6651_v27 = vld [vmem:[#allocation3 + $0x17a] sm:$0xff] }
 0x7c9   :  { %v5246_v51 = vpop.permute.xlu0 %5245  ;;  %v7715_v35 = vpop.f32.mrb[80].mxu1 }
 0x7ca   :  { %5319 = vst.msk [vmem:[#allocation4 + $0x1d0] sm:$0xff] %vm5289_vm14, %v5246_v51  ;;  %v7716_v4 = vadd.f32 %v13256_v6, %v7715_v35  ;;  %v7717_v31 = vpop.f32.mrb[81].mxu1  ;;  %v4633_v50 = vpop.permute.xlu1 %4632  ;;  %v7897_v51 = vld [vmem:[#allocation5 + $0x2c] sm:$0x3]  ;;  %v7971_v35 = vld [vmem:[#allocation5 + $0x8e] sm:$0x3] }
 0x7cb   :  { %4843 = vrot.lane.b32.xlu0 %v4742_v10, %s9514_s26  ;;  %4705 = vst.msk [vmem:[#allocation4 + $0x1e0] sm:$0xff] %vm4674_vm11, %v4633_v50  ;;  %v7990_v31 = vld [vmem:[#allocation5 + $0x78] sm:$0x3]  ;;  %v7991_v10 = vld [vmem:[#allocation5 + $0x7a] sm:$0x3] }
 0x7cc   :  { %v7796_v7 = vmax.f32 %v7716_v4, 0.0  ;;  %5048 = vrot.lane.b32.xlu1 %v4947_v44, %s9515_s27  ;;  %v7896_v4 = vmax.f32 %v7894_v57, %v7895_v58 }
 0x7cd   :  { %v7153_v34 = vpop.permute.xlu0 %7152 }
 0x7ce   :  { %7830 = vst [vmem:[#allocation5 + $0xb0] sm:$0xff] %v7796_v7  ;;  %7225 = vst.msk [vmem:[#allocation4 + $0x1d8] sm:$0xff] %vm4059_vm8, %v7153_v34  ;;  %v6543_v19 = vpop.permute.xlu1 %6542  ;;  %v7886_v7 = vld [vmem:[#allocation5 + $0x2a] sm:$0x3]  ;;  %v7982_v34 = vmax.f32 %v7980_v40, %v7981_v38  ;;  %v7898_v42 = vmax.f32 %v7896_v4, %v7897_v51  ;;  %v8019_v40 = vld [vmem:[#allocation5 + $0x9e] sm:$0x3] }
 0x7cf   :  { %6752 = vrot.lane.b32.xlu0 %v6651_v27, %s9508_s1  ;;  %6614 = vst.msk [vmem:[#allocation4 + $0x1e8] sm:$0xff] %vm3444_vm5, %v6543_v19  ;;  %v7907_v27 = vld [vmem:[#allocation5 + $0x38] sm:$0x3]  ;;  %v7908_v19 = vld [vmem:[#allocation5 + $0x3a] sm:$0x3] }
 0x7d0   :  { %5253 = vrot.lane.b32.xlu1 %v5152_v61, %s9516_s28  ;;  %v7909_v22 = vmax.f32 %v7907_v27, %v7908_v19  ;;  %v7938_v4 = vld [vmem:[#allocation5 + $0x5e] sm:$0x3]  ;;  %v8143_v27 = vld [vmem:[%s13956_s2 + $0x108] sm:$0xff] }
 0x7d1   :  { %v5451_v33 = vpop.permute.xlu0 %5450  ;;  %v8160_v19 = vld [vmem:[%s13956_s2 + $0x190] sm:$0xff] }
 0x7d2   :  { %5524 = vst.msk [vmem:[#allocation4 + $0x1d0] sm:$0xff] %vm5494_vm15, %v5451_v33  ;;  %v4020_v1 = vpop.permute.xlu1 %4019  ;;  %v7887_v33 = vmax.f32 %v7885_v62, %v7886_v7  ;;  %v8142_v7 = vld [vmem:[%s13956_s2 + $0x100] sm:$0xff] }
 0x7d3   :  { %6956 = vrot.lane.b32.xlu0 %v6855_v5, %s9509_s21  ;;  %4091 = vst.msk [vmem:[#allocation4 + $0x1f0] sm:$0xff] %vm4059_vm8, %v4020_v1  ;;  %v7992_v5 = vmax.f32 %v7990_v31, %v7991_v10  ;;  %v7910_v1 = vld [vmem:[#allocation5 + $0x54] sm:$0x3] }
 0x7d4   :  { %5458 = vrot.lane.b32.xlu1 %v13158_v21, %s9517_s29  ;;  %v7870_v21 = vmax.f32 %v7868_v37, %v7869_v2  ;;  %v7984_v37 = vmax.f32 %v7982_v34, %v7983_v60  ;;  %v7899_v2 = vld [vmem:[#allocation5 + $0x2e] sm:$0x3] }
 0x7d5   :  { %v7357_v36 = vpop.permute.xlu0 %7356  ;;  %v8162_v60 = vld [vmem:[%s13956_s2 + $0x1a0] sm:$0xff] }
 0x7d6   :  { %7429 = vst.msk [vmem:[#allocation4 + $0x1d8] sm:$0xff] %vm4264_vm9, %v7357_v36  ;;  %v5656_v9 = vpop.permute.xlu1 %5655  ;;  %v7872_v54 = vmax.f32 %v7870_v21, %v7871_v47  ;;  %v7900_v47 = vmax.f32 %v7898_v42, %v7899_v2  ;;  %v7911_v21 = vmax.f32 %v7909_v22, %v7910_v1  ;;  %v9267_v42 = vpack.c.bf16 %v8143_v27, %v8142_v7  ;;  %v8145_v1 = vld [vmem:[%s13956_s2 + $0x118] sm:$0xff]  ;;  %v8147_v2 = vld [vmem:[%s13956_s2 + $0x128] sm:$0xff]  ;;  %v8027_v27 = vld [vmem:[#allocation5 + $0xaa] sm:$0x3] }
 0x7d7   :  { %7160 = vrot.lane.b32.xlu0 %v7059_v41, %s9504_s17  ;;  %5729 = vst.msk [vmem:[#allocation4 + $0x1d0] sm:$0xff] %vm5699_vm0, %v5656_v9  ;;  %v7994_v41 = vmax.f32 %v7992_v5, %v7993_v32  ;;  %v7920_v9 = vld [vmem:[#allocation5 + $0x3c] sm:$0x3] }
 0x7d8   :  { %5663 = vrot.lane.b32.xlu1 %v13330_v53, %s9519_s13  ;;  %v7968_v53 = vmax.f32 %v7966_v49, %v7967_v24  ;;  %v7874_v29 = vmax.f32 %v7872_v54, %v7873_v52  ;;  %v8005_v49 = vld [vmem:[#allocation5 + $0x98] sm:$0x3]  ;;  %v7913_v43 = vmax.f32 %v7911_v21, %v7912_v46  ;;  %v7935_v52 = vmax.f32 %v7933_v30, %v7934_v23 }
 0x7d9   :  { %v4838_v45 = vpop.permute.xlu0 %4837  ;;  %v8006_v57 = vmax.f32 %v8004_v11, %v8005_v49  ;;  %v8144_v5 = vld [vmem:[%s13956_s2 + $0x110] sm:$0xff]  ;;  %v8166_v11 = vld [vmem:[%s13956_s2 + $0x1c0] sm:$0xff] }
 0x7da   :  { %4910 = vst.msk [vmem:[#allocation4 + $0x1e0] sm:$0xff] %vm4879_vm12, %v4838_v45  ;;  %v6747_v15 = vpop.permute.xlu1 %6746  ;;  %v7970_v59 = vmax.f32 %v7968_v53, %v7969_v55  ;;  %v7996_v53 = vmax.f32 %v7994_v41, %v7995_v20  ;;  %v9271_v17 = vpack.c.bf16 %v8145_v1, %v8144_v5  ;;  %v8148_v49 = vld [vmem:[%s13956_s2 + $0x130] sm:$0xff] }
 0x7db   :  { %7364 = vrot.lane.b32.xlu0 %v7263_v25, %s9507_s20  ;;  %6818 = vst.msk [vmem:[#allocation4 + $0x1e8] sm:$0xff] %vm3649_vm6, %v6747_v15  ;;  %v7922_v25 = vmax.f32 %v7920_v9, %v7921_v63  ;;  %v8014_v15 = vld [vmem:[#allocation5 + $0x80] sm:$0x3]  ;;  %v8164_v9 = vld [vmem:[%s13956_s2 + $0x1b0] sm:$0xff] }
 0x7dc   :  { %7863 = vrot.lane.b32.xlu1 %v7861_v13, %s9510_s22  ;;  %v7972_v44 = vmax.f32 %v7970_v59, %v7971_v35  ;;  %v8015_v13 = vld [vmem:[#allocation5 + $0x82] sm:$0x3]  ;;  %v8172_v1 = vld [vmem:[%s13956_s2 + $0x1f0] sm:$0xff] }
 0x7dd   :  { %v5933_v18 = vpop.permute.xlu0 %5932  ;;  %v7493_v39 = vld [vmem:[#allocation4 + $0x1d8] sm:$0xff]  ;;  %v7924_v16 = vmax.f32 %v7922_v25, %v7923_v48  ;;  %v8165_v63 = vld [vmem:[%s13956_s2 + $0x1b8] sm:$0xff]  ;;  %v8167_v48 = vld [vmem:[%s13956_s2 + $0x1c8] sm:$0xff] }
 0x7de   :  { %6003 = vst.msk [vmem:[#allocation4 + $0x1f8] sm:$0xff] %vm2829_vm2, %v5933_v18  ;;  %7748 = vmatprep.mubr.f32.mxu1 %v7493_v39  ;;  %v5043_v3 = vpop.permute.xlu1 %5042  ;;  %v7492_v28 = vld [vmem:[#allocation4 + $0x1d0] sm:$0xff]  ;;  %v8016_v18 = vmax.f32 %v8014_v15, %v8015_v13  ;;  %v7936_v39 = vld [vmem:[#allocation5 + $0x5c] sm:$0x3]  ;;  %v9277_v21 = vpack.c.bf16 %v8165_v63, %v8164_v9  ;;  %v9281_v25 = vpack.c.bf16 %v8167_v48, %v8166_v11  ;;  %v8150_v15 = vld [vmem:[%s13956_s2 + $0x140] sm:$0xff] }
 0x7df   :  { %5115 = vst.msk [vmem:[#allocation4 + $0x1e0] sm:$0xff] %vm5084_vm13, %v5043_v3  ;;  %7962 = vrot.lane.b32.xlu0 %v7960_v56, %s9510_s22  ;;  %7749 = vmatmul.mubr.f32.gmra.mrb[94].mxu1 %v7492_v28  ;;  %v8007_v56 = vld [vmem:[#allocation5 + $0x9a] sm:$0x3]  ;;  %v7937_v38 = vmax.f32 %v7935_v52, %v7936_v39  ;;  %v8151_v13 = vld [vmem:[%s13956_s2 + $0x148] sm:$0xff] }
 0x7e0   :  { %7876 = vrot.lane.b32.xlu1 %v7874_v29, %s9505_s18  ;;  %v8008_v58 = vmax.f32 %v8006_v57, %v8007_v56  ;;  %v7925_v3 = vld [vmem:[#allocation5 + $0x5a] sm:$0x3]  ;;  %v8018_v28 = vmax.f32 %v8016_v18, %v8017_v12  ;;  %v9283_v57 = vpack.c.bf16 %v8151_v13, %v8150_v15 }
 0x7e1   :  { %v4225_v50 = vpop.permute.xlu0 %4224  ;;  %v7926_v62 = vmax.f32 %v7924_v16, %v7925_v3  ;;  %v7939_v10 = vmax.f32 %v7937_v38, %v7938_v4  ;;  %v13634_v3 = vld [vmem:[%s13956_s2 + $0x401] ss:$0 sm:$0xff] }
 0x7e2   :  { %4296 = vst.msk [vmem:[#allocation4 + $0x1f0] sm:$0xff] %vm4264_vm9, %v4225_v50  ;;  %v6951_v61 = vpop.permute.xlu1 %6950  ;;  %v8020_v35 = vmax.f32 %v8018_v28, %v8019_v40  ;;  %v8158_v50 = vld [vmem:[%s13956_s2 + $0x180] sm:$0xff] }
 0x7e3   :  { %7022 = vst.msk [vmem:[#allocation4 + $0x1e8] sm:$0xff] %vm3854_vm7, %v6951_v61  ;;  %7974 = vrot.lane.b32.xlu0 %v7972_v44, %s9505_s18  ;;  %v8159_v44 = vld [vmem:[%s13956_s2 + $0x188] sm:$0xff]  ;;  %v8161_v61 = vld [vmem:[%s13956_s2 + $0x198] sm:$0xff]  ;;  %v8154_v4 = vld [vmem:[%s13956_s2 + $0x160] sm:$0xff] }
 0x7e4   :  { %7889 = vrot.lane.b32.xlu1 %v7887_v33, %s9509_s21  ;;  %v9265_v34 = vpack.c.bf16 %v8159_v44, %v8158_v50  ;;  %v9269_v32 = vpack.c.bf16 %v8161_v61, %v8160_v19  ;;  %v8155_v50 = vld [vmem:[%s13956_s2 + $0x168] sm:$0xff] }
 0x7e5   :  { %v6137_v36 = vpop.permute.xlu0 %6136  ;;  %v9291_v44 = vpack.c.bf16 %v8155_v50, %v8154_v4 }
 0x7e6   :  { %6207 = vst.msk [vmem:[#allocation4 + $0x1f8] sm:$0xff] %vm3034_vm3, %v6137_v36  ;;  %v5248_v14 = vpop.permute.xlu1 %5247  ;;  %v7720_v8 = vpop.f32.mrb[82].mxu1  ;;  %9266 = vmatprep.subr.bf16.mxu1 %v9265_v34  ;;  %v9273_v36 = vpack.c.bf16 %v8163_v26, %v8162_v60  ;;  %v8026_v34 = vld [vmem:[#allocation5 + $0xa8] sm:$0x3]  ;;  %v8173_v60 = vld [vmem:[%s13956_s2 + $0x1f8] sm:$0xff] }
 0x7e7   :  { %5320 = vst.msk [vmem:[#allocation4 + $0x1e0] sm:$0xff] %vm5289_vm14, %v5248_v14  ;;  %v7721_v24 = vadd.f32 %v13256_v6, %v7720_v8  ;;  %7986 = vrot.lane.b32.xlu0 %v7984_v37, %s9509_s21  ;;  %v7722_v45 = vpop.f32.mrb[83].mxu1  ;;  %9268 = vmatpush3.bf16.msra.mxu1 %v9267_v42  ;;  %v8146_v37 = vld [vmem:[%s13956_s2 + $0x120] sm:$0xff]  ;;  %v8028_v61 = vmax.f32 %v8026_v34, %v8027_v27 }
 0x7e8   :  { %7902 = vrot.lane.b32.xlu1 %v7900_v47, %s9507_s20  ;;  %9270 = vmatprep.subr.bf16.mxu1 %v9269_v32  ;;  %v9275_v47 = vpack.c.bf16 %v8147_v2, %v8146_v37 }
 0x7e9   :  { %v7797_v54 = vmax.f32 %v7721_v24, 0.0  ;;  %v4430_v55 = vpop.permute.xlu0 %4429  ;;  %v8149_v24 = vld [vmem:[%s13956_s2 + $0x138] sm:$0xff] }
 0x7ea   :  { %4501 = vst.msk [vmem:[#allocation4 + $0x1f0] sm:$0xff] %vm4469_vm10, %v4430_v55  ;;  %v7155_v6 = vpop.permute.xlu1 %7154  ;;  %v9279_v20 = vpack.c.bf16 %v8149_v24, %v8148_v49  ;;  %v8168_v55 = vld [vmem:[%s13956_s2 + $0x1d0] sm:$0xff] }
 0x7eb   :  { %7831 = vst [vmem:[#allocation5 + $0xb8] sm:$0xff] %v7797_v54  ;;  %7226 = vst.msk [vmem:[#allocation4 + $0x1e8] sm:$0xff] %vm4059_vm8, %v7155_v6  ;;  %7998 = vrot.lane.b32.xlu0 %v7996_v53, %s9507_s20  ;;  %9272 = vmatpush3.bf16.msra.mxu1 %v9271_v17  ;;  %v8169_v53 = vld [vmem:[%s13956_s2 + $0x1d8] sm:$0xff]  ;;  %v8152_v6 = vld [vmem:[%s13956_s2 + $0x150] sm:$0xff]  ;;  %v9293_v17 = vpack.c.bf16 %v8173_v60, %v8172_v1 }
 0x7ec   :  { %7915 = vrot.lane.b32.xlu1 %v7913_v43, %s9512_s24  ;;  %9274 = vmatprep.subr.bf16.mxu1 %v9273_v36  ;;  %v9285_v23 = vpack.c.bf16 %v8169_v53, %v8168_v55  ;;  %v8153_v43 = vld [vmem:[%s13956_s2 + $0x158] sm:$0xff]  ;;  %v8046_v53 = vld [vmem:[#allocation5 + $0xb0] sm:$0x3] }
 0x7ed   :  { %v6341_v59 = vpop.permute.xlu0 %6340  ;;  %v9287_v39 = vpack.c.bf16 %v8153_v43, %v8152_v6  ;;  %v8157_v36 = vld [vmem:[%s13956_s2 + $0x178] sm:$0xff] }
 0x7ee   :  { %6411 = vst.msk [vmem:[#allocation4 + $0x1f8] sm:$0xff] %vm3239_vm4, %v6341_v59  ;;  %v5453_v29 = vpop.permute.xlu1 %5452 }
 0x7ef   :  { %5525 = vst.msk [vmem:[#allocation4 + $0x1e0] sm:$0xff] %vm5494_vm15, %v5453_v29  ;;  %8010 = vrot.lane.b32.xlu0 %v8008_v58, %s9512_s24  ;;  %9276 = vmatpush3.bf16.msra.mxu1 %v9275_v47 }
 0x7f0   :  { %7928 = vrot.lane.b32.xlu1 %v7926_v62, %s9515_s27  ;;  %9278 = vmatprep.subr.bf16.mxu1 %v9277_v21 }
 0x7f1   :  { %v4635_v51 = vpop.permute.xlu0 %4634 }
 0x7f2   :  { %4706 = vst.msk [vmem:[#allocation4 + $0x1f0] sm:$0xff] %vm4674_vm11, %v4635_v51  ;;  %v7359_v31 = vpop.permute.xlu1 %7358  ;;  %v8170_v51 = vld [vmem:[%s13956_s2 + $0x1e0] sm:$0xff] }
 0x7f3   :  { %7430 = vst.msk [vmem:[#allocation4 + $0x1e8] sm:$0xff] %vm4264_vm9, %v7359_v31  ;;  %8022 = vrot.lane.b32.xlu0 %v8020_v35, %s9515_s27  ;;  %9280 = vmatpush3.bf16.msra.mxu1 %v9279_v20  ;;  %v8171_v35 = vld [vmem:[%s13956_s2 + $0x1e8] sm:$0xff] }
 0x7f4   :  { %7941 = vrot.lane.b32.xlu1 %v7939_v10, %s9517_s29  ;;  %9282 = vmatprep.subr.bf16.mxu1 %v9281_v25  ;;  %v9289_v10 = vpack.c.bf16 %v8171_v35, %v8170_v51 }
 0x7f5   :  { %v6545_v33 = vpop.permute.xlu0 %6544 }
 0x7f6   :  { %6615 = vst.msk [vmem:[#allocation4 + $0x1f8] sm:$0xff] %vm3444_vm5, %v6545_v33  ;;  %v4840_v22 = vpop.permute.xlu1 %4839 }
 0x7f7   :  { %4911 = vst.msk [vmem:[#allocation4 + $0x1f0] sm:$0xff] %vm4879_vm12, %v4840_v22  ;;  %9284 = vmatpush3.bf16.msra.mxu1 %v9283_v57  ;;  %v8156_v22 = vld [vmem:[%s13956_s2 + $0x170] sm:$0xff]  ;;  %v8039_v57 = vld [vmem:[#allocation5 + $0xae] sm:$0x3] }
 0x7f8   :  { %9286 = vmatprep.subr.bf16.mxu1 %v9285_v23  ;;  %v9295_v2 = vpack.c.bf16 %v8157_v36, %v8156_v22 }
 0x7f9   :  { %v4022_v41 = vpop.permute.xlu0 %4021 }
 0x7fa   :  { %4092 = vst.msk [vmem:[#allocation4 + $0x200] sm:$0xff] %vm4059_vm8, %v4022_v41  ;;  %v5935_v14 = vpop.permute.xlu1 %5934  ;;  %v7495_v8 = vld [vmem:[#allocation4 + $0x1e8] sm:$0xff] }
 0x7fb   :  { %6004 = vst.msk [vmem:[#allocation4 + $0x208] sm:$0xff] %vm2829_vm2, %v5935_v14  ;;  %7753 = vmatprep.mubr.f32.mxu1 %v7495_v8  ;;  %9288 = vmatpush3.bf16.msra.mxu1 %v9287_v39 }
 0x7fc   :  { %9290 = vmatprep.subr.bf16.mxu1 %v9289_v10 }
 0x7fd   :  { %v5658_v45 = vpop.permute.xlu0 %5657 }
 0x7fe   :  { %5730 = vst.msk [vmem:[#allocation4 + $0x1e0] sm:$0xff] %vm5699_vm0, %v5658_v45  ;;  %v4227_v30 = vpop.permute.xlu1 %4226 }
 0x7ff   :  { %4297 = vst.msk [vmem:[#allocation4 + $0x200] sm:$0xff] %vm4264_vm9, %v4227_v30  ;;  %9292 = vmatpush3.bf16.msra.mxu1 %v9291_v44 }
 0x800   :  { %9294 = vmatprep.subr.bf16.mxu1 %v9293_v17  ;;  %v8058_v17 = vld [vmem:[#allocation5 + $0xb4] sm:$0x3] }
 0x801   :  { %v6749_v54 = vpop.permute.xlu0 %6748 }
 0x802   :  { %6819 = vst.msk [vmem:[#allocation4 + $0x1f8] sm:$0xff] %vm3649_vm6, %v6749_v54  ;;  %v6139_v46 = vpop.permute.xlu1 %6138  ;;  %v8038_v54 = vld [vmem:[#allocation5 + $0xac] sm:$0x3] }
 0x803   :  { %6208 = vst.msk [vmem:[#allocation4 + $0x208] sm:$0xff] %vm3034_vm3, %v6139_v46  ;;  %9296 = vmatpush3.bf16.msra.mxu1 %v9295_v2  ;;  %v8047_v46 = vld [vmem:[#allocation5 + $0xb2] sm:$0x3]  ;;  %v8040_v43 = vmax.f32 %v8038_v54, %v8039_v57  ;;  %v8071_v2 = vld [vmem:[#allocation5 + $0xba] sm:$0x3] }
 0x804   :  { %v8048_v6 = vmax.f32 %v8046_v53, %v8047_v46 }
 0x805   :  { %v5045_v16 = vpop.permute.xlu0 %5044  ;;  %v7494_v12 = vld [vmem:[#allocation4 + $0x1e0] sm:$0xff] }
 0x806   :  { %5116 = vst.msk [vmem:[#allocation4 + $0x1f0] sm:$0xff] %vm5084_vm13, %v5045_v16  ;;  %7754 = vmatmul.mubr.f32.gmra.mrb[96].mxu1 %v7494_v12  ;;  %v4432_v18 = vpop.permute.xlu1 %4431 }
 0x807   :  { %4502 = vst.msk [vmem:[#allocation4 + $0x200] sm:$0xff] %vm4469_vm10, %v4432_v18 }
 0x809   :  { %v6953_v56 = vpop.permute.xlu0 %6952 }
 0x80a   :  { %7023 = vst.msk [vmem:[#allocation4 + $0x1f8] sm:$0xff] %vm3854_vm7, %v6953_v56  ;;  %v6343_v52 = vpop.permute.xlu1 %6342 }
 0x80b   :  { %6412 = vst.msk [vmem:[#allocation4 + $0x208] sm:$0xff] %vm3239_vm4, %v6343_v52 }
 0x80d   :  { %v5250_v59 = vpop.permute.xlu0 %5249  ;;  %v7725_v58 = vpop.f32.mrb[84].mxu1 }
 0x80e   :  { %5321 = vst.msk [vmem:[#allocation4 + $0x1f0] sm:$0xff] %vm5289_vm14, %v5250_v59  ;;  %v7726_v28 = vadd.f32 %v13634_v3, %v7725_v58  ;;  %v7727_v29 = vpop.f32.mrb[85].mxu1  ;;  %v4637_v62 = vpop.permute.xlu1 %4636 }
 0x80f   :  { %4707 = vst.msk [vmem:[#allocation4 + $0x200] sm:$0xff] %vm4674_vm11, %v4637_v62 }
 0x810   :  { %v7798_v38 = vmax.f32 %v7726_v28, 0.0 }
 0x811   :  { %v7157_v40 = vpop.permute.xlu0 %7156 }
 0x812   :  { %7832 = vst [vmem:[#allocation5 + $0xc0] sm:$0xff] %v7798_v38  ;;  %7227 = vst.msk [vmem:[#allocation4 + $0x1f8] sm:$0xff] %vm4059_vm8, %v7157_v40  ;;  %v6547_v31 = vpop.permute.xlu1 %6546 }
 0x813   :  { %6616 = vst.msk [vmem:[#allocation4 + $0x208] sm:$0xff] %vm3444_vm5, %v6547_v31 }
 0x815   :  { %v5455_v7 = vpop.permute.xlu0 %5454 }
 0x816   :  { %5526 = vst.msk [vmem:[#allocation4 + $0x1f0] sm:$0xff] %vm5494_vm15, %v5455_v7  ;;  %v4024_v19 = vpop.permute.xlu1 %4023 }
 0x817   :  { %4093 = vst.msk [vmem:[#allocation4 + $0x210] sm:$0xff] %vm4059_vm8, %v4024_v19 }
 0x819   :  { %v7361_v33 = vpop.permute.xlu0 %7360  ;;  %v8029_v42 = vld [vmem:[#allocation5 + $0xc4] sm:$0x3]  ;;  %v8031_v26 = vld [vmem:[#allocation5 + $0xc6] sm:$0x3] }
 0x81a   :  { %7431 = vst.msk [vmem:[#allocation4 + $0x1f8] sm:$0xff] %vm4264_vm9, %v7361_v33  ;;  %v5660_v32 = vpop.permute.xlu1 %5659  ;;  %v8030_v5 = vmax.f32 %v8028_v61, %v8029_v42 }
 0x81b   :  { %5731 = vst.msk [vmem:[#allocation4 + $0x1f0] sm:$0xff] %vm5699_vm0, %v5660_v32 }
 0x81c   :  { %v8032_v37 = vmax.f32 %v8030_v5, %v8031_v26 }
 0x81d   :  { %v4842_v41 = vpop.permute.xlu0 %4841 }
 0x81e   :  { %4912 = vst.msk [vmem:[#allocation4 + $0x200] sm:$0xff] %vm4879_vm12, %v4842_v41  ;;  %8034 = vrot.lane.b32.xlu0 %v8032_v37, %s9517_s29  ;;  %v6751_v9 = vpop.permute.xlu1 %6750  ;;  %v8070_v37 = vld [vmem:[#allocation5 + $0xb8] sm:$0x3]  ;;  %v8059_v41 = vld [vmem:[#allocation5 + $0xb6] sm:$0x3] }
 0x81f   :  { %6820 = vst.msk [vmem:[#allocation4 + $0x208] sm:$0xff] %vm3649_vm6, %v6751_v9 }
 0x821   :  { %v5937_v63 = vpop.permute.xlu0 %5936  ;;  %v7497_v14 = vld [vmem:[#allocation4 + $0x1f8] sm:$0xff] }
 0x822   :  { %6005 = vst.msk [vmem:[#allocation4 + $0x218] sm:$0xff] %vm2829_vm2, %v5937_v63  ;;  %7758 = vmatprep.mubr.f32.mxu1 %v7497_v14  ;;  %v5047_v8 = vpop.permute.xlu1 %5046  ;;  %v7496_v47 = vld [vmem:[#allocation4 + $0x1f0] sm:$0xff]  ;;  %vm7866_vm2 = vcmask 255104   ;;  %v8072_v63 = vmax.f32 %v8070_v37, %v8071_v2  ;;  %v8060_v14 = vmax.f32 %v8058_v17, %v8059_v41  ;;  %v8193_v37 = vld [vmem:[%s13956_s2 + $0x298] sm:$0xff]  ;;  %v8176_v41 = vld [vmem:[%s13956_s2 + $0x210] sm:$0xff] }
 0x823   :  { %5117 = vst.msk [vmem:[#allocation4 + $0x200] sm:$0xff] %vm5084_vm13, %v5047_v8  ;;  %7759 = vmatmul.mubr.f32.gmra.mrb[98].mxu1 %v7496_v47 }
 0x825   :  { %v4229_v21 = vpop.permute.xlu0 %4228 }
 0x826   :  { %4298 = vst.msk [vmem:[#allocation4 + $0x210] sm:$0xff] %vm4264_vm9, %v4229_v21  ;;  %v6955_v49 = vpop.permute.xlu1 %6954 }
 0x827   :  { %7024 = vst.msk [vmem:[#allocation4 + $0x208] sm:$0xff] %vm3854_vm7, %v6955_v49 }
 0x829   :  { %v6141_v24 = vpop.permute.xlu0 %6140 }
 0x82a   :  { %6209 = vst.msk [vmem:[#allocation4 + $0x218] sm:$0xff] %vm3034_vm3, %v6141_v24  ;;  %v5252_v45 = vpop.permute.xlu1 %5251  ;;  %v7730_v11 = vpop.f32.mrb[86].mxu1  ;;  %vm7879_vm3 = vcmask 386304  }
 0x82b   :  { %5322 = vst.msk [vmem:[#allocation4 + $0x200] sm:$0xff] %vm5289_vm14, %v5252_v45  ;;  %v7731_v48 = vadd.f32 %v13634_v3, %v7730_v11  ;;  %v7732_v30 = vpop.f32.mrb[87].mxu1 }
 0x82d   :  { %v7799_v20 = vmax.f32 %v7731_v48, 0.0  ;;  %v4434_v25 = vpop.permute.xlu0 %4433 }
 0x82e   :  { %4503 = vst.msk [vmem:[#allocation4 + $0x210] sm:$0xff] %vm4469_vm10, %v4434_v25  ;;  %v7159_v15 = vpop.permute.xlu1 %7158 }
 0x82f   :  { %7833 = vst [vmem:[#allocation5 + $0xc8] sm:$0xff] %v7799_v20  ;;  %7228 = vst.msk [vmem:[#allocation4 + $0x208] sm:$0xff] %vm4059_vm8, %v7159_v15 }
 0x831   :  { %v6345_v13 = vpop.permute.xlu0 %6344 }
 0x832   :  { %6413 = vst.msk [vmem:[#allocation4 + $0x218] sm:$0xff] %vm3239_vm4, %v6345_v13  ;;  %v5457_v55 = vpop.permute.xlu1 %5456  ;;  %vm7892_vm4 = vcmask 517504  }
 0x833   :  { %5527 = vst.msk [vmem:[#allocation4 + $0x200] sm:$0xff] %vm5494_vm15, %v5457_v55 }
 0x835   :  { %v4639_v23 = vpop.permute.xlu0 %4638 }
 0x836   :  { %4708 = vst.msk [vmem:[#allocation4 + $0x210] sm:$0xff] %vm4674_vm11, %v4639_v23  ;;  %v7363_v16 = vpop.permute.xlu1 %7362  ;;  %v8049_v12 = vld [vmem:[#allocation5 + $0xcc] sm:$0x3]  ;;  %v8041_v18 = vld [vmem:[#allocation5 + $0xc8] sm:$0x3] }
 0x837   :  { %7432 = vst.msk [vmem:[#allocation4 + $0x208] sm:$0xff] %vm4264_vm9, %v7363_v16  ;;  %v8050_v39 = vmax.f32 %v8048_v6, %v8049_v12  ;;  %v8042_v56 = vmax.f32 %v8040_v43, %v8041_v18  ;;  %v8051_v52 = vld [vmem:[#allocation5 + $0xce] sm:$0x3]  ;;  %v8043_v59 = vld [vmem:[#allocation5 + $0xca] sm:$0x3] }
 0x839   :  { %v6549_v58 = vpop.permute.xlu0 %6548  ;;  %v8052_v28 = vmax.f32 %v8050_v39, %v8051_v52  ;;  %v8044_v29 = vmax.f32 %v8042_v56, %v8043_v59 }
 0x83a   :  { %6617 = vst.msk [vmem:[#allocation4 + $0x218] sm:$0xff] %vm3444_vm5, %v6549_v58  ;;  %v5662_v62 = vpop.permute.xlu1 %5661  ;;  %vm7905_vm5 = vcmask 648704  }
 0x83b   :  { %5732 = vst.msk [vmem:[#allocation4 + $0x200] sm:$0xff] %vm5699_vm0, %v5662_v62  ;;  %8054 = vrot.lane.b32.xlu0 %v8052_v28, %s9510_s22 }
 0x83c   :  { %8045 = vst.msk [vmem:[#allocation6 + $0x10] sm:$0x3] %vm7853_vm1, %v8044_v29 }
 0x83d   :  { %v4844_v38 = vpop.permute.xlu0 %4843 }
 0x83e   :  { %4913 = vst.msk [vmem:[#allocation4 + $0x210] sm:$0xff] %vm4879_vm12, %v4844_v38  ;;  %v5049_v40 = vpop.permute.xlu1 %5048  ;;  %v7499_v51 = vld [vmem:[#allocation4 + $0x208] sm:$0xff] }
 0x83f   :  { %5118 = vst.msk [vmem:[#allocation4 + $0x210] sm:$0xff] %vm5084_vm13, %v5049_v40  ;;  %7763 = vmatprep.mubr.f32.mxu1 %v7499_v51 }
 0x841   :  { %v6753_v35 = vpop.permute.xlu0 %6752 }
 0x842   :  { %6821 = vst.msk [vmem:[#allocation4 + $0x218] sm:$0xff] %vm3649_vm6, %v6753_v35  ;;  %v5254_v4 = vpop.permute.xlu1 %5253  ;;  %v7498_v31 = vld [vmem:[#allocation4 + $0x200] sm:$0xff]  ;;  %vm7918_vm6 = vcmask 779904  }
 0x843   :  { %5323 = vst.msk [vmem:[#allocation4 + $0x210] sm:$0xff] %vm5289_vm14, %v5254_v4  ;;  %7764 = vmatmul.mubr.f32.gmra.mrb[100].mxu1 %v7498_v31 }
 0x845   :  { %v6957_v10 = vpop.permute.xlu0 %6956 }
 0x846   :  { %7025 = vst.msk [vmem:[#allocation4 + $0x218] sm:$0xff] %vm3854_vm7, %v6957_v10  ;;  %v5459_v50 = vpop.permute.xlu1 %5458  ;;  %vm7931_vm7 = vcmask 911104   ;;  %v8190_v10 = vld [vmem:[%s13956_s2 + $0x280] sm:$0xff] }
 0x847   :  { %5528 = vst.msk [vmem:[#allocation4 + $0x210] sm:$0xff] %vm5494_vm15, %v5459_v50  ;;  %v8191_v50 = vld [vmem:[%s13956_s2 + $0x288] sm:$0xff] }
 0x849   :  { %v7161_v44 = vpop.permute.xlu0 %7160 }
 0x84a   :  { %7229 = vst.msk [vmem:[#allocation4 + $0x218] sm:$0xff] %vm4059_vm8, %v7161_v44  ;;  %v5664_v7 = vpop.permute.xlu1 %5663  ;;  %vm7944_vm8 = vcmask 1042304   ;;  %v8174_v44 = vld [vmem:[%s13956_s2 + $0x200] sm:$0xff] }
 0x84b   :  { %5733 = vst.msk [vmem:[#allocation4 + $0x210] sm:$0xff] %vm5699_vm0, %v5664_v7  ;;  %v9297_v7 = vpack.c.bf16 %v8191_v50, %v8190_v10 }
 0x84d   :  { %v7365_v34 = vpop.permute.xlu0 %7364  ;;  %9298 = vmatprep.subr.bf16.mxu1 %v9297_v7  ;;  %v8202_v7 = vld [vmem:[%s13956_s2 + $0x2e0] sm:$0xff] }
 0x84e   :  { %7433 = vst.msk [vmem:[#allocation4 + $0x218] sm:$0xff] %vm4264_vm9, %v7365_v34  ;;  %v7864_v27 = vpop.permute.xlu1 %7863  ;;  %v8175_v34 = vld [vmem:[%s13956_s2 + $0x208] sm:$0xff]  ;;  %vm9520_vm9 = vmmov 0  }
 0x84f   :  { %7867 = vst.msk [vmem:[#allocation6] sm:$0x3] %vm7866_vm2, %v7864_v27  ;;  %v9299_v27 = vpack.c.bf16 %v8175_v34, %v8174_v44  ;;  %v8203_v34 = vld [vmem:[%s13956_s2 + $0x2e8] sm:$0xff] }
 0x851   :  { %v7735_v19 = vpop.f32.mrb[88].mxu1  ;;  %v7963_v61 = vpop.permute.xlu0 %7962 }
 0x852   :  { %v7736_v33 = vadd.f32 %v13634_v3, %v7735_v19  ;;  %7965 = vst.msk [vmem:[#allocation6 + $0x8] sm:$0x3] %vm7866_vm2, %v7963_v61  ;;  %v7737_v42 = vpop.f32.mrb[89].mxu1  ;;  %v7877_v32 = vpop.permute.xlu1 %7876  ;;  %v7500_v26 = vld [vmem:[#allocation4 + $0x210] sm:$0xff] }
 0x853   :  { %7880 = vst.msk [vmem:[#allocation6] sm:$0x3] %vm7879_vm3, %v7877_v32 }
 0x854   :  { %v7800_v5 = vmax.f32 %v7736_v33, 0.0 }
 0x855   :  { %v7975_v1 = vpop.permute.xlu0 %7974  ;;  %v7501_v60 = vld [vmem:[#allocation4 + $0x218] sm:$0xff] }
 0x856   :  { %7834 = vst [vmem:[#allocation5 + $0xd0] sm:$0xff] %v7800_v5  ;;  %7977 = vst.msk [vmem:[#allocation6 + $0x8] sm:$0x3] %vm7879_vm3, %v7975_v1  ;;  %7768 = vmatprep.mubr.f32.mxu1 %v7501_v60  ;;  %v7890_v22 = vpop.permute.xlu1 %7889 }
 0x857   :  { %7893 = vst.msk [vmem:[#allocation6] sm:$0x3] %vm7892_vm4, %v7890_v22  ;;  %7769 = vmatmul.mubr.f32.gmra.mrb[102].mxu1 %v7500_v26 }
 0x859   :  { %v7987_v36 = vpop.permute.xlu0 %7986 }
 0x85a   :  { %7989 = vst.msk [vmem:[#allocation6 + $0x8] sm:$0x3] %vm7892_vm4, %v7987_v36  ;;  %v7903_v9 = vpop.permute.xlu1 %7902  ;;  %v8192_v36 = vld [vmem:[%s13956_s2 + $0x290] sm:$0xff] }
 0x85b   :  { %7906 = vst.msk [vmem:[#allocation6] sm:$0x3] %vm7905_vm5, %v7903_v9  ;;  %v9301_v2 = vpack.c.bf16 %v8193_v37, %v8192_v36  ;;  %v8177_v9 = vld [vmem:[%s13956_s2 + $0x218] sm:$0xff] }
 0x85d   :  { %v7999_v8 = vpop.permute.xlu0 %7998  ;;  %v8073_v47 = vld [vmem:[#allocation5 + $0xd4] sm:$0x3]  ;;  %v8061_v21 = vld [vmem:[#allocation5 + $0xd0] sm:$0x3]  ;;  %v8075_v11 = vld [vmem:[#allocation5 + $0xd6] sm:$0x3] }
 0x85e   :  { %8001 = vst.msk [vmem:[#allocation6 + $0x8] sm:$0x3] %vm7905_vm5, %v7999_v8  ;;  %v7916_v49 = vpop.permute.xlu1 %7915  ;;  %v8074_v24 = vmax.f32 %v8072_v63, %v8073_v47  ;;  %v8062_v45 = vmax.f32 %v8060_v14, %v8061_v21  ;;  %v8063_v48 = vld [vmem:[#allocation5 + $0xd2] sm:$0x3]  ;;  %v8194_v63 = vld [vmem:[%s13956_s2 + $0x2a0] sm:$0xff]  ;;  %v9303_v14 = vpack.c.bf16 %v8177_v9, %v8176_v41 }
 0x85f   :  { %7919 = vst.msk [vmem:[#allocation6] sm:$0x3] %vm7918_vm6, %v7916_v49  ;;  %v8195_v8 = vld [vmem:[%s13956_s2 + $0x2a8] sm:$0xff]  ;;  %v8178_v47 = vld [vmem:[%s13956_s2 + $0x220] sm:$0xff] }
 0x860   :  { %v8076_v30 = vmax.f32 %v8074_v24, %v8075_v11  ;;  %v8064_v20 = vmax.f32 %v8062_v45, %v8063_v48  ;;  %v8179_v21 = vld [vmem:[%s13956_s2 + $0x228] sm:$0xff]  ;;  %v9305_v24 = vpack.c.bf16 %v8195_v8, %v8194_v63  ;;  %v8196_v45 = vld [vmem:[%s13956_s2 + $0x2b0] sm:$0xff]  ;;  %v8197_v11 = vld [vmem:[%s13956_s2 + $0x2b8] sm:$0xff] }
 0x861   :  { %v8011_v25 = vpop.permute.xlu0 %8010 }
 0x862   :  { %8013 = vst.msk [vmem:[#allocation6 + $0x8] sm:$0x3] %vm7918_vm6, %v8011_v25  ;;  %8078 = vrot.lane.b32.xlu0 %v8076_v30, %s9509_s21  ;;  %8066 = vrot.lane.b32.xlu1 %v8064_v20, %s9505_s18  ;;  %v7929_v15 = vpop.permute.xlu1 %7928  ;;  %v9307_v25 = vpack.c.bf16 %v8179_v21, %v8178_v47 }
 0x863   :  { %7932 = vst.msk [vmem:[#allocation6] sm:$0x3] %vm7931_vm7, %v7929_v15  ;;  %v9309_v15 = vpack.c.bf16 %v8197_v11, %v8196_v45 }
 0x865   :  { %v8023_v13 = vpop.permute.xlu0 %8022 }
 0x866   :  { %8025 = vst.msk [vmem:[#allocation6 + $0x8] sm:$0x3] %vm7931_vm7, %v8023_v13  ;;  %v7942_v54 = vpop.permute.xlu1 %7941  ;;  %v8180_v13 = vld [vmem:[%s13956_s2 + $0x230] sm:$0xff] }
 0x867   :  { %7945 = vst.msk [vmem:[#allocation6] sm:$0x3] %vm7944_vm8, %v7942_v54  ;;  %v8181_v54 = vld [vmem:[%s13956_s2 + $0x238] sm:$0xff] }
 0x86e   :  { %v7740_v55 = vpop.f32.mrb[90].mxu1  ;;  %v8138_v12 = vld [vmem:[#allocation6] sm:$0xff] }
 0x86f   :  { %v7742_v53 = vpop.f32.mrb[91].mxu1 }
 0x890   :  { %v8035_v46 = vpop.permute.xlu0 %8034 }
 0x891   :  { %8037 = vst.msk [vmem:[#allocation6 + $0x8] sm:$0x3] %vm7944_vm8, %v8035_v46  ;;  %v8198_v46 = vld [vmem:[%s13956_s2 + $0x2c0] sm:$0xff] }
 0x895   :  { %v7745_v57 = vpop.f32.mrb[92].mxu1 }
 0x896   :  { %v7746_v23 = vadd.f32 %v13634_v3, %v7745_v57  ;;  %v7747_v6 = vpop.f32.mrb[93].mxu1  ;;  %v8199_v57 = vld [vmem:[%s13956_s2 + $0x2c8] sm:$0xff] }
 0x898   :  { %v7802_v43 = vmax.f32 %v7746_v23, 0.0  ;;  %v8139_v16 = vld [vmem:[#allocation6 + $0x8] sm:$0xff] }
 0x899   :  { %8275 = vmatprep.mubr.f32.mxu1 %v8139_v16 }
 0x89a   :  { %7836 = vst [vmem:[#allocation5 + $0xe0] sm:$0xff] %v7802_v43  ;;  %8276 = vmatmul.mubr.f32.vlgmr.msra.gmra.mrb[104].mxu1 %v8138_v12  ;;  %v9311_v43 = vpack.c.bf16 %v8181_v54, %v8180_v13  ;;  %v8352_v13 = vld [vmem:[%s13956_s2 + $0x300] sm:$0xff]  ;;  %v8353_v54 = vld [vmem:[%s13956_s2 + $0x308] sm:$0xff] }
 0x89b   :  { %9300 = vmatpush3.bf16.msra.mxu1 %v9299_v27  ;;  %v8186_v27 = vld [vmem:[%s13956_s2 + $0x260] sm:$0xff] }
 0x89c   :  { %9302 = vmatprep.subr.bf16.mxu1 %v9301_v2 }
 0x89f   :  { %9304 = vmatpush3.bf16.msra.mxu1 %v9303_v14 }
 0x8a0   :  { %9306 = vmatprep.subr.bf16.mxu1 %v9305_v24 }
 0x8a1   :  { %v8082_v19 = vld [vmem:[#allocation5 + $0xe0] sm:$0x3]  ;;  %v8083_v61 = vld [vmem:[#allocation5 + $0xe2] sm:$0x3]  ;;  %v8094_v49 = vld [vmem:[#allocation5 + $0xe4] sm:$0x3] }
 0x8a2   :  { %v8084_v33 = vmax.f32 %v8082_v19, %v8083_v61  ;;  %v8095_v48 = vld [vmem:[#allocation5 + $0xe6] sm:$0x3]  ;;  %v9321_v19 = vpack.c.bf16 %v8203_v34, %v8202_v7  ;;  %v8204_v61 = vld [vmem:[%s13956_s2 + $0x2f0] sm:$0xff] }
 0x8a3   :  { %v8096_v55 = vmax.f32 %v8094_v49, %v8095_v48  ;;  %9308 = vmatpush3.bf16.msra.mxu1 %v9307_v25 }
 0x8a4   :  { %9310 = vmatprep.subr.bf16.mxu1 %v9309_v15 }
 0x8a7   :  { %9312 = vmatpush3.bf16.msra.mxu1 %v9311_v43  ;;  %v8357_v43 = vld [vmem:[%s13956_s2 + $0x328] sm:$0xff] }
 0x8ad   :  { %v8055_v18 = vpop.permute.xlu0 %8054 }
 0x8ae   :  { %8057 = vst.msk [vmem:[#allocation6 + $0x10] sm:$0x3] %vm7866_vm2, %v8055_v18  ;;  %v8182_v18 = vld [vmem:[%s13956_s2 + $0x240] sm:$0xff] }
 0x8b2   :  { %v7750_v39 = vpop.f32.mrb[94].mxu1 }
 0x8b3   :  { %v7751_v56 = vadd.f32 %v13634_v3, %v7750_v39  ;;  %v7752_v52 = vpop.f32.mrb[95].mxu1  ;;  %v8183_v39 = vld [vmem:[%s13956_s2 + $0x248] sm:$0xff] }
 0x8b5   :  { %v7803_v59 = vmax.f32 %v7751_v56, 0.0  ;;  %v8200_v56 = vld [vmem:[%s13956_s2 + $0x2d0] sm:$0xff] }
 0x8b7   :  { %7837 = vst [vmem:[#allocation5 + $0xe8] sm:$0xff] %v7803_v59 }
 0x8be   :  { %v8106_v30 = vld [vmem:[#allocation5 + $0xe8] sm:$0x3]  ;;  %v8107_v20 = vld [vmem:[#allocation5 + $0xea] sm:$0x3] }
 0x8bf   :  { %v8108_v53 = vmax.f32 %v8106_v30, %v8107_v20 }
 0x8d4   :  { %v8079_v58 = vpop.permute.xlu0 %8078  ;;  %v8067_v28 = vpop.permute.xlu1 %8066 }
 0x8d5   :  { %8069 = vst.msk [vmem:[#allocation6 + $0x10] sm:$0x3] %vm7879_vm3, %v8067_v28  ;;  %v8201_v28 = vld [vmem:[%s13956_s2 + $0x2d8] sm:$0xff] }
 0x8d6   :  { %8081 = vst.msk [vmem:[#allocation6 + $0x10] sm:$0x3] %vm7892_vm4, %v8079_v58  ;;  %v9313_v58 = vpack.c.bf16 %v8199_v57, %v8198_v46  ;;  %v8355_v46 = vld [vmem:[%s13956_s2 + $0x318] sm:$0xff] }
 0x8d8   :  { %9314 = vmatprep.subr.bf16.mxu1 %v9313_v58  ;;  %v8362_v58 = vld [vmem:[%s13956_s2 + $0x350] sm:$0xff] }
 0x8d9   :  { %v7755_v29 = vpop.f32.mrb[96].mxu1 }
 0x8da   :  { %v7756_v62 = vadd.f32 %v13634_v3, %v7755_v29  ;;  %v7757_v38 = vpop.f32.mrb[97].mxu1 }
 0x8db   :  { %v9315_v38 = vpack.c.bf16 %v8183_v39, %v8182_v18  ;;  %v8359_v18 = vld [vmem:[%s13956_s2 + $0x338] sm:$0xff] }
 0x8dc   :  { %v7804_v40 = vmax.f32 %v7756_v62, 0.0 }
 0x8dd   :  { %9316 = vmatpush3.bf16.msra.mxu1 %v9315_v38  ;;  %v8365_v38 = vld [vmem:[%s13956_s2 + $0x368] sm:$0xff] }
 0x8de   :  { %7838 = vst [vmem:[#allocation5 + $0xf0] sm:$0xff] %v7804_v40  ;;  %v9317_v40 = vpack.c.bf16 %v8201_v28, %v8200_v56  ;;  %v8360_v56 = vld [vmem:[%s13956_s2 + $0x340] sm:$0xff]  ;;  %v8363_v28 = vld [vmem:[%s13956_s2 + $0x358] sm:$0xff] }
 0x8e0   :  { %9318 = vmatprep.subr.bf16.mxu1 %v9317_v40  ;;  %v8366_v40 = vld [vmem:[%s13956_s2 + $0x370] sm:$0xff] }
 0x8f6   :  { %v7760_v51 = vpop.f32.mrb[98].mxu1 }
 0x8f7   :  { %v7761_v35 = vadd.f32 %v13634_v3, %v7760_v51  ;;  %v7762_v4 = vpop.f32.mrb[99].mxu1  ;;  %v8184_v51 = vld [vmem:[%s13956_s2 + $0x250] sm:$0xff] }
 0x8f9   :  { %v7805_v31 = vmax.f32 %v7761_v35, 0.0  ;;  %v8185_v35 = vld [vmem:[%s13956_s2 + $0x258] sm:$0xff] }
 0x8fb   :  { %7839 = vst [vmem:[#allocation5 + $0xf8] sm:$0xff] %v7805_v31  ;;  %v9319_v31 = vpack.c.bf16 %v8185_v35, %v8184_v51  ;;  %v8367_v35 = vld [vmem:[%s13956_s2 + $0x378] sm:$0xff] }
 0x8fd   :  { %9320 = vmatpush3.bf16.msra.mxu1 %v9319_v31  ;;  %v9351_v31 = vpack.c.bf16 %v8367_v35, %v8366_v40 }
 0x8fe   :  { %9322 = vmatprep.subr.bf16.mxu1 %v9321_v19  ;;  %v8445_v19 = vld [vmem:[%s13956_s2 + $0x388] sm:$0xff] }
 0x902   :  { %v8085_v42 = vld [vmem:[#allocation5 + $0xfc] sm:$0x3]  ;;  %v8087_v5 = vld [vmem:[#allocation5 + $0xfe] sm:$0x3] }
 0x903   :  { %v8086_v32 = vmax.f32 %v8084_v33, %v8085_v42  ;;  %v8205_v33 = vld [vmem:[%s13956_s2 + $0x2f8] sm:$0xff] }
 0x905   :  { %v8088_v1 = vmax.f32 %v8086_v32, %v8087_v5  ;;  %v9325_v32 = vpack.c.bf16 %v8205_v33, %v8204_v61  ;;  %v8188_v5 = vld [vmem:[%s13956_s2 + $0x270] sm:$0xff] }
 0x907   :  { %8090 = vrot.lane.b32.xlu1 %v8088_v1, %s9507_s20  ;;  %v8189_v1 = vld [vmem:[%s13956_s2 + $0x278] sm:$0xff] }
 0x908   :  { %v9327_v36 = vpack.c.bf16 %v8189_v1, %v8188_v5  ;;  %v8448_v1 = vld [vmem:[%s13956_s2 + $0x3a0] sm:$0xff] }
 0x916   :  { %v7765_v60 = vpop.f32.mrb[100].mxu1 }
 0x917   :  { %v7766_v22 = vadd.f32 %v13634_v3, %v7765_v60  ;;  %v7767_v26 = vpop.f32.mrb[101].mxu1  ;;  %v8118_v60 = vld [vmem:[#allocation5 + $0xec] sm:$0x3] }
 0x918   :  { %v8131_v26 = vld [vmem:[#allocation5 + $0xf2] sm:$0x3] }
 0x919   :  { %v7806_v17 = vmax.f32 %v7766_v22, 0.0  ;;  %v8130_v22 = vld [vmem:[#allocation5 + $0xf0] sm:$0x3] }
 0x91a   :  { %v8132_v37 = vmax.f32 %v8130_v22, %v8131_v26  ;;  %v8450_v26 = vld [vmem:[%s13956_s2 + $0x3b0] sm:$0xff] }
 0x91b   :  { %7840 = vst [vmem:[#allocation5 + $0x100] sm:$0xff] %v7806_v17  ;;  %v8119_v17 = vld [vmem:[#allocation5 + $0xee] sm:$0x3] }
 0x91c   :  { %v8120_v2 = vmax.f32 %v8118_v60, %v8119_v17  ;;  %v8449_v60 = vld [vmem:[%s13956_s2 + $0x3a8] sm:$0xff]  ;;  %v8451_v17 = vld [vmem:[%s13956_s2 + $0x3b8] sm:$0xff] }
 0x91d   :  { %v9360_v22 = vpack.c.bf16 %v8449_v60, %v8448_v1 }
 0x922   :  { %v8097_v23 = vld [vmem:[#allocation5 + $0x100] sm:$0x3]  ;;  %v8109_v6 = vld [vmem:[#allocation5 + $0x104] sm:$0x3]  ;;  %v8099_v52 = vld [vmem:[#allocation5 + $0x102] sm:$0x3] }
 0x923   :  { %v8098_v16 = vmax.f32 %v8096_v55, %v8097_v23  ;;  %v8110_v12 = vmax.f32 %v8108_v53, %v8109_v6  ;;  %v8111_v59 = vld [vmem:[#allocation5 + $0x106] sm:$0x3]  ;;  %v9330_v55 = vpack.c.bf16 %v8353_v54, %v8352_v13  ;;  %v8354_v53 = vld [vmem:[%s13956_s2 + $0x310] sm:$0xff]  ;;  %v8356_v6 = vld [vmem:[%s13956_s2 + $0x320] sm:$0xff] }
 0x924   :  { %v9333_v23 = vpack.c.bf16 %v8355_v46, %v8354_v53 }
 0x925   :  { %v8100_v29 = vmax.f32 %v8098_v16, %v8099_v52  ;;  %v8112_v62 = vmax.f32 %v8110_v12, %v8111_v59  ;;  %v9336_v16 = vpack.c.bf16 %v8357_v43, %v8356_v6  ;;  %v8358_v12 = vld [vmem:[%s13956_s2 + $0x330] sm:$0xff]  ;;  %v8361_v52 = vld [vmem:[%s13956_s2 + $0x348] sm:$0xff] }
 0x926   :  { %v9339_v39 = vpack.c.bf16 %v8359_v18, %v8358_v12  ;;  %v9342_v59 = vpack.c.bf16 %v8361_v52, %v8360_v56 }
 0x927   :  { %8102 = vrot.lane.b32.xlu0 %v8100_v29, %s9512_s24  ;;  %8114 = vrot.lane.b32.xlu1 %v8112_v62, %s9515_s27  ;;  %v9345_v29 = vpack.c.bf16 %v8363_v28, %v8362_v58  ;;  %v8364_v62 = vld [vmem:[%s13956_s2 + $0x360] sm:$0xff] }
 0x928   :  { %v9348_v51 = vpack.c.bf16 %v8365_v38, %v8364_v62 }
 0x92a   :  { %v7770_v4 = vpop.f32.mrb[102].mxu1 }
 0x92b   :  { %v7771_v10 = vadd.f32 %v13634_v3, %v7770_v4  ;;  %v7772_v50 = vpop.f32.mrb[103].mxu1  ;;  %v8187_v3 = vld [vmem:[%s13956_s2 + $0x268] sm:$0xff] }
 0x92c   :  { %v9323_v42 = vpack.c.bf16 %v8187_v3, %v8186_v27  ;;  %v9502_v4 = vld [vmem:[#allocation3 + $0x188] sm:$0xff]  ;;  %v8444_v27 = vld [vmem:[%s13956_s2 + $0x380] sm:$0xff] }
 0x92d   :  { %v7807_v44 = vmax.f32 %v7771_v10, 0.0  ;;  %v8740_v10 = vld [vmem:[%s13956_s2 + $0x402] ss:$0 sm:$0xff]  ;;  %v9354_v61 = vpack.c.bf16 %v8445_v19, %v8444_v27 }
 0x92e   :  { %9324 = vmatpush3.bf16.msra.mxu1 %v9323_v42  ;;  %v8446_v42 = vld [vmem:[%s13956_s2 + $0x390] sm:$0xff] }
 0x92f   :  { %7841 = vst [vmem:[#allocation5 + $0x108] sm:$0xff] %v7807_v44  ;;  %9326 = vmatprep.subr.bf16.mxu1 %v9325_v32  ;;  %v8447_v32 = vld [vmem:[%s13956_s2 + $0x398] sm:$0xff] }
 0x930   :  { %v9357_v5 = vpack.c.bf16 %v8447_v32, %v8446_v42 }
 0x932   :  { %9328 = vmatpush3.bf16.msra.mxu1 %v9327_v36  ;;  %v9363_v36 = vpack.c.bf16 %v8451_v17, %v8450_v26 }
 0x933   :  { %9329 = vmatprep.subr.bf16.mxu1 %v9518_v0 }
 0x936   :  { %v8133_v41 = vld [vmem:[#allocation5 + $0x10c] sm:$0x3]  ;;  %v8121_v9 = vld [vmem:[#allocation5 + $0x108] sm:$0x3]  ;;  %v8135_v8 = vld [vmem:[#allocation5 + $0x10e] sm:$0x3] }
 0x937   :  { %v8134_v63 = vmax.f32 %v8132_v37, %v8133_v41  ;;  %v8122_v14 = vmax.f32 %v8120_v2, %v8121_v9  ;;  %v8123_v47 = vld [vmem:[#allocation5 + $0x10a] sm:$0x3]  ;;  %v8453_v2 = vld [vmem:[%s13956_s2 + $0x3c8] sm:$0xff]  ;;  %v8454_v9 = vld [vmem:[%s13956_s2 + $0x3d0] sm:$0xff] }
 0x938   :  { %v8452_v37 = vld [vmem:[%s13956_s2 + $0x3c0] sm:$0xff] }
 0x939   :  { %v8136_v21 = vmax.f32 %v8134_v63, %v8135_v8  ;;  %v8124_v49 = vmax.f32 %v8122_v14, %v8123_v47  ;;  %v9366_v41 = vpack.c.bf16 %v8453_v2, %v8452_v37  ;;  %v8455_v63 = vld [vmem:[%s13956_s2 + $0x3d8] sm:$0xff]  ;;  %v8456_v8 = vld [vmem:[%s13956_s2 + $0x3e0] sm:$0xff]  ;;  %v8457_v47 = vld [vmem:[%s13956_s2 + $0x3e8] sm:$0xff] }
 0x93a   :  { %v9369_v14 = vpack.c.bf16 %v8455_v63, %v8454_v9 }
 0x93b   :  { %8137 = vst.msk [vmem:[#allocation6 + $0x18] sm:$0x3] %vm7853_vm1, %v8136_v21  ;;  %8126 = vrot.lane.b32.xlu0 %v8124_v49, %s9517_s29  ;;  %v9372_v21 = vpack.c.bf16 %v8457_v47, %v8456_v8  ;;  %v8458_v49 = vld [vmem:[%s13956_s2 + $0x3f0] sm:$0xff] }
 0x942   :  { %v8141_v24 = vld [vmem:[#allocation6 + $0x18] sm:$0xff] }
 0x943   :  { %8345 = vmatprep.mubr.f32.mxu1 %v8141_v24  ;;  %v8459_v24 = vld [vmem:[%s13956_s2 + $0x3f8] sm:$0xff] }
 0x96d   :  { %v8875_v45 = vpop.f32.mrb[104].mxu1 }
 0x96e   :  { %v8876_v11 = vpop.f32.mrb[105].mxu1 }
 0x96f   :  { %v8877_v48 = vadd.f32 %v8876_v11, %v8875_v45  ;;  %v9375_v45 = vpack.c.bf16 %v8459_v24, %v8458_v49  ;;  %v8741_v11 = vld [vmem:[%s13956_s2 + $0x403] ss:$0 sm:$0xff] }
 0x971   :  { %v8278_v7 = vadd.f32 %v8877_v48, %v8740_v10 }
 0x979   :  { %v8091_v30 = vpop.permute.xlu1 %8090 }
 0x97a   :  { %8093 = vst.msk [vmem:[#allocation6 + $0x10] sm:$0x3] %vm7905_vm5, %v8091_v30 }
 0x999   :  { %v8103_v20 = vpop.permute.xlu0 %8102  ;;  %v8115_v25 = vpop.permute.xlu1 %8114 }
 0x99a   :  { %8105 = vst.msk [vmem:[#allocation6 + $0x10] sm:$0x3] %vm7918_vm6, %v8103_v20 }
 0x99b   :  { %8117 = vst.msk [vmem:[#allocation6 + $0x10] sm:$0x3] %vm7931_vm7, %v8115_v25 }
 0x9ad   :  { %v8127_v15 = vpop.permute.xlu0 %8126 }
 0x9ae   :  { %8129 = vst.msk [vmem:[#allocation6 + $0x10] sm:$0x3] %vm7944_vm8, %v8127_v15 }
 0x9b5   :  { %v8140_v57 = vld [vmem:[#allocation6 + $0x10] sm:$0xff] }
 0x9b6   :  { %8346 = vmatmul.mubr.f32.vlgmr.msra.gmra.mrb[106].mxu1 %v8140_v57 }
 0x9b7   :  { %9331 = vmatpush3.bf16.msra.mxu1 %v9330_v55  ;;  %9179 = vmatprep.mubr.msk.f32.mxu1 %vm9520_vm9, %v9502_v4 }
 0x9b8   :  { %9332 = vmatprep.subr.bf16.mxu1 %v9518_v0 }
 0x9bb   :  { %9334 = vmatpush3.bf16.msra.mxu1 %v9333_v23 }
 0x9bc   :  { %9335 = vmatprep.subr.bf16.mxu1 %v9518_v0 }
 0x9bf   :  { %9337 = vmatpush3.bf16.msra.mxu1 %v9336_v16 }
 0x9c0   :  { %9338 = vmatprep.subr.bf16.mxu1 %v9518_v0 }
 0x9c3   :  { %9340 = vmatpush3.bf16.msra.mxu1 %v9339_v39 }
 0x9c4   :  { %9341 = vmatprep.subr.bf16.mxu1 %v9518_v0 }
 0x9c7   :  { %9343 = vmatpush3.bf16.msra.mxu1 %v9342_v59 }
 0x9c8   :  { %9344 = vmatprep.subr.bf16.mxu1 %v9518_v0 }
 0x9cb   :  { %9346 = vmatpush3.bf16.msra.mxu1 %v9345_v29 }
 0x9cc   :  { %9347 = vmatprep.subr.bf16.mxu1 %v9518_v0 }
 0x9cf   :  { %9349 = vmatpush3.bf16.msra.mxu1 %v9348_v51 }
 0x9d0   :  { %9350 = vmatprep.subr.bf16.mxu1 %v9518_v0 }
 0x9d3   :  { %9352 = vmatpush3.bf16.msra.mxu1 %v9351_v31 }
 0x9d4   :  { %9353 = vmatprep.subr.bf16.mxu1 %v9518_v0 }
 0xa89   :  { %v8910_v50 = vpop.f32.mrb[106].mxu1 }
 0xa8a   :  { %v8911_v44 = vpop.f32.mrb[107].mxu1 }
 0xa8b   :  { %v8912_v34 = vadd.f32 %v8911_v44, %v8910_v50 }
 0xa8d   :  { %v8348_v3 = vadd.f32 %v8912_v34, %v8278_v7 }
 0xa8f   :  { %v8351_v33 = vmax.f32 %v8348_v3, 0.0 }
 0xa91   :  { %9180 = vmatmul.mubr.f32.vlgmr.msra.gmra.mrb[108].mxu1 %v8351_v33 }
 0xa92   :  { %9355 = vmatpush3.bf16.msra.mxu1 %v9354_v61  ;;  %9214 = vmatprep.mubr.msk.f32.mxu1 %vm9520_vm9, %v9502_v4 }
 0xa93   :  { %9356 = vmatprep.subr.bf16.mxu1 %v9518_v0 }
 0xa96   :  { %9358 = vmatpush3.bf16.msra.mxu1 %v9357_v5 }
 0xa97   :  { %9359 = vmatprep.subr.bf16.mxu1 %v9518_v0 }
 0xa9a   :  { %9361 = vmatpush3.bf16.msra.mxu1 %v9360_v22 }
 0xa9b   :  { %9362 = vmatprep.subr.bf16.mxu1 %v9518_v0 }
 0xa9e   :  { %9364 = vmatpush3.bf16.msra.mxu1 %v9363_v36 }
 0xa9f   :  { %9365 = vmatprep.subr.bf16.mxu1 %v9518_v0 }
 0xaa2   :  { %9367 = vmatpush3.bf16.msra.mxu1 %v9366_v41 }
 0xaa3   :  { %9368 = vmatprep.subr.bf16.mxu1 %v9518_v0 }
 0xaa6   :  { %9370 = vmatpush3.bf16.msra.mxu1 %v9369_v14 }
 0xaa7   :  { %9371 = vmatprep.subr.bf16.mxu1 %v9518_v0 }
 0xaaa   :  { %9373 = vmatpush3.bf16.msra.mxu1 %v9372_v21 }
 0xaab   :  { %9374 = vmatprep.subr.bf16.mxu1 %v9518_v0  ;;  %v8742_v0 = vld [vmem:[%s13956_s2 + $0x404] ss:$0 sm:$0xff] }
 0xaae   :  { %9376 = vmatpush3.bf16.msra.mxu1 %v9375_v45 }
 0xb64   :  { %v8439_v48 = vpop.f32.mrb[108].mxu1 }
 0xb65   :  { %v8440_v30 = vadd.f32 %v8741_v11, %v8439_v48  ;;  %v9181_v20 = vpop.f32.mrb[109].mxu1 }
 0xb67   :  { %v8443_v25 = vmax.f32 %v8440_v30, 0.0 }
 0xb69   :  { %9215 = vmatmul.mubr.f32.vlgmr.msra.gmra.mrb[110].mxu1 %v8443_v25 }
 0xc3c   :  { %v8531_v15 = vpop.f32.mrb[110].mxu1 }
 0xc3d   :  { %v8532_v13 = vadd.f32 %v8742_v0, %v8531_v15  ;;  %v9216_v54 = vpop.f32.mrb[111].mxu1 }
 0xc3f   :  { %8535 = vst [vmem:[%s13957_s3] sm:$0xff] %v8532_v13 }

</bundles_post_ra>
